<compile_context>
chip_gen: v5e
topology: v5e:2x2
jax: 0.10.0
libtpu: 0.0.40
codegen_flags: <defaults>
</compile_context>

<pallas_src>
import functools

import jax
import jax.numpy as jnp
from jax import lax
from jax.experimental import pallas as pl
from jax.experimental.pallas import tpu as pltpu


_BLOCK_B = 8                      # images per grid step (multiple of 8)
_VMEM_LIMIT = 32 * 1024 * 1024


# ----------------------------- Pallas kernels ------------------------------ #

def _conv1_pool_kernel(p_ref, w_ref, b_ref, o_ref, *,
                       g, n_groups, group_pad, n_rows):
    """conv1 (im2col matmul) + bias + relu + 2x2 maxpool for g images.

    p_ref : (1, g*n_groups*group_pad, K) bf16 phase-ordered patches.
            Per image, rows are grouped by 2x2-pool phase; the first n_rows of
            each group are real conv-output positions, the rest zero padding.
    w_ref : (K, C) bf16 conv weight.   b_ref: (1, C) f32 bias.
    o_ref : (g, n_rows, C) bf16 pooled output, rows in (ho, wo) order.
    """
    p = p_ref[0]                                            # (g*800, 25)
    y = jnp.dot(p, w_ref[...], preferred_element_type=jnp.float32)
    y = jnp.maximum(y + b_ref[...], 0.0)                    # bias + relu
    rows_per_img = n_groups * group_pad
    for gg in range(g):                                     # static unroll
        base = gg * rows_per_img
        pooled = y[base:base + n_rows]
        for ph in range(1, n_groups):                       # 2x2 max over phases
            off = base + ph * group_pad
            pooled = jnp.maximum(pooled, y[off:off + n_rows])
        o_ref[gg] = pooled.astype(o_ref.dtype)


def _conv2_fc_kernel(p_ref, w2_ref, b2_ref, wf1_ref, bf1_ref,
                     wf2_ref, bf2_ref, wf3_ref, bf3_ref, o_ref, *,
                     g, n_groups, group_pad, n_rows):
    """conv2 + bias + relu + 2x2 maxpool + fc1 + fc2 + fc3 for g images.

    p_ref : (1, n_groups*group_pad*g, K2) bf16 patches with row index
            (phase*group_pad + pos)*g + img  (pos < n_rows real, rest padding).
    o_ref : (g, 128) f32 logits (lanes >= 10 are zero padding).
    """
    p = p_ref[0]                                            # (128*g, 150)
    y = jnp.dot(p, w2_ref[...], preferred_element_type=jnp.float32)
    y = jnp.maximum(y + b2_ref[...], 0.0)                   # (128*g, 16)

    seg = n_rows * g
    pooled = y[0:seg]
    for ph in range(1, n_groups):                           # 2x2 max over phases
        off = ph * group_pad * g
        pooled = jnp.maximum(pooled, y[off:off + seg])      # (25*g, 16) f32

    # fc1: the K=400 contraction is split into 25 position-wise matmuls so the
    # (25*g, 16) pooled activation never needs an in-kernel flatten/relayout.
    w_fc1 = wf1_ref[...]                                    # (25, 16, 128) bf16
    h1 = jnp.dot(pooled[0:g].astype(jnp.bfloat16), w_fc1[0],
                 preferred_element_type=jnp.float32)
    for r in range(1, n_rows):
        lhs = pooled[r * g:(r + 1) * g].astype(jnp.bfloat16)
        h1 = h1 + jnp.dot(lhs, w_fc1[r], preferred_element_type=jnp.float32)
    h1 = h1 + bf1_ref[...]                                  # (g, 128)

    h2 = jnp.dot(h1.astype(jnp.bfloat16), wf2_ref[...],
                 preferred_element_type=jnp.float32) + bf2_ref[...]
    # fc3 kept in f32 (negligible cost) for accuracy margin; output padded to
    # 128 lanes so the final store is lane-dense.
    o_ref[...] = jnp.dot(h2, wf3_ref[...],
                         preferred_element_type=jnp.float32) + bf3_ref[...]


# ------------------------------ wrappers ----------------------------------- #

def conv1_pool(patches_blk, w, b, *, block_b, n_groups, group_pad, n_rows):
    nb, rows_blk, k = patches_blk.shape
    c = w.shape[1]
    kernel = functools.partial(_conv1_pool_kernel, g=block_b, n_groups=n_groups,
                               group_pad=group_pad, n_rows=n_rows)
    return pl.pallas_call(
        kernel,
        out_shape=jax.ShapeDtypeStruct((nb * block_b, n_rows, c), jnp.bfloat16),
        grid=(nb,),
        in_specs=[
            pl.BlockSpec((1, rows_blk, k), lambda i: (i, 0, 0)),
            pl.BlockSpec((k, c), lambda i: (0, 0)),      # weights resident
            pl.BlockSpec((1, c), lambda i: (0, 0)),
        ],
        out_specs=pl.BlockSpec((block_b, n_rows, c), lambda i: (i, 0, 0)),
        compiler_params=pltpu.CompilerParams(
            dimension_semantics=("parallel",),
            vmem_limit_bytes=_VMEM_LIMIT),
    )(patches_blk, w, b)


def conv2_fc(patches_blk, kp, *, block_b, n_groups, group_pad, n_rows):
    nb, rows_blk, k2 = patches_blk.shape
    kernel = functools.partial(_conv2_fc_kernel, g=block_b, n_groups=n_groups,
                               group_pad=group_pad, n_rows=n_rows)

    def _full(arr):
        nd = arr.ndim
        return pl.BlockSpec(arr.shape, lambda i, _nd=nd: (0,) * _nd)

    args = (patches_blk, kp["w2"], kp["b2"], kp["w_fc1"], kp["b_fc1"],
            kp["w_fc2"], kp["b_fc2"], kp["w_fc3"], kp["b_fc3"])
    in_specs = [pl.BlockSpec((1, rows_blk, k2), lambda i: (i, 0, 0))]
    in_specs += [_full(a) for a in args[1:]]

    return pl.pallas_call(
        kernel,
        out_shape=jax.ShapeDtypeStruct((nb * block_b, 128), jnp.float32),
        grid=(nb,),
        in_specs=in_specs,
        out_specs=pl.BlockSpec((block_b, 128), lambda i: (i, 0)),
        compiler_params=pltpu.CompilerParams(
            dimension_semantics=("parallel",),
            vmem_limit_bytes=_VMEM_LIMIT),
    )(*args)


# ------------------------------ JAX glue ----------------------------------- #

def _phase_ordered_patches(x_nhwc, *, k, out_hw, pool_hw, group_pad):
    """Phase-ordered im2col for a k x k VALID conv followed by 2x2 maxpool.

    x_nhwc: (B, H, W, C).  Returns (B, 4*group_pad, k*k*C): group g holds the
    conv-output positions whose 2x2-pool phase is g, rows in (ho, wo) order
    (first pool_hw**2 rows real, rest zero padding so group offsets are
    sublane-aligned).  K axis ordered (ki, kj, cin).
    """
    B, _, _, C = x_nhwc.shape
    taps = [x_nhwc[:, i:i + out_hw, j:j + out_hw, :]
            for i in range(k) for j in range(k)]
    pf = jnp.stack(taps, axis=3).reshape(B, out_hw, out_hw, k * k * C)
    rows, pad = pool_hw * pool_hw, group_pad - pool_hw * pool_hw
    groups = []
    for ph in range(2):
        for pw in range(2):
            grp = pf[:, ph::2, pw::2, :].reshape(B, rows, k * k * C)
            groups.append(jnp.pad(grp, ((0, 0), (0, pad), (0, 0))))
    return jnp.concatenate(groups, axis=1)


def init_params(key):
    """Deterministic synthetic parameters, PyTorch-shaped."""
    ks = jax.random.split(key, 10)
    def rnd(k, shape, fan_in):
        return jax.random.normal(k, shape, jnp.float32) / jnp.sqrt(fan_in)
    return {
        "conv1_w": rnd(ks[0], (6, 1, 5, 5), 25),      # (Cout, Cin, kh, kw)
        "conv1_b": rnd(ks[1], (6,), 25),
        "conv2_w": rnd(ks[2], (16, 6, 5, 5), 150),
        "conv2_b": rnd(ks[3], (16,), 150),
        "fc1_w":   rnd(ks[4], (120, 400), 400),       # PyTorch (out, in)
        "fc1_b":   rnd(ks[5], (120,), 400),
        "fc2_w":   rnd(ks[6], (84, 120), 120),
        "fc2_b":   rnd(ks[7], (84,), 120),
        "fc3_w":   rnd(ks[8], (10, 84), 84),
        "fc3_b":   rnd(ks[9], (10,), 84),
    }


def prepare_params(params):
    """One-time layout prep: PyTorch weights -> kernel-native matrices."""
    w1 = jnp.transpose(params["conv1_w"], (2, 3, 1, 0)).reshape(25, 6)
    b1 = params["conv1_b"].reshape(1, 6)
    w2 = jnp.transpose(params["conv2_w"], (2, 3, 1, 0)).reshape(150, 16)
    b2 = params["conv2_b"].reshape(1, 16)
    # fc1: PyTorch flattens the (16,5,5) activation as (c, h, w), i.e. input
    # index c*25 + r with r = h*5 + w.  Reorder to [r, c, n] so the kernel's 25
    # position-wise matmuls need no runtime transpose/flatten; pad N 120->128.
    w_fc1 = params["fc1_w"].reshape(120, 16, 25).transpose(2, 1, 0)    # (25,16,120)
    w_fc1 = jnp.pad(w_fc1, ((0, 0), (0, 0), (0, 8)))
    b_fc1 = jnp.pad(params["fc1_b"], (0, 8)).reshape(1, 128)
    w_fc2 = jnp.pad(params["fc2_w"].T, ((0, 8), (0, 44)))              # (128,128)
    b_fc2 = jnp.pad(params["fc2_b"], (0, 44)).reshape(1, 128)
    w_fc3 = jnp.pad(params["fc3_w"].T, ((0, 44), (0, 118)))            # (128,128)
    b_fc3 = jnp.pad(params["fc3_b"], (0, 118)).reshape(1, 128)
    return {
        "w1": w1.astype(jnp.bfloat16), "b1": b1,
        "w2": w2.astype(jnp.bfloat16), "b2": b2,
        "w_fc1": w_fc1.astype(jnp.bfloat16), "b_fc1": b_fc1,
        "w_fc2": w_fc2.astype(jnp.bfloat16), "b_fc2": b_fc2,
        "w_fc3": w_fc3, "b_fc3": b_fc3,            # fc3 kept f32
    }


@jax.jit
def model_m3_forward(x_nchw, kp):
    B = x_nchw.shape[0]
    G = _BLOCK_B
    Bp = ((B + G - 1) // G) * G
    nb = Bp // G

    xs = x_nchw[:, 0, :, :][..., None].astype(jnp.bfloat16)      # (B,32,32,1)
    if Bp != B:
        xs = jnp.pad(xs, ((0, Bp - B), (0, 0), (0, 0), (0, 0)))

    # conv1 (5x5, 1->6) + relu + maxpool(2):  32x32 -> 28x28 -> 14x14
    patches1 = _phase_ordered_patches(xs, k=5, out_hw=28, pool_hw=14,
                                      group_pad=200)             # (Bp,800,25) bf16
    patches1 = patches1.reshape(nb, G * 800, 25)                 # row=(img,phase,pos)
    pooled1 = conv1_pool(patches1, kp["w1"], kp["b1"], block_b=G,
                         n_groups=4, group_pad=200, n_rows=196)  # (Bp,196,6) bf16

    # conv2 (5x5, 6->16) + relu + maxpool(2) + fc1 + fc2 + fc3, fused.
    p1 = pooled1.reshape(Bp, 14, 14, 6)
    patches2 = _phase_ordered_patches(p1, k=5, out_hw=10, pool_hw=5,
                                      group_pad=32)              # (Bp,128,150) bf16
    # Reorder rows to (phase, pos, img-within-block) so the fused kernel's
    # pooling and per-position fc1 matmuls only need 8-aligned sublane slices.
    patches2 = patches2.reshape(nb, G, 128, 150).transpose(0, 2, 1, 3)
    patches2 = patches2.reshape(nb, 128 * G, 150)
    logits = conv2_fc(patches2, kp, block_b=G,
                      n_groups=4, group_pad=32, n_rows=25)       # (Bp,128) f32
    return logits[:B, :10]


# ----------------------- pure-JAX reference (check) ------------------------ #

@jax.jit
def reference_forward(x, params):
    y = lax.conv_general_dilated(x, params["conv1_w"], (1, 1), "VALID",
                                 dimension_numbers=("NCHW", "OIHW", "NCHW"))
    y = jax.nn.relu(y + params["conv1_b"].reshape(1, -1, 1, 1))
    y = lax.reduce_window(y, -jnp.inf, lax.max, (1, 1, 2, 2), (1, 1, 2, 2), "VALID")
    y = lax.conv_general_dilated(y, params["conv2_w"], (1, 1), "VALID",
                                 dimension_numbers=("NCHW", "OIHW", "NCHW"))
    y = jax.nn.relu(y + params["conv2_b"].reshape(1, -1, 1, 1))
    y = lax.reduce_window(y, -jnp.inf, lax.max, (1, 1, 2, 2), (1, 1, 2, 2), "VALID")
    y = y.reshape(y.shape[0], -1)
    y = y @ params["fc1_w"].T + params["fc1_b"]
    y = y @ params["fc2_w"].T + params["fc2_b"]
    return y @ params["fc3_w"].T + params["fc3_b"]


if __name__ == "__main__":
    key = jax.random.PRNGKey(0)
    k_x, k_p = jax.random.split(key)
    # fc1 expects 400 = 16*5*5 features => 32x32 single-channel input.
    x = jax.random.normal(k_x, (2, 1, 32, 32), jnp.float32)
    params = init_params(k_p)
    kp = prepare_params(params)

    out = model_m3_forward(x, kp)
    jax.block_until_ready(out)
    assert out.shape == (2, 10)
    assert bool(jnp.all(jnp.isfinite(out)))

    # Compare against a pure-JAX fp32 reference (bf16 operands give a small,
    # bounded deviation).
    ref = reference_forward(x, params)
    err = float(jnp.max(jnp.abs(out - ref)) / (jnp.max(jnp.abs(ref)) + 1e-6))
    assert err < 5e-2, f"mismatch vs reference: rel_err={err}"
    print("KERNEL_OK")
</pallas_src>

<mosaic_0001>
module attributes {stable_mosaic.version = 11 : i64} {
  func.func @_conv1_pool_kernel(%arg0: i32, %arg1: memref<1x6400x25xbf16, #tpu.memory_space<vmem>>, %arg2: memref<25x6xbf16, #tpu.memory_space<vmem>>, %arg3: memref<1x6xf32, #tpu.memory_space<vmem>>, %arg4: memref<8x196x6xbf16, #tpu.memory_space<vmem>>) attributes {dimension_semantics = [#tpu.dimension_semantics<parallel>], iteration_bounds = array<i64: 1>, scalar_prefetch = 0 : i64, scratch_operands = 0 : i64, tpu.core_type = #tpu.core_type<tc>, window_params = [{transform_indices = @transform_0, window_bounds = array<i64: 1, 6400, 25>}, {pipeline_mode = #tpu.pipeline_mode<synchronous>, transform_indices = @transform_1, window_bounds = array<i64: 25, 6>}, {pipeline_mode = #tpu.pipeline_mode<synchronous>, transform_indices = @transform_2, window_bounds = array<i64: 1, 6>}, {transform_indices = @transform_3, window_bounds = array<i64: 8, 196, 6>}]} {
    %c0 = arith.constant 0 : index
    %c0_0 = arith.constant 0 : index
    %c0_1 = arith.constant 0 : index
    %0 = vector.load %arg1[%c0, %c0_0, %c0_1] : memref<1x6400x25xbf16, #tpu.memory_space<vmem>>, vector<1x6400x25xbf16>
    %1 = vector.shape_cast %0 : vector<1x6400x25xbf16> to vector<6400x25xbf16>
    %c0_2 = arith.constant 0 : index
    %c0_3 = arith.constant 0 : index
    %2 = vector.load %arg2[%c0_2, %c0_3] : memref<25x6xbf16, #tpu.memory_space<vmem>>, vector<25x6xbf16>
    %cst = arith.constant dense<0.000000e+00> : vector<6400x6xf32>
    %3 = tpu.matmul %1, %2, %cst {dimension_numbers = #tpu.dot_dimension_numbers<[1], [0], [0], [1], [0, 0, 1, 1], [], []>} : vector<6400x25xbf16>, vector<25x6xbf16>, vector<6400x6xf32> -> vector<6400x6xf32>
    %c0_4 = arith.constant 0 : index
    %c0_5 = arith.constant 0 : index
    %4 = vector.load %arg3[%c0_4, %c0_5] : memref<1x6xf32, #tpu.memory_space<vmem>>, vector<1x6xf32>
    %5 = vector.broadcast %4 : vector<1x6xf32> to vector<6400x6xf32>
    %6 = arith.addf %3, %5 : vector<6400x6xf32>
    %cst_6 = arith.constant 0.000000e+00 : f32
    %7 = vector.broadcast %cst_6 : f32 to vector<6400x6xf32>
    %8 = arith.maximumf %6, %7 : vector<6400x6xf32>
    %9 = vector.extract_strided_slice %8 {offsets = [0, 0], sizes = [196, 6], strides = [1, 1]} : vector<6400x6xf32> to vector<196x6xf32>
    %10 = vector.extract_strided_slice %8 {offsets = [200, 0], sizes = [196, 6], strides = [1, 1]} : vector<6400x6xf32> to vector<196x6xf32>
    %11 = arith.maximumf %9, %10 : vector<196x6xf32>
    %12 = vector.extract_strided_slice %8 {offsets = [400, 0], sizes = [196, 6], strides = [1, 1]} : vector<6400x6xf32> to vector<196x6xf32>
    %13 = arith.maximumf %11, %12 : vector<196x6xf32>
    %14 = vector.extract_strided_slice %8 {offsets = [600, 0], sizes = [196, 6], strides = [1, 1]} : vector<6400x6xf32> to vector<196x6xf32>
    %15 = arith.maximumf %13, %14 : vector<196x6xf32>
    %16 = arith.truncf %15 : vector<196x6xf32> to vector<196x6xbf16>
    %c0_7 = arith.constant 0 : index
    %c0_8 = arith.constant 0 : index
    %c0_9 = arith.constant 0 : index
    %17 = vector.load %arg4[%c0_7, %c0_8, %c0_9] : memref<8x196x6xbf16, #tpu.memory_space<vmem>>, vector<1x196x6xbf16>
    %18 = vector.shape_cast %17 : vector<1x196x6xbf16> to vector<196x6xbf16>
    %19 = vector.shape_cast %16 : vector<196x6xbf16> to vector<1x196x6xbf16>
    tpu.vector_store %arg4[%c0_7, %c0_8, %c0_9], %19 {strides = array<i32>} : memref<8x196x6xbf16, #tpu.memory_space<vmem>>, vector<1x196x6xbf16>,
    %20 = vector.extract_strided_slice %8 {offsets = [800, 0], sizes = [196, 6], strides = [1, 1]} : vector<6400x6xf32> to vector<196x6xf32>
    %21 = vector.extract_strided_slice %8 {offsets = [1000, 0], sizes = [196, 6], strides = [1, 1]} : vector<6400x6xf32> to vector<196x6xf32>
    %22 = arith.maximumf %20, %21 : vector<196x6xf32>
    %23 = vector.extract_strided_slice %8 {offsets = [1200, 0], sizes = [196, 6], strides = [1, 1]} : vector<6400x6xf32> to vector<196x6xf32>
    %24 = arith.maximumf %22, %23 : vector<196x6xf32>
    %25 = vector.extract_strided_slice %8 {offsets = [1400, 0], sizes = [196, 6], strides = [1, 1]} : vector<6400x6xf32> to vector<196x6xf32>
    %26 = arith.maximumf %24, %25 : vector<196x6xf32>
    %27 = arith.truncf %26 : vector<196x6xf32> to vector<196x6xbf16>
    %c1 = arith.constant 1 : index
    %c0_10 = arith.constant 0 : index
    %c0_11 = arith.constant 0 : index
    %28 = vector.load %arg4[%c1, %c0_10, %c0_11] : memref<8x196x6xbf16, #tpu.memory_space<vmem>>, vector<1x196x6xbf16>
    %29 = vector.shape_cast %28 : vector<1x196x6xbf16> to vector<196x6xbf16>
    %30 = vector.shape_cast %27 : vector<196x6xbf16> to vector<1x196x6xbf16>
    tpu.vector_store %arg4[%c1, %c0_10, %c0_11], %30 {strides = array<i32>} : memref<8x196x6xbf16, #tpu.memory_space<vmem>>, vector<1x196x6xbf16>,
    %31 = vector.extract_strided_slice %8 {offsets = [1600, 0], sizes = [196, 6], strides = [1, 1]} : vector<6400x6xf32> to vector<196x6xf32>
    %32 = vector.extract_strided_slice %8 {offsets = [1800, 0], sizes = [196, 6], strides = [1, 1]} : vector<6400x6xf32> to vector<196x6xf32>
    %33 = arith.maximumf %31, %32 : vector<196x6xf32>
    %34 = vector.extract_strided_slice %8 {offsets = [2000, 0], sizes = [196, 6], strides = [1, 1]} : vector<6400x6xf32> to vector<196x6xf32>
    %35 = arith.maximumf %33, %34 : vector<196x6xf32>
    %36 = vector.extract_strided_slice %8 {offsets = [2200, 0], sizes = [196, 6], strides = [1, 1]} : vector<6400x6xf32> to vector<196x6xf32>
    %37 = arith.maximumf %35, %36 : vector<196x6xf32>
    %38 = arith.truncf %37 : vector<196x6xf32> to vector<196x6xbf16>
    %c2 = arith.constant 2 : index
    %c0_12 = arith.constant 0 : index
    %c0_13 = arith.constant 0 : index
    %39 = vector.load %arg4[%c2, %c0_12, %c0_13] : memref<8x196x6xbf16, #tpu.memory_space<vmem>>, vector<1x196x6xbf16>
    %40 = vector.shape_cast %39 : vector<1x196x6xbf16> to vector<196x6xbf16>
    %41 = vector.shape_cast %38 : vector<196x6xbf16> to vector<1x196x6xbf16>
    tpu.vector_store %arg4[%c2, %c0_12, %c0_13], %41 {strides = array<i32>} : memref<8x196x6xbf16, #tpu.memory_space<vmem>>, vector<1x196x6xbf16>,
    %42 = vector.extract_strided_slice %8 {offsets = [2400, 0], sizes = [196, 6], strides = [1, 1]} : vector<6400x6xf32> to vector<196x6xf32>
    %43 = vector.extract_strided_slice %8 {offsets = [2600, 0], sizes = [196, 6], strides = [1, 1]} : vector<6400x6xf32> to vector<196x6xf32>
    %44 = arith.maximumf %42, %43 : vector<196x6xf32>
    %45 = vector.extract_strided_slice %8 {offsets = [2800, 0], sizes = [196, 6], strides = [1, 1]} : vector<6400x6xf32> to vector<196x6xf32>
    %46 = arith.maximumf %44, %45 : vector<196x6xf32>
    %47 = vector.extract_strided_slice %8 {offsets = [3000, 0], sizes = [196, 6], strides = [1, 1]} : vector<6400x6xf32> to vector<196x6xf32>
    %48 = arith.maximumf %46, %47 : vector<196x6xf32>
    %49 = arith.truncf %48 : vector<196x6xf32> to vector<196x6xbf16>
    %c3 = arith.constant 3 : index
    %c0_14 = arith.constant 0 : index
    %c0_15 = arith.constant 0 : index
    %50 = vector.load %arg4[%c3, %c0_14, %c0_15] : memref<8x196x6xbf16, #tpu.memory_space<vmem>>, vector<1x196x6xbf16>
    %51 = vector.shape_cast %50 : vector<1x196x6xbf16> to vector<196x6xbf16>
    %52 = vector.shape_cast %49 : vector<196x6xbf16> to vector<1x196x6xbf16>
    tpu.vector_store %arg4[%c3, %c0_14, %c0_15], %52 {strides = array<i32>} : memref<8x196x6xbf16, #tpu.memory_space<vmem>>, vector<1x196x6xbf16>,
    %53 = vector.extract_strided_slice %8 {offsets = [3200, 0], sizes = [196, 6], strides = [1, 1]} : vector<6400x6xf32> to vector<196x6xf32>
    %54 = vector.extract_strided_slice %8 {offsets = [3400, 0], sizes = [196, 6], strides = [1, 1]} : vector<6400x6xf32> to vector<196x6xf32>
    %55 = arith.maximumf %53, %54 : vector<196x6xf32>
    %56 = vector.extract_strided_slice %8 {offsets = [3600, 0], sizes = [196, 6], strides = [1, 1]} : vector<6400x6xf32> to vector<196x6xf32>
    %57 = arith.maximumf %55, %56 : vector<196x6xf32>
    %58 = vector.extract_strided_slice %8 {offsets = [3800, 0], sizes = [196, 6], strides = [1, 1]} : vector<6400x6xf32> to vector<196x6xf32>
    %59 = arith.maximumf %57, %58 : vector<196x6xf32>
    %60 = arith.truncf %59 : vector<196x6xf32> to vector<196x6xbf16>
    %c4 = arith.constant 4 : index
    %c0_16 = arith.constant 0 : index
    %c0_17 = arith.constant 0 : index
    %61 = vector.load %arg4[%c4, %c0_16, %c0_17] : memref<8x196x6xbf16, #tpu.memory_space<vmem>>, vector<1x196x6xbf16>
    %62 = vector.shape_cast %61 : vector<1x196x6xbf16> to vector<196x6xbf16>
    %63 = vector.shape_cast %60 : vector<196x6xbf16> to vector<1x196x6xbf16>
    tpu.vector_store %arg4[%c4, %c0_16, %c0_17], %63 {strides = array<i32>} : memref<8x196x6xbf16, #tpu.memory_space<vmem>>, vector<1x196x6xbf16>,
    %64 = vector.extract_strided_slice %8 {offsets = [4000, 0], sizes = [196, 6], strides = [1, 1]} : vector<6400x6xf32> to vector<196x6xf32>
    %65 = vector.extract_strided_slice %8 {offsets = [4200, 0], sizes = [196, 6], strides = [1, 1]} : vector<6400x6xf32> to vector<196x6xf32>
    %66 = arith.maximumf %64, %65 : vector<196x6xf32>
    %67 = vector.extract_strided_slice %8 {offsets = [4400, 0], sizes = [196, 6], strides = [1, 1]} : vector<6400x6xf32> to vector<196x6xf32>
    %68 = arith.maximumf %66, %67 : vector<196x6xf32>
    %69 = vector.extract_strided_slice %8 {offsets = [4600, 0], sizes = [196, 6], strides = [1, 1]} : vector<6400x6xf32> to vector<196x6xf32>
    %70 = arith.maximumf %68, %69 : vector<196x6xf32>
    %71 = arith.truncf %70 : vector<196x6xf32> to vector<196x6xbf16>
    %c5 = arith.constant 5 : index
    %c0_18 = arith.constant 0 : index
    %c0_19 = arith.constant 0 : index
    %72 = vector.load %arg4[%c5, %c0_18, %c0_19] : memref<8x196x6xbf16, #tpu.memory_space<vmem>>, vector<1x196x6xbf16>
    %73 = vector.shape_cast %72 : vector<1x196x6xbf16> to vector<196x6xbf16>
    %74 = vector.shape_cast %71 : vector<196x6xbf16> to vector<1x196x6xbf16>
    tpu.vector_store %arg4[%c5, %c0_18, %c0_19], %74 {strides = array<i32>} : memref<8x196x6xbf16, #tpu.memory_space<vmem>>, vector<1x196x6xbf16>,
    %75 = vector.extract_strided_slice %8 {offsets = [4800, 0], sizes = [196, 6], strides = [1, 1]} : vector<6400x6xf32> to vector<196x6xf32>
    %76 = vector.extract_strided_slice %8 {offsets = [5000, 0], sizes = [196, 6], strides = [1, 1]} : vector<6400x6xf32> to vector<196x6xf32>
    %77 = arith.maximumf %75, %76 : vector<196x6xf32>
    %78 = vector.extract_strided_slice %8 {offsets = [5200, 0], sizes = [196, 6], strides = [1, 1]} : vector<6400x6xf32> to vector<196x6xf32>
    %79 = arith.maximumf %77, %78 : vector<196x6xf32>
    %80 = vector.extract_strided_slice %8 {offsets = [5400, 0], sizes = [196, 6], strides = [1, 1]} : vector<6400x6xf32> to vector<196x6xf32>
    %81 = arith.maximumf %79, %80 : vector<196x6xf32>
    %82 = arith.truncf %81 : vector<196x6xf32> to vector<196x6xbf16>
    %c6 = arith.constant 6 : index
    %c0_20 = arith.constant 0 : index
    %c0_21 = arith.constant 0 : index
    %83 = vector.load %arg4[%c6, %c0_20, %c0_21] : memref<8x196x6xbf16, #tpu.memory_space<vmem>>, vector<1x196x6xbf16>
    %84 = vector.shape_cast %83 : vector<1x196x6xbf16> to vector<196x6xbf16>
    %85 = vector.shape_cast %82 : vector<196x6xbf16> to vector<1x196x6xbf16>
    tpu.vector_store %arg4[%c6, %c0_20, %c0_21], %85 {strides = array<i32>} : memref<8x196x6xbf16, #tpu.memory_space<vmem>>, vector<1x196x6xbf16>,
    %86 = vector.extract_strided_slice %8 {offsets = [5600, 0], sizes = [196, 6], strides = [1, 1]} : vector<6400x6xf32> to vector<196x6xf32>
    %87 = vector.extract_strided_slice %8 {offsets = [5800, 0], sizes = [196, 6], strides = [1, 1]} : vector<6400x6xf32> to vector<196x6xf32>
    %88 = arith.maximumf %86, %87 : vector<196x6xf32>
    %89 = vector.extract_strided_slice %8 {offsets = [6000, 0], sizes = [196, 6], strides = [1, 1]} : vector<6400x6xf32> to vector<196x6xf32>
    %90 = arith.maximumf %88, %89 : vector<196x6xf32>
    %91 = vector.extract_strided_slice %8 {offsets = [6200, 0], sizes = [196, 6], strides = [1, 1]} : vector<6400x6xf32> to vector<196x6xf32>
    %92 = arith.maximumf %90, %91 : vector<196x6xf32>
    %93 = arith.truncf %92 : vector<196x6xf32> to vector<196x6xbf16>
    %c7 = arith.constant 7 : index
    %c0_22 = arith.constant 0 : index
    %c0_23 = arith.constant 0 : index
    %94 = vector.load %arg4[%c7, %c0_22, %c0_23] : memref<8x196x6xbf16, #tpu.memory_space<vmem>>, vector<1x196x6xbf16>
    %95 = vector.shape_cast %94 : vector<1x196x6xbf16> to vector<196x6xbf16>
    %96 = vector.shape_cast %93 : vector<196x6xbf16> to vector<1x196x6xbf16>
    tpu.vector_store %arg4[%c7, %c0_22, %c0_23], %96 {strides = array<i32>} : memref<8x196x6xbf16, #tpu.memory_space<vmem>>, vector<1x196x6xbf16>,
    return
  }
  func.func @transform_0(%arg0: i32) -> (i32, i32, i32) {
    %c0_i32 = arith.constant 0 : i32
    %c0_i32_0 = arith.constant 0 : i32
    %c0_i32_1 = arith.constant 0 : i32
    return %arg0, %c0_i32, %c0_i32_0 : i32, i32, i32
  }
  func.func @transform_1(%arg0: i32) -> (i32, i32) {
    %c0_i32 = arith.constant 0 : i32
    %c0_i32_0 = arith.constant 0 : i32
    %c0_i32_1 = arith.constant 0 : i32
    return %c0_i32, %c0_i32_0 : i32, i32
  }
  func.func @transform_2(%arg0: i32) -> (i32, i32) {
    %c0_i32 = arith.constant 0 : i32
    %c0_i32_0 = arith.constant 0 : i32
    %c0_i32_1 = arith.constant 0 : i32
    return %c0_i32, %c0_i32_0 : i32, i32
  }
  func.func @transform_3(%arg0: i32) -> (i32, i32, i32) {
    %c0_i32 = arith.constant 0 : i32
    %c0_i32_0 = arith.constant 0 : i32
    %c0_i32_1 = arith.constant 0 : i32
    return %arg0, %c0_i32, %c0_i32_0 : i32, i32, i32
  }
}

module attributes {stable_mosaic.version = 11 : i64} {
  func.func @_conv2_fc_kernel(%arg0: i32, %arg1: memref<1x1024x150xbf16, #tpu.memory_space<vmem>>, %arg2: memref<150x16xbf16, #tpu.memory_space<vmem>>, %arg3: memref<1x16xf32, #tpu.memory_space<vmem>>, %arg4: memref<25x16x128xbf16, #tpu.memory_space<vmem>>, %arg5: memref<1x128xf32, #tpu.memory_space<vmem>>, %arg6: memref<128x128xbf16, #tpu.memory_space<vmem>>, %arg7: memref<1x128xf32, #tpu.memory_space<vmem>>, %arg8: memref<128x128xf32, #tpu.memory_space<vmem>>, %arg9: memref<1x128xf32, #tpu.memory_space<vmem>>, %arg10: memref<8x128xf32, #tpu.memory_space<vmem>>) attributes {dimension_semantics = [#tpu.dimension_semantics<parallel>], iteration_bounds = array<i64: 1>, scalar_prefetch = 0 : i64, scratch_operands = 0 : i64, tpu.core_type = #tpu.core_type<tc>, window_params = [{transform_indices = @transform_0, window_bounds = array<i64: 1, 1024, 150>}, {pipeline_mode = #tpu.pipeline_mode<synchronous>, transform_indices = @transform_1, window_bounds = array<i64: 150, 16>}, {pipeline_mode = #tpu.pipeline_mode<synchronous>, transform_indices = @transform_2, window_bounds = array<i64: 1, 16>}, {pipeline_mode = #tpu.pipeline_mode<synchronous>, transform_indices = @transform_3, window_bounds = array<i64: 25, 16, 128>}, {pipeline_mode = #tpu.pipeline_mode<synchronous>, transform_indices = @transform_4, window_bounds = array<i64: 1, 128>}, {pipeline_mode = #tpu.pipeline_mode<synchronous>, transform_indices = @transform_5, window_bounds = array<i64: 128, 128>}, {pipeline_mode = #tpu.pipeline_mode<synchronous>, transform_indices = @transform_6, window_bounds = array<i64: 1, 128>}, {pipeline_mode = #tpu.pipeline_mode<synchronous>, transform_indices = @transform_7, window_bounds = array<i64: 128, 128>}, {pipeline_mode = #tpu.pipeline_mode<synchronous>, transform_indices = @transform_8, window_bounds = array<i64: 1, 128>}, {transform_indices = @transform_9, window_bounds = array<i64: 8, 128>}]} {
    %c0 = arith.constant 0 : index
    %c0_0 = arith.constant 0 : index
    %c0_1 = arith.constant 0 : index
    %0 = vector.load %arg1[%c0, %c0_0, %c0_1] : memref<1x1024x150xbf16, #tpu.memory_space<vmem>>, vector<1x1024x150xbf16>
    %1 = vector.shape_cast %0 : vector<1x1024x150xbf16> to vector<1024x150xbf16>
    %c0_2 = arith.constant 0 : index
    %c0_3 = arith.constant 0 : index
    %2 = vector.load %arg2[%c0_2, %c0_3] : memref<150x16xbf16, #tpu.memory_space<vmem>>, vector<150x16xbf16>
    %cst = arith.constant dense<0.000000e+00> : vector<1024x16xf32>
    %3 = tpu.matmul %1, %2, %cst {dimension_numbers = #tpu.dot_dimension_numbers<[1], [0], [0], [1], [0, 0, 1, 1], [], []>} : vector<1024x150xbf16>, vector<150x16xbf16>, vector<1024x16xf32> -> vector<1024x16xf32>
    %c0_4 = arith.constant 0 : index
    %c0_5 = arith.constant 0 : index
    %4 = vector.load %arg3[%c0_4, %c0_5] : memref<1x16xf32, #tpu.memory_space<vmem>>, vector<1x16xf32>
    %5 = vector.broadcast %4 : vector<1x16xf32> to vector<1024x16xf32>
    %6 = arith.addf %3, %5 : vector<1024x16xf32>
    %cst_6 = arith.constant 0.000000e+00 : f32
    %7 = vector.broadcast %cst_6 : f32 to vector<1024x16xf32>
    %8 = arith.maximumf %6, %7 : vector<1024x16xf32>
    %9 = vector.extract_strided_slice %8 {offsets = [0, 0], sizes = [200, 16], strides = [1, 1]} : vector<1024x16xf32> to vector<200x16xf32>
    %10 = vector.extract_strided_slice %8 {offsets = [256, 0], sizes = [200, 16], strides = [1, 1]} : vector<1024x16xf32> to vector<200x16xf32>
    %11 = arith.maximumf %9, %10 : vector<200x16xf32>
    %12 = vector.extract_strided_slice %8 {offsets = [512, 0], sizes = [200, 16], strides = [1, 1]} : vector<1024x16xf32> to vector<200x16xf32>
    %13 = arith.maximumf %11, %12 : vector<200x16xf32>
    %14 = vector.extract_strided_slice %8 {offsets = [768, 0], sizes = [200, 16], strides = [1, 1]} : vector<1024x16xf32> to vector<200x16xf32>
    %15 = arith.maximumf %13, %14 : vector<200x16xf32>
    %c0_7 = arith.constant 0 : index
    %c0_8 = arith.constant 0 : index
    %c0_9 = arith.constant 0 : index
    %16 = vector.load %arg4[%c0_7, %c0_8, %c0_9] : memref<25x16x128xbf16, #tpu.memory_space<vmem>>, vector<25x16x128xbf16>
    %17 = vector.extract_strided_slice %15 {offsets = [0, 0], sizes = [8, 16], strides = [1, 1]} : vector<200x16xf32> to vector<8x16xf32>
    %18 = arith.truncf %17 : vector<8x16xf32> to vector<8x16xbf16>
    %19 = vector.extract_strided_slice %16 {offsets = [0, 0, 0], sizes = [1, 16, 128], strides = [1, 1, 1]} : vector<25x16x128xbf16> to vector<1x16x128xbf16>
    %20 = vector.shape_cast %19 : vector<1x16x128xbf16> to vector<16x128xbf16>
    %cst_10 = arith.constant dense<0.000000e+00> : vector<8x128xf32>
    %21 = tpu.matmul %18, %20, %cst_10 {dimension_numbers = #tpu.dot_dimension_numbers<[1], [0], [0], [1], [0, 0, 1, 1], [], []>} : vector<8x16xbf16>, vector<16x128xbf16>, vector<8x128xf32> -> vector<8x128xf32>
    %22 = vector.extract_strided_slice %15 {offsets = [8, 0], sizes = [8, 16], strides = [1, 1]} : vector<200x16xf32> to vector<8x16xf32>
    %23 = arith.truncf %22 : vector<8x16xf32> to vector<8x16xbf16>
    %24 = vector.extract_strided_slice %16 {offsets = [1, 0, 0], sizes = [1, 16, 128], strides = [1, 1, 1]} : vector<25x16x128xbf16> to vector<1x16x128xbf16>
    %25 = vector.shape_cast %24 : vector<1x16x128xbf16> to vector<16x128xbf16>
    %cst_11 = arith.constant dense<0.000000e+00> : vector<8x128xf32>
    %26 = tpu.matmul %23, %25, %cst_11 {dimension_numbers = #tpu.dot_dimension_numbers<[1], [0], [0], [1], [0, 0, 1, 1], [], []>} : vector<8x16xbf16>, vector<16x128xbf16>, vector<8x128xf32> -> vector<8x128xf32>
    %27 = arith.addf %21, %26 : vector<8x128xf32>
    %28 = vector.extract_strided_slice %15 {offsets = [16, 0], sizes = [8, 16], strides = [1, 1]} : vector<200x16xf32> to vector<8x16xf32>
    %29 = arith.truncf %28 : vector<8x16xf32> to vector<8x16xbf16>
    %30 = vector.extract_strided_slice %16 {offsets = [2, 0, 0], sizes = [1, 16, 128], strides = [1, 1, 1]} : vector<25x16x128xbf16> to vector<1x16x128xbf16>
    %31 = vector.shape_cast %30 : vector<1x16x128xbf16> to vector<16x128xbf16>
    %cst_12 = arith.constant dense<0.000000e+00> : vector<8x128xf32>
    %32 = tpu.matmul %29, %31, %cst_12 {dimension_numbers = #tpu.dot_dimension_numbers<[1], [0], [0], [1], [0, 0, 1, 1], [], []>} : vector<8x16xbf16>, vector<16x128xbf16>, vector<8x128xf32> -> vector<8x128xf32>
    %33 = arith.addf %27, %32 : vector<8x128xf32>
    %34 = vector.extract_strided_slice %15 {offsets = [24, 0], sizes = [8, 16], strides = [1, 1]} : vector<200x16xf32> to vector<8x16xf32>
    %35 = arith.truncf %34 : vector<8x16xf32> to vector<8x16xbf16>
    %36 = vector.extract_strided_slice %16 {offsets = [3, 0, 0], sizes = [1, 16, 128], strides = [1, 1, 1]} : vector<25x16x128xbf16> to vector<1x16x128xbf16>
    %37 = vector.shape_cast %36 : vector<1x16x128xbf16> to vector<16x128xbf16>
    %cst_13 = arith.constant dense<0.000000e+00> : vector<8x128xf32>
    %38 = tpu.matmul %35, %37, %cst_13 {dimension_numbers = #tpu.dot_dimension_numbers<[1], [0], [0], [1], [0, 0, 1, 1], [], []>} : vector<8x16xbf16>, vector<16x128xbf16>, vector<8x128xf32> -> vector<8x128xf32>
    %39 = arith.addf %33, %38 : vector<8x128xf32>
    %40 = vector.extract_strided_slice %15 {offsets = [32, 0], sizes = [8, 16], strides = [1, 1]} : vector<200x16xf32> to vector<8x16xf32>
    %41 = arith.truncf %40 : vector<8x16xf32> to vector<8x16xbf16>
    %42 = vector.extract_strided_slice %16 {offsets = [4, 0, 0], sizes = [1, 16, 128], strides = [1, 1, 1]} : vector<25x16x128xbf16> to vector<1x16x128xbf16>
    %43 = vector.shape_cast %42 : vector<1x16x128xbf16> to vector<16x128xbf16>
    %cst_14 = arith.constant dense<0.000000e+00> : vector<8x128xf32>
    %44 = tpu.matmul %41, %43, %cst_14 {dimension_numbers = #tpu.dot_dimension_numbers<[1], [0], [0], [1], [0, 0, 1, 1], [], []>} : vector<8x16xbf16>, vector<16x128xbf16>, vector<8x128xf32> -> vector<8x128xf32>
    %45 = arith.addf %39, %44 : vector<8x128xf32>
    %46 = vector.extract_strided_slice %15 {offsets = [40, 0], sizes = [8, 16], strides = [1, 1]} : vector<200x16xf32> to vector<8x16xf32>
    %47 = arith.truncf %46 : vector<8x16xf32> to vector<8x16xbf16>
    %48 = vector.extract_strided_slice %16 {offsets = [5, 0, 0], sizes = [1, 16, 128], strides = [1, 1, 1]} : vector<25x16x128xbf16> to vector<1x16x128xbf16>
    %49 = vector.shape_cast %48 : vector<1x16x128xbf16> to vector<16x128xbf16>
    %cst_15 = arith.constant dense<0.000000e+00> : vector<8x128xf32>
    %50 = tpu.matmul %47, %49, %cst_15 {dimension_numbers = #tpu.dot_dimension_numbers<[1], [0], [0], [1], [0, 0, 1, 1], [], []>} : vector<8x16xbf16>, vector<16x128xbf16>, vector<8x128xf32> -> vector<8x128xf32>
    %51 = arith.addf %45, %50 : vector<8x128xf32>
    %52 = vector.extract_strided_slice %15 {offsets = [48, 0], sizes = [8, 16], strides = [1, 1]} : vector<200x16xf32> to vector<8x16xf32>
    %53 = arith.truncf %52 : vector<8x16xf32> to vector<8x16xbf16>
    %54 = vector.extract_strided_slice %16 {offsets = [6, 0, 0], sizes = [1, 16, 128], strides = [1, 1, 1]} : vector<25x16x128xbf16> to vector<1x16x128xbf16>
    %55 = vector.shape_cast %54 : vector<1x16x128xbf16> to vector<16x128xbf16>
    %cst_16 = arith.constant dense<0.000000e+00> : vector<8x128xf32>
    %56 = tpu.matmul %53, %55, %cst_16 {dimension_numbers = #tpu.dot_dimension_numbers<[1], [0], [0], [1], [0, 0, 1, 1], [], []>} : vector<8x16xbf16>, vector<16x128xbf16>, vector<8x128xf32> -> vector<8x128xf32>
    %57 = arith.addf %51, %56 : vector<8x128xf32>
    %58 = vector.extract_strided_slice %15 {offsets = [56, 0], sizes = [8, 16], strides = [1, 1]} : vector<200x16xf32> to vector<8x16xf32>
    %59 = arith.truncf %58 : vector<8x16xf32> to vector<8x16xbf16>
    %60 = vector.extract_strided_slice %16 {offsets = [7, 0, 0], sizes = [1, 16, 128], strides = [1, 1, 1]} : vector<25x16x128xbf16> to vector<1x16x128xbf16>
    %61 = vector.shape_cast %60 : vector<1x16x128xbf16> to vector<16x128xbf16>
    %cst_17 = arith.constant dense<0.000000e+00> : vector<8x128xf32>
    %62 = tpu.matmul %59, %61, %cst_17 {dimension_numbers = #tpu.dot_dimension_numbers<[1], [0], [0], [1], [0, 0, 1, 1], [], []>} : vector<8x16xbf16>, vector<16x128xbf16>, vector<8x128xf32> -> vector<8x128xf32>
    %63 = arith.addf %57, %62 : vector<8x128xf32>
    %64 = vector.extract_strided_slice %15 {offsets = [64, 0], sizes = [8, 16], strides = [1, 1]} : vector<200x16xf32> to vector<8x16xf32>
    %65 = arith.truncf %64 : vector<8x16xf32> to vector<8x16xbf16>
    %66 = vector.extract_strided_slice %16 {offsets = [8, 0, 0], sizes = [1, 16, 128], strides = [1, 1, 1]} : vector<25x16x128xbf16> to vector<1x16x128xbf16>
    %67 = vector.shape_cast %66 : vector<1x16x128xbf16> to vector<16x128xbf16>
    %cst_18 = arith.constant dense<0.000000e+00> : vector<8x128xf32>
    %68 = tpu.matmul %65, %67, %cst_18 {dimension_numbers = #tpu.dot_dimension_numbers<[1], [0], [0], [1], [0, 0, 1, 1], [], []>} : vector<8x16xbf16>, vector<16x128xbf16>, vector<8x128xf32> -> vector<8x128xf32>
    %69 = arith.addf %63, %68 : vector<8x128xf32>
    %70 = vector.extract_strided_slice %15 {offsets = [72, 0], sizes = [8, 16], strides = [1, 1]} : vector<200x16xf32> to vector<8x16xf32>
    %71 = arith.truncf %70 : vector<8x16xf32> to vector<8x16xbf16>
    %72 = vector.extract_strided_slice %16 {offsets = [9, 0, 0], sizes = [1, 16, 128], strides = [1, 1, 1]} : vector<25x16x128xbf16> to vector<1x16x128xbf16>
    %73 = vector.shape_cast %72 : vector<1x16x128xbf16> to vector<16x128xbf16>
    %cst_19 = arith.constant dense<0.000000e+00> : vector<8x128xf32>
    %74 = tpu.matmul %71, %73, %cst_19 {dimension_numbers = #tpu.dot_dimension_numbers<[1], [0], [0], [1], [0, 0, 1, 1], [], []>} : vector<8x16xbf16>, vector<16x128xbf16>, vector<8x128xf32> -> vector<8x128xf32>
    %75 = arith.addf %69, %74 : vector<8x128xf32>
    %76 = vector.extract_strided_slice %15 {offsets = [80, 0], sizes = [8, 16], strides = [1, 1]} : vector<200x16xf32> to vector<8x16xf32>
    %77 = arith.truncf %76 : vector<8x16xf32> to vector<8x16xbf16>
    %78 = vector.extract_strided_slice %16 {offsets = [10, 0, 0], sizes = [1, 16, 128], strides = [1, 1, 1]} : vector<25x16x128xbf16> to vector<1x16x128xbf16>
    %79 = vector.shape_cast %78 : vector<1x16x128xbf16> to vector<16x128xbf16>
    %cst_20 = arith.constant dense<0.000000e+00> : vector<8x128xf32>
    %80 = tpu.matmul %77, %79, %cst_20 {dimension_numbers = #tpu.dot_dimension_numbers<[1], [0], [0], [1], [0, 0, 1, 1], [], []>} : vector<8x16xbf16>, vector<16x128xbf16>, vector<8x128xf32> -> vector<8x128xf32>
    %81 = arith.addf %75, %80 : vector<8x128xf32>
    %82 = vector.extract_strided_slice %15 {offsets = [88, 0], sizes = [8, 16], strides = [1, 1]} : vector<200x16xf32> to vector<8x16xf32>
    %83 = arith.truncf %82 : vector<8x16xf32> to vector<8x16xbf16>
    %84 = vector.extract_strided_slice %16 {offsets = [11, 0, 0], sizes = [1, 16, 128], strides = [1, 1, 1]} : vector<25x16x128xbf16> to vector<1x16x128xbf16>
    %85 = vector.shape_cast %84 : vector<1x16x128xbf16> to vector<16x128xbf16>
    %cst_21 = arith.constant dense<0.000000e+00> : vector<8x128xf32>
    %86 = tpu.matmul %83, %85, %cst_21 {dimension_numbers = #tpu.dot_dimension_numbers<[1], [0], [0], [1], [0, 0, 1, 1], [], []>} : vector<8x16xbf16>, vector<16x128xbf16>, vector<8x128xf32> -> vector<8x128xf32>
    %87 = arith.addf %81, %86 : vector<8x128xf32>
    %88 = vector.extract_strided_slice %15 {offsets = [96, 0], sizes = [8, 16], strides = [1, 1]} : vector<200x16xf32> to vector<8x16xf32>
    %89 = arith.truncf %88 : vector<8x16xf32> to vector<8x16xbf16>
    %90 = vector.extract_strided_slice %16 {offsets = [12, 0, 0], sizes = [1, 16, 128], strides = [1, 1, 1]} : vector<25x16x128xbf16> to vector<1x16x128xbf16>
    %91 = vector.shape_cast %90 : vector<1x16x128xbf16> to vector<16x128xbf16>
    %cst_22 = arith.constant dense<0.000000e+00> : vector<8x128xf32>
    %92 = tpu.matmul %89, %91, %cst_22 {dimension_numbers = #tpu.dot_dimension_numbers<[1], [0], [0], [1], [0, 0, 1, 1], [], []>} : vector<8x16xbf16>, vector<16x128xbf16>, vector<8x128xf32> -> vector<8x128xf32>
    %93 = arith.addf %87, %92 : vector<8x128xf32>
    %94 = vector.extract_strided_slice %15 {offsets = [104, 0], sizes = [8, 16], strides = [1, 1]} : vector<200x16xf32> to vector<8x16xf32>
    %95 = arith.truncf %94 : vector<8x16xf32> to vector<8x16xbf16>
    %96 = vector.extract_strided_slice %16 {offsets = [13, 0, 0], sizes = [1, 16, 128], strides = [1, 1, 1]} : vector<25x16x128xbf16> to vector<1x16x128xbf16>
    %97 = vector.shape_cast %96 : vector<1x16x128xbf16> to vector<16x128xbf16>
    %cst_23 = arith.constant dense<0.000000e+00> : vector<8x128xf32>
    %98 = tpu.matmul %95, %97, %cst_23 {dimension_numbers = #tpu.dot_dimension_numbers<[1], [0], [0], [1], [0, 0, 1, 1], [], []>} : vector<8x16xbf16>, vector<16x128xbf16>, vector<8x128xf32> -> vector<8x128xf32>
    %99 = arith.addf %93, %98 : vector<8x128xf32>
    %100 = vector.extract_strided_slice %15 {offsets = [112, 0], sizes = [8, 16], strides = [1, 1]} : vector<200x16xf32> to vector<8x16xf32>
    %101 = arith.truncf %100 : vector<8x16xf32> to vector<8x16xbf16>
    %102 = vector.extract_strided_slice %16 {offsets = [14, 0, 0], sizes = [1, 16, 128], strides = [1, 1, 1]} : vector<25x16x128xbf16> to vector<1x16x128xbf16>
    %103 = vector.shape_cast %102 : vector<1x16x128xbf16> to vector<16x128xbf16>
    %cst_24 = arith.constant dense<0.000000e+00> : vector<8x128xf32>
    %104 = tpu.matmul %101, %103, %cst_24 {dimension_numbers = #tpu.dot_dimension_numbers<[1], [0], [0], [1], [0, 0, 1, 1], [], []>} : vector<8x16xbf16>, vector<16x128xbf16>, vector<8x128xf32> -> vector<8x128xf32>
    %105 = arith.addf %99, %104 : vector<8x128xf32>
    %106 = vector.extract_strided_slice %15 {offsets = [120, 0], sizes = [8, 16], strides = [1, 1]} : vector<200x16xf32> to vector<8x16xf32>
    %107 = arith.truncf %106 : vector<8x16xf32> to vector<8x16xbf16>
    %108 = vector.extract_strided_slice %16 {offsets = [15, 0, 0], sizes = [1, 16, 128], strides = [1, 1, 1]} : vector<25x16x128xbf16> to vector<1x16x128xbf16>
    %109 = vector.shape_cast %108 : vector<1x16x128xbf16> to vector<16x128xbf16>
    %cst_25 = arith.constant dense<0.000000e+00> : vector<8x128xf32>
    %110 = tpu.matmul %107, %109, %cst_25 {dimension_numbers = #tpu.dot_dimension_numbers<[1], [0], [0], [1], [0, 0, 1, 1], [], []>} : vector<8x16xbf16>, vector<16x128xbf16>, vector<8x128xf32> -> vector<8x128xf32>
    %111 = arith.addf %105, %110 : vector<8x128xf32>
    %112 = vector.extract_strided_slice %15 {offsets = [128, 0], sizes = [8, 16], strides = [1, 1]} : vector<200x16xf32> to vector<8x16xf32>
    %113 = arith.truncf %112 : vector<8x16xf32> to vector<8x16xbf16>
    %114 = vector.extract_strided_slice %16 {offsets = [16, 0, 0], sizes = [1, 16, 128], strides = [1, 1, 1]} : vector<25x16x128xbf16> to vector<1x16x128xbf16>
    %115 = vector.shape_cast %114 : vector<1x16x128xbf16> to vector<16x128xbf16>
    %cst_26 = arith.constant dense<0.000000e+00> : vector<8x128xf32>
    %116 = tpu.matmul %113, %115, %cst_26 {dimension_numbers = #tpu.dot_dimension_numbers<[1], [0], [0], [1], [0, 0, 1, 1], [], []>} : vector<8x16xbf16>, vector<16x128xbf16>, vector<8x128xf32> -> vector<8x128xf32>
    %117 = arith.addf %111, %116 : vector<8x128xf32>
    %118 = vector.extract_strided_slice %15 {offsets = [136, 0], sizes = [8, 16], strides = [1, 1]} : vector<200x16xf32> to vector<8x16xf32>
    %119 = arith.truncf %118 : vector<8x16xf32> to vector<8x16xbf16>
    %120 = vector.extract_strided_slice %16 {offsets = [17, 0, 0], sizes = [1, 16, 128], strides = [1, 1, 1]} : vector<25x16x128xbf16> to vector<1x16x128xbf16>
    %121 = vector.shape_cast %120 : vector<1x16x128xbf16> to vector<16x128xbf16>
    %cst_27 = arith.constant dense<0.000000e+00> : vector<8x128xf32>
    %122 = tpu.matmul %119, %121, %cst_27 {dimension_numbers = #tpu.dot_dimension_numbers<[1], [0], [0], [1], [0, 0, 1, 1], [], []>} : vector<8x16xbf16>, vector<16x128xbf16>, vector<8x128xf32> -> vector<8x128xf32>
    %123 = arith.addf %117, %122 : vector<8x128xf32>
    %124 = vector.extract_strided_slice %15 {offsets = [144, 0], sizes = [8, 16], strides = [1, 1]} : vector<200x16xf32> to vector<8x16xf32>
    %125 = arith.truncf %124 : vector<8x16xf32> to vector<8x16xbf16>
    %126 = vector.extract_strided_slice %16 {offsets = [18, 0, 0], sizes = [1, 16, 128], strides = [1, 1, 1]} : vector<25x16x128xbf16> to vector<1x16x128xbf16>
    %127 = vector.shape_cast %126 : vector<1x16x128xbf16> to vector<16x128xbf16>
    %cst_28 = arith.constant dense<0.000000e+00> : vector<8x128xf32>
    %128 = tpu.matmul %125, %127, %cst_28 {dimension_numbers = #tpu.dot_dimension_numbers<[1], [0], [0], [1], [0, 0, 1, 1], [], []>} : vector<8x16xbf16>, vector<16x128xbf16>, vector<8x128xf32> -> vector<8x128xf32>
    %129 = arith.addf %123, %128 : vector<8x128xf32>
    %130 = vector.extract_strided_slice %15 {offsets = [152, 0], sizes = [8, 16], strides = [1, 1]} : vector<200x16xf32> to vector<8x16xf32>
    %131 = arith.truncf %130 : vector<8x16xf32> to vector<8x16xbf16>
    %132 = vector.extract_strided_slice %16 {offsets = [19, 0, 0], sizes = [1, 16, 128], strides = [1, 1, 1]} : vector<25x16x128xbf16> to vector<1x16x128xbf16>
    %133 = vector.shape_cast %132 : vector<1x16x128xbf16> to vector<16x128xbf16>
    %cst_29 = arith.constant dense<0.000000e+00> : vector<8x128xf32>
    %134 = tpu.matmul %131, %133, %cst_29 {dimension_numbers = #tpu.dot_dimension_numbers<[1], [0], [0], [1], [0, 0, 1, 1], [], []>} : vector<8x16xbf16>, vector<16x128xbf16>, vector<8x128xf32> -> vector<8x128xf32>
    %135 = arith.addf %129, %134 : vector<8x128xf32>
    %136 = vector.extract_strided_slice %15 {offsets = [160, 0], sizes = [8, 16], strides = [1, 1]} : vector<200x16xf32> to vector<8x16xf32>
    %137 = arith.truncf %136 : vector<8x16xf32> to vector<8x16xbf16>
    %138 = vector.extract_strided_slice %16 {offsets = [20, 0, 0], sizes = [1, 16, 128], strides = [1, 1, 1]} : vector<25x16x128xbf16> to vector<1x16x128xbf16>
    %139 = vector.shape_cast %138 : vector<1x16x128xbf16> to vector<16x128xbf16>
    %cst_30 = arith.constant dense<0.000000e+00> : vector<8x128xf32>
    %140 = tpu.matmul %137, %139, %cst_30 {dimension_numbers = #tpu.dot_dimension_numbers<[1], [0], [0], [1], [0, 0, 1, 1], [], []>} : vector<8x16xbf16>, vector<16x128xbf16>, vector<8x128xf32> -> vector<8x128xf32>
    %141 = arith.addf %135, %140 : vector<8x128xf32>
    %142 = vector.extract_strided_slice %15 {offsets = [168, 0], sizes = [8, 16], strides = [1, 1]} : vector<200x16xf32> to vector<8x16xf32>
    %143 = arith.truncf %142 : vector<8x16xf32> to vector<8x16xbf16>
    %144 = vector.extract_strided_slice %16 {offsets = [21, 0, 0], sizes = [1, 16, 128], strides = [1, 1, 1]} : vector<25x16x128xbf16> to vector<1x16x128xbf16>
    %145 = vector.shape_cast %144 : vector<1x16x128xbf16> to vector<16x128xbf16>
    %cst_31 = arith.constant dense<0.000000e+00> : vector<8x128xf32>
    %146 = tpu.matmul %143, %145, %cst_31 {dimension_numbers = #tpu.dot_dimension_numbers<[1], [0], [0], [1], [0, 0, 1, 1], [], []>} : vector<8x16xbf16>, vector<16x128xbf16>, vector<8x128xf32> -> vector<8x128xf32>
    %147 = arith.addf %141, %146 : vector<8x128xf32>
    %148 = vector.extract_strided_slice %15 {offsets = [176, 0], sizes = [8, 16], strides = [1, 1]} : vector<200x16xf32> to vector<8x16xf32>
    %149 = arith.truncf %148 : vector<8x16xf32> to vector<8x16xbf16>
    %150 = vector.extract_strided_slice %16 {offsets = [22, 0, 0], sizes = [1, 16, 128], strides = [1, 1, 1]} : vector<25x16x128xbf16> to vector<1x16x128xbf16>
    %151 = vector.shape_cast %150 : vector<1x16x128xbf16> to vector<16x128xbf16>
    %cst_32 = arith.constant dense<0.000000e+00> : vector<8x128xf32>
    %152 = tpu.matmul %149, %151, %cst_32 {dimension_numbers = #tpu.dot_dimension_numbers<[1], [0], [0], [1], [0, 0, 1, 1], [], []>} : vector<8x16xbf16>, vector<16x128xbf16>, vector<8x128xf32> -> vector<8x128xf32>
    %153 = arith.addf %147, %152 : vector<8x128xf32>
    %154 = vector.extract_strided_slice %15 {offsets = [184, 0], sizes = [8, 16], strides = [1, 1]} : vector<200x16xf32> to vector<8x16xf32>
    %155 = arith.truncf %154 : vector<8x16xf32> to vector<8x16xbf16>
    %156 = vector.extract_strided_slice %16 {offsets = [23, 0, 0], sizes = [1, 16, 128], strides = [1, 1, 1]} : vector<25x16x128xbf16> to vector<1x16x128xbf16>
    %157 = vector.shape_cast %156 : vector<1x16x128xbf16> to vector<16x128xbf16>
    %cst_33 = arith.constant dense<0.000000e+00> : vector<8x128xf32>
    %158 = tpu.matmul %155, %157, %cst_33 {dimension_numbers = #tpu.dot_dimension_numbers<[1], [0], [0], [1], [0, 0, 1, 1], [], []>} : vector<8x16xbf16>, vector<16x128xbf16>, vector<8x128xf32> -> vector<8x128xf32>
    %159 = arith.addf %153, %158 : vector<8x128xf32>
    %160 = vector.extract_strided_slice %15 {offsets = [192, 0], sizes = [8, 16], strides = [1, 1]} : vector<200x16xf32> to vector<8x16xf32>
    %161 = arith.truncf %160 : vector<8x16xf32> to vector<8x16xbf16>
    %162 = vector.extract_strided_slice %16 {offsets = [24, 0, 0], sizes = [1, 16, 128], strides = [1, 1, 1]} : vector<25x16x128xbf16> to vector<1x16x128xbf16>
    %163 = vector.shape_cast %162 : vector<1x16x128xbf16> to vector<16x128xbf16>
    %cst_34 = arith.constant dense<0.000000e+00> : vector<8x128xf32>
    %164 = tpu.matmul %161, %163, %cst_34 {dimension_numbers = #tpu.dot_dimension_numbers<[1], [0], [0], [1], [0, 0, 1, 1], [], []>} : vector<8x16xbf16>, vector<16x128xbf16>, vector<8x128xf32> -> vector<8x128xf32>
    %165 = arith.addf %159, %164 : vector<8x128xf32>
    %c0_35 = arith.constant 0 : index
    %c0_36 = arith.constant 0 : index
    %166 = vector.load %arg5[%c0_35, %c0_36] : memref<1x128xf32, #tpu.memory_space<vmem>>, vector<1x128xf32>
    %167 = vector.broadcast %166 : vector<1x128xf32> to vector<8x128xf32>
    %168 = arith.addf %165, %167 : vector<8x128xf32>
    %169 = arith.truncf %168 : vector<8x128xf32> to vector<8x128xbf16>
    %c0_37 = arith.constant 0 : index
    %c0_38 = arith.constant 0 : index
    %170 = vector.load %arg6[%c0_37, %c0_38] : memref<128x128xbf16, #tpu.memory_space<vmem>>, vector<128x128xbf16>
    %cst_39 = arith.constant dense<0.000000e+00> : vector<8x128xf32>
    %171 = tpu.matmul %169, %170, %cst_39 {dimension_numbers = #tpu.dot_dimension_numbers<[1], [0], [0], [1], [0, 0, 1, 1], [], []>} : vector<8x128xbf16>, vector<128x128xbf16>, vector<8x128xf32> -> vector<8x128xf32>
    %c0_40 = arith.constant 0 : index
    %c0_41 = arith.constant 0 : index
    %172 = vector.load %arg7[%c0_40, %c0_41] : memref<1x128xf32, #tpu.memory_space<vmem>>, vector<1x128xf32>
    %173 = vector.broadcast %172 : vector<1x128xf32> to vector<8x128xf32>
    %174 = arith.addf %171, %173 : vector<8x128xf32>
    %c0_42 = arith.constant 0 : index
    %c0_43 = arith.constant 0 : index
    %175 = vector.load %arg8[%c0_42, %c0_43] : memref<128x128xf32, #tpu.memory_space<vmem>>, vector<128x128xf32>
    %cst_44 = arith.constant dense<0.000000e+00> : vector<8x128xf32>
    %176 = tpu.matmul %174, %175, %cst_44 {dimension_numbers = #tpu.dot_dimension_numbers<[1], [0], [0], [1], [0, 0, 1, 1], [], []>} : vector<8x128xf32>, vector<128x128xf32>, vector<8x128xf32> -> vector<8x128xf32>
    %c0_45 = arith.constant 0 : index
    %c0_46 = arith.constant 0 : index
    %177 = vector.load %arg9[%c0_45, %c0_46] : memref<1x128xf32, #tpu.memory_space<vmem>>, vector<1x128xf32>
    %178 = vector.broadcast %177 : vector<1x128xf32> to vector<8x128xf32>
    %179 = arith.addf %176, %178 : vector<8x128xf32>
    %c0_47 = arith.constant 0 : index
    %c0_48 = arith.constant 0 : index
    %180 = vector.load %arg10[%c0_47, %c0_48] : memref<8x128xf32, #tpu.memory_space<vmem>>, vector<8x128xf32>
    tpu.vector_store %arg10[%c0_47, %c0_48], %179 {strides = array<i32>} : memref<8x128xf32, #tpu.memory_space<vmem>>, vector<8x128xf32>,
    return
  }
  func.func @transform_0(%arg0: i32) -> (i32, i32, i32) {
    %c0_i32 = arith.constant 0 : i32
    %c0_i32_0 = arith.constant 0 : i32
    %c0_i32_1 = arith.constant 0 : i32
    return %arg0, %c0_i32, %c0_i32_0 : i32, i32, i32
  }
  func.func @transform_1(%arg0: i32) -> (i32, i32) {
    %c0_i32 = arith.constant 0 : i32
    %c0_i32_0 = arith.constant 0 : i32
    %c0_i32_1 = arith.constant 0 : i32
    return %c0_i32, %c0_i32_0 : i32, i32
  }
  func.func @transform_2(%arg0: i32) -> (i32, i32) {
    %c0_i32 = arith.constant 0 : i32
    %c0_i32_0 = arith.constant 0 : i32
    %c0_i32_1 = arith.constant 0 : i32
    return %c0_i32, %c0_i32_0 : i32, i32
  }
  func.func @transform_3(%arg0: i32) -> (i32, i32, i32) {
    %c0_i32 = arith.constant 0 : i32
    %c0_i32_0 = arith.constant 0 : i32
    %c0_i32_1 = arith.constant 0 : i32
    %c0_i32_2 = arith.constant 0 : i32
    return %c0_i32, %c0_i32_0, %c0_i32_1 : i32, i32, i32
  }
  func.func @transform_4(%arg0: i32) -> (i32, i32) {
    %c0_i32 = arith.constant 0 : i32
    %c0_i32_0 = arith.constant 0 : i32
    %c0_i32_1 = arith.constant 0 : i32
    return %c0_i32, %c0_i32_0 : i32, i32
  }
  func.func @transform_5(%arg0: i32) -> (i32, i32) {
    %c0_i32 = arith.constant 0 : i32
    %c0_i32_0 = arith.constant 0 : i32
    %c0_i32_1 = arith.constant 0 : i32
    return %c0_i32, %c0_i32_0 : i32, i32
  }
  func.func @transform_6(%arg0: i32) -> (i32, i32) {
    %c0_i32 = arith.constant 0 : i32
    %c0_i32_0 = arith.constant 0 : i32
    %c0_i32_1 = arith.constant 0 : i32
    return %c0_i32, %c0_i32_0 : i32, i32
  }
  func.func @transform_7(%arg0: i32) -> (i32, i32) {
    %c0_i32 = arith.constant 0 : i32
    %c0_i32_0 = arith.constant 0 : i32
    %c0_i32_1 = arith.constant 0 : i32
    return %c0_i32, %c0_i32_0 : i32, i32
  }
  func.func @transform_8(%arg0: i32) -> (i32, i32) {
    %c0_i32 = arith.constant 0 : i32
    %c0_i32_0 = arith.constant 0 : i32
    %c0_i32_1 = arith.constant 0 : i32
    return %c0_i32, %c0_i32_0 : i32, i32
  }
  func.func @transform_9(%arg0: i32) -> (i32, i32) {
    %c0_i32 = arith.constant 0 : i32
    %c0_i32_0 = arith.constant 0 : i32
    return %arg0, %c0_i32 : i32, i32
  }
}

</mosaic_0001>

<bundles_post_ra>
// kernel: model_m3_forward.2
= control target key start
LH: loop header
LB: loop body
LE: loop exit
PB: predicated region body
PF: predicated region fallthrough
CT: control target
= control target key end

     0   :  { %vm4035_vm0 = vcmask 1043456   ;;  %vm4036_vm1 = vcmask 1044480   ;;  %v10464_v2 = vmov 65535   ;;  %vm2834_vm2 = vcmask 203776   ;;  %s15534_s1 = inlined_call_operand.vmem [shape: bf16[25,6], index: 1, kind: input, shape index: {}]   ;;  %s15535_s2 = inlined_call_operand.vmem [shape: f32[1,6], index: 2, kind: input, shape index: {}]   ;;  %s15536_s0 = inlined_call_operand.vmem [shape: bf16[1,6400,25], index: 0, kind: input, shape index: {}]   ;;  %s15537_s3 = inlined_call_operand.vmem [shape: bf16[8,196,6], index: 3, kind: output, shape index: {}]  }
   0x1   :  { %v9470_v0 = vld [vmem:[%s15534_s1 + $0x8] sm:$0xf]  ;;  %v10448_v1 = vld [vmem:[%s15534_s1 + $0x8] sm:$0x10]  ;;  %v4037_v3 = vsel %vm4035_vm0, 4294967295, %v10464_v2  ;;  %v10447_v7 = vld [vmem:[%s15534_s1] sm:$0xff] }
   0x2   :  { %v9471_v4 = vor.u32 %v10448_v1, %v9470_v0  ;;  %v4038_v5 = vsel %vm4036_vm1, %v4037_v3, 0  ;;  %v10047_v8 = vld [vmem:[%s15536_s0] sm:$0xff]  ;;  %v10048_v12 = vld [vmem:[%s15536_s0 + $0x8] sm:$0xff]  ;;  %v10049_v16 = vld [vmem:[%s15536_s0 + $0x10] sm:$0xff]  ;;  %vm6951_vm3 = vcmask 44032   ;;  %vm6976_vm4 = vcmask 41984  }
   0x3   :  { %v10147_v9 = vld [vmem:[%s15536_s0 + $0x320] sm:$0xff]  ;;  %v10148_v13 = vld [vmem:[%s15536_s0 + $0x328] sm:$0xff]  ;;  %v10149_v17 = vld [vmem:[%s15536_s0 + $0x330] sm:$0xff] }
   0x4   :  { %v4040_v6 = vand.u32 %v9471_v4, %v4038_v5  ;;  %v10247_v10 = vld [vmem:[%s15536_s0 + $0x640] sm:$0xff]  ;;  %v10248_v14 = vld [vmem:[%s15536_s0 + $0x648] sm:$0xff]  ;;  %v10249_v18 = vld [vmem:[%s15536_s0 + $0x650] sm:$0xff] }
   0x5   :  { %v10347_v11 = vld [vmem:[%s15536_s0 + $0x960] sm:$0xff]  ;;  %v10348_v15 = vld [vmem:[%s15536_s0 + $0x968] sm:$0xff]  ;;  %v10349_v19 = vld [vmem:[%s15536_s0 + $0x970] sm:$0xff] }
   0x6   :  { %4048 = vmatpush.bf16.msra.mxu0 %v4040_v6  ;;  %10449 = vmatpush.bf16.msra.mxu1 %v4040_v6  ;;  %v10050_v20 = vld [vmem:[%s15536_s0 + $0x18] sm:$0xff]  ;;  %v10051_v24 = vld [vmem:[%s15536_s0 + $0x20] sm:$0xff]  ;;  %v10052_v28 = vld [vmem:[%s15536_s0 + $0x28] sm:$0xff] }
   0x7   :  { %10450 = vmatpush.bf16.msra.mxu2 %v4040_v6  ;;  %10451 = vmatpush.bf16.msra.mxu3 %v4040_v6  ;;  %v10150_v21 = vld [vmem:[%s15536_s0 + $0x338] sm:$0xff]  ;;  %v10151_v25 = vld [vmem:[%s15536_s0 + $0x340] sm:$0xff]  ;;  %v10152_v29 = vld [vmem:[%s15536_s0 + $0x348] sm:$0xff] }
   0x8   :  { %v10250_v22 = vld [vmem:[%s15536_s0 + $0x658] sm:$0xff]  ;;  %v10251_v26 = vld [vmem:[%s15536_s0 + $0x660] sm:$0xff]  ;;  %v10252_v30 = vld [vmem:[%s15536_s0 + $0x668] sm:$0xff] }
   0x9   :  { %v10350_v23 = vld [vmem:[%s15536_s0 + $0x978] sm:$0xff]  ;;  %v10351_v27 = vld [vmem:[%s15536_s0 + $0x980] sm:$0xff]  ;;  %v10352_v31 = vld [vmem:[%s15536_s0 + $0x988] sm:$0xff] }
   0xa   :  { %4049 = vmatpush.bf16.msra.mxu0 %v10447_v7  ;;  %10452 = vmatpush.bf16.msra.mxu1 %v10447_v7  ;;  %v10053_v32 = vld [vmem:[%s15536_s0 + $0x30] sm:$0xff]  ;;  %v10054_v36 = vld [vmem:[%s15536_s0 + $0x38] sm:$0xff]  ;;  %v10055_v40 = vld [vmem:[%s15536_s0 + $0x40] sm:$0xff] }
   0xb   :  { %10453 = vmatpush.bf16.msra.mxu2 %v10447_v7  ;;  %10454 = vmatpush.bf16.msra.mxu3 %v10447_v7  ;;  %v10153_v33 = vld [vmem:[%s15536_s0 + $0x350] sm:$0xff]  ;;  %v10154_v37 = vld [vmem:[%s15536_s0 + $0x358] sm:$0xff]  ;;  %v10155_v41 = vld [vmem:[%s15536_s0 + $0x360] sm:$0xff] }
   0xc   :  { %v10253_v34 = vld [vmem:[%s15536_s0 + $0x670] sm:$0xff]  ;;  %v10254_v38 = vld [vmem:[%s15536_s0 + $0x678] sm:$0xff]  ;;  %v10255_v44 = vld [vmem:[%s15536_s0 + $0x680] sm:$0xff] }
   0xd   :  { %9472 = vmatmul.msk.bf16.vlgmr.msra.gmra.mxu0 %vm2834_vm2, %v10047_v8  ;;  %9572 = vmatmul.msk.bf16.vlgmr.msra.gmra.mxu1 %vm2834_vm2, %v10147_v9  ;;  %v10353_v35 = vld [vmem:[%s15536_s0 + $0x990] sm:$0xff]  ;;  %v10354_v39 = vld [vmem:[%s15536_s0 + $0x998] sm:$0xff]  ;;  %v10355_v45 = vld [vmem:[%s15536_s0 + $0x9a0] sm:$0xff] }
   0xe   :  { %9672 = vmatmul.msk.bf16.vlgmr.msra.gmra.mxu2 %vm2834_vm2, %v10247_v10  ;;  %9772 = vmatmul.msk.bf16.vlgmr.msra.gmra.mxu3 %vm2834_vm2, %v10347_v11  ;;  %v10056_v52 = vld [vmem:[%s15536_s0 + $0x48] sm:$0xff]  ;;  %v10057_v0 = vld [vmem:[%s15536_s0 + $0x50] sm:$0xff] }
   0xf   :  { %v10156_v53 = vld [vmem:[%s15536_s0 + $0x368] sm:$0xff]  ;;  %v10157_v1 = vld [vmem:[%s15536_s0 + $0x370] sm:$0xff] }
  0x10   :  { %v10256_v56 = vld [vmem:[%s15536_s0 + $0x688] sm:$0xff]  ;;  %v10257_v4 = vld [vmem:[%s15536_s0 + $0x690] sm:$0xff] }
  0x11   :  { %v10356_v57 = vld [vmem:[%s15536_s0 + $0x9a8] sm:$0xff]  ;;  %v10357_v5 = vld [vmem:[%s15536_s0 + $0x9b0] sm:$0xff] }
  0x1d   :  { %9473 = vmatmul.msk.bf16.gmra.mxu0 %vm2834_vm2, %v10048_v12  ;;  %9573 = vmatmul.msk.bf16.gmra.mxu1 %vm2834_vm2, %v10148_v13  ;;  %v10058_v12 = vld [vmem:[%s15536_s0 + $0x58] sm:$0xff] }
  0x1e   :  { %9673 = vmatmul.msk.bf16.gmra.mxu2 %vm2834_vm2, %v10248_v14  ;;  %9773 = vmatmul.msk.bf16.gmra.mxu3 %vm2834_vm2, %v10348_v15  ;;  %v10158_v13 = vld [vmem:[%s15536_s0 + $0x378] sm:$0xff] }
  0x2d   :  { %9474 = vmatmul.msk.bf16.gmra.mxu0 %vm2834_vm2, %v10049_v16  ;;  %9574 = vmatmul.msk.bf16.gmra.mxu1 %vm2834_vm2, %v10149_v17  ;;  %v10258_v16 = vld [vmem:[%s15536_s0 + $0x698] sm:$0xff] }
  0x2e   :  { %9674 = vmatmul.msk.bf16.gmra.mxu2 %vm2834_vm2, %v10249_v18  ;;  %9774 = vmatmul.msk.bf16.gmra.mxu3 %vm2834_vm2, %v10349_v19  ;;  %v10358_v17 = vld [vmem:[%s15536_s0 + $0x9b8] sm:$0xff] }
  0x3d   :  { %9475 = vmatmul.msk.bf16.gmra.mxu0 %vm2834_vm2, %v10050_v20  ;;  %9575 = vmatmul.msk.bf16.gmra.mxu1 %vm2834_vm2, %v10150_v21 }
  0x3e   :  { %9675 = vmatmul.msk.bf16.gmra.mxu2 %vm2834_vm2, %v10250_v22  ;;  %9775 = vmatmul.msk.bf16.gmra.mxu3 %vm2834_vm2, %v10350_v23 }
  0x4d   :  { %9476 = vmatmul.msk.bf16.gmra.mxu0 %vm2834_vm2, %v10051_v24  ;;  %9576 = vmatmul.msk.bf16.gmra.mxu1 %vm2834_vm2, %v10151_v25  ;;  %v10059_v24 = vld [vmem:[%s15536_s0 + $0x60] sm:$0xff] }
  0x4e   :  { %9676 = vmatmul.msk.bf16.gmra.mxu2 %vm2834_vm2, %v10251_v26  ;;  %9776 = vmatmul.msk.bf16.gmra.mxu3 %vm2834_vm2, %v10351_v27  ;;  %v10159_v25 = vld [vmem:[%s15536_s0 + $0x380] sm:$0xff] }
  0x5d   :  { %9477 = vmatmul.msk.bf16.gmra.mxu0 %vm2834_vm2, %v10052_v28  ;;  %9577 = vmatmul.msk.bf16.gmra.mxu1 %vm2834_vm2, %v10152_v29  ;;  %v10259_v28 = vld [vmem:[%s15536_s0 + $0x6a0] sm:$0xff] }
  0x5e   :  { %9677 = vmatmul.msk.bf16.gmra.mxu2 %vm2834_vm2, %v10252_v30  ;;  %9777 = vmatmul.msk.bf16.gmra.mxu3 %vm2834_vm2, %v10352_v31  ;;  %v10359_v29 = vld [vmem:[%s15536_s0 + $0x9c0] sm:$0xff] }
  0x6d   :  { %9478 = vmatmul.msk.bf16.gmra.mxu0 %vm2834_vm2, %v10053_v32  ;;  %9578 = vmatmul.msk.bf16.gmra.mxu1 %vm2834_vm2, %v10153_v33 }
  0x6e   :  { %9678 = vmatmul.msk.bf16.gmra.mxu2 %vm2834_vm2, %v10253_v34  ;;  %9778 = vmatmul.msk.bf16.gmra.mxu3 %vm2834_vm2, %v10353_v35 }
  0x7d   :  { %9479 = vmatmul.msk.bf16.gmra.mxu0 %vm2834_vm2, %v10054_v36  ;;  %9579 = vmatmul.msk.bf16.gmra.mxu1 %vm2834_vm2, %v10154_v37  ;;  %v10060_v36 = vld [vmem:[%s15536_s0 + $0x68] sm:$0xff] }
  0x7e   :  { %9679 = vmatmul.msk.bf16.gmra.mxu2 %vm2834_vm2, %v10254_v38  ;;  %9779 = vmatmul.msk.bf16.gmra.mxu3 %vm2834_vm2, %v10354_v39  ;;  %v10160_v37 = vld [vmem:[%s15536_s0 + $0x388] sm:$0xff] }
  0x8a   :  { %v10628_v42 = vpop.f32.mrf.mxu0  ;;  %v10630_v43 = vpop.f32.mrf.mxu1 }
  0x8d   :  { %9480 = vmatmul.msk.bf16.gmra.mxu0 %vm2834_vm2, %v10055_v40  ;;  %9580 = vmatmul.msk.bf16.gmra.mxu1 %vm2834_vm2, %v10155_v41  ;;  %v10260_v40 = vld [vmem:[%s15536_s0 + $0x6a8] sm:$0xff] }
  0x8e   :  { %9680 = vmatmul.msk.bf16.gmra.mxu2 %vm2834_vm2, %v10255_v44  ;;  %9780 = vmatmul.msk.bf16.gmra.mxu3 %vm2834_vm2, %v10355_v45  ;;  %v10360_v41 = vld [vmem:[%s15536_s0 + $0x9c8] sm:$0xff] }
  0x91   :  { %v10642_v46 = vpop.f32.mrf.mxu2  ;;  %v10644_v47 = vpop.f32.mrf.mxu3 }
  0x92   :  { %v10646_v48 = vpop.f32.mrf.mxu0  ;;  %v10648_v49 = vpop.f32.mrf.mxu1 }
  0x99   :  { %v10650_v50 = vpop.f32.mrf.mxu2  ;;  %v10652_v51 = vpop.f32.mrf.mxu3 }
  0x9a   :  { %v10660_v54 = vpop.f32.mrf.mxu0  ;;  %v10662_v55 = vpop.f32.mrf.mxu1 }
  0x9d   :  { %9481 = vmatmul.msk.bf16.gmra.mxu0 %vm2834_vm2, %v10056_v52  ;;  %9581 = vmatmul.msk.bf16.gmra.mxu1 %vm2834_vm2, %v10156_v53 }
  0x9e   :  { %9681 = vmatmul.msk.bf16.gmra.mxu2 %vm2834_vm2, %v10256_v56  ;;  %9781 = vmatmul.msk.bf16.gmra.mxu3 %vm2834_vm2, %v10356_v57 }
  0xa1   :  { %v10674_v58 = vpop.f32.mrf.mxu2  ;;  %v10676_v59 = vpop.f32.mrf.mxu3 }
  0xa2   :  { %v10678_v60 = vpop.f32.mrf.mxu0  ;;  %v10680_v61 = vpop.f32.mrf.mxu1 }
  0xa9   :  { %v10682_v62 = vpop.f32.mrf.mxu2  ;;  %v10684_v63 = vpop.f32.mrf.mxu3 }
  0xaa   :  { %v10692_v2 = vpop.f32.mrf.mxu0  ;;  %v10694_v3 = vpop.f32.mrf.mxu1 }
  0xad   :  { %9482 = vmatmul.msk.bf16.gmra.mxu0 %vm2834_vm2, %v10057_v0  ;;  %9582 = vmatmul.msk.bf16.gmra.mxu1 %vm2834_vm2, %v10157_v1  ;;  %v10061_v0 = vld [vmem:[%s15536_s0 + $0x70] sm:$0xff] }
  0xae   :  { %9682 = vmatmul.msk.bf16.gmra.mxu2 %vm2834_vm2, %v10257_v4  ;;  %9782 = vmatmul.msk.bf16.gmra.mxu3 %vm2834_vm2, %v10357_v5  ;;  %v10161_v1 = vld [vmem:[%s15536_s0 + $0x390] sm:$0xff] }
  0xb1   :  { %v10706_v6 = vpop.f32.mrf.mxu2  ;;  %v10708_v7 = vpop.f32.mrf.mxu3 }
  0xb2   :  { %v10710_v8 = vpop.f32.mrf.mxu0  ;;  %v10712_v9 = vpop.f32.mrf.mxu1 }
  0xb9   :  { %v10714_v10 = vpop.f32.mrf.mxu2  ;;  %v10716_v11 = vpop.f32.mrf.mxu3 }
  0xba   :  { %v10724_v14 = vpop.f32.mrf.mxu0  ;;  %v10726_v15 = vpop.f32.mrf.mxu1 }
  0xbd   :  { %9483 = vmatmul.msk.bf16.gmra.mxu0 %vm2834_vm2, %v10058_v12  ;;  %9583 = vmatmul.msk.bf16.gmra.mxu1 %vm2834_vm2, %v10158_v13  ;;  %v10261_v12 = vld [vmem:[%s15536_s0 + $0x6b0] sm:$0xff] }
  0xbe   :  { %9683 = vmatmul.msk.bf16.gmra.mxu2 %vm2834_vm2, %v10258_v16  ;;  %9783 = vmatmul.msk.bf16.gmra.mxu3 %vm2834_vm2, %v10358_v17  ;;  %v10361_v13 = vld [vmem:[%s15536_s0 + $0x9d0] sm:$0xff] }
  0xc1   :  { %v10738_v18 = vpop.f32.mrf.mxu2  ;;  %v10740_v19 = vpop.f32.mrf.mxu3 }
  0xc2   :  { %v10742_v20 = vpop.f32.mrf.mxu0  ;;  %v10744_v21 = vpop.f32.mrf.mxu1 }
  0xc9   :  { %v10746_v22 = vpop.f32.mrf.mxu2  ;;  %v10748_v23 = vpop.f32.mrf.mxu3 }
  0xca   :  { %v10756_v26 = vpop.f32.mrf.mxu0  ;;  %v10758_v27 = vpop.f32.mrf.mxu1 }
  0xcd   :  { %9484 = vmatmul.msk.bf16.gmra.mxu0 %vm2834_vm2, %v10059_v24  ;;  %9584 = vmatmul.msk.bf16.gmra.mxu1 %vm2834_vm2, %v10159_v25 }
  0xce   :  { %9684 = vmatmul.msk.bf16.gmra.mxu2 %vm2834_vm2, %v10259_v28  ;;  %9784 = vmatmul.msk.bf16.gmra.mxu3 %vm2834_vm2, %v10359_v29 }
  0xd1   :  { %v10770_v30 = vpop.f32.mrf.mxu2  ;;  %v10772_v31 = vpop.f32.mrf.mxu3 }
  0xd2   :  { %v10774_v32 = vpop.f32.mrf.mxu0  ;;  %v10776_v33 = vpop.f32.mrf.mxu1 }
  0xd9   :  { %v10778_v34 = vpop.f32.mrf.mxu2  ;;  %v10780_v35 = vpop.f32.mrf.mxu3 }
  0xda   :  { %v10788_v38 = vpop.f32.mrf.mxu0  ;;  %v10790_v39 = vpop.f32.mrf.mxu1 }
  0xdd   :  { %9485 = vmatmul.msk.bf16.gmra.mxu0 %vm2834_vm2, %v10060_v36  ;;  %9585 = vmatmul.msk.bf16.gmra.mxu1 %vm2834_vm2, %v10160_v37  ;;  %v10062_v36 = vld [vmem:[%s15536_s0 + $0x78] sm:$0xff] }
  0xde   :  { %9685 = vmatmul.msk.bf16.gmra.mxu2 %vm2834_vm2, %v10260_v40  ;;  %9785 = vmatmul.msk.bf16.gmra.mxu3 %vm2834_vm2, %v10360_v41  ;;  %v10162_v37 = vld [vmem:[%s15536_s0 + $0x398] sm:$0xff] }
  0xe1   :  { %v10802_v44 = vpop.f32.mrf.mxu2  ;;  %v10804_v45 = vpop.f32.mrf.mxu3 }
  0xe2   :  { %v10806_v52 = vpop.f32.mrf.mxu0  ;;  %v10808_v53 = vpop.f32.mrf.mxu1 }
  0xe3   :  { %15538 = vst [vmem:[#allocation2_spill] sm:$0xff] %v10808_v53 }
  0xe9   :  { %v10810_v56 = vpop.f32.mrf.mxu2  ;;  %v10812_v57 = vpop.f32.mrf.mxu3 }
  0xea   :  { %15539 = vst [vmem:[#allocation3_spill] sm:$0xff] %v10810_v56  ;;  %v10820_v4 = vpop.f32.mrf.mxu0  ;;  %v10822_v5 = vpop.f32.mrf.mxu1 }
  0xeb   :  { %15540 = vst [vmem:[#allocation4_spill] sm:$0xff] %v10812_v57 }
  0xec   :  { %15541 = vst [vmem:[#allocation5_spill] sm:$0xff] %v10820_v4 }
  0xed   :  { %15542 = vst [vmem:[#allocation6_spill] sm:$0xff] %v10822_v5  ;;  %9486 = vmatmul.msk.bf16.gmra.mxu0 %vm2834_vm2, %v10061_v0  ;;  %9586 = vmatmul.msk.bf16.gmra.mxu1 %vm2834_vm2, %v10161_v1  ;;  %v10262_v0 = vld [vmem:[%s15536_s0 + $0x6b8] sm:$0xff] }
  0xee   :  { %9686 = vmatmul.msk.bf16.gmra.mxu2 %vm2834_vm2, %v10261_v12  ;;  %9786 = vmatmul.msk.bf16.gmra.mxu3 %vm2834_vm2, %v10361_v13  ;;  %v10362_v1 = vld [vmem:[%s15536_s0 + $0x9d8] sm:$0xff] }
  0xf1   :  { %v10834_v16 = vpop.f32.mrf.mxu2  ;;  %v10836_v17 = vpop.f32.mrf.mxu3 }
  0xf2   :  { %15543 = vst [vmem:[#allocation7_spill] sm:$0xff] %v10834_v16  ;;  %v10838_v24 = vpop.f32.mrf.mxu0  ;;  %v10840_v25 = vpop.f32.mrf.mxu1 }
  0xf3   :  { %15544 = vst [vmem:[#allocation8_spill] sm:$0xff] %v10836_v17 }
  0xf4   :  { %15545 = vst [vmem:[#allocation9_spill] sm:$0xff] %v10838_v24 }
  0xf5   :  { %15546 = vst [vmem:[#allocation10_spill] sm:$0xff] %v10840_v25 }
  0xf9   :  { %v10842_v28 = vpop.f32.mrf.mxu2  ;;  %v10844_v29 = vpop.f32.mrf.mxu3 }
  0xfa   :  { %15547 = vst [vmem:[#allocation11_spill] sm:$0xff] %v10842_v28  ;;  %v10852_v40 = vpop.f32.mrf.mxu0  ;;  %v10854_v41 = vpop.f32.mrf.mxu1 }
  0xfb   :  { %15548 = vst [vmem:[#allocation12_spill] sm:$0xff] %v10844_v29 }
  0xfc   :  { %15549 = vst [vmem:[#allocation13_spill] sm:$0xff] %v10852_v40 }
  0xfd   :  { %15550 = vst [vmem:[#allocation14_spill] sm:$0xff] %v10854_v41  ;;  %9487 = vmatmul.msk.bf16.gmra.mxu0 %vm2834_vm2, %v10062_v36  ;;  %9587 = vmatmul.msk.bf16.gmra.mxu1 %vm2834_vm2, %v10162_v37  ;;  %v10063_v36 = vld [vmem:[%s15536_s0 + $0x80] sm:$0xff] }
  0xfe   :  { %9687 = vmatmul.msk.bf16.gmra.mxu2 %vm2834_vm2, %v10262_v0  ;;  %9787 = vmatmul.msk.bf16.gmra.mxu3 %vm2834_vm2, %v10362_v1  ;;  %v10163_v37 = vld [vmem:[%s15536_s0 + $0x3a0] sm:$0xff] }
 0x101   :  { %v10866_v12 = vpop.f32.mrf.mxu2  ;;  %v10868_v13 = vpop.f32.mrf.mxu3 }
 0x102   :  { %15551 = vst [vmem:[#allocation15_spill] sm:$0xff] %v10866_v12  ;;  %v10870_v41 = vpop.f32.mrf.mxu0  ;;  %v10872_v40 = vpop.f32.mrf.mxu1 }
 0x103   :  { %15552 = vst [vmem:[#allocation16_spill] sm:$0xff] %v10868_v13 }
 0x104   :  { %15553 = vst [vmem:[#allocation17_spill] sm:$0xff] %v10870_v41 }
 0x105   :  { %15554 = vst [vmem:[#allocation18_spill] sm:$0xff] %v10872_v40  ;;  %v10263_v40 = vld [vmem:[%s15536_s0 + $0x6c0] sm:$0xff] }
 0x109   :  { %v10874_v29 = vpop.f32.mrf.mxu2  ;;  %v10876_v28 = vpop.f32.mrf.mxu3 }
 0x10a   :  { %15555 = vst [vmem:[#allocation19_spill] sm:$0xff] %v10874_v29  ;;  %v10884_v0 = vpop.f32.mrf.mxu0  ;;  %v10886_v1 = vpop.f32.mrf.mxu1 }
 0x10b   :  { %15556 = vst [vmem:[#allocation20_spill] sm:$0xff] %v10876_v28  ;;  %v10363_v28 = vld [vmem:[%s15536_s0 + $0x9e0] sm:$0xff] }
 0x10c   :  { %15557 = vst [vmem:[#allocation21_spill] sm:$0xff] %v10884_v0 }
 0x10d   :  { %15558 = vst [vmem:[#allocation22_spill] sm:$0xff] %v10886_v1  ;;  %9488 = vmatmul.msk.bf16.gmra.mxu0 %vm2834_vm2, %v10063_v36  ;;  %9588 = vmatmul.msk.bf16.gmra.mxu1 %vm2834_vm2, %v10163_v37  ;;  %v10064_v36 = vld [vmem:[%s15536_s0 + $0x88] sm:$0xff] }
 0x10e   :  { %9688 = vmatmul.msk.bf16.gmra.mxu2 %vm2834_vm2, %v10263_v40  ;;  %9788 = vmatmul.msk.bf16.gmra.mxu3 %vm2834_vm2, %v10363_v28  ;;  %v10164_v28 = vld [vmem:[%s15536_s0 + $0x3a8] sm:$0xff] }
 0x111   :  { %v10898_v29 = vpop.f32.mrf.mxu2  ;;  %v10900_v0 = vpop.f32.mrf.mxu3 }
 0x112   :  { %15559 = vst [vmem:[#allocation23_spill] sm:$0xff] %v10898_v29  ;;  %v10902_v1 = vpop.f32.mrf.mxu0  ;;  %v10904_v41 = vpop.f32.mrf.mxu1 }
 0x113   :  { %15560 = vst [vmem:[#allocation24_spill] sm:$0xff] %v10900_v0 }
 0x114   :  { %15561 = vst [vmem:[#allocation25_spill] sm:$0xff] %v10902_v1 }
 0x115   :  { %15562 = vst [vmem:[#allocation26_spill] sm:$0xff] %v10904_v41  ;;  %v10264_v41 = vld [vmem:[%s15536_s0 + $0x6c8] sm:$0xff] }
 0x119   :  { %v10906_v13 = vpop.f32.mrf.mxu2  ;;  %v10908_v12 = vpop.f32.mrf.mxu3 }
 0x11a   :  { %15563 = vst [vmem:[#allocation27_spill] sm:$0xff] %v10906_v13  ;;  %v10916_v40 = vpop.f32.mrf.mxu0  ;;  %v10918_v37 = vpop.f32.mrf.mxu1 }
 0x11b   :  { %15564 = vst [vmem:[#allocation28_spill] sm:$0xff] %v10908_v12  ;;  %v10364_v12 = vld [vmem:[%s15536_s0 + $0x9e8] sm:$0xff] }
 0x11c   :  { %15565 = vst [vmem:[#allocation29_spill] sm:$0xff] %v10916_v40 }
 0x11d   :  { %15566 = vst [vmem:[#allocation30_spill] sm:$0xff] %v10918_v37  ;;  %9489 = vmatmul.msk.bf16.gmra.mxu0 %vm2834_vm2, %v10064_v36  ;;  %9589 = vmatmul.msk.bf16.gmra.mxu1 %vm2834_vm2, %v10164_v28  ;;  %v10065_v36 = vld [vmem:[%s15536_s0 + $0x90] sm:$0xff] }
 0x11e   :  { %9689 = vmatmul.msk.bf16.gmra.mxu2 %vm2834_vm2, %v10264_v41  ;;  %9789 = vmatmul.msk.bf16.gmra.mxu3 %vm2834_vm2, %v10364_v12  ;;  %v10165_v41 = vld [vmem:[%s15536_s0 + $0x3b0] sm:$0xff] }
 0x121   :  { %v10930_v13 = vpop.f32.mrf.mxu2  ;;  %v10932_v40 = vpop.f32.mrf.mxu3 }
 0x122   :  { %15567 = vst [vmem:[#allocation31_spill] sm:$0xff] %v10930_v13  ;;  %v10934_v37 = vpop.f32.mrf.mxu0  ;;  %v10936_v1 = vpop.f32.mrf.mxu1 }
 0x123   :  { %15568 = vst [vmem:[#allocation32_spill] sm:$0xff] %v10932_v40 }
 0x124   :  { %15569 = vst [vmem:[#allocation33_spill] sm:$0xff] %v10934_v37 }
 0x125   :  { %15570 = vst [vmem:[#allocation34_spill] sm:$0xff] %v10936_v1  ;;  %v10265_v1 = vld [vmem:[%s15536_s0 + $0x6d0] sm:$0xff] }
 0x129   :  { %v10938_v0 = vpop.f32.mrf.mxu2  ;;  %v10940_v29 = vpop.f32.mrf.mxu3 }
 0x12a   :  { %15571 = vst [vmem:[#allocation35_spill] sm:$0xff] %v10938_v0  ;;  %v10948_v12 = vpop.f32.mrf.mxu0  ;;  %v10950_v28 = vpop.f32.mrf.mxu1 }
 0x12b   :  { %15572 = vst [vmem:[#allocation36_spill] sm:$0xff] %v10940_v29  ;;  %v10365_v29 = vld [vmem:[%s15536_s0 + $0x9f0] sm:$0xff] }
 0x12c   :  { %15573 = vst [vmem:[#allocation37_spill] sm:$0xff] %v10948_v12 }
 0x12d   :  { %15574 = vst [vmem:[#allocation38_spill] sm:$0xff] %v10950_v28  ;;  %9490 = vmatmul.msk.bf16.gmra.mxu0 %vm2834_vm2, %v10065_v36  ;;  %9590 = vmatmul.msk.bf16.gmra.mxu1 %vm2834_vm2, %v10165_v41  ;;  %v10066_v36 = vld [vmem:[%s15536_s0 + $0x98] sm:$0xff] }
 0x12e   :  { %9690 = vmatmul.msk.bf16.gmra.mxu2 %vm2834_vm2, %v10265_v1  ;;  %9790 = vmatmul.msk.bf16.gmra.mxu3 %vm2834_vm2, %v10365_v29  ;;  %v10166_v29 = vld [vmem:[%s15536_s0 + $0x3b8] sm:$0xff] }
 0x131   :  { %v10962_v0 = vpop.f32.mrf.mxu2  ;;  %v10964_v12 = vpop.f32.mrf.mxu3 }
 0x132   :  { %15575 = vst [vmem:[#allocation39_spill] sm:$0xff] %v10962_v0  ;;  %v10966_v28 = vpop.f32.mrf.mxu0  ;;  %v10968_v37 = vpop.f32.mrf.mxu1 }
 0x133   :  { %15576 = vst [vmem:[#allocation40_spill] sm:$0xff] %v10964_v12 }
 0x134   :  { %15577 = vst [vmem:[#allocation41_spill] sm:$0xff] %v10966_v28 }
 0x135   :  { %15578 = vst [vmem:[#allocation42_spill] sm:$0xff] %v10968_v37  ;;  %v10266_v37 = vld [vmem:[%s15536_s0 + $0x6d8] sm:$0xff] }
 0x139   :  { %v10970_v40 = vpop.f32.mrf.mxu2  ;;  %v10972_v13 = vpop.f32.mrf.mxu3 }
 0x13a   :  { %15579 = vst [vmem:[#allocation43_spill] sm:$0xff] %v10970_v40  ;;  %v10980_v1 = vpop.f32.mrf.mxu0  ;;  %v10982_v41 = vpop.f32.mrf.mxu1 }
 0x13b   :  { %15580 = vst [vmem:[#allocation44_spill] sm:$0xff] %v10972_v13  ;;  %v10366_v13 = vld [vmem:[%s15536_s0 + $0x9f8] sm:$0xff] }
 0x13c   :  { %15581 = vst [vmem:[#allocation45_spill] sm:$0xff] %v10980_v1 }
 0x13d   :  { %15582 = vst [vmem:[#allocation46_spill] sm:$0xff] %v10982_v41  ;;  %9491 = vmatmul.msk.bf16.gmra.mxu0 %vm2834_vm2, %v10066_v36  ;;  %9591 = vmatmul.msk.bf16.gmra.mxu1 %vm2834_vm2, %v10166_v29  ;;  %v10067_v36 = vld [vmem:[%s15536_s0 + $0xa0] sm:$0xff] }
 0x13e   :  { %9691 = vmatmul.msk.bf16.gmra.mxu2 %vm2834_vm2, %v10266_v37  ;;  %9791 = vmatmul.msk.bf16.gmra.mxu3 %vm2834_vm2, %v10366_v13  ;;  %v10167_v13 = vld [vmem:[%s15536_s0 + $0x3c0] sm:$0xff] }
 0x141   :  { %v10994_v40 = vpop.f32.mrf.mxu2  ;;  %v10996_v1 = vpop.f32.mrf.mxu3 }
 0x142   :  { %15583 = vst [vmem:[#allocation47_spill] sm:$0xff] %v10994_v40  ;;  %v10998_v41 = vpop.f32.mrf.mxu0  ;;  %v11000_v28 = vpop.f32.mrf.mxu1 }
 0x143   :  { %15584 = vst [vmem:[#allocation48_spill] sm:$0xff] %v10996_v1 }
 0x144   :  { %15585 = vst [vmem:[#allocation49_spill] sm:$0xff] %v10998_v41 }
 0x145   :  { %15586 = vst [vmem:[#allocation50_spill] sm:$0xff] %v11000_v28  ;;  %v10267_v28 = vld [vmem:[%s15536_s0 + $0x6e0] sm:$0xff] }
 0x149   :  { %v11002_v12 = vpop.f32.mrf.mxu2  ;;  %v11004_v0 = vpop.f32.mrf.mxu3 }
 0x14a   :  { %15587 = vst [vmem:[#allocation51_spill] sm:$0xff] %v11002_v12  ;;  %v11012_v37 = vpop.f32.mrf.mxu0  ;;  %v11014_v29 = vpop.f32.mrf.mxu1  ;;  %v11025_v12 = vld [vmem:[%s15535_s2] ss:$0 sm:$0xff] }
 0x14b   :  { %15588 = vst [vmem:[#allocation52_spill] sm:$0xff] %v11004_v0  ;;  %v10367_v0 = vld [vmem:[%s15536_s0 + $0xa00] sm:$0xff] }
 0x14c   :  { %15589 = vst [vmem:[#allocation53_spill] sm:$0xff] %v11012_v37  ;;  %v4552_v37 = vadd.f32 %v11025_v12, %v10630_v43  ;;  %v5052_v43 = vadd.f32 %v11025_v12, %v10642_v46 }
 0x14d   :  { %15590 = vst [vmem:[#allocation54_spill] sm:$0xff] %v11014_v29  ;;  %9492 = vmatmul.msk.bf16.gmra.mxu0 %vm2834_vm2, %v10067_v36  ;;  %9592 = vmatmul.msk.bf16.gmra.mxu1 %vm2834_vm2, %v10167_v13  ;;  %v4052_v29 = vadd.f32 %v11025_v12, %v10628_v42 }
 0x14e   :  { %9692 = vmatmul.msk.bf16.gmra.mxu2 %vm2834_vm2, %v10267_v28  ;;  %9792 = vmatmul.msk.bf16.gmra.mxu3 %vm2834_vm2, %v10367_v0  ;;  %v6251_v28 = vmax.f32 %v4552_v37, 0.0 }
 0x14f   :  { %v6051_v24 = vmax.f32 %v4052_v29, 0.0 }
 0x151   :  { %v11035_v41 = vpop.f32.mrf.mxu2  ;;  %v11037_v1 = vpop.f32.mrf.mxu3 }
 0x152   :  { %15591 = vst [vmem:[#allocation55_spill] sm:$0xff] %v11035_v41  ;;  %v4113_v40 = vpop.f32.mrf.mxu0  ;;  %v4613_v25 = vpop.f32.mrf.mxu1  ;;  %v4054_v41 = vadd.f32 %v11025_v12, %v10646_v48  ;;  %v10268_v48 = vld [vmem:[%s15536_s0 + $0x6e8] sm:$0xff] }
 0x153   :  { %15592 = vst [vmem:[#allocation56_spill] sm:$0xff] %v11037_v1  ;;  %v4114_v36 = vadd.f32 %v11025_v12, %v4113_v40  ;;  %v4614_v13 = vadd.f32 %v11025_v12, %v4613_v25  ;;  %v5552_v1 = vadd.f32 %v11025_v12, %v10644_v47  ;;  %v4554_v25 = vadd.f32 %v11025_v12, %v10648_v49  ;;  %v10368_v49 = vld [vmem:[%s15536_s0 + $0xa08] sm:$0xff] }
 0x154   :  { %v6052_v5 = vmax.f32 %v4054_v41, 0.0  ;;  %v5054_v41 = vadd.f32 %v11025_v12, %v10650_v50 }
 0x155   :  { %v6076_v17 = vmax.f32 %v4114_v36, 0.0  ;;  %v6276_v0 = vmax.f32 %v4614_v13, 0.0 }
 0x157   :  { %v11041_v16 = vmax.f32 %v6051_v24, %v6076_v17  ;;  %v11043_v42 = vmax.f32 %v6251_v28, %v6276_v0  ;;  %v10068_v17 = vld [vmem:[%s15536_s0 + $0xa8] sm:$0xff]  ;;  %v6451_v0 = vmax.f32 %v5052_v43, 0.0 }
 0x158   :  { %v10168_v24 = vld [vmem:[%s15536_s0 + $0x3c8] sm:$0xff] }
 0x159   :  { %15593 = vst [vmem:[#allocation57_spill] sm:$0xff] %v11041_v16  ;;  %v5113_v40 = vpop.f32.mrf.mxu2  ;;  %v5613_v37 = vpop.f32.mrf.mxu3 }
 0x15a   :  { %15594 = vst [vmem:[#allocation58_spill] sm:$0xff] %v11043_v42  ;;  %v5114_v46 = vadd.f32 %v11025_v12, %v5113_v40  ;;  %v5614_v47 = vadd.f32 %v11025_v12, %v5613_v37  ;;  %v4116_v29 = vpop.f32.mrf.mxu0  ;;  %v4616_v36 = vpop.f32.mrf.mxu1  ;;  %v6651_v42 = vmax.f32 %v5552_v1, 0.0  ;;  %v6252_v37 = vmax.f32 %v4554_v25, 0.0 }
 0x15b   :  { %v4117_v13 = vadd.f32 %v11025_v12, %v4116_v29  ;;  %v4617_v28 = vadd.f32 %v11025_v12, %v4616_v36  ;;  %v5554_v25 = vadd.f32 %v11025_v12, %v10652_v51  ;;  %v6452_v29 = vmax.f32 %v5054_v41, 0.0 }
 0x15c   :  { %v6476_v16 = vmax.f32 %v5114_v46, 0.0  ;;  %v6676_v40 = vmax.f32 %v5614_v47, 0.0  ;;  %v5557_v41 = vadd.f32 %v11025_v12, %v10676_v59 }
 0x15d   :  { %v6077_v4 = vmax.f32 %v4117_v13, 0.0  ;;  %v6277_v57 = vmax.f32 %v4617_v28, 0.0  ;;  %9493 = vmatmul.msk.bf16.gmra.mxu0 %vm2834_vm2, %v10068_v17  ;;  %9593 = vmatmul.msk.bf16.gmra.mxu1 %vm2834_vm2, %v10168_v24  ;;  %v6652_v51 = vmax.f32 %v5554_v25, 0.0  ;;  %v4059_v25 = vadd.f32 %v11025_v12, %v10678_v60  ;;  %v10269_v60 = vld [vmem:[%s15536_s0 + $0x6f0] sm:$0xff] }
 0x15e   :  { %v11071_v56 = vmax.f32 %v6451_v0, %v6476_v16  ;;  %v11073_v53 = vmax.f32 %v6651_v42, %v6676_v40  ;;  %9693 = vmatmul.msk.bf16.gmra.mxu2 %vm2834_vm2, %v10268_v48  ;;  %9793 = vmatmul.msk.bf16.gmra.mxu3 %vm2834_vm2, %v10368_v49  ;;  %v4057_v16 = vadd.f32 %v11025_v12, %v10660_v54 }
 0x15f   :  { %v11077_v43 = vmax.f32 %v6052_v5, %v6077_v4  ;;  %v11079_v1 = vmax.f32 %v6252_v37, %v6277_v57  ;;  %v4557_v42 = vadd.f32 %v11025_v12, %v10662_v55 }
 0x160   :  { %v6053_v54 = vmax.f32 %v4057_v16, 0.0  ;;  %v4559_v16 = vadd.f32 %v11025_v12, %v10680_v61  ;;  %v10369_v61 = vld [vmem:[%s15536_s0 + $0xa10] sm:$0xff] }
 0x161   :  { %v5116_v17 = vpop.f32.mrf.mxu2  ;;  %v5616_v24 = vpop.f32.mrf.mxu3  ;;  %v6253_v49 = vmax.f32 %v4557_v42, 0.0 }
 0x162   :  { %v5117_v46 = vadd.f32 %v11025_v12, %v5116_v17  ;;  %v5617_v4 = vadd.f32 %v11025_v12, %v5616_v24  ;;  %v4118_v57 = vpop.f32.mrf.mxu0  ;;  %v4618_v5 = vpop.f32.mrf.mxu1  ;;  %v5057_v17 = vadd.f32 %v11025_v12, %v10674_v58 }
 0x163   :  { %v4119_v47 = vadd.f32 %v11025_v12, %v4118_v57  ;;  %v4619_v50 = vadd.f32 %v11025_v12, %v4618_v5 }
 0x164   :  { %v6477_v36 = vmax.f32 %v5117_v46, 0.0  ;;  %v6677_v48 = vmax.f32 %v5617_v4, 0.0  ;;  %v10069_v46 = vld [vmem:[%s15536_s0 + $0xb0] sm:$0xff] }
 0x165   :  { %v6078_v13 = vmax.f32 %v4119_v47, 0.0  ;;  %v6278_v55 = vmax.f32 %v4619_v50, 0.0  ;;  %v10169_v4 = vld [vmem:[%s15536_s0 + $0x3d0] sm:$0xff] }
 0x166   :  { %v11093_v28 = vmax.f32 %v6452_v29, %v6477_v36  ;;  %v11095_v0 = vmax.f32 %v6652_v51, %v6677_v48  ;;  %v6453_v29 = vmax.f32 %v5057_v17, 0.0  ;;  %v6653_v51 = vmax.f32 %v5557_v41, 0.0 }
 0x167   :  { %v11097_v40 = vmax.f32 %v6053_v54, %v6078_v13  ;;  %v11099_v37 = vmax.f32 %v6253_v49, %v6278_v55  ;;  %v6054_v54 = vmax.f32 %v4059_v25, 0.0  ;;  %v6254_v49 = vmax.f32 %v4559_v16, 0.0 }
 0x168   :  { %v5059_v25 = vadd.f32 %v11025_v12, %v10682_v62  ;;  %v5559_v16 = vadd.f32 %v11025_v12, %v10684_v63 }
 0x169   :  { %v5118_v42 = vpop.f32.mrf.mxu2  ;;  %v5618_v24 = vpop.f32.mrf.mxu3 }
 0x16a   :  { %v5119_v58 = vadd.f32 %v11025_v12, %v5118_v42  ;;  %v5619_v59 = vadd.f32 %v11025_v12, %v5618_v24  ;;  %v4121_v57 = vpop.f32.mrf.mxu0  ;;  %v4621_v5 = vpop.f32.mrf.mxu1  ;;  %v6654_v63 = vmax.f32 %v5559_v16, 0.0  ;;  %v4064_v16 = vadd.f32 %v11025_v12, %v10710_v8  ;;  %v10270_v8 = vld [vmem:[%s15536_s0 + $0x6f8] sm:$0xff] }
 0x16b   :  { %v4122_v47 = vadd.f32 %v11025_v12, %v4121_v57  ;;  %v4622_v50 = vadd.f32 %v11025_v12, %v4621_v5 }
 0x16c   :  { %v6478_v36 = vmax.f32 %v5119_v58, 0.0  ;;  %v6678_v48 = vmax.f32 %v5619_v59, 0.0 }
 0x16d   :  { %v6079_v13 = vmax.f32 %v4122_v47, 0.0  ;;  %v6279_v55 = vmax.f32 %v4622_v50, 0.0  ;;  %9494 = vmatmul.msk.bf16.gmra.mxu0 %vm2834_vm2, %v10069_v46  ;;  %9594 = vmatmul.msk.bf16.gmra.mxu1 %vm2834_vm2, %v10169_v4  ;;  %v4062_v46 = vadd.f32 %v11025_v12, %v10692_v2  ;;  %v4562_v4 = vadd.f32 %v11025_v12, %v10694_v3 }
 0x16e   :  { %v11127_v42 = vmax.f32 %v6453_v29, %v6478_v36  ;;  %v11129_v24 = vmax.f32 %v6653_v51, %v6678_v48  ;;  %9694 = vmatmul.msk.bf16.gmra.mxu2 %vm2834_vm2, %v10269_v60  ;;  %9794 = vmatmul.msk.bf16.gmra.mxu3 %vm2834_vm2, %v10369_v61  ;;  %v6454_v50 = vmax.f32 %v5059_v25, 0.0  ;;  %v5562_v25 = vadd.f32 %v11025_v12, %v10708_v7 }
 0x16f   :  { %v11133_v17 = vmax.f32 %v6054_v54, %v6079_v13  ;;  %v11135_v41 = vmax.f32 %v6254_v49, %v6279_v55  ;;  %v6055_v2 = vmax.f32 %v4062_v46, 0.0  ;;  %v6255_v36 = vmax.f32 %v4562_v4, 0.0 }
 0x170   :  { %v4564_v46 = vadd.f32 %v11025_v12, %v10712_v9  ;;  %v10370_v9 = vld [vmem:[%s15536_s0 + $0xa18] sm:$0xff] }
 0x171   :  { %v5121_v58 = vpop.f32.mrf.mxu2  ;;  %v5621_v59 = vpop.f32.mrf.mxu3 }
 0x172   :  { %v5122_v57 = vadd.f32 %v11025_v12, %v5121_v58  ;;  %v5622_v5 = vadd.f32 %v11025_v12, %v5621_v59  ;;  %v4123_v60 = vpop.f32.mrf.mxu0  ;;  %v4623_v61 = vpop.f32.mrf.mxu1  ;;  %v5062_v58 = vadd.f32 %v11025_v12, %v10706_v6 }
 0x173   :  { %v4124_v47 = vadd.f32 %v11025_v12, %v4123_v60  ;;  %v4624_v62 = vadd.f32 %v11025_v12, %v4623_v61 }
 0x174   :  { %v6479_v29 = vmax.f32 %v5122_v57, 0.0  ;;  %v6679_v51 = vmax.f32 %v5622_v5, 0.0  ;;  %v10070_v57 = vld [vmem:[%s15536_s0 + $0xb8] sm:$0xff] }
 0x175   :  { %v6080_v48 = vmax.f32 %v4124_v47, 0.0  ;;  %v6280_v3 = vmax.f32 %v4624_v62, 0.0  ;;  %v10170_v5 = vld [vmem:[%s15536_s0 + $0x3d8] sm:$0xff] }
 0x176   :  { %v11149_v54 = vmax.f32 %v6454_v50, %v6479_v29  ;;  %v11151_v49 = vmax.f32 %v6654_v63, %v6679_v51  ;;  %v6455_v50 = vmax.f32 %v5062_v58, 0.0  ;;  %v6655_v63 = vmax.f32 %v5562_v25, 0.0 }
 0x177   :  { %v11153_v13 = vmax.f32 %v6055_v2, %v6080_v48  ;;  %v11155_v55 = vmax.f32 %v6255_v36, %v6280_v3  ;;  %v6056_v2 = vmax.f32 %v4064_v16, 0.0  ;;  %v6256_v36 = vmax.f32 %v4564_v46, 0.0 }
 0x178   :  { %v5064_v16 = vadd.f32 %v11025_v12, %v10714_v10  ;;  %v5564_v46 = vadd.f32 %v11025_v12, %v10716_v11 }
 0x179   :  { %v5123_v4 = vpop.f32.mrf.mxu2  ;;  %v5623_v59 = vpop.f32.mrf.mxu3 }
 0x17a   :  { %v5124_v6 = vadd.f32 %v11025_v12, %v5123_v4  ;;  %v5624_v7 = vadd.f32 %v11025_v12, %v5623_v59  ;;  %v4126_v60 = vpop.f32.mrf.mxu0  ;;  %v4626_v61 = vpop.f32.mrf.mxu1  ;;  %v6656_v11 = vmax.f32 %v5564_v46, 0.0  ;;  %v4069_v46 = vadd.f32 %v11025_v12, %v10742_v20  ;;  %v10271_v20 = vld [vmem:[%s15536_s0 + $0x700] sm:$0xff] }
 0x17b   :  { %v4127_v47 = vadd.f32 %v11025_v12, %v4126_v60  ;;  %v4627_v62 = vadd.f32 %v11025_v12, %v4626_v61 }
 0x17c   :  { %v6480_v29 = vmax.f32 %v5124_v6, 0.0  ;;  %v6680_v51 = vmax.f32 %v5624_v7, 0.0 }
 0x17d   :  { %v6081_v48 = vmax.f32 %v4127_v47, 0.0  ;;  %v6281_v3 = vmax.f32 %v4627_v62, 0.0  ;;  %9495 = vmatmul.msk.bf16.gmra.mxu0 %vm2834_vm2, %v10070_v57  ;;  %9595 = vmatmul.msk.bf16.gmra.mxu1 %vm2834_vm2, %v10170_v5  ;;  %v4067_v57 = vadd.f32 %v11025_v12, %v10724_v14  ;;  %v4567_v5 = vadd.f32 %v11025_v12, %v10726_v15 }
 0x17e   :  { %v11183_v4 = vmax.f32 %v6455_v50, %v6480_v29  ;;  %v11185_v59 = vmax.f32 %v6655_v63, %v6680_v51  ;;  %9695 = vmatmul.msk.bf16.gmra.mxu2 %vm2834_vm2, %v10270_v8  ;;  %9795 = vmatmul.msk.bf16.gmra.mxu3 %vm2834_vm2, %v10370_v9  ;;  %v6456_v62 = vmax.f32 %v5064_v16, 0.0  ;;  %v5567_v16 = vadd.f32 %v11025_v12, %v10740_v19 }
 0x17f   :  { %v11189_v58 = vmax.f32 %v6056_v2, %v6081_v48  ;;  %v11191_v25 = vmax.f32 %v6256_v36, %v6281_v3  ;;  %v6057_v14 = vmax.f32 %v4067_v57, 0.0  ;;  %v6257_v29 = vmax.f32 %v4567_v5, 0.0 }
 0x180   :  { %v4569_v57 = vadd.f32 %v11025_v12, %v10744_v21  ;;  %v10371_v21 = vld [vmem:[%s15536_s0 + $0xa20] sm:$0xff] }
 0x181   :  { %v5126_v6 = vpop.f32.mrf.mxu2  ;;  %v5626_v7 = vpop.f32.mrf.mxu3 }
 0x182   :  { %v5127_v60 = vadd.f32 %v11025_v12, %v5126_v6  ;;  %v5627_v61 = vadd.f32 %v11025_v12, %v5626_v7  ;;  %v4128_v8 = vpop.f32.mrf.mxu0  ;;  %v4628_v9 = vpop.f32.mrf.mxu1  ;;  %v5067_v6 = vadd.f32 %v11025_v12, %v10738_v18 }
 0x183   :  { %v4129_v47 = vadd.f32 %v11025_v12, %v4128_v8  ;;  %v4629_v10 = vadd.f32 %v11025_v12, %v4628_v9 }
 0x184   :  { %v6481_v50 = vmax.f32 %v5127_v60, 0.0  ;;  %v6681_v63 = vmax.f32 %v5627_v61, 0.0  ;;  %v10071_v60 = vld [vmem:[%s15536_s0 + $0xc0] sm:$0xff] }
 0x185   :  { %v6082_v51 = vmax.f32 %v4129_v47, 0.0  ;;  %v6282_v15 = vmax.f32 %v4629_v10, 0.0  ;;  %v10171_v61 = vld [vmem:[%s15536_s0 + $0x3e0] sm:$0xff] }
 0x186   :  { %v11205_v2 = vmax.f32 %v6456_v62, %v6481_v50  ;;  %v11207_v36 = vmax.f32 %v6656_v11, %v6681_v63  ;;  %v6457_v62 = vmax.f32 %v5067_v6, 0.0  ;;  %v6657_v11 = vmax.f32 %v5567_v16, 0.0 }
 0x187   :  { %v11209_v48 = vmax.f32 %v6057_v14, %v6082_v51  ;;  %v11211_v3 = vmax.f32 %v6257_v29, %v6282_v15  ;;  %v6058_v14 = vmax.f32 %v4069_v46, 0.0  ;;  %v6258_v29 = vmax.f32 %v4569_v57, 0.0 }
 0x188   :  { %v5069_v46 = vadd.f32 %v11025_v12, %v10746_v22  ;;  %v5569_v57 = vadd.f32 %v11025_v12, %v10748_v23 }
 0x189   :  { %v5128_v5 = vpop.f32.mrf.mxu2  ;;  %v5628_v7 = vpop.f32.mrf.mxu3 }
 0x18a   :  { %v5129_v18 = vadd.f32 %v11025_v12, %v5128_v5  ;;  %v5629_v19 = vadd.f32 %v11025_v12, %v5628_v7  ;;  %v4131_v8 = vpop.f32.mrf.mxu0  ;;  %v4631_v9 = vpop.f32.mrf.mxu1  ;;  %v6658_v23 = vmax.f32 %v5569_v57, 0.0  ;;  %v4074_v57 = vadd.f32 %v11025_v12, %v10774_v32  ;;  %v10272_v32 = vld [vmem:[%s15536_s0 + $0x708] sm:$0xff] }
 0x18b   :  { %v4132_v47 = vadd.f32 %v11025_v12, %v4131_v8  ;;  %v4632_v10 = vadd.f32 %v11025_v12, %v4631_v9 }
 0x18c   :  { %v6482_v50 = vmax.f32 %v5129_v18, 0.0  ;;  %v6682_v63 = vmax.f32 %v5629_v19, 0.0 }
 0x18d   :  { %v6083_v51 = vmax.f32 %v4132_v47, 0.0  ;;  %v6283_v15 = vmax.f32 %v4632_v10, 0.0  ;;  %9496 = vmatmul.msk.bf16.gmra.mxu0 %vm2834_vm2, %v10071_v60  ;;  %9596 = vmatmul.msk.bf16.gmra.mxu1 %vm2834_vm2, %v10171_v61  ;;  %v4072_v60 = vadd.f32 %v11025_v12, %v10756_v26  ;;  %v4572_v61 = vadd.f32 %v11025_v12, %v10758_v27 }
 0x18e   :  { %v11239_v5 = vmax.f32 %v6457_v62, %v6482_v50  ;;  %v11241_v7 = vmax.f32 %v6657_v11, %v6682_v63  ;;  %9696 = vmatmul.msk.bf16.gmra.mxu2 %vm2834_vm2, %v10271_v20  ;;  %9796 = vmatmul.msk.bf16.gmra.mxu3 %vm2834_vm2, %v10371_v21  ;;  %v6458_v10 = vmax.f32 %v5069_v46, 0.0  ;;  %v5572_v46 = vadd.f32 %v11025_v12, %v10772_v31 }
 0x18f   :  { %v11245_v6 = vmax.f32 %v6058_v14, %v6083_v51  ;;  %v11247_v16 = vmax.f32 %v6258_v29, %v6283_v15  ;;  %v6059_v26 = vmax.f32 %v4072_v60, 0.0  ;;  %v6259_v50 = vmax.f32 %v4572_v61, 0.0 }
 0x190   :  { %v4574_v60 = vadd.f32 %v11025_v12, %v10776_v33  ;;  %v10372_v33 = vld [vmem:[%s15536_s0 + $0xa28] sm:$0xff] }
 0x191   :  { %v5131_v18 = vpop.f32.mrf.mxu2  ;;  %v5631_v19 = vpop.f32.mrf.mxu3 }
 0x192   :  { %v5132_v8 = vadd.f32 %v11025_v12, %v5131_v18  ;;  %v5632_v9 = vadd.f32 %v11025_v12, %v5631_v19  ;;  %v4133_v20 = vpop.f32.mrf.mxu0  ;;  %v4633_v21 = vpop.f32.mrf.mxu1  ;;  %v5072_v18 = vadd.f32 %v11025_v12, %v10770_v30 }
 0x193   :  { %v4134_v47 = vadd.f32 %v11025_v12, %v4133_v20  ;;  %v4634_v22 = vadd.f32 %v11025_v12, %v4633_v21 }
 0x194   :  { %v6483_v62 = vmax.f32 %v5132_v8, 0.0  ;;  %v6683_v11 = vmax.f32 %v5632_v9, 0.0  ;;  %v10072_v8 = vld [vmem:[%s15536_s0 + $0xc8] sm:$0xff] }
 0x195   :  { %v6084_v63 = vmax.f32 %v4134_v47, 0.0  ;;  %v6284_v27 = vmax.f32 %v4634_v22, 0.0  ;;  %v10172_v9 = vld [vmem:[%s15536_s0 + $0x3e8] sm:$0xff] }
 0x196   :  { %v11261_v14 = vmax.f32 %v6458_v10, %v6483_v62  ;;  %v11263_v29 = vmax.f32 %v6658_v23, %v6683_v11  ;;  %v6459_v10 = vmax.f32 %v5072_v18, 0.0  ;;  %v6659_v23 = vmax.f32 %v5572_v46, 0.0 }
 0x197   :  { %v11265_v51 = vmax.f32 %v6059_v26, %v6084_v63  ;;  %v11267_v15 = vmax.f32 %v6259_v50, %v6284_v27  ;;  %v6060_v26 = vmax.f32 %v4074_v57, 0.0  ;;  %v6260_v50 = vmax.f32 %v4574_v60, 0.0 }
 0x198   :  { %v5074_v57 = vadd.f32 %v11025_v12, %v10778_v34  ;;  %v5574_v60 = vadd.f32 %v11025_v12, %v10780_v35 }
 0x199   :  { %v5133_v61 = vpop.f32.mrf.mxu2  ;;  %v5633_v19 = vpop.f32.mrf.mxu3 }
 0x19a   :  { %v5134_v30 = vadd.f32 %v11025_v12, %v5133_v61  ;;  %v5634_v31 = vadd.f32 %v11025_v12, %v5633_v19  ;;  %v4136_v20 = vpop.f32.mrf.mxu0  ;;  %v4636_v21 = vpop.f32.mrf.mxu1  ;;  %v6660_v35 = vmax.f32 %v5574_v60, 0.0  ;;  %v4079_v60 = vadd.f32 %v11025_v12, %v10806_v52  ;;  %v10273_v52 = vld [vmem:[%s15536_s0 + $0x710] sm:$0xff] }
 0x19b   :  { %v4137_v47 = vadd.f32 %v11025_v12, %v4136_v20  ;;  %v4637_v22 = vadd.f32 %v11025_v12, %v4636_v21 }
 0x19c   :  { %v6484_v62 = vmax.f32 %v5134_v30, 0.0  ;;  %v6684_v11 = vmax.f32 %v5634_v31, 0.0 }
 0x19d   :  { %v6085_v63 = vmax.f32 %v4137_v47, 0.0  ;;  %v6285_v27 = vmax.f32 %v4637_v22, 0.0  ;;  %9497 = vmatmul.msk.bf16.gmra.mxu0 %vm2834_vm2, %v10072_v8  ;;  %9597 = vmatmul.msk.bf16.gmra.mxu1 %vm2834_vm2, %v10172_v9  ;;  %v4077_v8 = vadd.f32 %v11025_v12, %v10788_v38  ;;  %v4577_v9 = vadd.f32 %v11025_v12, %v10790_v39 }
 0x19e   :  { %v11295_v61 = vmax.f32 %v6459_v10, %v6484_v62  ;;  %v11297_v19 = vmax.f32 %v6659_v23, %v6684_v11  ;;  %9697 = vmatmul.msk.bf16.gmra.mxu2 %vm2834_vm2, %v10272_v32  ;;  %9797 = vmatmul.msk.bf16.gmra.mxu3 %vm2834_vm2, %v10372_v33  ;;  %v6460_v22 = vmax.f32 %v5074_v57, 0.0  ;;  %v5577_v57 = vadd.f32 %v11025_v12, %v10804_v45 }
 0x19f   :  { %v11301_v18 = vmax.f32 %v6060_v26, %v6085_v63  ;;  %v11303_v46 = vmax.f32 %v6260_v50, %v6285_v27  ;;  %v6061_v38 = vmax.f32 %v4077_v8, 0.0  ;;  %v6261_v62 = vmax.f32 %v4577_v9, 0.0  ;;  %v15596_v8 = vld [vmem:[#allocation2_spill] sm:$0xff] }
 0x1a0   :  { %v4579_v9 = vadd.f32 %v11025_v12, %v15596_v8 }
 0x1a1   :  { %v5136_v30 = vpop.f32.mrf.mxu2  ;;  %v5636_v31 = vpop.f32.mrf.mxu3 }
 0x1a2   :  { %v5137_v20 = vadd.f32 %v11025_v12, %v5136_v30  ;;  %v5637_v21 = vadd.f32 %v11025_v12, %v5636_v31  ;;  %v4138_v32 = vpop.f32.mrf.mxu0  ;;  %v4638_v33 = vpop.f32.mrf.mxu1  ;;  %v5077_v30 = vadd.f32 %v11025_v12, %v10802_v44 }
 0x1a3   :  { %v4139_v47 = vadd.f32 %v11025_v12, %v4138_v32  ;;  %v4639_v34 = vadd.f32 %v11025_v12, %v4638_v33  ;;  %v10173_v32 = vld [vmem:[%s15536_s0 + $0x3f0] sm:$0xff] }
 0x1a4   :  { %v6485_v10 = vmax.f32 %v5137_v20, 0.0  ;;  %v6685_v23 = vmax.f32 %v5637_v21, 0.0  ;;  %v10073_v21 = vld [vmem:[%s15536_s0 + $0xd0] sm:$0xff] }
 0x1a5   :  { %v6086_v11 = vmax.f32 %v4139_v47, 0.0  ;;  %v6286_v39 = vmax.f32 %v4639_v34, 0.0  ;;  %v10373_v34 = vld [vmem:[%s15536_s0 + $0xa30] sm:$0xff] }
 0x1a6   :  { %v11317_v26 = vmax.f32 %v6460_v22, %v6485_v10  ;;  %v11319_v50 = vmax.f32 %v6660_v35, %v6685_v23  ;;  %v6461_v10 = vmax.f32 %v5077_v30, 0.0  ;;  %v6661_v23 = vmax.f32 %v5577_v57, 0.0 }
 0x1a7   :  { %v11321_v63 = vmax.f32 %v6061_v38, %v6086_v11  ;;  %v11323_v27 = vmax.f32 %v6261_v62, %v6286_v39  ;;  %v6062_v11 = vmax.f32 %v4079_v60, 0.0  ;;  %v6262_v39 = vmax.f32 %v4579_v9, 0.0  ;;  %v15601_v60 = vld [vmem:[#allocation3_spill] sm:$0xff] }
 0x1a8   :  { %v5079_v9 = vadd.f32 %v11025_v12, %v15601_v60 }
 0x1a9   :  { %15595 = vst [vmem:[#allocation59_spill] sm:$0xff] %v11323_v27  ;;  %v5138_v31 = vpop.f32.mrf.mxu2  ;;  %v5638_v20 = vpop.f32.mrf.mxu3 }
 0x1aa   :  { %v5139_v44 = vadd.f32 %v11025_v12, %v5138_v31  ;;  %v5639_v45 = vadd.f32 %v11025_v12, %v5638_v20  ;;  %v4141_v33 = vpop.f32.mrf.mxu0  ;;  %v4641_v47 = vpop.f32.mrf.mxu1 }
 0x1ab   :  { %v4142_v22 = vadd.f32 %v11025_v12, %v4141_v33  ;;  %v4642_v35 = vadd.f32 %v11025_v12, %v4641_v47  ;;  %v15604_v33 = vld [vmem:[#allocation6_spill] sm:$0xff] }
 0x1ac   :  { %v6486_v38 = vmax.f32 %v5139_v44, 0.0  ;;  %v6686_v62 = vmax.f32 %v5639_v45, 0.0  ;;  %v15602_v44 = vld [vmem:[#allocation4_spill] sm:$0xff]  ;;  %v15603_v45 = vld [vmem:[#allocation5_spill] sm:$0xff]  ;;  %v4582_v47 = vadd.f32 %v11025_v12, %v15604_v33 }
 0x1ad   :  { %v6087_v8 = vmax.f32 %v4142_v22, 0.0  ;;  %v6287_v31 = vmax.f32 %v4642_v35, 0.0  ;;  %9498 = vmatmul.msk.bf16.gmra.mxu0 %vm2834_vm2, %v10073_v21  ;;  %9598 = vmatmul.msk.bf16.gmra.mxu1 %vm2834_vm2, %v10173_v32  ;;  %v5579_v21 = vadd.f32 %v11025_v12, %v15602_v44  ;;  %v4082_v32 = vadd.f32 %v11025_v12, %v15603_v45 }
 0x1ae   :  { %v11351_v20 = vmax.f32 %v6461_v10, %v6486_v38  ;;  %v11353_v27 = vmax.f32 %v6661_v23, %v6686_v62  ;;  %9698 = vmatmul.msk.bf16.gmra.mxu2 %vm2834_vm2, %v10273_v52  ;;  %9798 = vmatmul.msk.bf16.gmra.mxu3 %vm2834_vm2, %v10373_v34  ;;  %v6263_v44 = vmax.f32 %v4582_v47, 0.0  ;;  %v15612_v47 = vld [vmem:[#allocation10_spill] sm:$0xff] }
 0x1af   :  { %v11357_v30 = vmax.f32 %v6062_v11, %v6087_v8  ;;  %v11359_v57 = vmax.f32 %v6262_v39, %v6287_v31  ;;  %v6462_v11 = vmax.f32 %v5079_v9, 0.0  ;;  %v6662_v39 = vmax.f32 %v5579_v21, 0.0  ;;  %v15611_v21 = vld [vmem:[#allocation9_spill] sm:$0xff] }
 0x1b0   :  { %15597 = vst [vmem:[#allocation2_spill] sm:$0xff] %v11351_v20  ;;  %v6063_v60 = vmax.f32 %v4082_v32, 0.0  ;;  %v4084_v32 = vadd.f32 %v11025_v12, %v15611_v21 }
 0x1b1   :  { %15598 = vst [vmem:[#allocation60_spill] sm:$0xff] %v11353_v27  ;;  %v5141_v22 = vpop.f32.mrf.mxu2  ;;  %v5641_v52 = vpop.f32.mrf.mxu3  ;;  %v15609_v27 = vld [vmem:[#allocation7_spill] sm:$0xff] }
 0x1b2   :  { %15599 = vst [vmem:[#allocation61_spill] sm:$0xff] %v11357_v30  ;;  %v5142_v34 = vadd.f32 %v11025_v12, %v5141_v22  ;;  %v5642_v35 = vadd.f32 %v11025_v12, %v5641_v52  ;;  %v4143_v10 = vpop.f32.mrf.mxu0  ;;  %v4643_v23 = vpop.f32.mrf.mxu1 }
 0x1b3   :  { %15600 = vst [vmem:[#allocation62_spill] sm:$0xff] %v11359_v57  ;;  %v4144_v38 = vadd.f32 %v11025_v12, %v4143_v10  ;;  %v4644_v62 = vadd.f32 %v11025_v12, %v4643_v23  ;;  %v5082_v10 = vadd.f32 %v11025_v12, %v15609_v27  ;;  %v15610_v23 = vld [vmem:[#allocation8_spill] sm:$0xff] }
 0x1b4   :  { %v6487_v8 = vmax.f32 %v5142_v34, 0.0  ;;  %v6687_v31 = vmax.f32 %v5642_v35, 0.0  ;;  %v5582_v9 = vadd.f32 %v11025_v12, %v15610_v23  ;;  %v4584_v34 = vadd.f32 %v11025_v12, %v15612_v47 }
 0x1b5   :  { %v6088_v45 = vmax.f32 %v4144_v38, 0.0  ;;  %v6288_v33 = vmax.f32 %v4644_v62, 0.0  ;;  %v10074_v62 = vld [vmem:[%s15536_s0 + $0xd8] sm:$0xff]  ;;  %v6463_v23 = vmax.f32 %v5082_v10, 0.0 }
 0x1b6   :  { %v11373_v57 = vmax.f32 %v6462_v11, %v6487_v8  ;;  %v11375_v30 = vmax.f32 %v6662_v39, %v6687_v31  ;;  %v10174_v11 = vld [vmem:[%s15536_s0 + $0x3f8] sm:$0xff]  ;;  %v6663_v21 = vmax.f32 %v5582_v9, 0.0 }
 0x1b7   :  { %v11377_v22 = vmax.f32 %v6063_v60, %v6088_v45  ;;  %v11379_v52 = vmax.f32 %v6263_v44, %v6288_v33  ;;  %v10274_v60 = vld [vmem:[%s15536_s0 + $0x718] sm:$0xff] }
 0x1b8   :  { %15605 = vst [vmem:[#allocation3_spill] sm:$0xff] %v11373_v57  ;;  %v10374_v44 = vld [vmem:[%s15536_s0 + $0xa38] sm:$0xff] }
 0x1b9   :  { %15606 = vst [vmem:[#allocation4_spill] sm:$0xff] %v11375_v30  ;;  %v5143_v35 = vpop.f32.mrf.mxu2  ;;  %v5643_v38 = vpop.f32.mrf.mxu3 }
 0x1ba   :  { %15607 = vst [vmem:[#allocation5_spill] sm:$0xff] %v11377_v22  ;;  %v5144_v27 = vadd.f32 %v11025_v12, %v5143_v35  ;;  %v5644_v39 = vadd.f32 %v11025_v12, %v5643_v38  ;;  %v4146_v8 = vpop.f32.mrf.mxu0  ;;  %v4646_v31 = vpop.f32.mrf.mxu1  ;;  %v6264_v38 = vmax.f32 %v4584_v34, 0.0 }
 0x1bb   :  { %15608 = vst [vmem:[#allocation6_spill] sm:$0xff] %v11379_v52  ;;  %v4147_v45 = vadd.f32 %v11025_v12, %v4146_v8  ;;  %v4647_v33 = vadd.f32 %v11025_v12, %v4646_v31  ;;  %v6064_v52 = vmax.f32 %v4084_v32, 0.0  ;;  %v15617_v32 = vld [vmem:[#allocation11_spill] sm:$0xff]  ;;  %v15620_v8 = vld [vmem:[#allocation14_spill] sm:$0xff] }
 0x1bc   :  { %v6488_v47 = vmax.f32 %v5144_v27, 0.0  ;;  %v6688_v35 = vmax.f32 %v5644_v39, 0.0  ;;  %v5084_v34 = vadd.f32 %v11025_v12, %v15617_v32  ;;  %v15618_v27 = vld [vmem:[#allocation12_spill] sm:$0xff]  ;;  %v15619_v39 = vld [vmem:[#allocation13_spill] sm:$0xff]  ;;  %v4587_v31 = vadd.f32 %v11025_v12, %v15620_v8 }
 0x1bd   :  { %v6089_v22 = vmax.f32 %v4147_v45, 0.0  ;;  %v6289_v30 = vmax.f32 %v4647_v33, 0.0  ;;  %9499 = vmatmul.msk.bf16.gmra.mxu0 %vm2834_vm2, %v10074_v62  ;;  %9599 = vmatmul.msk.bf16.gmra.mxu1 %vm2834_vm2, %v10174_v11  ;;  %v5584_v62 = vadd.f32 %v11025_v12, %v15618_v27  ;;  %v4087_v11 = vadd.f32 %v11025_v12, %v15619_v39 }
 0x1be   :  { %v11407_v57 = vmax.f32 %v6463_v23, %v6488_v47  ;;  %v11409_v20 = vmax.f32 %v6663_v21, %v6688_v35  ;;  %9699 = vmatmul.msk.bf16.gmra.mxu2 %vm2834_vm2, %v10274_v60  ;;  %9799 = vmatmul.msk.bf16.gmra.mxu3 %vm2834_vm2, %v10374_v44  ;;  %v6464_v21 = vmax.f32 %v5084_v34, 0.0  ;;  %v6265_v27 = vmax.f32 %v4587_v31, 0.0  ;;  %v15628_v31 = vld [vmem:[#allocation18_spill] sm:$0xff] }
 0x1bf   :  { %v11413_v10 = vmax.f32 %v6064_v52, %v6089_v22  ;;  %v11415_v9 = vmax.f32 %v6264_v38, %v6289_v30  ;;  %v6664_v47 = vmax.f32 %v5584_v62, 0.0  ;;  %v6065_v32 = vmax.f32 %v4087_v11, 0.0  ;;  %v15627_v62 = vld [vmem:[#allocation17_spill] sm:$0xff] }
 0x1c0   :  { %15613 = vst [vmem:[#allocation7_spill] sm:$0xff] %v11407_v57  ;;  %v4089_v11 = vadd.f32 %v11025_v12, %v15627_v62 }
 0x1c1   :  { %15614 = vst [vmem:[#allocation8_spill] sm:$0xff] %v11409_v20  ;;  %v5146_v45 = vpop.f32.mrf.mxu2  ;;  %v5646_v60 = vpop.f32.mrf.mxu3  ;;  %v15625_v20 = vld [vmem:[#allocation15_spill] sm:$0xff] }
 0x1c2   :  { %15615 = vst [vmem:[#allocation9_spill] sm:$0xff] %v11413_v10  ;;  %v5147_v44 = vadd.f32 %v11025_v12, %v5146_v45  ;;  %v5647_v22 = vadd.f32 %v11025_v12, %v5646_v60  ;;  %v4148_v30 = vpop.f32.mrf.mxu0  ;;  %v4648_v52 = vpop.f32.mrf.mxu1 }
 0x1c3   :  { %15616 = vst [vmem:[#allocation10_spill] sm:$0xff] %v11415_v9  ;;  %v4149_v33 = vadd.f32 %v11025_v12, %v4148_v30  ;;  %v4649_v23 = vadd.f32 %v11025_v12, %v4648_v52  ;;  %v5087_v30 = vadd.f32 %v11025_v12, %v15625_v20  ;;  %v15626_v52 = vld [vmem:[#allocation16_spill] sm:$0xff] }
 0x1c4   :  { %v6489_v35 = vmax.f32 %v5147_v44, 0.0  ;;  %v6689_v38 = vmax.f32 %v5647_v22, 0.0  ;;  %v5587_v34 = vadd.f32 %v11025_v12, %v15626_v52  ;;  %v4589_v44 = vadd.f32 %v11025_v12, %v15628_v31 }
 0x1c5   :  { %v6090_v39 = vmax.f32 %v4149_v33, 0.0  ;;  %v6290_v8 = vmax.f32 %v4649_v23, 0.0  ;;  %v10075_v23 = vld [vmem:[%s15536_s0 + $0xe0] sm:$0xff]  ;;  %v6465_v52 = vmax.f32 %v5087_v30, 0.0 }
 0x1c6   :  { %v11429_v9 = vmax.f32 %v6464_v21, %v6489_v35  ;;  %v11431_v10 = vmax.f32 %v6664_v47, %v6689_v38  ;;  %v10175_v21 = vld [vmem:[%s15536_s0 + $0x400] sm:$0xff]  ;;  %v6665_v62 = vmax.f32 %v5587_v34, 0.0 }
 0x1c7   :  { %v11433_v45 = vmax.f32 %v6065_v32, %v6090_v39  ;;  %v11435_v60 = vmax.f32 %v6265_v27, %v6290_v8  ;;  %v10275_v32 = vld [vmem:[%s15536_s0 + $0x720] sm:$0xff] }
 0x1c8   :  { %15621 = vst [vmem:[#allocation11_spill] sm:$0xff] %v11429_v9  ;;  %v10375_v27 = vld [vmem:[%s15536_s0 + $0xa40] sm:$0xff] }
 0x1c9   :  { %15622 = vst [vmem:[#allocation12_spill] sm:$0xff] %v11431_v10  ;;  %v5148_v22 = vpop.f32.mrf.mxu2  ;;  %v5648_v33 = vpop.f32.mrf.mxu3 }
 0x1ca   :  { %15623 = vst [vmem:[#allocation13_spill] sm:$0xff] %v11433_v45  ;;  %v5149_v20 = vadd.f32 %v11025_v12, %v5148_v22  ;;  %v5649_v47 = vadd.f32 %v11025_v12, %v5648_v33  ;;  %v4151_v35 = vpop.f32.mrf.mxu0  ;;  %v4651_v38 = vpop.f32.mrf.mxu1  ;;  %v6266_v33 = vmax.f32 %v4589_v44, 0.0 }
 0x1cb   :  { %15624 = vst [vmem:[#allocation14_spill] sm:$0xff] %v11435_v60  ;;  %v4152_v39 = vadd.f32 %v11025_v12, %v4151_v35  ;;  %v4652_v8 = vadd.f32 %v11025_v12, %v4651_v38  ;;  %v6066_v60 = vmax.f32 %v4089_v11, 0.0  ;;  %v15633_v11 = vld [vmem:[#allocation19_spill] sm:$0xff]  ;;  %v15636_v35 = vld [vmem:[#allocation22_spill] sm:$0xff] }
 0x1cc   :  { %v6490_v31 = vmax.f32 %v5149_v20, 0.0  ;;  %v6690_v22 = vmax.f32 %v5649_v47, 0.0  ;;  %v5089_v44 = vadd.f32 %v11025_v12, %v15633_v11  ;;  %v15634_v20 = vld [vmem:[#allocation20_spill] sm:$0xff]  ;;  %v15635_v47 = vld [vmem:[#allocation21_spill] sm:$0xff]  ;;  %v4592_v38 = vadd.f32 %v11025_v12, %v15636_v35 }
 0x1cd   :  { %v6091_v45 = vmax.f32 %v4152_v39, 0.0  ;;  %v6291_v10 = vmax.f32 %v4652_v8, 0.0  ;;  %9500 = vmatmul.msk.bf16.gmra.mxu0 %vm2834_vm2, %v10075_v23  ;;  %9600 = vmatmul.msk.bf16.gmra.mxu1 %vm2834_vm2, %v10175_v21  ;;  %v5589_v23 = vadd.f32 %v11025_v12, %v15634_v20  ;;  %v4092_v21 = vadd.f32 %v11025_v12, %v15635_v47 }
 0x1ce   :  { %v11463_v9 = vmax.f32 %v6465_v52, %v6490_v31  ;;  %v11465_v57 = vmax.f32 %v6665_v62, %v6690_v22  ;;  %9700 = vmatmul.msk.bf16.gmra.mxu2 %vm2834_vm2, %v10275_v32  ;;  %9800 = vmatmul.msk.bf16.gmra.mxu3 %vm2834_vm2, %v10375_v27  ;;  %v6466_v62 = vmax.f32 %v5089_v44, 0.0  ;;  %v6267_v20 = vmax.f32 %v4592_v38, 0.0  ;;  %v15644_v38 = vld [vmem:[#allocation26_spill] sm:$0xff] }
 0x1cf   :  { %v11469_v30 = vmax.f32 %v6066_v60, %v6091_v45  ;;  %v11471_v34 = vmax.f32 %v6266_v33, %v6291_v10  ;;  %v6666_v31 = vmax.f32 %v5589_v23, 0.0  ;;  %v6067_v11 = vmax.f32 %v4092_v21, 0.0  ;;  %v15643_v23 = vld [vmem:[#allocation25_spill] sm:$0xff] }
 0x1d0   :  { %15629 = vst [vmem:[#allocation15_spill] sm:$0xff] %v11463_v9  ;;  %v4094_v21 = vadd.f32 %v11025_v12, %v15643_v23 }
 0x1d1   :  { %15630 = vst [vmem:[#allocation16_spill] sm:$0xff] %v11465_v57  ;;  %v5151_v39 = vpop.f32.mrf.mxu2  ;;  %v5651_v32 = vpop.f32.mrf.mxu3  ;;  %v15641_v57 = vld [vmem:[#allocation23_spill] sm:$0xff] }
 0x1d2   :  { %15631 = vst [vmem:[#allocation17_spill] sm:$0xff] %v11469_v30  ;;  %v5152_v27 = vadd.f32 %v11025_v12, %v5151_v39  ;;  %v5652_v45 = vadd.f32 %v11025_v12, %v5651_v32  ;;  %v4153_v10 = vpop.f32.mrf.mxu0  ;;  %v4653_v60 = vpop.f32.mrf.mxu1 }
 0x1d3   :  { %15632 = vst [vmem:[#allocation18_spill] sm:$0xff] %v11471_v34  ;;  %v4154_v8 = vadd.f32 %v11025_v12, %v4153_v10  ;;  %v4654_v52 = vadd.f32 %v11025_v12, %v4653_v60  ;;  %v5092_v10 = vadd.f32 %v11025_v12, %v15641_v57  ;;  %v15642_v60 = vld [vmem:[#allocation24_spill] sm:$0xff] }
 0x1d4   :  { %v6491_v22 = vmax.f32 %v5152_v27, 0.0  ;;  %v6691_v33 = vmax.f32 %v5652_v45, 0.0  ;;  %v5592_v44 = vadd.f32 %v11025_v12, %v15642_v60  ;;  %v4594_v27 = vadd.f32 %v11025_v12, %v15644_v38 }
 0x1d5   :  { %v6092_v47 = vmax.f32 %v4154_v8, 0.0  ;;  %v6292_v35 = vmax.f32 %v4654_v52, 0.0  ;;  %v10076_v52 = vld [vmem:[%s15536_s0 + $0xe8] sm:$0xff]  ;;  %v6467_v60 = vmax.f32 %v5092_v10, 0.0 }
 0x1d6   :  { %v11485_v34 = vmax.f32 %v6466_v62, %v6491_v22  ;;  %v11487_v30 = vmax.f32 %v6666_v31, %v6691_v33  ;;  %v10176_v62 = vld [vmem:[%s15536_s0 + $0x408] sm:$0xff]  ;;  %v6667_v23 = vmax.f32 %v5592_v44, 0.0 }
 0x1d7   :  { %v11489_v39 = vmax.f32 %v6067_v11, %v6092_v47  ;;  %v11491_v32 = vmax.f32 %v6267_v20, %v6292_v35  ;;  %v10276_v11 = vld [vmem:[%s15536_s0 + $0x728] sm:$0xff] }
 0x1d8   :  { %15637 = vst [vmem:[#allocation19_spill] sm:$0xff] %v11485_v34  ;;  %v10376_v20 = vld [vmem:[%s15536_s0 + $0xa48] sm:$0xff] }
 0x1d9   :  { %15638 = vst [vmem:[#allocation20_spill] sm:$0xff] %v11487_v30  ;;  %v5153_v45 = vpop.f32.mrf.mxu2  ;;  %v5653_v8 = vpop.f32.mrf.mxu3 }
 0x1da   :  { %15639 = vst [vmem:[#allocation21_spill] sm:$0xff] %v11489_v39  ;;  %v5154_v57 = vadd.f32 %v11025_v12, %v5153_v45  ;;  %v5654_v31 = vadd.f32 %v11025_v12, %v5653_v8  ;;  %v4156_v22 = vpop.f32.mrf.mxu0  ;;  %v4656_v33 = vpop.f32.mrf.mxu1  ;;  %v6268_v8 = vmax.f32 %v4594_v27, 0.0 }
 0x1db   :  { %15640 = vst [vmem:[#allocation22_spill] sm:$0xff] %v11491_v32  ;;  %v4157_v47 = vadd.f32 %v11025_v12, %v4156_v22  ;;  %v4657_v35 = vadd.f32 %v11025_v12, %v4656_v33  ;;  %v6068_v32 = vmax.f32 %v4094_v21, 0.0  ;;  %v15649_v21 = vld [vmem:[#allocation27_spill] sm:$0xff]  ;;  %v15652_v22 = vld [vmem:[#allocation30_spill] sm:$0xff] }
 0x1dc   :  { %v6492_v38 = vmax.f32 %v5154_v57, 0.0  ;;  %v6692_v45 = vmax.f32 %v5654_v31, 0.0  ;;  %v5094_v27 = vadd.f32 %v11025_v12, %v15649_v21  ;;  %v15650_v57 = vld [vmem:[#allocation28_spill] sm:$0xff]  ;;  %v15651_v31 = vld [vmem:[#allocation29_spill] sm:$0xff]  ;;  %v4597_v33 = vadd.f32 %v11025_v12, %v15652_v22 }
 0x1dd   :  { %v6093_v39 = vmax.f32 %v4157_v47, 0.0  ;;  %v6293_v30 = vmax.f32 %v4657_v35, 0.0  ;;  %9501 = vmatmul.msk.bf16.gmra.mxu0 %vm2834_vm2, %v10076_v52  ;;  %9601 = vmatmul.msk.bf16.gmra.mxu1 %vm2834_vm2, %v10176_v62  ;;  %v5594_v52 = vadd.f32 %v11025_v12, %v15650_v57  ;;  %v4097_v62 = vadd.f32 %v11025_v12, %v15651_v31 }
 0x1de   :  { %v11519_v34 = vmax.f32 %v6467_v60, %v6492_v38  ;;  %v11521_v9 = vmax.f32 %v6667_v23, %v6692_v45  ;;  %9701 = vmatmul.msk.bf16.gmra.mxu2 %vm2834_vm2, %v10276_v11  ;;  %9801 = vmatmul.msk.bf16.gmra.mxu3 %vm2834_vm2, %v10376_v20  ;;  %v6468_v23 = vmax.f32 %v5094_v27, 0.0  ;;  %v6269_v57 = vmax.f32 %v4597_v33, 0.0  ;;  %v15657_v27 = vld [vmem:[#allocation31_spill] sm:$0xff] }
 0x1df   :  { %v11525_v10 = vmax.f32 %v6068_v32, %v6093_v39  ;;  %v11527_v44 = vmax.f32 %v6268_v8, %v6293_v30  ;;  %v6668_v38 = vmax.f32 %v5594_v52, 0.0  ;;  %v6069_v21 = vmax.f32 %v4097_v62, 0.0  ;;  %v15658_v62 = vld [vmem:[#allocation32_spill] sm:$0xff] }
 0x1e0   :  { %15645 = vst [vmem:[#allocation23_spill] sm:$0xff] %v11519_v34 }
 0x1e1   :  { %15646 = vst [vmem:[#allocation24_spill] sm:$0xff] %v11521_v9  ;;  %v5156_v47 = vpop.f32.mrf.mxu2  ;;  %v5656_v11 = vpop.f32.mrf.mxu3 }
 0x1e2   :  { %15647 = vst [vmem:[#allocation25_spill] sm:$0xff] %v11525_v10  ;;  %v5157_v20 = vadd.f32 %v11025_v12, %v5156_v47  ;;  %v5657_v39 = vadd.f32 %v11025_v12, %v5656_v11  ;;  %v4158_v30 = vpop.f32.mrf.mxu0  ;;  %v4658_v32 = vpop.f32.mrf.mxu1 }
 0x1e3   :  { %15648 = vst [vmem:[#allocation26_spill] sm:$0xff] %v11527_v44  ;;  %v4159_v35 = vadd.f32 %v11025_v12, %v4158_v30  ;;  %v4659_v60 = vadd.f32 %v11025_v12, %v4658_v32  ;;  %v11552_v12 = vld [vmem:[%s15535_s2] ss:$0 sm:$0xff] }
 0x1e4   :  { %v6493_v45 = vmax.f32 %v5157_v20, 0.0  ;;  %v6693_v8 = vmax.f32 %v5657_v39, 0.0  ;;  %v5097_v52 = vadd.f32 %v11552_v12, %v15657_v27  ;;  %v5597_v33 = vadd.f32 %v11552_v12, %v15658_v62  ;;  %v15659_v20 = vld [vmem:[#allocation33_spill] sm:$0xff]  ;;  %v15660_v30 = vld [vmem:[#allocation34_spill] sm:$0xff] }
 0x1e5   :  { %v6094_v31 = vmax.f32 %v4159_v35, 0.0  ;;  %v6294_v22 = vmax.f32 %v4659_v60, 0.0  ;;  %v4099_v39 = vadd.f32 %v11552_v12, %v15659_v20  ;;  %v4599_v32 = vadd.f32 %v11552_v12, %v15660_v30 }
 0x1e6   :  { %v11541_v44 = vmax.f32 %v6468_v23, %v6493_v45  ;;  %v11543_v10 = vmax.f32 %v6668_v38, %v6693_v8  ;;  %v10077_v23 = vld [vmem:[%s15536_s0 + $0xf0] sm:$0xff]  ;;  %v6469_v20 = vmax.f32 %v5097_v52, 0.0  ;;  %v6669_v30 = vmax.f32 %v5597_v33, 0.0 }
 0x1e7   :  { %v11545_v47 = vmax.f32 %v6069_v21, %v6094_v31  ;;  %v11547_v11 = vmax.f32 %v6269_v57, %v6294_v22  ;;  %v10177_v38 = vld [vmem:[%s15536_s0 + $0x410] sm:$0xff] }
 0x1e8   :  { %15653 = vst [vmem:[#allocation27_spill] sm:$0xff] %v11541_v44  ;;  %v10277_v31 = vld [vmem:[%s15536_s0 + $0x730] sm:$0xff] }
 0x1e9   :  { %15654 = vst [vmem:[#allocation28_spill] sm:$0xff] %v11543_v10  ;;  %v5158_v35 = vpop.f32.mrf.mxu2  ;;  %v5658_v60 = vpop.f32.mrf.mxu3  ;;  %v10377_v22 = vld [vmem:[%s15536_s0 + $0xa50] sm:$0xff] }
 0x1ea   :  { %15655 = vst [vmem:[#allocation29_spill] sm:$0xff] %v11545_v47  ;;  %v5159_v45 = vadd.f32 %v11552_v12, %v5158_v35  ;;  %v5659_v8 = vadd.f32 %v11552_v12, %v5658_v60  ;;  %v4161_v21 = vpop.f32.mrf.mxu0  ;;  %v4661_v57 = vpop.f32.mrf.mxu1  ;;  %v6070_v47 = vmax.f32 %v4099_v39, 0.0  ;;  %v6270_v60 = vmax.f32 %v4599_v32, 0.0  ;;  %v15665_v39 = vld [vmem:[#allocation35_spill] sm:$0xff] }
 0x1eb   :  { %15656 = vst [vmem:[#allocation30_spill] sm:$0xff] %v11547_v11  ;;  %v4162_v27 = vadd.f32 %v11552_v12, %v4161_v21  ;;  %v4662_v62 = vadd.f32 %v11552_v12, %v4661_v57  ;;  %v5099_v32 = vadd.f32 %v11552_v12, %v15665_v39 }
 0x1ec   :  { %v6494_v11 = vmax.f32 %v5159_v45, 0.0  ;;  %v6694_v35 = vmax.f32 %v5659_v8, 0.0  ;;  %v15666_v45 = vld [vmem:[#allocation36_spill] sm:$0xff]  ;;  %v15667_v8 = vld [vmem:[#allocation37_spill] sm:$0xff] }
 0x1ed   :  { %v6095_v10 = vmax.f32 %v4162_v27, 0.0  ;;  %v6295_v44 = vmax.f32 %v4662_v62, 0.0  ;;  %9502 = vmatmul.msk.bf16.gmra.mxu0 %vm2834_vm2, %v10077_v23  ;;  %9602 = vmatmul.msk.bf16.gmra.mxu1 %vm2834_vm2, %v10177_v38  ;;  %v5599_v23 = vadd.f32 %v11552_v12, %v15666_v45  ;;  %v15668_v38 = vld [vmem:[#allocation38_spill] sm:$0xff] }
 0x1ee   :  { %v11580_v9 = vmax.f32 %v6469_v20, %v6494_v11  ;;  %v11582_v34 = vmax.f32 %v6669_v30, %v6694_v35  ;;  %9702 = vmatmul.msk.bf16.gmra.mxu2 %vm2834_vm2, %v10277_v31  ;;  %9802 = vmatmul.msk.bf16.gmra.mxu3 %vm2834_vm2, %v10377_v22  ;;  %v4102_v11 = vadd.f32 %v11552_v12, %v15667_v8  ;;  %v6470_v20 = vmax.f32 %v5099_v32, 0.0 }
 0x1ef   :  { %v11586_v52 = vmax.f32 %v6070_v47, %v6095_v10  ;;  %v11588_v33 = vmax.f32 %v6270_v60, %v6295_v44  ;;  %v4602_v21 = vadd.f32 %v11552_v12, %v15668_v38  ;;  %v6670_v30 = vmax.f32 %v5599_v23, 0.0  ;;  %v15675_v23 = vld [vmem:[#allocation41_spill] sm:$0xff] }
 0x1f0   :  { %15661 = vst [vmem:[#allocation31_spill] sm:$0xff] %v11580_v9  ;;  %v6071_v39 = vmax.f32 %v4102_v11, 0.0  ;;  %v4104_v11 = vadd.f32 %v11552_v12, %v15675_v23 }
 0x1f1   :  { %15662 = vst [vmem:[#allocation32_spill] sm:$0xff] %v11582_v34  ;;  %v5161_v57 = vpop.f32.mrf.mxu2  ;;  %v5661_v31 = vpop.f32.mrf.mxu3  ;;  %v6271_v45 = vmax.f32 %v4602_v21, 0.0  ;;  %v15673_v34 = vld [vmem:[#allocation39_spill] sm:$0xff]  ;;  %v15676_v21 = vld [vmem:[#allocation42_spill] sm:$0xff] }
 0x1f2   :  { %15663 = vst [vmem:[#allocation33_spill] sm:$0xff] %v11586_v52  ;;  %v5162_v22 = vadd.f32 %v11552_v12, %v5161_v57  ;;  %v5662_v10 = vadd.f32 %v11552_v12, %v5661_v31  ;;  %v4163_v44 = vpop.f32.mrf.mxu0  ;;  %v4663_v47 = vpop.f32.mrf.mxu1 }
 0x1f3   :  { %15664 = vst [vmem:[#allocation34_spill] sm:$0xff] %v11588_v33  ;;  %v4164_v27 = vadd.f32 %v11552_v12, %v4163_v44  ;;  %v4664_v62 = vadd.f32 %v11552_v12, %v4663_v47  ;;  %v5102_v44 = vadd.f32 %v11552_v12, %v15673_v34  ;;  %v15674_v47 = vld [vmem:[#allocation40_spill] sm:$0xff] }
 0x1f4   :  { %v6495_v35 = vmax.f32 %v5162_v22, 0.0  ;;  %v6695_v60 = vmax.f32 %v5662_v10, 0.0  ;;  %v5602_v32 = vadd.f32 %v11552_v12, %v15674_v47  ;;  %v4604_v22 = vadd.f32 %v11552_v12, %v15676_v21 }
 0x1f5   :  { %v6096_v8 = vmax.f32 %v4164_v27, 0.0  ;;  %v6296_v38 = vmax.f32 %v4664_v62, 0.0  ;;  %v10078_v62 = vld [vmem:[%s15536_s0 + $0xf8] sm:$0xff]  ;;  %v6471_v47 = vmax.f32 %v5102_v44, 0.0 }
 0x1f6   :  { %v11602_v33 = vmax.f32 %v6470_v20, %v6495_v35  ;;  %v11604_v52 = vmax.f32 %v6670_v30, %v6695_v60  ;;  %v10178_v20 = vld [vmem:[%s15536_s0 + $0x418] sm:$0xff]  ;;  %v6671_v23 = vmax.f32 %v5602_v32, 0.0 }
 0x1f7   :  { %v11606_v57 = vmax.f32 %v6071_v39, %v6096_v8  ;;  %v11608_v31 = vmax.f32 %v6271_v45, %v6296_v38  ;;  %v10278_v39 = vld [vmem:[%s15536_s0 + $0x738] sm:$0xff] }
 0x1f8   :  { %15669 = vst [vmem:[#allocation35_spill] sm:$0xff] %v11602_v33  ;;  %v10378_v45 = vld [vmem:[%s15536_s0 + $0xa58] sm:$0xff] }
 0x1f9   :  { %15670 = vst [vmem:[#allocation36_spill] sm:$0xff] %v11604_v52  ;;  %v5163_v10 = vpop.f32.mrf.mxu2  ;;  %v5663_v27 = vpop.f32.mrf.mxu3 }
 0x1fa   :  { %15671 = vst [vmem:[#allocation37_spill] sm:$0xff] %v11606_v57  ;;  %v5164_v34 = vadd.f32 %v11552_v12, %v5163_v10  ;;  %v5664_v30 = vadd.f32 %v11552_v12, %v5663_v27  ;;  %v4166_v35 = vpop.f32.mrf.mxu0  ;;  %v4666_v60 = vpop.f32.mrf.mxu1  ;;  %v6272_v27 = vmax.f32 %v4604_v22, 0.0 }
 0x1fb   :  { %15672 = vst [vmem:[#allocation38_spill] sm:$0xff] %v11608_v31  ;;  %v4167_v8 = vadd.f32 %v11552_v12, %v4166_v35  ;;  %v4667_v38 = vadd.f32 %v11552_v12, %v4666_v60  ;;  %v6072_v31 = vmax.f32 %v4104_v11, 0.0  ;;  %v15681_v11 = vld [vmem:[#allocation43_spill] sm:$0xff]  ;;  %v15684_v35 = vld [vmem:[#allocation46_spill] sm:$0xff] }
 0x1fc   :  { %v6496_v21 = vmax.f32 %v5164_v34, 0.0  ;;  %v6696_v10 = vmax.f32 %v5664_v30, 0.0  ;;  %v5104_v22 = vadd.f32 %v11552_v12, %v15681_v11  ;;  %v15682_v34 = vld [vmem:[#allocation44_spill] sm:$0xff]  ;;  %v15683_v30 = vld [vmem:[#allocation45_spill] sm:$0xff]  ;;  %v4607_v60 = vadd.f32 %v11552_v12, %v15684_v35 }
 0x1fd   :  { %v6097_v57 = vmax.f32 %v4167_v8, 0.0  ;;  %v6297_v52 = vmax.f32 %v4667_v38, 0.0  ;;  %9503 = vmatmul.msk.bf16.gmra.mxu0 %vm2834_vm2, %v10078_v62  ;;  %9603 = vmatmul.msk.bf16.gmra.mxu1 %vm2834_vm2, %v10178_v20  ;;  %v5604_v62 = vadd.f32 %v11552_v12, %v15682_v34  ;;  %v4107_v20 = vadd.f32 %v11552_v12, %v15683_v30 }
 0x1fe   :  { %v11636_v33 = vmax.f32 %v6471_v47, %v6496_v21  ;;  %v11638_v9 = vmax.f32 %v6671_v23, %v6696_v10  ;;  %9703 = vmatmul.msk.bf16.gmra.mxu2 %vm2834_vm2, %v10278_v39  ;;  %9803 = vmatmul.msk.bf16.gmra.mxu3 %vm2834_vm2, %v10378_v45  ;;  %v6472_v23 = vmax.f32 %v5104_v22, 0.0  ;;  %v6273_v34 = vmax.f32 %v4607_v60, 0.0  ;;  %v15692_v60 = vld [vmem:[#allocation50_spill] sm:$0xff] }
 0x1ff   :  { %v11642_v44 = vmax.f32 %v6072_v31, %v6097_v57  ;;  %v11644_v32 = vmax.f32 %v6272_v27, %v6297_v52  ;;  %v6672_v21 = vmax.f32 %v5604_v62, 0.0  ;;  %v6073_v11 = vmax.f32 %v4107_v20, 0.0  ;;  %v15691_v62 = vld [vmem:[#allocation49_spill] sm:$0xff] }
 0x200   :  { %15677 = vst [vmem:[#allocation39_spill] sm:$0xff] %v11636_v33  ;;  %v4109_v20 = vadd.f32 %v11552_v12, %v15691_v62 }
 0x201   :  { %15678 = vst [vmem:[#allocation40_spill] sm:$0xff] %v11638_v9  ;;  %v5166_v8 = vpop.f32.mrf.mxu2  ;;  %v5666_v39 = vpop.f32.mrf.mxu3  ;;  %v15689_v9 = vld [vmem:[#allocation47_spill] sm:$0xff] }
 0x202   :  { %15679 = vst [vmem:[#allocation41_spill] sm:$0xff] %v11642_v44  ;;  %v5167_v45 = vadd.f32 %v11552_v12, %v5166_v8  ;;  %v5667_v57 = vadd.f32 %v11552_v12, %v5666_v39  ;;  %v4168_v52 = vpop.f32.mrf.mxu0  ;;  %v4668_v31 = vpop.f32.mrf.mxu1 }
 0x203   :  { %15680 = vst [vmem:[#allocation42_spill] sm:$0xff] %v11644_v32  ;;  %v4169_v38 = vadd.f32 %v11552_v12, %v4168_v52  ;;  %v4669_v47 = vadd.f32 %v11552_v12, %v4668_v31  ;;  %v5107_v52 = vadd.f32 %v11552_v12, %v15689_v9  ;;  %v15690_v31 = vld [vmem:[#allocation48_spill] sm:$0xff] }
 0x204   :  { %v6497_v10 = vmax.f32 %v5167_v45, 0.0  ;;  %v6697_v27 = vmax.f32 %v5667_v57, 0.0  ;;  %v5607_v22 = vadd.f32 %v11552_v12, %v15690_v31  ;;  %v4609_v45 = vadd.f32 %v11552_v12, %v15692_v60 }
 0x205   :  { %v6098_v30 = vmax.f32 %v4169_v38, 0.0  ;;  %v6298_v35 = vmax.f32 %v4669_v47, 0.0  ;;  %v10079_v47 = vld [vmem:[%s15536_s0 + $0x100] sm:$0xff]  ;;  %v6473_v31 = vmax.f32 %v5107_v52, 0.0 }
 0x206   :  { %v11658_v32 = vmax.f32 %v6472_v23, %v6497_v10  ;;  %v11660_v44 = vmax.f32 %v6672_v21, %v6697_v27  ;;  %v10179_v23 = vld [vmem:[%s15536_s0 + $0x420] sm:$0xff]  ;;  %v6673_v62 = vmax.f32 %v5607_v22, 0.0 }
 0x207   :  { %v11662_v8 = vmax.f32 %v6073_v11, %v6098_v30  ;;  %v11664_v39 = vmax.f32 %v6273_v34, %v6298_v35  ;;  %v10279_v11 = vld [vmem:[%s15536_s0 + $0x740] sm:$0xff] }
 0x208   :  { %15685 = vst [vmem:[#allocation43_spill] sm:$0xff] %v11658_v32  ;;  %v10379_v34 = vld [vmem:[%s15536_s0 + $0xa60] sm:$0xff] }
 0x209   :  { %15686 = vst [vmem:[#allocation44_spill] sm:$0xff] %v11660_v44  ;;  %v5168_v57 = vpop.f32.mrf.mxu2  ;;  %v5668_v38 = vpop.f32.mrf.mxu3 }
 0x20a   :  { %15687 = vst [vmem:[#allocation45_spill] sm:$0xff] %v11662_v8  ;;  %v5169_v9 = vadd.f32 %v11552_v12, %v5168_v57  ;;  %v5669_v21 = vadd.f32 %v11552_v12, %v5668_v38  ;;  %v4171_v10 = vpop.f32.mrf.mxu0  ;;  %v4671_v27 = vpop.f32.mrf.mxu1  ;;  %v6274_v38 = vmax.f32 %v4609_v45, 0.0 }
 0x20b   :  { %15688 = vst [vmem:[#allocation46_spill] sm:$0xff] %v11664_v39  ;;  %v4172_v30 = vadd.f32 %v11552_v12, %v4171_v10  ;;  %v4672_v35 = vadd.f32 %v11552_v12, %v4671_v27  ;;  %v6074_v39 = vmax.f32 %v4109_v20, 0.0  ;;  %v15696_v20 = vld [vmem:[#allocation51_spill] sm:$0xff]  ;;  %v15699_v10 = vld [vmem:[#allocation54_spill] sm:$0xff] }
 0x20c   :  { %v6498_v60 = vmax.f32 %v5169_v9, 0.0  ;;  %v6698_v57 = vmax.f32 %v5669_v21, 0.0  ;;  %v5109_v45 = vadd.f32 %v11552_v12, %v15696_v20  ;;  %v15697_v9 = vld [vmem:[#allocation52_spill] sm:$0xff]  ;;  %v15698_v21 = vld [vmem:[#allocation53_spill] sm:$0xff]  ;;  %v4612_v27 = vadd.f32 %v11552_v12, %v15699_v10 }
 0x20d   :  { %v6099_v8 = vmax.f32 %v4172_v30, 0.0  ;;  %v6299_v44 = vmax.f32 %v4672_v35, 0.0  ;;  %9504 = vmatmul.msk.bf16.gmra.mxu0 %vm2834_vm2, %v10079_v47  ;;  %9604 = vmatmul.msk.bf16.gmra.mxu1 %vm2834_vm2, %v10179_v23  ;;  %v5609_v47 = vadd.f32 %v11552_v12, %v15697_v9  ;;  %v4112_v23 = vadd.f32 %v11552_v12, %v15698_v21 }
 0x20e   :  { %v11692_v32 = vmax.f32 %v6473_v31, %v6498_v60  ;;  %v11694_v33 = vmax.f32 %v6673_v62, %v6698_v57  ;;  %9704 = vmatmul.msk.bf16.gmra.mxu2 %vm2834_vm2, %v10279_v11  ;;  %9804 = vmatmul.msk.bf16.gmra.mxu3 %vm2834_vm2, %v10379_v34  ;;  %v6474_v62 = vmax.f32 %v5109_v45, 0.0  ;;  %v6275_v9 = vmax.f32 %v4612_v27, 0.0  ;;  %v10180_v27 = vld [vmem:[%s15536_s0 + $0x428] sm:$0xff] }
 0x20f   :  { %v11698_v52 = vmax.f32 %v6074_v39, %v6099_v8  ;;  %v11700_v22 = vmax.f32 %v6274_v38, %v6299_v44  ;;  %v6674_v60 = vmax.f32 %v5609_v47, 0.0  ;;  %v6075_v20 = vmax.f32 %v4112_v23, 0.0  ;;  %v10080_v23 = vld [vmem:[%s15536_s0 + $0x108] sm:$0xff] }
 0x210   :  { %15693 = vst [vmem:[#allocation47_spill] sm:$0xff] %v11694_v33  ;;  %v15701_v33 = vld [vmem:[#allocation55_spill] sm:$0xff] }
 0x211   :  { %15694 = vst [vmem:[#allocation48_spill] sm:$0xff] %v11698_v52  ;;  %v5171_v30 = vpop.f32.mrf.mxu2  ;;  %v5671_v11 = vpop.f32.mrf.mxu3 }
 0x212   :  { %15695 = vst [vmem:[#allocation49_spill] sm:$0xff] %v11700_v22  ;;  %v5172_v34 = vadd.f32 %v11552_v12, %v5171_v30  ;;  %v5672_v8 = vadd.f32 %v11552_v12, %v5671_v11  ;;  %v4173_v44 = vpop.f32.mrf.mxu0  ;;  %v4673_v39 = vpop.f32.mrf.mxu1 }
 0x213   :  { %v4174_v35 = vadd.f32 %v11552_v12, %v4173_v44  ;;  %v4674_v31 = vadd.f32 %v11552_v12, %v4673_v39  ;;  %v5112_v44 = vadd.f32 %v11552_v12, %v15701_v33  ;;  %v15702_v39 = vld [vmem:[#allocation56_spill] sm:$0xff]  ;;  %v10280_v33 = vld [vmem:[%s15536_s0 + $0x748] sm:$0xff] }
 0x214   :  { %v6499_v57 = vmax.f32 %v5172_v34, 0.0  ;;  %v6699_v38 = vmax.f32 %v5672_v8, 0.0  ;;  %v5612_v45 = vadd.f32 %v11552_v12, %v15702_v39 }
 0x215   :  { %v6100_v21 = vmax.f32 %v4174_v35, 0.0  ;;  %v6300_v10 = vmax.f32 %v4674_v31, 0.0 }
 0x216   :  { %v11714_v22 = vmax.f32 %v6474_v62, %v6499_v57  ;;  %v11716_v52 = vmax.f32 %v6674_v60, %v6699_v38  ;;  %v10380_v60 = vld [vmem:[%s15536_s0 + $0xa68] sm:$0xff] }
 0x217   :  { %v11718_v30 = vmax.f32 %v6075_v20, %v6100_v21  ;;  %v11720_v11 = vmax.f32 %v6275_v9, %v6300_v10  ;;  %v6475_v20 = vmax.f32 %v5112_v44, 0.0  ;;  %v6675_v9 = vmax.f32 %v5612_v45, 0.0  ;;  %v15704_v44 = vld [vmem:[#allocation58_spill] sm:$0xff] }
 0x219   :  { %15700 = vst [vmem:[#allocation50_spill] sm:$0xff] %v11720_v11  ;;  %v5173_v47 = vpop.f32.mrf.mxu2  ;;  %v5673_v34 = vpop.f32.mrf.mxu3 }
 0x21a   :  { %v5174_v8 = vadd.f32 %v11552_v12, %v5173_v47  ;;  %v5674_v35 = vadd.f32 %v11552_v12, %v5673_v34  ;;  %v4176_v31 = vpop.f32.mrf.mxu0  ;;  %v4676_v62 = vpop.f32.mrf.mxu1 }
 0x21b   :  { %v4177_v57 = vadd.f32 %v11552_v12, %v4176_v31  ;;  %v4677_v38 = vadd.f32 %v11552_v12, %v4676_v62  ;;  %v15703_v31 = vld [vmem:[#allocation57_spill] sm:$0xff] }
 0x21c   :  { %v6500_v21 = vmax.f32 %v5174_v8, 0.0  ;;  %v6700_v10 = vmax.f32 %v5674_v35, 0.0 }
 0x21d   :  { %v6101_v39 = vmax.f32 %v4177_v57, 0.0  ;;  %v6301_v47 = vmax.f32 %v4677_v38, 0.0  ;;  %9505 = vmatmul.msk.bf16.gmra.mxu0 %vm2834_vm2, %v10080_v23  ;;  %9605 = vmatmul.msk.bf16.gmra.mxu1 %vm2834_vm2, %v10180_v27 }
 0x21e   :  { %v11744_v34 = vmax.f32 %v6475_v20, %v6500_v21  ;;  %v11746_v11 = vmax.f32 %v6675_v9, %v6700_v10  ;;  %9705 = vmatmul.msk.bf16.gmra.mxu2 %vm2834_vm2, %v10280_v33  ;;  %9805 = vmatmul.msk.bf16.gmra.mxu3 %vm2834_vm2, %v10380_v60 }
 0x21f   :  { %v11751_v62 = vmax.f32 %v15703_v31, %v6101_v39  ;;  %v11754_v45 = vmax.f32 %v15704_v44, %v6301_v47 }
 0x221   :  { %v5176_v8 = vpop.f32.mrf.mxu2  ;;  %v5676_v35 = vpop.f32.mrf.mxu3 }
 0x222   :  { %v5177_v23 = vadd.f32 %v11552_v12, %v5176_v8  ;;  %v5677_v27 = vadd.f32 %v11552_v12, %v5676_v35  ;;  %v4178_v57 = vpop.f32.mrf.mxu0  ;;  %v4678_v38 = vpop.f32.mrf.mxu1 }
 0x223   :  { %v4179_v20 = vadd.f32 %v11552_v12, %v4178_v57  ;;  %v4679_v33 = vadd.f32 %v11552_v12, %v4678_v38  ;;  %v10381_v38 = vld [vmem:[%s15536_s0 + $0xa70] sm:$0xff] }
 0x224   :  { %v6501_v9 = vmax.f32 %v5177_v23, 0.0  ;;  %v6701_v60 = vmax.f32 %v5677_v27, 0.0  ;;  %v10081_v23 = vld [vmem:[%s15536_s0 + $0x110] sm:$0xff] }
 0x225   :  { %v6102_v21 = vmax.f32 %v4179_v20, 0.0  ;;  %v6302_v10 = vmax.f32 %v4679_v33, 0.0 }
 0x226   :  { %v11761_v39 = vmax.f32 %v11071_v56, %v6501_v9  ;;  %v11764_v47 = vmax.f32 %v11073_v53, %v6701_v60  ;;  %v10181_v56 = vld [vmem:[%s15536_s0 + $0x430] sm:$0xff] }
 0x227   :  { %v11767_v31 = vmax.f32 %v11077_v43, %v6102_v21  ;;  %v11770_v44 = vmax.f32 %v11079_v1, %v6302_v10  ;;  %v10281_v1 = vld [vmem:[%s15536_s0 + $0x750] sm:$0xff] }
 0x229   :  { %v5178_v8 = vpop.f32.mrf.mxu2  ;;  %v5678_v35 = vpop.f32.mrf.mxu3 }
 0x22a   :  { %v5179_v27 = vadd.f32 %v11552_v12, %v5178_v8  ;;  %v5679_v53 = vadd.f32 %v11552_v12, %v5678_v35  ;;  %v4181_v57 = vpop.f32.mrf.mxu0  ;;  %v4681_v43 = vpop.f32.mrf.mxu1 }
 0x22b   :  { %v4182_v20 = vadd.f32 %v11552_v12, %v4181_v57  ;;  %v4682_v33 = vadd.f32 %v11552_v12, %v4681_v43 }
 0x22c   :  { %v6502_v9 = vmax.f32 %v5179_v27, 0.0  ;;  %v6702_v60 = vmax.f32 %v5679_v53, 0.0 }
 0x22d   :  { %v6103_v21 = vmax.f32 %v4182_v20, 0.0  ;;  %v6303_v10 = vmax.f32 %v4682_v33, 0.0  ;;  %9506 = vmatmul.msk.bf16.gmra.mxu0 %vm2834_vm2, %v10081_v23  ;;  %9606 = vmatmul.msk.bf16.gmra.mxu1 %vm2834_vm2, %v10181_v56 }
 0x22e   :  { %v11791_v8 = vmax.f32 %v11093_v28, %v6502_v9  ;;  %v11794_v35 = vmax.f32 %v11095_v0, %v6702_v60  ;;  %9706 = vmatmul.msk.bf16.gmra.mxu2 %vm2834_vm2, %v10281_v1  ;;  %9806 = vmatmul.msk.bf16.gmra.mxu3 %vm2834_vm2, %v10381_v38 }
 0x22f   :  { %v11799_v57 = vmax.f32 %v11097_v40, %v6103_v21  ;;  %v11802_v27 = vmax.f32 %v11099_v37, %v6303_v10 }
 0x231   :  { %v5181_v53 = vpop.f32.mrf.mxu2  ;;  %v5681_v23 = vpop.f32.mrf.mxu3 }
 0x232   :  { %v5182_v56 = vadd.f32 %v11552_v12, %v5181_v53  ;;  %v5682_v28 = vadd.f32 %v11552_v12, %v5681_v23  ;;  %v4183_v43 = vpop.f32.mrf.mxu0  ;;  %v4683_v20 = vpop.f32.mrf.mxu1 }
 0x233   :  { %v4184_v0 = vadd.f32 %v11552_v12, %v4183_v43  ;;  %v4684_v1 = vadd.f32 %v11552_v12, %v4683_v20  ;;  %v10382_v20 = vld [vmem:[%s15536_s0 + $0xa78] sm:$0xff] }
 0x234   :  { %v6503_v33 = vmax.f32 %v5182_v56, 0.0  ;;  %v6703_v38 = vmax.f32 %v5682_v28, 0.0  ;;  %v10082_v56 = vld [vmem:[%s15536_s0 + $0x118] sm:$0xff] }
 0x235   :  { %v6104_v9 = vmax.f32 %v4184_v0, 0.0  ;;  %v6304_v40 = vmax.f32 %v4684_v1, 0.0 }
 0x236   :  { %v11809_v60 = vmax.f32 %v11127_v42, %v6503_v33  ;;  %v11812_v37 = vmax.f32 %v11129_v24, %v6703_v38  ;;  %v10182_v42 = vld [vmem:[%s15536_s0 + $0x438] sm:$0xff] }
 0x237   :  { %v11815_v21 = vmax.f32 %v11133_v17, %v6104_v9  ;;  %v11818_v10 = vmax.f32 %v11135_v41, %v6304_v40  ;;  %v10282_v41 = vld [vmem:[%s15536_s0 + $0x758] sm:$0xff] }
 0x239   :  { %v5183_v53 = vpop.f32.mrf.mxu2  ;;  %v5683_v23 = vpop.f32.mrf.mxu3 }
 0x23a   :  { %v5184_v28 = vadd.f32 %v11552_v12, %v5183_v53  ;;  %v5684_v24 = vadd.f32 %v11552_v12, %v5683_v23  ;;  %v4186_v43 = vpop.f32.mrf.mxu0  ;;  %v4686_v17 = vpop.f32.mrf.mxu1 }
 0x23b   :  { %v4187_v0 = vadd.f32 %v11552_v12, %v4186_v43  ;;  %v4687_v1 = vadd.f32 %v11552_v12, %v4686_v17 }
 0x23c   :  { %v6504_v33 = vmax.f32 %v5184_v28, 0.0  ;;  %v6704_v38 = vmax.f32 %v5684_v24, 0.0 }
 0x23d   :  { %v6105_v9 = vmax.f32 %v4187_v0, 0.0  ;;  %v6305_v40 = vmax.f32 %v4687_v1, 0.0  ;;  %9507 = vmatmul.msk.bf16.gmra.mxu0 %vm2834_vm2, %v10082_v56  ;;  %9607 = vmatmul.msk.bf16.gmra.mxu1 %vm2834_vm2, %v10182_v42 }
 0x23e   :  { %v11839_v53 = vmax.f32 %v11149_v54, %v6504_v33  ;;  %v11842_v23 = vmax.f32 %v11151_v49, %v6704_v38  ;;  %9707 = vmatmul.msk.bf16.gmra.mxu2 %vm2834_vm2, %v10282_v41  ;;  %9807 = vmatmul.msk.bf16.gmra.mxu3 %vm2834_vm2, %v10382_v20 }
 0x23f   :  { %v11847_v43 = vmax.f32 %v11153_v13, %v6105_v9  ;;  %v11850_v28 = vmax.f32 %v11155_v55, %v6305_v40 }
 0x241   :  { %v5186_v24 = vpop.f32.mrf.mxu2  ;;  %v5686_v56 = vpop.f32.mrf.mxu3 }
 0x242   :  { %v5187_v42 = vadd.f32 %v11552_v12, %v5186_v24  ;;  %v5687_v54 = vadd.f32 %v11552_v12, %v5686_v56  ;;  %v4188_v17 = vpop.f32.mrf.mxu0  ;;  %v4688_v0 = vpop.f32.mrf.mxu1 }
 0x243   :  { %v4189_v49 = vadd.f32 %v11552_v12, %v4188_v17  ;;  %v4689_v41 = vadd.f32 %v11552_v12, %v4688_v0  ;;  %v10383_v0 = vld [vmem:[%s15536_s0 + $0xa80] sm:$0xff] }
 0x244   :  { %v6505_v1 = vmax.f32 %v5187_v42, 0.0  ;;  %v6705_v20 = vmax.f32 %v5687_v54, 0.0  ;;  %v10083_v42 = vld [vmem:[%s15536_s0 + $0x120] sm:$0xff] }
 0x245   :  { %v6106_v33 = vmax.f32 %v4189_v49, 0.0  ;;  %v6306_v13 = vmax.f32 %v4689_v41, 0.0 }
 0x246   :  { %v11857_v38 = vmax.f32 %v11183_v4, %v6505_v1  ;;  %v11860_v55 = vmax.f32 %v11185_v59, %v6705_v20  ;;  %v10183_v4 = vld [vmem:[%s15536_s0 + $0x440] sm:$0xff] }
 0x247   :  { %v11863_v9 = vmax.f32 %v11189_v58, %v6106_v33  ;;  %v11866_v40 = vmax.f32 %v11191_v25, %v6306_v13  ;;  %v10283_v25 = vld [vmem:[%s15536_s0 + $0x760] sm:$0xff] }
 0x249   :  { %v5188_v24 = vpop.f32.mrf.mxu2  ;;  %v5688_v56 = vpop.f32.mrf.mxu3 }
 0x24a   :  { %v5189_v54 = vadd.f32 %v11552_v12, %v5188_v24  ;;  %v5689_v59 = vadd.f32 %v11552_v12, %v5688_v56  ;;  %v4191_v17 = vpop.f32.mrf.mxu0  ;;  %v4691_v58 = vpop.f32.mrf.mxu1 }
 0x24b   :  { %v4192_v49 = vadd.f32 %v11552_v12, %v4191_v17  ;;  %v4692_v41 = vadd.f32 %v11552_v12, %v4691_v58 }
 0x24c   :  { %v6506_v1 = vmax.f32 %v5189_v54, 0.0  ;;  %v6706_v20 = vmax.f32 %v5689_v59, 0.0 }
 0x24d   :  { %v6107_v33 = vmax.f32 %v4192_v49, 0.0  ;;  %v6307_v13 = vmax.f32 %v4692_v41, 0.0  ;;  %9508 = vmatmul.msk.bf16.gmra.mxu0 %vm2834_vm2, %v10083_v42  ;;  %9608 = vmatmul.msk.bf16.gmra.mxu1 %vm2834_vm2, %v10183_v4 }
 0x24e   :  { %v11887_v24 = vmax.f32 %v11205_v2, %v6506_v1  ;;  %v11890_v56 = vmax.f32 %v11207_v36, %v6706_v20  ;;  %9708 = vmatmul.msk.bf16.gmra.mxu2 %vm2834_vm2, %v10283_v25  ;;  %9808 = vmatmul.msk.bf16.gmra.mxu3 %vm2834_vm2, %v10383_v0 }
 0x24f   :  { %v11895_v17 = vmax.f32 %v11209_v48, %v6107_v33  ;;  %v11898_v54 = vmax.f32 %v11211_v3, %v6307_v13 }
 0x251   :  { %v5191_v59 = vpop.f32.mrf.mxu2  ;;  %v5691_v42 = vpop.f32.mrf.mxu3 }
 0x252   :  { %v5192_v4 = vadd.f32 %v11552_v12, %v5191_v59  ;;  %v5692_v2 = vadd.f32 %v11552_v12, %v5691_v42  ;;  %v4193_v58 = vpop.f32.mrf.mxu0  ;;  %v4693_v49 = vpop.f32.mrf.mxu1 }
 0x253   :  { %v4194_v36 = vadd.f32 %v11552_v12, %v4193_v58  ;;  %v4694_v25 = vadd.f32 %v11552_v12, %v4693_v49  ;;  %v10384_v49 = vld [vmem:[%s15536_s0 + $0xa88] sm:$0xff] }
 0x254   :  { %v6507_v41 = vmax.f32 %v5192_v4, 0.0  ;;  %v6707_v0 = vmax.f32 %v5692_v2, 0.0  ;;  %v10084_v4 = vld [vmem:[%s15536_s0 + $0x128] sm:$0xff] }
 0x255   :  { %v6108_v1 = vmax.f32 %v4194_v36, 0.0  ;;  %v6308_v48 = vmax.f32 %v4694_v25, 0.0 }
 0x256   :  { %v11905_v20 = vmax.f32 %v11239_v5, %v6507_v41  ;;  %v11908_v3 = vmax.f32 %v11241_v7, %v6707_v0  ;;  %v10184_v5 = vld [vmem:[%s15536_s0 + $0x448] sm:$0xff] }
 0x257   :  { %v11911_v33 = vmax.f32 %v11245_v6, %v6108_v1  ;;  %v11914_v13 = vmax.f32 %v11247_v16, %v6308_v48  ;;  %v10284_v16 = vld [vmem:[%s15536_s0 + $0x768] sm:$0xff] }
 0x259   :  { %v5193_v59 = vpop.f32.mrf.mxu2  ;;  %v5693_v42 = vpop.f32.mrf.mxu3 }
 0x25a   :  { %v5194_v2 = vadd.f32 %v11552_v12, %v5193_v59  ;;  %v5694_v7 = vadd.f32 %v11552_v12, %v5693_v42  ;;  %v4196_v58 = vpop.f32.mrf.mxu0  ;;  %v4696_v6 = vpop.f32.mrf.mxu1 }
 0x25b   :  { %v4197_v36 = vadd.f32 %v11552_v12, %v4196_v58  ;;  %v4697_v25 = vadd.f32 %v11552_v12, %v4696_v6 }
 0x25c   :  { %v6508_v41 = vmax.f32 %v5194_v2, 0.0  ;;  %v6708_v0 = vmax.f32 %v5694_v7, 0.0 }
 0x25d   :  { %v6109_v1 = vmax.f32 %v4197_v36, 0.0  ;;  %v6309_v48 = vmax.f32 %v4697_v25, 0.0  ;;  %9509 = vmatmul.msk.bf16.gmra.mxu0 %vm2834_vm2, %v10084_v4  ;;  %9609 = vmatmul.msk.bf16.gmra.mxu1 %vm2834_vm2, %v10184_v5 }
 0x25e   :  { %v11935_v59 = vmax.f32 %v11261_v14, %v6508_v41  ;;  %v11938_v42 = vmax.f32 %v11263_v29, %v6708_v0  ;;  %9709 = vmatmul.msk.bf16.gmra.mxu2 %vm2834_vm2, %v10284_v16  ;;  %9809 = vmatmul.msk.bf16.gmra.mxu3 %vm2834_vm2, %v10384_v49 }
 0x25f   :  { %v11943_v58 = vmax.f32 %v11265_v51, %v6109_v1  ;;  %v11946_v2 = vmax.f32 %v11267_v15, %v6309_v48 }
 0x261   :  { %v5196_v7 = vpop.f32.mrf.mxu2  ;;  %v5696_v4 = vpop.f32.mrf.mxu3 }
 0x262   :  { %v5197_v5 = vadd.f32 %v11552_v12, %v5196_v7  ;;  %v5697_v14 = vadd.f32 %v11552_v12, %v5696_v4  ;;  %v4198_v6 = vpop.f32.mrf.mxu0  ;;  %v4698_v36 = vpop.f32.mrf.mxu1 }
 0x263   :  { %v4199_v29 = vadd.f32 %v11552_v12, %v4198_v6  ;;  %v4699_v16 = vadd.f32 %v11552_v12, %v4698_v36  ;;  %v10385_v36 = vld [vmem:[%s15536_s0 + $0xa90] sm:$0xff] }
 0x264   :  { %v6509_v25 = vmax.f32 %v5197_v5, 0.0  ;;  %v6709_v49 = vmax.f32 %v5697_v14, 0.0  ;;  %v10085_v5 = vld [vmem:[%s15536_s0 + $0x130] sm:$0xff] }
 0x265   :  { %v6110_v41 = vmax.f32 %v4199_v29, 0.0  ;;  %v6310_v51 = vmax.f32 %v4699_v16, 0.0 }
 0x266   :  { %v11953_v0 = vmax.f32 %v11295_v61, %v6509_v25  ;;  %v11956_v15 = vmax.f32 %v11297_v19, %v6709_v49  ;;  %v10185_v61 = vld [vmem:[%s15536_s0 + $0x450] sm:$0xff] }
 0x267   :  { %v11959_v1 = vmax.f32 %v11301_v18, %v6110_v41  ;;  %v11962_v48 = vmax.f32 %v11303_v46, %v6310_v51  ;;  %v10285_v46 = vld [vmem:[%s15536_s0 + $0x770] sm:$0xff] }
 0x269   :  { %v5198_v7 = vpop.f32.mrf.mxu2  ;;  %v5698_v4 = vpop.f32.mrf.mxu3 }
 0x26a   :  { %v5199_v14 = vadd.f32 %v11552_v12, %v5198_v7  ;;  %v5699_v19 = vadd.f32 %v11552_v12, %v5698_v4  ;;  %v4201_v6 = vpop.f32.mrf.mxu0  ;;  %v4701_v18 = vpop.f32.mrf.mxu1 }
 0x26b   :  { %v4202_v29 = vadd.f32 %v11552_v12, %v4201_v6  ;;  %v4702_v16 = vadd.f32 %v11552_v12, %v4701_v18 }
 0x26c   :  { %v6510_v25 = vmax.f32 %v5199_v14, 0.0  ;;  %v6710_v49 = vmax.f32 %v5699_v19, 0.0  ;;  %v15708_v14 = vld [vmem:[#allocation59_spill] sm:$0xff] }
 0x26d   :  { %v6111_v41 = vmax.f32 %v4202_v29, 0.0  ;;  %v6311_v51 = vmax.f32 %v4702_v16, 0.0  ;;  %9510 = vmatmul.msk.bf16.gmra.mxu0 %vm2834_vm2, %v10085_v5  ;;  %9610 = vmatmul.msk.bf16.gmra.mxu1 %vm2834_vm2, %v10185_v61 }
 0x26e   :  { %v11983_v7 = vmax.f32 %v11317_v26, %v6510_v25  ;;  %v11986_v4 = vmax.f32 %v11319_v50, %v6710_v49  ;;  %9710 = vmatmul.msk.bf16.gmra.mxu2 %vm2834_vm2, %v10285_v46  ;;  %9810 = vmatmul.msk.bf16.gmra.mxu3 %vm2834_vm2, %v10385_v36 }
 0x26f   :  { %v11991_v6 = vmax.f32 %v11321_v63, %v6111_v41  ;;  %v11994_v19 = vmax.f32 %v15708_v14, %v6311_v51  ;;  %v15710_v41 = vld [vmem:[#allocation2_spill] sm:$0xff]  ;;  %v15712_v51 = vld [vmem:[#allocation60_spill] sm:$0xff] }
 0x270   :  { %15705 = vst [vmem:[#allocation51_spill] sm:$0xff] %v11983_v7 }
 0x271   :  { %15706 = vst [vmem:[#allocation52_spill] sm:$0xff] %v11986_v4  ;;  %v5201_v18 = vpop.f32.mrf.mxu2  ;;  %v5701_v5 = vpop.f32.mrf.mxu3 }
 0x272   :  { %15707 = vst [vmem:[#allocation53_spill] sm:$0xff] %v11991_v6  ;;  %v5202_v61 = vadd.f32 %v11552_v12, %v5201_v18  ;;  %v5702_v26 = vadd.f32 %v11552_v12, %v5701_v5  ;;  %v4203_v29 = vpop.f32.mrf.mxu0  ;;  %v4703_v16 = vpop.f32.mrf.mxu1  ;;  %v15716_v5 = vld [vmem:[#allocation62_spill] sm:$0xff] }
 0x273   :  { %15709 = vst [vmem:[#allocation54_spill] sm:$0xff] %v11994_v19  ;;  %v4204_v50 = vadd.f32 %v11552_v12, %v4203_v29  ;;  %v4704_v46 = vadd.f32 %v11552_v12, %v4703_v16  ;;  %v15714_v19 = vld [vmem:[#allocation61_spill] sm:$0xff] }
 0x274   :  { %v6511_v25 = vmax.f32 %v5202_v61, 0.0  ;;  %v6711_v36 = vmax.f32 %v5702_v26, 0.0  ;;  %v10086_v61 = vld [vmem:[%s15536_s0 + $0x138] sm:$0xff] }
 0x275   :  { %v6112_v49 = vmax.f32 %v4204_v50, 0.0  ;;  %v6312_v63 = vmax.f32 %v4704_v46, 0.0  ;;  %v10186_v26 = vld [vmem:[%s15536_s0 + $0x458] sm:$0xff] }
 0x276   :  { %v12001_v6 = vmax.f32 %v15710_v41, %v6511_v25  ;;  %v12004_v14 = vmax.f32 %v15712_v51, %v6711_v36  ;;  %v10286_v25 = vld [vmem:[%s15536_s0 + $0x778] sm:$0xff] }
 0x277   :  { %v12007_v18 = vmax.f32 %v15714_v19, %v6112_v49  ;;  %v12010_v4 = vmax.f32 %v15716_v5, %v6312_v63  ;;  %v10386_v36 = vld [vmem:[%s15536_s0 + $0xa98] sm:$0xff] }
 0x278   :  { %15711 = vst [vmem:[#allocation55_spill] sm:$0xff] %v12001_v6 }
 0x279   :  { %15713 = vst [vmem:[#allocation56_spill] sm:$0xff] %v12004_v14  ;;  %v5203_v7 = vpop.f32.mrf.mxu2  ;;  %v5703_v29 = vpop.f32.mrf.mxu3 }
 0x27a   :  { %15715 = vst [vmem:[#allocation57_spill] sm:$0xff] %v12007_v18  ;;  %v5204_v16 = vadd.f32 %v11552_v12, %v5203_v7  ;;  %v5704_v50 = vadd.f32 %v11552_v12, %v5703_v29  ;;  %v4206_v46 = vpop.f32.mrf.mxu0  ;;  %v4706_v19 = vpop.f32.mrf.mxu1  ;;  %v15718_v29 = vld [vmem:[#allocation3_spill] sm:$0xff]  ;;  %v15720_v18 = vld [vmem:[#allocation4_spill] sm:$0xff] }
 0x27b   :  { %15717 = vst [vmem:[#allocation58_spill] sm:$0xff] %v12010_v4  ;;  %v4207_v49 = vadd.f32 %v11552_v12, %v4206_v46  ;;  %v4707_v63 = vadd.f32 %v11552_v12, %v4706_v19  ;;  %v15722_v46 = vld [vmem:[#allocation5_spill] sm:$0xff] }
 0x27c   :  { %v6512_v41 = vmax.f32 %v5204_v16, 0.0  ;;  %v6712_v51 = vmax.f32 %v5704_v50, 0.0  ;;  %v15724_v16 = vld [vmem:[#allocation6_spill] sm:$0xff] }
 0x27d   :  { %v6113_v5 = vmax.f32 %v4207_v49, 0.0  ;;  %v6313_v7 = vmax.f32 %v4707_v63, 0.0  ;;  %9511 = vmatmul.msk.bf16.gmra.mxu0 %vm2834_vm2, %v10086_v61  ;;  %9611 = vmatmul.msk.bf16.gmra.mxu1 %vm2834_vm2, %v10186_v26 }
 0x27e   :  { %v12031_v4 = vmax.f32 %v15718_v29, %v6512_v41  ;;  %v12034_v14 = vmax.f32 %v15720_v18, %v6712_v51  ;;  %9711 = vmatmul.msk.bf16.gmra.mxu2 %vm2834_vm2, %v10286_v25  ;;  %9811 = vmatmul.msk.bf16.gmra.mxu3 %vm2834_vm2, %v10386_v36 }
 0x27f   :  { %v12039_v19 = vmax.f32 %v15722_v46, %v6113_v5  ;;  %v12042_v50 = vmax.f32 %v15724_v16, %v6313_v7  ;;  %v15726_v46 = vld [vmem:[#allocation7_spill] sm:$0xff]  ;;  %v15728_v7 = vld [vmem:[#allocation8_spill] sm:$0xff] }
 0x280   :  { %15719 = vst [vmem:[#allocation59_spill] sm:$0xff] %v12031_v4 }
 0x281   :  { %15721 = vst [vmem:[#allocation2_spill] sm:$0xff] %v12034_v14  ;;  %v5206_v49 = vpop.f32.mrf.mxu2  ;;  %v5706_v61 = vpop.f32.mrf.mxu3 }
 0x282   :  { %15723 = vst [vmem:[#allocation60_spill] sm:$0xff] %v12039_v19  ;;  %v5207_v26 = vadd.f32 %v11552_v12, %v5206_v49  ;;  %v5707_v63 = vadd.f32 %v11552_v12, %v5706_v61  ;;  %v4208_v41 = vpop.f32.mrf.mxu0  ;;  %v4708_v29 = vpop.f32.mrf.mxu1  ;;  %v15732_v61 = vld [vmem:[#allocation10_spill] sm:$0xff] }
 0x283   :  { %15725 = vst [vmem:[#allocation61_spill] sm:$0xff] %v12042_v50  ;;  %v4209_v18 = vadd.f32 %v11552_v12, %v4208_v41  ;;  %v4709_v25 = vadd.f32 %v11552_v12, %v4708_v29  ;;  %v15730_v50 = vld [vmem:[#allocation9_spill] sm:$0xff] }
 0x284   :  { %v6513_v51 = vmax.f32 %v5207_v26, 0.0  ;;  %v6713_v36 = vmax.f32 %v5707_v63, 0.0  ;;  %v10087_v26 = vld [vmem:[%s15536_s0 + $0x140] sm:$0xff] }
 0x285   :  { %v6114_v14 = vmax.f32 %v4209_v18, 0.0  ;;  %v6314_v5 = vmax.f32 %v4709_v25, 0.0  ;;  %v10187_v63 = vld [vmem:[%s15536_s0 + $0x460] sm:$0xff] }
 0x286   :  { %v12049_v19 = vmax.f32 %v15726_v46, %v6513_v51  ;;  %v12052_v16 = vmax.f32 %v15728_v7, %v6713_v36  ;;  %v10387_v51 = vld [vmem:[%s15536_s0 + $0xaa0] sm:$0xff] }
 0x287   :  { %v12055_v49 = vmax.f32 %v15730_v50, %v6114_v14  ;;  %v12058_v4 = vmax.f32 %v15732_v61, %v6314_v5  ;;  %v10287_v50 = vld [vmem:[%s15536_s0 + $0x780] sm:$0xff] }
 0x288   :  { %15727 = vst [vmem:[#allocation62_spill] sm:$0xff] %v12049_v19 }
 0x289   :  { %15729 = vst [vmem:[#allocation3_spill] sm:$0xff] %v12052_v16  ;;  %v5208_v6 = vpop.f32.mrf.mxu2  ;;  %v5708_v41 = vpop.f32.mrf.mxu3 }
 0x28a   :  { %15731 = vst [vmem:[#allocation4_spill] sm:$0xff] %v12055_v49  ;;  %v5209_v29 = vadd.f32 %v11552_v12, %v5208_v6  ;;  %v5709_v18 = vadd.f32 %v11552_v12, %v5708_v41  ;;  %v4211_v25 = vpop.f32.mrf.mxu0  ;;  %v4711_v14 = vpop.f32.mrf.mxu1  ;;  %v15734_v41 = vld [vmem:[#allocation11_spill] sm:$0xff]  ;;  %v15736_v49 = vld [vmem:[#allocation12_spill] sm:$0xff] }
 0x28b   :  { %15733 = vst [vmem:[#allocation5_spill] sm:$0xff] %v12058_v4  ;;  %v4212_v36 = vadd.f32 %v11552_v12, %v4211_v25  ;;  %v4712_v5 = vadd.f32 %v11552_v12, %v4711_v14  ;;  %v15738_v25 = vld [vmem:[#allocation13_spill] sm:$0xff] }
 0x28c   :  { %v6514_v46 = vmax.f32 %v5209_v29, 0.0  ;;  %v6714_v7 = vmax.f32 %v5709_v18, 0.0  ;;  %v15740_v29 = vld [vmem:[#allocation14_spill] sm:$0xff] }
 0x28d   :  { %v6115_v61 = vmax.f32 %v4212_v36, 0.0  ;;  %v6315_v6 = vmax.f32 %v4712_v5, 0.0  ;;  %9512 = vmatmul.msk.bf16.gmra.mxu0 %vm2834_vm2, %v10087_v26  ;;  %9612 = vmatmul.msk.bf16.gmra.mxu1 %vm2834_vm2, %v10187_v63 }
 0x28e   :  { %v12079_v4 = vmax.f32 %v15734_v41, %v6514_v46  ;;  %v12082_v16 = vmax.f32 %v15736_v49, %v6714_v7  ;;  %9712 = vmatmul.msk.bf16.gmra.mxu2 %vm2834_vm2, %v10287_v50  ;;  %9812 = vmatmul.msk.bf16.gmra.mxu3 %vm2834_vm2, %v10387_v51 }
 0x28f   :  { %v12087_v14 = vmax.f32 %v15738_v25, %v6115_v61  ;;  %v12090_v18 = vmax.f32 %v15740_v29, %v6315_v6  ;;  %v15742_v25 = vld [vmem:[#allocation15_spill] sm:$0xff]  ;;  %v15744_v6 = vld [vmem:[#allocation16_spill] sm:$0xff] }
 0x290   :  { %15735 = vst [vmem:[#allocation6_spill] sm:$0xff] %v12079_v4 }
 0x291   :  { %15737 = vst [vmem:[#allocation7_spill] sm:$0xff] %v12082_v16  ;;  %v5211_v36 = vpop.f32.mrf.mxu2  ;;  %v5711_v26 = vpop.f32.mrf.mxu3 }
 0x292   :  { %15739 = vst [vmem:[#allocation8_spill] sm:$0xff] %v12087_v14  ;;  %v5212_v63 = vadd.f32 %v11552_v12, %v5211_v36  ;;  %v5712_v5 = vadd.f32 %v11552_v12, %v5711_v26  ;;  %v4213_v46 = vpop.f32.mrf.mxu0  ;;  %v4713_v41 = vpop.f32.mrf.mxu1  ;;  %v15748_v26 = vld [vmem:[#allocation18_spill] sm:$0xff] }
 0x293   :  { %15741 = vst [vmem:[#allocation9_spill] sm:$0xff] %v12090_v18  ;;  %v4214_v49 = vadd.f32 %v11552_v12, %v4213_v46  ;;  %v4714_v50 = vadd.f32 %v11552_v12, %v4713_v41  ;;  %v15746_v18 = vld [vmem:[#allocation17_spill] sm:$0xff] }
 0x294   :  { %v6515_v7 = vmax.f32 %v5212_v63, 0.0  ;;  %v6715_v51 = vmax.f32 %v5712_v5, 0.0  ;;  %v10088_v63 = vld [vmem:[%s15536_s0 + $0x148] sm:$0xff] }
 0x295   :  { %v6116_v16 = vmax.f32 %v4214_v49, 0.0  ;;  %v6316_v61 = vmax.f32 %v4714_v50, 0.0  ;;  %v10188_v5 = vld [vmem:[%s15536_s0 + $0x468] sm:$0xff] }
 0x296   :  { %v12097_v14 = vmax.f32 %v15742_v25, %v6515_v7  ;;  %v12100_v29 = vmax.f32 %v15744_v6, %v6715_v51  ;;  %v10388_v7 = vld [vmem:[%s15536_s0 + $0xaa8] sm:$0xff] }
 0x297   :  { %v12103_v36 = vmax.f32 %v15746_v18, %v6116_v16  ;;  %v12106_v4 = vmax.f32 %v15748_v26, %v6316_v61  ;;  %v10288_v18 = vld [vmem:[%s15536_s0 + $0x788] sm:$0xff] }
 0x298   :  { %15743 = vst [vmem:[#allocation10_spill] sm:$0xff] %v12097_v14 }
 0x299   :  { %15745 = vst [vmem:[#allocation11_spill] sm:$0xff] %v12100_v29  ;;  %v5213_v19 = vpop.f32.mrf.mxu2  ;;  %v5713_v46 = vpop.f32.mrf.mxu3 }
 0x29a   :  { %15747 = vst [vmem:[#allocation12_spill] sm:$0xff] %v12103_v36  ;;  %v5214_v41 = vadd.f32 %v11552_v12, %v5213_v19  ;;  %v5714_v49 = vadd.f32 %v11552_v12, %v5713_v46  ;;  %v4216_v50 = vpop.f32.mrf.mxu0  ;;  %v4716_v16 = vpop.f32.mrf.mxu1  ;;  %v15750_v46 = vld [vmem:[#allocation19_spill] sm:$0xff]  ;;  %v15752_v36 = vld [vmem:[#allocation20_spill] sm:$0xff] }
 0x29b   :  { %15749 = vst [vmem:[#allocation13_spill] sm:$0xff] %v12106_v4  ;;  %v4217_v51 = vadd.f32 %v11552_v12, %v4216_v50  ;;  %v4717_v61 = vadd.f32 %v11552_v12, %v4716_v16  ;;  %v15754_v50 = vld [vmem:[#allocation21_spill] sm:$0xff] }
 0x29c   :  { %v6516_v25 = vmax.f32 %v5214_v41, 0.0  ;;  %v6716_v6 = vmax.f32 %v5714_v49, 0.0  ;;  %v15756_v41 = vld [vmem:[#allocation22_spill] sm:$0xff] }
 0x29d   :  { %v6117_v26 = vmax.f32 %v4217_v51, 0.0  ;;  %v6317_v19 = vmax.f32 %v4717_v61, 0.0  ;;  %9513 = vmatmul.msk.bf16.gmra.mxu0 %vm2834_vm2, %v10088_v63  ;;  %9613 = vmatmul.msk.bf16.gmra.mxu1 %vm2834_vm2, %v10188_v5  ;;  %v12143_v5 = vld [vmem:[%s15535_s2] ss:$0 sm:$0xff] }
 0x29e   :  { %v12127_v4 = vmax.f32 %v15750_v46, %v6516_v25  ;;  %v12130_v29 = vmax.f32 %v15752_v36, %v6716_v6  ;;  %9713 = vmatmul.msk.bf16.gmra.mxu2 %vm2834_vm2, %v10288_v18  ;;  %9813 = vmatmul.msk.bf16.gmra.mxu3 %vm2834_vm2, %v10388_v7 }
 0x29f   :  { %v12135_v12 = vmax.f32 %v15754_v50, %v6117_v26  ;;  %v12138_v49 = vmax.f32 %v15756_v41, %v6317_v19  ;;  %v15758_v50 = vld [vmem:[#allocation23_spill] sm:$0xff] }
 0x2a0   :  { %15751 = vst [vmem:[#allocation14_spill] sm:$0xff] %v12127_v4 }
 0x2a1   :  { %15753 = vst [vmem:[#allocation15_spill] sm:$0xff] %v12130_v29  ;;  %v5216_v16 = vpop.f32.mrf.mxu2  ;;  %v5716_v63 = vpop.f32.mrf.mxu3  ;;  %v15762_v29 = vld [vmem:[#allocation25_spill] sm:$0xff] }
 0x2a2   :  { %15755 = vst [vmem:[#allocation16_spill] sm:$0xff] %v12135_v12  ;;  %v5217_v36 = vadd.f32 %v12143_v5, %v5216_v16  ;;  %v5717_v51 = vadd.f32 %v12143_v5, %v5716_v63  ;;  %v4218_v18 = vpop.f32.mrf.mxu0  ;;  %v4718_v61 = vpop.f32.mrf.mxu1  ;;  %v15764_v63 = vld [vmem:[#allocation26_spill] sm:$0xff] }
 0x2a3   :  { %15757 = vst [vmem:[#allocation17_spill] sm:$0xff] %v12138_v49  ;;  %v4219_v7 = vadd.f32 %v12143_v5, %v4218_v18  ;;  %v4719_v25 = vadd.f32 %v12143_v5, %v4718_v61  ;;  %v15760_v49 = vld [vmem:[#allocation24_spill] sm:$0xff] }
 0x2a4   :  { %v6517_v6 = vmax.f32 %v5217_v36, 0.0  ;;  %v6717_v26 = vmax.f32 %v5717_v51, 0.0  ;;  %v10089_v36 = vld [vmem:[%s15536_s0 + $0x150] sm:$0xff] }
 0x2a5   :  { %v6118_v19 = vmax.f32 %v4219_v7, 0.0  ;;  %v6318_v46 = vmax.f32 %v4719_v25, 0.0  ;;  %v10189_v51 = vld [vmem:[%s15536_s0 + $0x470] sm:$0xff] }
 0x2a6   :  { %v12150_v41 = vmax.f32 %v15758_v50, %v6517_v6  ;;  %v12153_v12 = vmax.f32 %v15760_v49, %v6717_v26  ;;  %v10289_v25 = vld [vmem:[%s15536_s0 + $0x790] sm:$0xff] }
 0x2a7   :  { %v12156_v16 = vmax.f32 %v15762_v29, %v6118_v19  ;;  %v12159_v4 = vmax.f32 %v15764_v63, %v6318_v46  ;;  %v10389_v6 = vld [vmem:[%s15536_s0 + $0xab0] sm:$0xff] }
 0x2a8   :  { %15759 = vst [vmem:[#allocation18_spill] sm:$0xff] %v12150_v41 }
 0x2a9   :  { %15761 = vst [vmem:[#allocation19_spill] sm:$0xff] %v12153_v12  ;;  %v5218_v14 = vpop.f32.mrf.mxu2  ;;  %v5718_v18 = vpop.f32.mrf.mxu3 }
 0x2aa   :  { %15763 = vst [vmem:[#allocation20_spill] sm:$0xff] %v12156_v16  ;;  %v5219_v61 = vadd.f32 %v12143_v5, %v5218_v14  ;;  %v5719_v49 = vadd.f32 %v12143_v5, %v5718_v18  ;;  %v4221_v7 = vpop.f32.mrf.mxu0  ;;  %v4721_v29 = vpop.f32.mrf.mxu1  ;;  %v15766_v18 = vld [vmem:[#allocation27_spill] sm:$0xff]  ;;  %v15768_v16 = vld [vmem:[#allocation28_spill] sm:$0xff] }
 0x2ab   :  { %15765 = vst [vmem:[#allocation21_spill] sm:$0xff] %v12159_v4  ;;  %v4222_v26 = vadd.f32 %v12143_v5, %v4221_v7  ;;  %v4722_v19 = vadd.f32 %v12143_v5, %v4721_v29  ;;  %v15770_v7 = vld [vmem:[#allocation29_spill] sm:$0xff] }
 0x2ac   :  { %v6518_v46 = vmax.f32 %v5219_v61, 0.0  ;;  %v6718_v50 = vmax.f32 %v5719_v49, 0.0  ;;  %v15772_v61 = vld [vmem:[#allocation30_spill] sm:$0xff] }
 0x2ad   :  { %v6119_v63 = vmax.f32 %v4222_v26, 0.0  ;;  %v6319_v14 = vmax.f32 %v4722_v19, 0.0  ;;  %9514 = vmatmul.msk.bf16.gmra.mxu0 %vm2834_vm2, %v10089_v36  ;;  %9614 = vmatmul.msk.bf16.gmra.mxu1 %vm2834_vm2, %v10189_v51 }
 0x2ae   :  { %v12180_v4 = vmax.f32 %v15766_v18, %v6518_v46  ;;  %v12183_v12 = vmax.f32 %v15768_v16, %v6718_v50  ;;  %9714 = vmatmul.msk.bf16.gmra.mxu2 %vm2834_vm2, %v10289_v25  ;;  %9814 = vmatmul.msk.bf16.gmra.mxu3 %vm2834_vm2, %v10389_v6 }
 0x2af   :  { %v12188_v29 = vmax.f32 %v15770_v7, %v6119_v63  ;;  %v12191_v49 = vmax.f32 %v15772_v61, %v6319_v14  ;;  %v15774_v7 = vld [vmem:[#allocation31_spill] sm:$0xff]  ;;  %v15776_v14 = vld [vmem:[#allocation32_spill] sm:$0xff] }
 0x2b0   :  { %15767 = vst [vmem:[#allocation22_spill] sm:$0xff] %v12180_v4 }
 0x2b1   :  { %15769 = vst [vmem:[#allocation23_spill] sm:$0xff] %v12183_v12  ;;  %v5221_v26 = vpop.f32.mrf.mxu2  ;;  %v5721_v36 = vpop.f32.mrf.mxu3 }
 0x2b2   :  { %15771 = vst [vmem:[#allocation24_spill] sm:$0xff] %v12188_v29  ;;  %v5222_v51 = vadd.f32 %v12143_v5, %v5221_v26  ;;  %v5722_v19 = vadd.f32 %v12143_v5, %v5721_v36  ;;  %v4223_v46 = vpop.f32.mrf.mxu0  ;;  %v4723_v18 = vpop.f32.mrf.mxu1  ;;  %v15780_v36 = vld [vmem:[#allocation34_spill] sm:$0xff] }
 0x2b3   :  { %15773 = vst [vmem:[#allocation25_spill] sm:$0xff] %v12191_v49  ;;  %v4224_v16 = vadd.f32 %v12143_v5, %v4223_v46  ;;  %v4724_v25 = vadd.f32 %v12143_v5, %v4723_v18  ;;  %v15778_v49 = vld [vmem:[#allocation33_spill] sm:$0xff] }
 0x2b4   :  { %v6519_v50 = vmax.f32 %v5222_v51, 0.0  ;;  %v6719_v6 = vmax.f32 %v5722_v19, 0.0  ;;  %v10090_v51 = vld [vmem:[%s15536_s0 + $0x158] sm:$0xff] }
 0x2b5   :  { %v6120_v12 = vmax.f32 %v4224_v16, 0.0  ;;  %v6320_v63 = vmax.f32 %v4724_v25, 0.0  ;;  %v10190_v19 = vld [vmem:[%s15536_s0 + $0x478] sm:$0xff] }
 0x2b6   :  { %v12198_v29 = vmax.f32 %v15774_v7, %v6519_v50  ;;  %v12201_v61 = vmax.f32 %v15776_v14, %v6719_v6  ;;  %v10390_v50 = vld [vmem:[%s15536_s0 + $0xab8] sm:$0xff] }
 0x2b7   :  { %v12204_v26 = vmax.f32 %v15778_v49, %v6120_v12  ;;  %v12207_v4 = vmax.f32 %v15780_v36, %v6320_v63  ;;  %v10290_v49 = vld [vmem:[%s15536_s0 + $0x798] sm:$0xff] }
 0x2b8   :  { %15775 = vst [vmem:[#allocation26_spill] sm:$0xff] %v12198_v29 }
 0x2b9   :  { %15777 = vst [vmem:[#allocation27_spill] sm:$0xff] %v12201_v61  ;;  %v5223_v41 = vpop.f32.mrf.mxu2  ;;  %v5723_v46 = vpop.f32.mrf.mxu3 }
 0x2ba   :  { %15779 = vst [vmem:[#allocation28_spill] sm:$0xff] %v12204_v26  ;;  %v5224_v18 = vadd.f32 %v12143_v5, %v5223_v41  ;;  %v5724_v16 = vadd.f32 %v12143_v5, %v5723_v46  ;;  %v4226_v25 = vpop.f32.mrf.mxu0  ;;  %v4726_v12 = vpop.f32.mrf.mxu1  ;;  %v15782_v46 = vld [vmem:[#allocation35_spill] sm:$0xff]  ;;  %v15784_v26 = vld [vmem:[#allocation36_spill] sm:$0xff] }
 0x2bb   :  { %15781 = vst [vmem:[#allocation29_spill] sm:$0xff] %v12207_v4  ;;  %v4227_v6 = vadd.f32 %v12143_v5, %v4226_v25  ;;  %v4727_v63 = vadd.f32 %v12143_v5, %v4726_v12  ;;  %v15786_v25 = vld [vmem:[#allocation37_spill] sm:$0xff] }
 0x2bc   :  { %v6520_v7 = vmax.f32 %v5224_v18, 0.0  ;;  %v6720_v14 = vmax.f32 %v5724_v16, 0.0  ;;  %v15788_v18 = vld [vmem:[#allocation38_spill] sm:$0xff] }
 0x2bd   :  { %v6121_v36 = vmax.f32 %v4227_v6, 0.0  ;;  %v6321_v41 = vmax.f32 %v4727_v63, 0.0  ;;  %9515 = vmatmul.msk.bf16.gmra.mxu0 %vm2834_vm2, %v10090_v51  ;;  %9615 = vmatmul.msk.bf16.gmra.mxu1 %vm2834_vm2, %v10190_v19 }
 0x2be   :  { %v12228_v4 = vmax.f32 %v15782_v46, %v6520_v7  ;;  %v12231_v61 = vmax.f32 %v15784_v26, %v6720_v14  ;;  %9715 = vmatmul.msk.bf16.gmra.mxu2 %vm2834_vm2, %v10290_v49  ;;  %9815 = vmatmul.msk.bf16.gmra.mxu3 %vm2834_vm2, %v10390_v50 }
 0x2bf   :  { %v12236_v12 = vmax.f32 %v15786_v25, %v6121_v36  ;;  %v12239_v16 = vmax.f32 %v15788_v18, %v6321_v41  ;;  %v15790_v25 = vld [vmem:[#allocation39_spill] sm:$0xff]  ;;  %v15791_v41 = vld [vmem:[#allocation40_spill] sm:$0xff] }
 0x2c0   :  { %15783 = vst [vmem:[#allocation30_spill] sm:$0xff] %v12228_v4 }
 0x2c1   :  { %15785 = vst [vmem:[#allocation31_spill] sm:$0xff] %v12231_v61  ;;  %v5226_v6 = vpop.f32.mrf.mxu2  ;;  %v5726_v51 = vpop.f32.mrf.mxu3 }
 0x2c2   :  { %15787 = vst [vmem:[#allocation32_spill] sm:$0xff] %v12236_v12  ;;  %v5227_v19 = vadd.f32 %v12143_v5, %v5226_v6  ;;  %v5727_v63 = vadd.f32 %v12143_v5, %v5726_v51  ;;  %v4228_v7 = vpop.f32.mrf.mxu0  ;;  %v4728_v46 = vpop.f32.mrf.mxu1  ;;  %v15795_v51 = vld [vmem:[#allocation42_spill] sm:$0xff] }
 0x2c3   :  { %15789 = vst [vmem:[#allocation33_spill] sm:$0xff] %v12239_v16  ;;  %v4229_v26 = vadd.f32 %v12143_v5, %v4228_v7  ;;  %v4729_v49 = vadd.f32 %v12143_v5, %v4728_v46  ;;  %v15793_v16 = vld [vmem:[#allocation41_spill] sm:$0xff] }
 0x2c4   :  { %v6521_v14 = vmax.f32 %v5227_v19, 0.0  ;;  %v6721_v50 = vmax.f32 %v5727_v63, 0.0  ;;  %v10091_v19 = vld [vmem:[%s15536_s0 + $0x160] sm:$0xff] }
 0x2c5   :  { %v6122_v61 = vmax.f32 %v4229_v26, 0.0  ;;  %v6322_v36 = vmax.f32 %v4729_v49, 0.0  ;;  %v10191_v63 = vld [vmem:[%s15536_s0 + $0x480] sm:$0xff] }
 0x2c6   :  { %v12246_v12 = vmax.f32 %v15790_v25, %v6521_v14  ;;  %v12249_v18 = vmax.f32 %v15791_v41, %v6721_v50  ;;  %v10391_v14 = vld [vmem:[%s15536_s0 + $0xac0] sm:$0xff] }
 0x2c7   :  { %v12252_v6 = vmax.f32 %v15793_v16, %v6122_v61  ;;  %v12255_v4 = vmax.f32 %v15795_v51, %v6322_v36  ;;  %v10291_v16 = vld [vmem:[%s15536_s0 + $0x7a0] sm:$0xff] }
 0x2c8   :  { %15792 = vst [vmem:[#allocation34_spill] sm:$0xff] %v12249_v18 }
 0x2c9   :  { %15794 = vst [vmem:[#allocation35_spill] sm:$0xff] %v12252_v6  ;;  %v5228_v29 = vpop.f32.mrf.mxu2  ;;  %v5728_v7 = vpop.f32.mrf.mxu3  ;;  %v15799_v6 = vld [vmem:[#allocation44_spill] sm:$0xff] }
 0x2ca   :  { %15796 = vst [vmem:[#allocation36_spill] sm:$0xff] %v12255_v4  ;;  %v5229_v46 = vadd.f32 %v12143_v5, %v5228_v29  ;;  %v5729_v26 = vadd.f32 %v12143_v5, %v5728_v7  ;;  %v4231_v49 = vpop.f32.mrf.mxu0  ;;  %v4731_v61 = vpop.f32.mrf.mxu1  ;;  %v15797_v7 = vld [vmem:[#allocation43_spill] sm:$0xff] }
 0x2cb   :  { %v4232_v50 = vadd.f32 %v12143_v5, %v4231_v49  ;;  %v4732_v36 = vadd.f32 %v12143_v5, %v4731_v61  ;;  %v15801_v49 = vld [vmem:[#allocation45_spill] sm:$0xff] }
 0x2cc   :  { %v6522_v25 = vmax.f32 %v5229_v46, 0.0  ;;  %v6722_v41 = vmax.f32 %v5729_v26, 0.0  ;;  %v15803_v46 = vld [vmem:[#allocation46_spill] sm:$0xff] }
 0x2cd   :  { %v6123_v51 = vmax.f32 %v4232_v50, 0.0  ;;  %v6323_v29 = vmax.f32 %v4732_v36, 0.0  ;;  %9516 = vmatmul.msk.bf16.gmra.mxu0 %vm2834_vm2, %v10091_v19  ;;  %9616 = vmatmul.msk.bf16.gmra.mxu1 %vm2834_vm2, %v10191_v63 }
 0x2ce   :  { %v12276_v4 = vmax.f32 %v15797_v7, %v6522_v25  ;;  %v12279_v18 = vmax.f32 %v15799_v6, %v6722_v41  ;;  %9716 = vmatmul.msk.bf16.gmra.mxu2 %vm2834_vm2, %v10291_v16  ;;  %9816 = vmatmul.msk.bf16.gmra.mxu3 %vm2834_vm2, %v10391_v14 }
 0x2cf   :  { %v12284_v61 = vmax.f32 %v15801_v49, %v6123_v51  ;;  %v12287_v26 = vmax.f32 %v15803_v46, %v6323_v29  ;;  %v15805_v29 = vld [vmem:[#allocation47_spill] sm:$0xff] }
 0x2d0   :  { %15798 = vst [vmem:[#allocation37_spill] sm:$0xff] %v12276_v4 }
 0x2d1   :  { %15800 = vst [vmem:[#allocation38_spill] sm:$0xff] %v12279_v18  ;;  %v5231_v50 = vpop.f32.mrf.mxu2  ;;  %v5731_v19 = vpop.f32.mrf.mxu3 }
 0x2d2   :  { %15802 = vst [vmem:[#allocation39_spill] sm:$0xff] %v12284_v61  ;;  %v5232_v63 = vadd.f32 %v12143_v5, %v5231_v50  ;;  %v5732_v36 = vadd.f32 %v12143_v5, %v5731_v19  ;;  %v4233_v25 = vpop.f32.mrf.mxu0  ;;  %v4733_v7 = vpop.f32.mrf.mxu1  ;;  %v15807_v19 = vld [vmem:[#allocation49_spill] sm:$0xff] }
 0x2d3   :  { %15804 = vst [vmem:[#allocation40_spill] sm:$0xff] %v12287_v26  ;;  %v4234_v6 = vadd.f32 %v12143_v5, %v4233_v25  ;;  %v4734_v16 = vadd.f32 %v12143_v5, %v4733_v7  ;;  %v15806_v26 = vld [vmem:[#allocation48_spill] sm:$0xff] }
 0x2d4   :  { %v6523_v41 = vmax.f32 %v5232_v63, 0.0  ;;  %v6723_v14 = vmax.f32 %v5732_v36, 0.0  ;;  %v10092_v63 = vld [vmem:[%s15536_s0 + $0x168] sm:$0xff] }
 0x2d5   :  { %v6124_v18 = vmax.f32 %v4234_v6, 0.0  ;;  %v6324_v51 = vmax.f32 %v4734_v16, 0.0  ;;  %v10392_v16 = vld [vmem:[%s15536_s0 + $0xac8] sm:$0xff] }
 0x2d6   :  { %v12294_v49 = vmax.f32 %v11692_v32, %v6523_v41  ;;  %v12297_v46 = vmax.f32 %v15805_v29, %v6723_v14  ;;  %v10192_v32 = vld [vmem:[%s15536_s0 + $0x488] sm:$0xff] }
 0x2d7   :  { %v12300_v50 = vmax.f32 %v15806_v26, %v6124_v18  ;;  %v12303_v61 = vmax.f32 %v15807_v19, %v6324_v51  ;;  %v10292_v26 = vld [vmem:[%s15536_s0 + $0x7a8] sm:$0xff] }
 0x2d9   :  { %15808 = vst [vmem:[#allocation41_spill] sm:$0xff] %v12303_v61  ;;  %v5233_v4 = vpop.f32.mrf.mxu2  ;;  %v5733_v25 = vpop.f32.mrf.mxu3 }
 0x2da   :  { %v5234_v36 = vadd.f32 %v12143_v5, %v5233_v4  ;;  %v5734_v7 = vadd.f32 %v12143_v5, %v5733_v25  ;;  %v4236_v6 = vpop.f32.mrf.mxu0  ;;  %v4736_v18 = vpop.f32.mrf.mxu1 }
 0x2db   :  { %v4237_v41 = vadd.f32 %v12143_v5, %v4236_v6  ;;  %v4737_v14 = vadd.f32 %v12143_v5, %v4736_v18 }
 0x2dc   :  { %v6524_v51 = vmax.f32 %v5234_v36, 0.0  ;;  %v6724_v29 = vmax.f32 %v5734_v7, 0.0  ;;  %v15810_v36 = vld [vmem:[#allocation50_spill] sm:$0xff] }
 0x2dd   :  { %v6125_v19 = vmax.f32 %v4237_v41, 0.0  ;;  %v6325_v4 = vmax.f32 %v4737_v14, 0.0  ;;  %9517 = vmatmul.msk.bf16.gmra.mxu0 %vm2834_vm2, %v10092_v63  ;;  %9617 = vmatmul.msk.bf16.gmra.mxu1 %vm2834_vm2, %v10192_v32 }
 0x2de   :  { %v12324_v25 = vmax.f32 %v11714_v22, %v6524_v51  ;;  %v12327_v61 = vmax.f32 %v11716_v52, %v6724_v29  ;;  %9717 = vmatmul.msk.bf16.gmra.mxu2 %vm2834_vm2, %v10292_v26  ;;  %9817 = vmatmul.msk.bf16.gmra.mxu3 %vm2834_vm2, %v10392_v16 }
 0x2df   :  { %v12332_v6 = vmax.f32 %v11718_v30, %v6125_v19  ;;  %v12335_v7 = vmax.f32 %v15810_v36, %v6325_v4 }
 0x2e1   :  { %15809 = vst [vmem:[#allocation42_spill] sm:$0xff] %v12332_v6  ;;  %v5236_v18 = vpop.f32.mrf.mxu2  ;;  %v5736_v63 = vpop.f32.mrf.mxu3 }
 0x2e2   :  { %15811 = vst [vmem:[#allocation43_spill] sm:$0xff] %v12335_v7  ;;  %v5237_v32 = vadd.f32 %v12143_v5, %v5236_v18  ;;  %v5737_v22 = vadd.f32 %v12143_v5, %v5736_v63  ;;  %v4238_v41 = vpop.f32.mrf.mxu0  ;;  %v4738_v14 = vpop.f32.mrf.mxu1 }
 0x2e3   :  { %v4239_v52 = vadd.f32 %v12143_v5, %v4238_v41  ;;  %v4739_v26 = vadd.f32 %v12143_v5, %v4738_v14 }
 0x2e4   :  { %v6525_v51 = vmax.f32 %v5237_v32, 0.0  ;;  %v6725_v16 = vmax.f32 %v5737_v22, 0.0  ;;  %v10093_v32 = vld [vmem:[%s15536_s0 + $0x170] sm:$0xff] }
 0x2e5   :  { %v6126_v29 = vmax.f32 %v4239_v52, 0.0  ;;  %v6326_v30 = vmax.f32 %v4739_v26, 0.0  ;;  %v10393_v52 = vld [vmem:[%s15536_s0 + $0xad0] sm:$0xff] }
 0x2e6   :  { %v12342_v19 = vmax.f32 %v11744_v34, %v6525_v51  ;;  %v12345_v4 = vmax.f32 %v11746_v11, %v6725_v16  ;;  %v10193_v34 = vld [vmem:[%s15536_s0 + $0x490] sm:$0xff] }
 0x2e7   :  { %v6901_v36 = vmax.f32 %v11751_v62, %v6126_v29  ;;  %v7154_v18 = vmax.f32 %v11754_v45, %v6326_v30  ;;  %v10293_v45 = vld [vmem:[%s15536_s0 + $0x7b0] sm:$0xff] }
 0x2e9   :  { %v6926_v63 = vpack.c.bf16 %v6901_v36, %v6901_v36  ;;  %v7179_v7 = vpack.c.bf16 %v7154_v18, %v7154_v18  ;;  %v5238_v41 = vpop.f32.mrf.mxu2  ;;  %v5738_v6 = vpop.f32.mrf.mxu3 }
 0x2ea   :  { %v5239_v11 = vadd.f32 %v12143_v5, %v5238_v41  ;;  %v5739_v22 = vadd.f32 %v12143_v5, %v5738_v6  ;;  %v4241_v62 = vpop.f32.mrf.mxu0  ;;  %v4741_v14 = vpop.f32.mrf.mxu1 }
 0x2eb   :  { %6952 = vst.msk [vmem:[%s15537_s3] sm:$0xf] %vm6951_vm3, %v6926_v63  ;;  %v4242_v26 = vadd.f32 %v12143_v5, %v4241_v62  ;;  %v4742_v51 = vadd.f32 %v12143_v5, %v4741_v14 }
 0x2ec   :  { %9897 = vst.msk [vmem:[%s15537_s3 + $0xc8] sm:$0xf] %vm6951_vm3, %v7179_v7  ;;  %v6526_v6 = vmax.f32 %v5239_v11, 0.0  ;;  %v6726_v16 = vmax.f32 %v5739_v22, 0.0 }
 0x2ed   :  { %v6127_v29 = vmax.f32 %v4242_v26, 0.0  ;;  %v6327_v30 = vmax.f32 %v4742_v51, 0.0  ;;  %9518 = vmatmul.msk.bf16.gmra.mxu0 %vm2834_vm2, %v10093_v32  ;;  %9618 = vmatmul.msk.bf16.gmra.mxu1 %vm2834_vm2, %v10193_v34 }
 0x2ee   :  { %v7406_v36 = vmax.f32 %v11761_v39, %v6526_v6  ;;  %v7658_v18 = vmax.f32 %v11764_v47, %v6726_v16  ;;  %9718 = vmatmul.msk.bf16.gmra.mxu2 %vm2834_vm2, %v10293_v45  ;;  %9818 = vmatmul.msk.bf16.gmra.mxu3 %vm2834_vm2, %v10393_v52 }
 0x2ef   :  { %v6902_v63 = vmax.f32 %v11767_v31, %v6127_v29  ;;  %v7155_v7 = vmax.f32 %v11770_v44, %v6327_v30 }
 0x2f0   :  { %v7431_v41 = vpack.c.bf16 %v7406_v36, %v7406_v36  ;;  %v7683_v11 = vpack.c.bf16 %v7658_v18, %v7658_v18 }
 0x2f1   :  { %v6927_v22 = vpack.c.bf16 %v6902_v63, %v6902_v63  ;;  %v7180_v62 = vpack.c.bf16 %v7155_v7, %v7155_v7  ;;  %v5241_v14 = vpop.f32.mrf.mxu2  ;;  %v5741_v32 = vpop.f32.mrf.mxu3 }
 0x2f2   :  { %9947 = vst.msk [vmem:[%s15537_s3 + $0x190] sm:$0xf] %vm6951_vm3, %v7431_v41  ;;  %v5242_v39 = vadd.f32 %v12143_v5, %v5241_v14  ;;  %v5742_v47 = vadd.f32 %v12143_v5, %v5741_v32  ;;  %v4243_v34 = vpop.f32.mrf.mxu0  ;;  %v4743_v45 = vpop.f32.mrf.mxu1  ;;  %v10294_v32 = vld [vmem:[%s15536_s0 + $0x7b8] sm:$0xff] }
 0x2f3   :  { %9997 = vst.msk [vmem:[%s15537_s3 + $0x258] sm:$0xf] %vm6951_vm3, %v7683_v11  ;;  %v4244_v31 = vadd.f32 %v12143_v5, %v4243_v34  ;;  %v4744_v44 = vadd.f32 %v12143_v5, %v4743_v45 }
 0x2f4   :  { %6953 = vst.msk [vmem:[%s15537_s3 + $0x4] sm:$0xf] %vm6951_vm3, %v6927_v22  ;;  %v6527_v52 = vmax.f32 %v5242_v39, 0.0  ;;  %v6727_v26 = vmax.f32 %v5742_v47, 0.0  ;;  %v10394_v39 = vld [vmem:[%s15536_s0 + $0xad8] sm:$0xff] }
 0x2f5   :  { %9898 = vst.msk [vmem:[%s15537_s3 + $0xcc] sm:$0xf] %vm6951_vm3, %v7180_v62  ;;  %v6128_v51 = vmax.f32 %v4244_v31, 0.0  ;;  %v6328_v6 = vmax.f32 %v4744_v44, 0.0  ;;  %v10094_v62 = vld [vmem:[%s15536_s0 + $0x178] sm:$0xff] }
 0x2f6   :  { %v7407_v16 = vmax.f32 %v11791_v8, %v6527_v52  ;;  %v7659_v29 = vmax.f32 %v11794_v35, %v6727_v26  ;;  %v10194_v8 = vld [vmem:[%s15536_s0 + $0x498] sm:$0xff] }
 0x2f7   :  { %v6903_v30 = vmax.f32 %v11799_v57, %v6128_v51  ;;  %v7156_v36 = vmax.f32 %v11802_v27, %v6328_v6 }
 0x2f8   :  { %v7432_v18 = vpack.c.bf16 %v7407_v16, %v7407_v16  ;;  %v7684_v63 = vpack.c.bf16 %v7659_v29, %v7659_v29 }
 0x2f9   :  { %v6928_v7 = vpack.c.bf16 %v6903_v30, %v6903_v30  ;;  %v7181_v41 = vpack.c.bf16 %v7156_v36, %v7156_v36  ;;  %v5243_v11 = vpop.f32.mrf.mxu2  ;;  %v5743_v22 = vpop.f32.mrf.mxu3 }
 0x2fa   :  { %9948 = vst.msk [vmem:[%s15537_s3 + $0x194] sm:$0xf] %vm6951_vm3, %v7432_v18  ;;  %v5244_v35 = vadd.f32 %v12143_v5, %v5243_v11  ;;  %v5744_v57 = vadd.f32 %v12143_v5, %v5743_v22  ;;  %v4246_v27 = vpop.f32.mrf.mxu0  ;;  %v4746_v14 = vpop.f32.mrf.mxu1 }
 0x2fb   :  { %9998 = vst.msk [vmem:[%s15537_s3 + $0x25c] sm:$0xf] %vm6951_vm3, %v7684_v63  ;;  %v4247_v47 = vadd.f32 %v12143_v5, %v4246_v27  ;;  %v4747_v34 = vadd.f32 %v12143_v5, %v4746_v14 }
 0x2fc   :  { %6954 = vst.msk [vmem:[%s15537_s3 + $0x8] sm:$0xf] %vm6951_vm3, %v6928_v7  ;;  %v6528_v45 = vmax.f32 %v5244_v35, 0.0  ;;  %v6728_v31 = vmax.f32 %v5744_v57, 0.0 }
 0x2fd   :  { %9899 = vst.msk [vmem:[%s15537_s3 + $0xd0] sm:$0xf] %vm6951_vm3, %v7181_v41  ;;  %v6129_v44 = vmax.f32 %v4247_v47, 0.0  ;;  %v6329_v52 = vmax.f32 %v4747_v34, 0.0  ;;  %9519 = vmatmul.msk.bf16.gmra.mxu0 %vm2834_vm2, %v10094_v62  ;;  %9619 = vmatmul.msk.bf16.gmra.mxu1 %vm2834_vm2, %v10194_v8 }
 0x2fe   :  { %v7408_v26 = vmax.f32 %v11809_v60, %v6528_v45  ;;  %v7660_v51 = vmax.f32 %v11812_v37, %v6728_v31  ;;  %9719 = vmatmul.msk.bf16.gmra.mxu2 %vm2834_vm2, %v10294_v32  ;;  %9819 = vmatmul.msk.bf16.gmra.mxu3 %vm2834_vm2, %v10394_v39 }
 0x2ff   :  { %v6904_v6 = vmax.f32 %v11815_v21, %v6129_v44  ;;  %v7157_v16 = vmax.f32 %v11818_v10, %v6329_v52  ;;  %v10095_v52 = vld [vmem:[%s15536_s0 + $0x180] sm:$0xff] }
 0x300   :  { %v7433_v29 = vpack.c.bf16 %v7408_v26, %v7408_v26  ;;  %v7685_v30 = vpack.c.bf16 %v7660_v51, %v7660_v51  ;;  %v10295_v51 = vld [vmem:[%s15536_s0 + $0x7c0] sm:$0xff] }
 0x301   :  { %v6929_v36 = vpack.c.bf16 %v6904_v6, %v6904_v6  ;;  %v7182_v18 = vpack.c.bf16 %v7157_v16, %v7157_v16  ;;  %v5246_v63 = vpop.f32.mrf.mxu2  ;;  %v5746_v7 = vpop.f32.mrf.mxu3  ;;  %v10395_v6 = vld [vmem:[%s15536_s0 + $0xae0] sm:$0xff] }
 0x302   :  { %9949 = vst.msk [vmem:[%s15537_s3 + $0x198] sm:$0xf] %vm6951_vm3, %v7433_v29  ;;  %v5247_v60 = vadd.f32 %v12143_v5, %v5246_v63  ;;  %v5747_v37 = vadd.f32 %v12143_v5, %v5746_v7  ;;  %v4248_v41 = vpop.f32.mrf.mxu0  ;;  %v4748_v11 = vpop.f32.mrf.mxu1 }
 0x303   :  { %9999 = vst.msk [vmem:[%s15537_s3 + $0x260] sm:$0xf] %vm6951_vm3, %v7685_v30  ;;  %v4249_v21 = vadd.f32 %v12143_v5, %v4248_v41  ;;  %v4749_v10 = vadd.f32 %v12143_v5, %v4748_v11 }
 0x304   :  { %6955 = vst.msk [vmem:[%s15537_s3 + $0xc] sm:$0xf] %vm6951_vm3, %v6929_v36  ;;  %v6529_v22 = vmax.f32 %v5247_v60, 0.0  ;;  %v6729_v62 = vmax.f32 %v5747_v37, 0.0 }
 0x305   :  { %9900 = vst.msk [vmem:[%s15537_s3 + $0xd4] sm:$0xf] %vm6951_vm3, %v7182_v18  ;;  %v6130_v8 = vmax.f32 %v4249_v21, 0.0  ;;  %v6330_v35 = vmax.f32 %v4749_v10, 0.0 }
 0x306   :  { %v7409_v57 = vmax.f32 %v11839_v53, %v6529_v22  ;;  %v7661_v27 = vmax.f32 %v11842_v23, %v6729_v62  ;;  %v10195_v53 = vld [vmem:[%s15536_s0 + $0x4a0] sm:$0xff] }
 0x307   :  { %v6905_v14 = vmax.f32 %v11847_v43, %v6130_v8  ;;  %v7158_v32 = vmax.f32 %v11850_v28, %v6330_v35 }
 0x308   :  { %v7434_v39 = vpack.c.bf16 %v7409_v57, %v7409_v57  ;;  %v7686_v47 = vpack.c.bf16 %v7661_v27, %v7661_v27 }
 0x309   :  { %v6930_v34 = vpack.c.bf16 %v6905_v14, %v6905_v14  ;;  %v7183_v45 = vpack.c.bf16 %v7158_v32, %v7158_v32  ;;  %v5248_v31 = vpop.f32.mrf.mxu2  ;;  %v5748_v44 = vpop.f32.mrf.mxu3 }
 0x30a   :  { %9950 = vst.msk [vmem:[%s15537_s3 + $0x19c] sm:$0xf] %vm6951_vm3, %v7434_v39  ;;  %v5249_v23 = vadd.f32 %v12143_v5, %v5248_v31  ;;  %v5749_v43 = vadd.f32 %v12143_v5, %v5748_v44  ;;  %v4251_v28 = vpop.f32.mrf.mxu0  ;;  %v4751_v26 = vpop.f32.mrf.mxu1 }
 0x30b   :  { %10000 = vst.msk [vmem:[%s15537_s3 + $0x264] sm:$0xf] %vm6951_vm3, %v7686_v47  ;;  %v4252_v16 = vadd.f32 %v12143_v5, %v4251_v28  ;;  %v4752_v29 = vadd.f32 %v12143_v5, %v4751_v26  ;;  %v10096_v26 = vld [vmem:[%s15536_s0 + $0x188] sm:$0xff] }
 0x30c   :  { %6956 = vst.msk [vmem:[%s15537_s3 + $0x10] sm:$0xf] %vm6951_vm3, %v6930_v34  ;;  %v6530_v30 = vmax.f32 %v5249_v23, 0.0  ;;  %v6730_v36 = vmax.f32 %v5749_v43, 0.0 }
 0x30d   :  { %9901 = vst.msk [vmem:[%s15537_s3 + $0xd8] sm:$0xf] %vm6951_vm3, %v7183_v45  ;;  %v6131_v18 = vmax.f32 %v4252_v16, 0.0  ;;  %v6331_v63 = vmax.f32 %v4752_v29, 0.0  ;;  %9520 = vmatmul.msk.bf16.gmra.mxu0 %vm2834_vm2, %v10095_v52  ;;  %9620 = vmatmul.msk.bf16.gmra.mxu1 %vm2834_vm2, %v10195_v53  ;;  %v10396_v16 = vld [vmem:[%s15536_s0 + $0xae8] sm:$0xff] }
 0x30e   :  { %v7410_v7 = vmax.f32 %v11857_v38, %v6530_v30  ;;  %v7662_v60 = vmax.f32 %v11860_v55, %v6730_v36  ;;  %9720 = vmatmul.msk.bf16.gmra.mxu2 %vm2834_vm2, %v10295_v51  ;;  %9820 = vmatmul.msk.bf16.gmra.mxu3 %vm2834_vm2, %v10395_v6  ;;  %v10296_v6 = vld [vmem:[%s15536_s0 + $0x7c8] sm:$0xff] }
 0x30f   :  { %v6906_v37 = vmax.f32 %v11863_v9, %v6131_v18  ;;  %v7159_v41 = vmax.f32 %v11866_v40, %v6331_v63 }
 0x310   :  { %v7435_v11 = vpack.c.bf16 %v7410_v7, %v7410_v7  ;;  %v7687_v21 = vpack.c.bf16 %v7662_v60, %v7662_v60 }
 0x311   :  { %v6931_v10 = vpack.c.bf16 %v6906_v37, %v6906_v37  ;;  %v7184_v22 = vpack.c.bf16 %v7159_v41, %v7159_v41  ;;  %v5251_v62 = vpop.f32.mrf.mxu2  ;;  %v5751_v8 = vpop.f32.mrf.mxu3 }
 0x312   :  { %9951 = vst.msk [vmem:[%s15537_s3 + $0x1a0] sm:$0xf] %vm6951_vm3, %v7435_v11  ;;  %v5252_v38 = vadd.f32 %v12143_v5, %v5251_v62  ;;  %v5752_v55 = vadd.f32 %v12143_v5, %v5751_v8  ;;  %v4253_v35 = vpop.f32.mrf.mxu0  ;;  %v4753_v57 = vpop.f32.mrf.mxu1 }
 0x313   :  { %10001 = vst.msk [vmem:[%s15537_s3 + $0x268] sm:$0xf] %vm6951_vm3, %v7687_v21  ;;  %v4254_v9 = vadd.f32 %v12143_v5, %v4253_v35  ;;  %v4754_v40 = vadd.f32 %v12143_v5, %v4753_v57 }
 0x314   :  { %6957 = vst.msk [vmem:[%s15537_s3 + $0x14] sm:$0xf] %vm6951_vm3, %v6931_v10  ;;  %v6531_v27 = vmax.f32 %v5252_v38, 0.0  ;;  %v6731_v14 = vmax.f32 %v5752_v55, 0.0 }
 0x315   :  { %9902 = vst.msk [vmem:[%s15537_s3 + $0xdc] sm:$0xf] %vm6951_vm3, %v7184_v22  ;;  %v6132_v32 = vmax.f32 %v4254_v9, 0.0  ;;  %v6332_v39 = vmax.f32 %v4754_v40, 0.0 }
 0x316   :  { %v7411_v47 = vmax.f32 %v11887_v24, %v6531_v27  ;;  %v7663_v34 = vmax.f32 %v11890_v56, %v6731_v14  ;;  %v10196_v24 = vld [vmem:[%s15536_s0 + $0x4a8] sm:$0xff] }
 0x317   :  { %v6907_v45 = vmax.f32 %v11895_v17, %v6132_v32  ;;  %v7160_v31 = vmax.f32 %v11898_v54, %v6332_v39 }
 0x318   :  { %v7436_v44 = vpack.c.bf16 %v7411_v47, %v7411_v47  ;;  %v7688_v52 = vpack.c.bf16 %v7663_v34, %v7663_v34 }
 0x319   :  { %v6932_v53 = vpack.c.bf16 %v6907_v45, %v6907_v45  ;;  %v7185_v23 = vpack.c.bf16 %v7160_v31, %v7160_v31  ;;  %v5253_v43 = vpop.f32.mrf.mxu2  ;;  %v5753_v28 = vpop.f32.mrf.mxu3 }
 0x31a   :  { %9952 = vst.msk [vmem:[%s15537_s3 + $0x1a4] sm:$0xf] %vm6951_vm3, %v7436_v44  ;;  %v5254_v56 = vadd.f32 %v12143_v5, %v5253_v43  ;;  %v5754_v17 = vadd.f32 %v12143_v5, %v5753_v28  ;;  %v4256_v54 = vpop.f32.mrf.mxu0  ;;  %v4756_v51 = vpop.f32.mrf.mxu1  ;;  %v10297_v28 = vld [vmem:[%s15536_s0 + $0x7d0] sm:$0xff] }
 0x31b   :  { %10002 = vst.msk [vmem:[%s15537_s3 + $0x26c] sm:$0xf] %vm6951_vm3, %v7688_v52  ;;  %v4257_v29 = vadd.f32 %v12143_v5, %v4256_v54  ;;  %v4757_v30 = vadd.f32 %v12143_v5, %v4756_v51 }
 0x31c   :  { %6958 = vst.msk [vmem:[%s15537_s3 + $0x18] sm:$0xf] %vm6951_vm3, %v6932_v53  ;;  %v6532_v36 = vmax.f32 %v5254_v56, 0.0  ;;  %v6732_v18 = vmax.f32 %v5754_v17, 0.0 }
 0x31d   :  { %9903 = vst.msk [vmem:[%s15537_s3 + $0xe0] sm:$0xf] %vm6951_vm3, %v7185_v23  ;;  %v6133_v63 = vmax.f32 %v4257_v29, 0.0  ;;  %v6333_v7 = vmax.f32 %v4757_v30, 0.0  ;;  %9521 = vmatmul.msk.bf16.gmra.mxu0 %vm2834_vm2, %v10096_v26  ;;  %9621 = vmatmul.msk.bf16.gmra.mxu1 %vm2834_vm2, %v10196_v24  ;;  %v10097_v23 = vld [vmem:[%s15536_s0 + $0x190] sm:$0xff] }
 0x31e   :  { %v7412_v60 = vmax.f32 %v11905_v20, %v6532_v36  ;;  %v7664_v37 = vmax.f32 %v11908_v3, %v6732_v18  ;;  %9721 = vmatmul.msk.bf16.gmra.mxu2 %vm2834_vm2, %v10296_v6  ;;  %9821 = vmatmul.msk.bf16.gmra.mxu3 %vm2834_vm2, %v10396_v16  ;;  %v10397_v26 = vld [vmem:[%s15536_s0 + $0xaf0] sm:$0xff] }
 0x31f   :  { %v6908_v41 = vmax.f32 %v11911_v33, %v6133_v63  ;;  %v7161_v11 = vmax.f32 %v11914_v13, %v6333_v7 }
 0x320   :  { %v7437_v21 = vpack.c.bf16 %v7412_v60, %v7412_v60  ;;  %v7689_v10 = vpack.c.bf16 %v7664_v37, %v7664_v37 }
 0x321   :  { %v6933_v22 = vpack.c.bf16 %v6908_v41, %v6908_v41  ;;  %v7186_v62 = vpack.c.bf16 %v7161_v11, %v7161_v11  ;;  %v5256_v8 = vpop.f32.mrf.mxu2  ;;  %v5756_v38 = vpop.f32.mrf.mxu3 }
 0x322   :  { %9953 = vst.msk [vmem:[%s15537_s3 + $0x1a8] sm:$0xf] %vm6951_vm3, %v7437_v21  ;;  %v5257_v20 = vadd.f32 %v12143_v5, %v5256_v8  ;;  %v5757_v3 = vadd.f32 %v12143_v5, %v5756_v38  ;;  %v4258_v55 = vpop.f32.mrf.mxu0  ;;  %v4758_v35 = vpop.f32.mrf.mxu1  ;;  %v15812_v38 = vld [vmem:[#allocation51_spill] sm:$0xff] }
 0x323   :  { %10003 = vst.msk [vmem:[%s15537_s3 + $0x270] sm:$0xf] %vm6951_vm3, %v7689_v10  ;;  %v4259_v33 = vadd.f32 %v12143_v5, %v4258_v55  ;;  %v4759_v13 = vadd.f32 %v12143_v5, %v4758_v35  ;;  %v15814_v35 = vld [vmem:[#allocation53_spill] sm:$0xff] }
 0x324   :  { %6959 = vst.msk [vmem:[%s15537_s3 + $0x1c] sm:$0xf] %vm6951_vm3, %v6933_v22  ;;  %v6533_v57 = vmax.f32 %v5257_v20, 0.0  ;;  %v6733_v9 = vmax.f32 %v5757_v3, 0.0  ;;  %v15813_v3 = vld [vmem:[#allocation52_spill] sm:$0xff] }
 0x325   :  { %9904 = vst.msk [vmem:[%s15537_s3 + $0xe4] sm:$0xf] %vm6951_vm3, %v7186_v62  ;;  %v6134_v40 = vmax.f32 %v4259_v33, 0.0  ;;  %v6334_v27 = vmax.f32 %v4759_v13, 0.0  ;;  %v15815_v13 = vld [vmem:[#allocation54_spill] sm:$0xff] }
 0x326   :  { %v7413_v14 = vmax.f32 %v11935_v59, %v6533_v57  ;;  %v7665_v32 = vmax.f32 %v11938_v42, %v6733_v9  ;;  %v10197_v59 = vld [vmem:[%s15536_s0 + $0x4b0] sm:$0xff] }
 0x327   :  { %v6909_v39 = vmax.f32 %v11943_v58, %v6134_v40  ;;  %v7162_v47 = vmax.f32 %v11946_v2, %v6334_v27 }
 0x328   :  { %v7438_v34 = vpack.c.bf16 %v7413_v14, %v7413_v14  ;;  %v7690_v45 = vpack.c.bf16 %v7665_v32, %v7665_v32 }
 0x329   :  { %v6934_v31 = vpack.c.bf16 %v6909_v39, %v6909_v39  ;;  %v7187_v44 = vpack.c.bf16 %v7162_v47, %v7162_v47  ;;  %v5258_v52 = vpop.f32.mrf.mxu2  ;;  %v5758_v53 = vpop.f32.mrf.mxu3  ;;  %v10098_v47 = vld [vmem:[%s15536_s0 + $0x198] sm:$0xff] }
 0x32a   :  { %9954 = vst.msk [vmem:[%s15537_s3 + $0x1ac] sm:$0xf] %vm6951_vm3, %v7438_v34  ;;  %v5259_v42 = vadd.f32 %v12143_v5, %v5258_v52  ;;  %v5759_v58 = vadd.f32 %v12143_v5, %v5758_v53  ;;  %v4261_v2 = vpop.f32.mrf.mxu0  ;;  %v4761_v43 = vpop.f32.mrf.mxu1  ;;  %v10198_v34 = vld [vmem:[%s15536_s0 + $0x4b8] sm:$0xff] }
 0x32b   :  { %10004 = vst.msk [vmem:[%s15537_s3 + $0x274] sm:$0xf] %vm6951_vm3, %v7690_v45  ;;  %v4262_v24 = vadd.f32 %v12143_v5, %v4261_v2  ;;  %v4762_v56 = vadd.f32 %v12143_v5, %v4761_v43  ;;  %v10298_v53 = vld [vmem:[%s15536_s0 + $0x7d8] sm:$0xff] }
 0x32c   :  { %6960 = vst.msk [vmem:[%s15537_s3 + $0x20] sm:$0xf] %vm6951_vm3, %v6934_v31  ;;  %v6534_v17 = vmax.f32 %v5259_v42, 0.0  ;;  %v6734_v54 = vmax.f32 %v5759_v58, 0.0 }
 0x32d   :  { %9905 = vst.msk [vmem:[%s15537_s3 + $0xe8] sm:$0xf] %vm6951_vm3, %v7187_v44  ;;  %v6135_v51 = vmax.f32 %v4262_v24, 0.0  ;;  %v6335_v6 = vmax.f32 %v4762_v56, 0.0  ;;  %9522 = vmatmul.msk.bf16.gmra.mxu0 %vm2834_vm2, %v10097_v23  ;;  %9622 = vmatmul.msk.bf16.gmra.mxu1 %vm2834_vm2, %v10197_v59  ;;  %v10398_v23 = vld [vmem:[%s15536_s0 + $0xaf8] sm:$0xff]  ;;  %v15817_v56 = vld [vmem:[#allocation56_spill] sm:$0xff] }
 0x32e   :  { %v7414_v16 = vmax.f32 %v11953_v0, %v6534_v17  ;;  %v7666_v29 = vmax.f32 %v11956_v15, %v6734_v54  ;;  %9722 = vmatmul.msk.bf16.gmra.mxu2 %vm2834_vm2, %v10297_v28  ;;  %9822 = vmatmul.msk.bf16.gmra.mxu3 %vm2834_vm2, %v10397_v26  ;;  %v15816_v26 = vld [vmem:[#allocation55_spill] sm:$0xff]  ;;  %v15818_v54 = vld [vmem:[#allocation57_spill] sm:$0xff] }
 0x32f   :  { %v6910_v30 = vmax.f32 %v11959_v1, %v6135_v51  ;;  %v7163_v36 = vmax.f32 %v11962_v48, %v6335_v6  ;;  %v15819_v6 = vld [vmem:[#allocation58_spill] sm:$0xff] }
 0x330   :  { %v7439_v18 = vpack.c.bf16 %v7414_v16, %v7414_v16  ;;  %v7691_v63 = vpack.c.bf16 %v7666_v29, %v7666_v29 }
 0x331   :  { %v6935_v7 = vpack.c.bf16 %v6910_v30, %v6910_v30  ;;  %v7188_v60 = vpack.c.bf16 %v7163_v36, %v7163_v36  ;;  %v5261_v37 = vpop.f32.mrf.mxu2  ;;  %v5761_v41 = vpop.f32.mrf.mxu3 }
 0x332   :  { %9955 = vst.msk [vmem:[%s15537_s3 + $0x1b0] sm:$0xf] %vm6951_vm3, %v7439_v18  ;;  %v5262_v0 = vadd.f32 %v12143_v5, %v5261_v37  ;;  %v5762_v15 = vadd.f32 %v12143_v5, %v5761_v41  ;;  %v4263_v11 = vpop.f32.mrf.mxu0  ;;  %v4763_v21 = vpop.f32.mrf.mxu1 }
 0x333   :  { %10005 = vst.msk [vmem:[%s15537_s3 + $0x278] sm:$0xf] %vm6951_vm3, %v7691_v63  ;;  %v4264_v1 = vadd.f32 %v12143_v5, %v4263_v11  ;;  %v4764_v48 = vadd.f32 %v12143_v5, %v4763_v21 }
 0x334   :  { %6961 = vst.msk [vmem:[%s15537_s3 + $0x24] sm:$0xf] %vm6951_vm3, %v6935_v7  ;;  %v6535_v10 = vmax.f32 %v5262_v0, 0.0  ;;  %v6735_v22 = vmax.f32 %v5762_v15, 0.0 }
 0x335   :  { %9906 = vst.msk [vmem:[%s15537_s3 + $0xec] sm:$0xf] %vm6951_vm3, %v7188_v60  ;;  %v6136_v62 = vmax.f32 %v4264_v1, 0.0  ;;  %v6336_v8 = vmax.f32 %v4764_v48, 0.0 }
 0x336   :  { %v7415_v20 = vmax.f32 %v15812_v38, %v6535_v10  ;;  %v7667_v55 = vmax.f32 %v15813_v3, %v6735_v22  ;;  %v15820_v22 = vld [vmem:[#allocation59_spill] sm:$0xff]  ;;  %v15823_v3 = vld [vmem:[#allocation61_spill] sm:$0xff] }
 0x337   :  { %v6911_v33 = vmax.f32 %v15814_v35, %v6136_v62  ;;  %v7164_v57 = vmax.f32 %v15815_v13, %v6336_v8  ;;  %v15821_v8 = vld [vmem:[#allocation2_spill] sm:$0xff] }
 0x338   :  { %v7440_v9 = vpack.c.bf16 %v7415_v20, %v7415_v20  ;;  %v7692_v40 = vpack.c.bf16 %v7667_v55, %v7667_v55  ;;  %v15822_v20 = vld [vmem:[#allocation60_spill] sm:$0xff] }
 0x339   :  { %v6936_v27 = vpack.c.bf16 %v6911_v33, %v6911_v33  ;;  %v7189_v14 = vpack.c.bf16 %v7164_v57, %v7164_v57  ;;  %v5263_v32 = vpop.f32.mrf.mxu2  ;;  %v5763_v39 = vpop.f32.mrf.mxu3 }
 0x33a   :  { %9956 = vst.msk [vmem:[%s15537_s3 + $0x1b4] sm:$0xf] %vm6951_vm3, %v7440_v9  ;;  %v5264_v45 = vadd.f32 %v12143_v5, %v5263_v32  ;;  %v5764_v31 = vadd.f32 %v12143_v5, %v5763_v39  ;;  %v4266_v44 = vpop.f32.mrf.mxu0  ;;  %v4766_v52 = vpop.f32.mrf.mxu1  ;;  %v12738_v32 = vld [vmem:[%s15535_s2] ss:$0 sm:$0xff] }
 0x33b   :  { %10006 = vst.msk [vmem:[%s15537_s3 + $0x27c] sm:$0xf] %vm6951_vm3, %v7692_v40  ;;  %v4267_v59 = vadd.f32 %v12143_v5, %v4266_v44  ;;  %v4767_v42 = vadd.f32 %v12143_v5, %v4766_v52  ;;  %v10399_v44 = vld [vmem:[%s15536_s0 + $0xb00] sm:$0xff] }
 0x33c   :  { %6962 = vst.msk [vmem:[%s15537_s3 + $0x28] sm:$0xf] %vm6951_vm3, %v6936_v27  ;;  %v6536_v58 = vmax.f32 %v5264_v45, 0.0  ;;  %v6736_v2 = vmax.f32 %v5764_v31, 0.0  ;;  %v10099_v27 = vld [vmem:[%s15536_s0 + $0x1a0] sm:$0xff] }
 0x33d   :  { %9907 = vst.msk [vmem:[%s15537_s3 + $0xf0] sm:$0xf] %vm6951_vm3, %v7189_v14  ;;  %v6137_v43 = vmax.f32 %v4267_v59, 0.0  ;;  %v6337_v28 = vmax.f32 %v4767_v42, 0.0  ;;  %9523 = vmatmul.msk.bf16.gmra.mxu0 %vm2834_vm2, %v10098_v47  ;;  %9623 = vmatmul.msk.bf16.gmra.mxu1 %vm2834_vm2, %v10198_v34  ;;  %v10199_v14 = vld [vmem:[%s15536_s0 + $0x4c0] sm:$0xff] }
 0x33e   :  { %v7416_v24 = vmax.f32 %v15816_v26, %v6536_v58  ;;  %v7668_v17 = vmax.f32 %v15817_v56, %v6736_v2  ;;  %9723 = vmatmul.msk.bf16.gmra.mxu2 %vm2834_vm2, %v10298_v53  ;;  %9823 = vmatmul.msk.bf16.gmra.mxu3 %vm2834_vm2, %v10398_v23  ;;  %v10299_v31 = vld [vmem:[%s15536_s0 + $0x7e0] sm:$0xff] }
 0x33f   :  { %v6912_v51 = vmax.f32 %v15818_v54, %v6137_v43  ;;  %v7165_v16 = vmax.f32 %v15819_v6, %v6337_v28  ;;  %v15824_v2 = vld [vmem:[#allocation62_spill] sm:$0xff]  ;;  %v15825_v28 = vld [vmem:[#allocation3_spill] sm:$0xff] }
 0x340   :  { %v7441_v29 = vpack.c.bf16 %v7416_v24, %v7416_v24  ;;  %v7693_v30 = vpack.c.bf16 %v7668_v17, %v7668_v17  ;;  %v15826_v24 = vld [vmem:[#allocation4_spill] sm:$0xff]  ;;  %v15827_v17 = vld [vmem:[#allocation5_spill] sm:$0xff] }
 0x341   :  { %v6937_v36 = vpack.c.bf16 %v6912_v51, %v6912_v51  ;;  %v7190_v18 = vpack.c.bf16 %v7165_v16, %v7165_v16  ;;  %v5266_v63 = vpop.f32.mrf.mxu2  ;;  %v5766_v7 = vpop.f32.mrf.mxu3 }
 0x342   :  { %9957 = vst.msk [vmem:[%s15537_s3 + $0x1b8] sm:$0xf] %vm6951_vm3, %v7441_v29  ;;  %v5267_v60 = vadd.f32 %v12143_v5, %v5266_v63  ;;  %v5767_v37 = vadd.f32 %v12143_v5, %v5766_v7  ;;  %v4268_v41 = vpop.f32.mrf.mxu0  ;;  %v4768_v0 = vpop.f32.mrf.mxu1 }
 0x343   :  { %10007 = vst.msk [vmem:[%s15537_s3 + $0x280] sm:$0xf] %vm6951_vm3, %v7693_v30  ;;  %v4269_v15 = vadd.f32 %v12143_v5, %v4268_v41  ;;  %v4769_v11 = vadd.f32 %v12143_v5, %v4768_v0 }
 0x344   :  { %6963 = vst.msk [vmem:[%s15537_s3 + $0x2c] sm:$0xf] %vm6951_vm3, %v6937_v36  ;;  %v6537_v21 = vmax.f32 %v5267_v60, 0.0  ;;  %v6737_v1 = vmax.f32 %v5767_v37, 0.0 }
 0x345   :  { %9908 = vst.msk [vmem:[%s15537_s3 + $0xf4] sm:$0xf] %vm6951_vm3, %v7190_v18  ;;  %v6138_v48 = vmax.f32 %v4269_v15, 0.0  ;;  %v6338_v10 = vmax.f32 %v4769_v11, 0.0 }
 0x346   :  { %v7417_v62 = vmax.f32 %v15820_v22, %v6537_v21  ;;  %v7669_v38 = vmax.f32 %v15821_v8, %v6737_v1  ;;  %v15828_v1 = vld [vmem:[#allocation6_spill] sm:$0xff] }
 0x347   :  { %v6913_v5 = vmax.f32 %v15822_v20, %v6138_v48  ;;  %v7166_v55 = vmax.f32 %v15823_v3, %v6338_v10  ;;  %v15829_v10 = vld [vmem:[#allocation7_spill] sm:$0xff] }
 0x348   :  { %v7442_v35 = vpack.c.bf16 %v7417_v62, %v7417_v62  ;;  %v7694_v33 = vpack.c.bf16 %v7669_v38, %v7669_v38  ;;  %v15830_v62 = vld [vmem:[#allocation8_spill] sm:$0xff]  ;;  %v15831_v38 = vld [vmem:[#allocation9_spill] sm:$0xff] }
 0x349   :  { %v6938_v13 = vpack.c.bf16 %v6913_v5, %v6913_v5  ;;  %v7191_v57 = vpack.c.bf16 %v7166_v55, %v7166_v55  ;;  %v5268_v9 = vpop.f32.mrf.mxu2  ;;  %v5768_v40 = vpop.f32.mrf.mxu3 }
 0x34a   :  { %9958 = vst.msk [vmem:[%s15537_s3 + $0x1bc] sm:$0xf] %vm6951_vm3, %v7442_v35  ;;  %v5269_v39 = vadd.f32 %v12738_v32, %v5268_v9  ;;  %v5769_v47 = vadd.f32 %v12738_v32, %v5768_v40  ;;  %v4271_v34 = vpop.f32.mrf.mxu0  ;;  %v4771_v45 = vpop.f32.mrf.mxu1  ;;  %v10200_v9 = vld [vmem:[%s15536_s0 + $0x4c8] sm:$0xff] }
 0x34b   :  { %10008 = vst.msk [vmem:[%s15537_s3 + $0x284] sm:$0xf] %vm6951_vm3, %v7694_v33  ;;  %v4272_v52 = vadd.f32 %v12738_v32, %v4271_v34  ;;  %v4772_v53 = vadd.f32 %v12738_v32, %v4771_v45  ;;  %v10400_v34 = vld [vmem:[%s15536_s0 + $0xb08] sm:$0xff] }
 0x34c   :  { %6964 = vst.msk [vmem:[%s15537_s3 + $0x30] sm:$0xf] %vm6951_vm3, %v6938_v13  ;;  %v6538_v23 = vmax.f32 %v5269_v39, 0.0  ;;  %v6738_v59 = vmax.f32 %v5769_v47, 0.0  ;;  %v10300_v47 = vld [vmem:[%s15536_s0 + $0x7e8] sm:$0xff] }
 0x34d   :  { %9909 = vst.msk [vmem:[%s15537_s3 + $0xf8] sm:$0xf] %vm6951_vm3, %v7191_v57  ;;  %v6139_v42 = vmax.f32 %v4272_v52, 0.0  ;;  %v6339_v58 = vmax.f32 %v4772_v53, 0.0  ;;  %9524 = vmatmul.msk.bf16.gmra.mxu0 %vm2834_vm2, %v10099_v27  ;;  %9624 = vmatmul.msk.bf16.gmra.mxu1 %vm2834_vm2, %v10199_v14  ;;  %v10100_v57 = vld [vmem:[%s15536_s0 + $0x1a8] sm:$0xff] }
 0x34e   :  { %v7418_v43 = vmax.f32 %v15824_v2, %v6538_v23  ;;  %v7670_v26 = vmax.f32 %v15825_v28, %v6738_v59  ;;  %9724 = vmatmul.msk.bf16.gmra.mxu2 %vm2834_vm2, %v10299_v31  ;;  %9824 = vmatmul.msk.bf16.gmra.mxu3 %vm2834_vm2, %v10399_v44  ;;  %v15832_v59 = vld [vmem:[#allocation10_spill] sm:$0xff] }
 0x34f   :  { %v6914_v56 = vmax.f32 %v15826_v24, %v6139_v42  ;;  %v7167_v54 = vmax.f32 %v15827_v17, %v6339_v58  ;;  %v15833_v58 = vld [vmem:[#allocation11_spill] sm:$0xff] }
 0x350   :  { %v7443_v51 = vpack.c.bf16 %v7418_v43, %v7418_v43  ;;  %v7695_v6 = vpack.c.bf16 %v7670_v26, %v7670_v26  ;;  %v15834_v43 = vld [vmem:[#allocation12_spill] sm:$0xff]  ;;  %v15835_v26 = vld [vmem:[#allocation13_spill] sm:$0xff] }
 0x351   :  { %v6939_v16 = vpack.c.bf16 %v6914_v56, %v6914_v56  ;;  %v7192_v29 = vpack.c.bf16 %v7167_v54, %v7167_v54  ;;  %v5271_v30 = vpop.f32.mrf.mxu2  ;;  %v5771_v36 = vpop.f32.mrf.mxu3 }
 0x352   :  { %9959 = vst.msk [vmem:[%s15537_s3 + $0x1c0] sm:$0xf] %vm6951_vm3, %v7443_v51  ;;  %v5272_v18 = vadd.f32 %v12738_v32, %v5271_v30  ;;  %v5772_v63 = vadd.f32 %v12738_v32, %v5771_v36  ;;  %v4273_v7 = vpop.f32.mrf.mxu0  ;;  %v4773_v60 = vpop.f32.mrf.mxu1 }
 0x353   :  { %10009 = vst.msk [vmem:[%s15537_s3 + $0x288] sm:$0xf] %vm6951_vm3, %v7695_v6  ;;  %v4274_v37 = vadd.f32 %v12738_v32, %v4273_v7  ;;  %v4774_v41 = vadd.f32 %v12738_v32, %v4773_v60 }
 0x354   :  { %6965 = vst.msk [vmem:[%s15537_s3 + $0x34] sm:$0xf] %vm6951_vm3, %v6939_v16  ;;  %v6539_v0 = vmax.f32 %v5272_v18, 0.0  ;;  %v6739_v15 = vmax.f32 %v5772_v63, 0.0 }
 0x355   :  { %9910 = vst.msk [vmem:[%s15537_s3 + $0xfc] sm:$0xf] %vm6951_vm3, %v7192_v29  ;;  %v6140_v11 = vmax.f32 %v4274_v37, 0.0  ;;  %v6340_v21 = vmax.f32 %v4774_v41, 0.0 }
 0x356   :  { %v7419_v48 = vmax.f32 %v15828_v1, %v6539_v0  ;;  %v7671_v22 = vmax.f32 %v15829_v10, %v6739_v15  ;;  %v15836_v15 = vld [vmem:[#allocation14_spill] sm:$0xff] }
 0x357   :  { %v6915_v8 = vmax.f32 %v15830_v62, %v6140_v11  ;;  %v7168_v20 = vmax.f32 %v15831_v38, %v6340_v21  ;;  %v15837_v21 = vld [vmem:[#allocation15_spill] sm:$0xff] }
 0x358   :  { %v7444_v5 = vpack.c.bf16 %v7419_v48, %v7419_v48  ;;  %v7696_v3 = vpack.c.bf16 %v7671_v22, %v7671_v22  ;;  %v15838_v48 = vld [vmem:[#allocation16_spill] sm:$0xff]  ;;  %v15839_v22 = vld [vmem:[#allocation17_spill] sm:$0xff] }
 0x359   :  { %v6940_v55 = vpack.c.bf16 %v6915_v8, %v6915_v8  ;;  %v7193_v35 = vpack.c.bf16 %v7168_v20, %v7168_v20  ;;  %v5273_v33 = vpop.f32.mrf.mxu2  ;;  %v5773_v13 = vpop.f32.mrf.mxu3 }
 0x35a   :  { %9960 = vst.msk [vmem:[%s15537_s3 + $0x1c4] sm:$0xf] %vm6951_vm3, %v7444_v5  ;;  %v5274_v40 = vadd.f32 %v12738_v32, %v5273_v33  ;;  %v5774_v27 = vadd.f32 %v12738_v32, %v5773_v13  ;;  %v4276_v14 = vpop.f32.mrf.mxu0  ;;  %v4776_v39 = vpop.f32.mrf.mxu1  ;;  %v10201_v33 = vld [vmem:[%s15536_s0 + $0x4d0] sm:$0xff] }
 0x35b   :  { %10010 = vst.msk [vmem:[%s15537_s3 + $0x28c] sm:$0xf] %vm6951_vm3, %v7696_v3  ;;  %v4277_v45 = vadd.f32 %v12738_v32, %v4276_v14  ;;  %v4777_v31 = vadd.f32 %v12738_v32, %v4776_v39  ;;  %v10401_v14 = vld [vmem:[%s15536_s0 + $0xb10] sm:$0xff] }
 0x35c   :  { %6966 = vst.msk [vmem:[%s15537_s3 + $0x38] sm:$0xf] %vm6951_vm3, %v6940_v55  ;;  %v6540_v44 = vmax.f32 %v5274_v40, 0.0  ;;  %v6740_v52 = vmax.f32 %v5774_v27, 0.0  ;;  %v10301_v27 = vld [vmem:[%s15536_s0 + $0x7f0] sm:$0xff] }
 0x35d   :  { %9911 = vst.msk [vmem:[%s15537_s3 + $0x100] sm:$0xf] %vm6951_vm3, %v7193_v35  ;;  %v6141_v53 = vmax.f32 %v4277_v45, 0.0  ;;  %v6341_v23 = vmax.f32 %v4777_v31, 0.0  ;;  %9525 = vmatmul.msk.bf16.gmra.mxu0 %vm2834_vm2, %v10100_v57  ;;  %9625 = vmatmul.msk.bf16.gmra.mxu1 %vm2834_vm2, %v10200_v9  ;;  %v10101_v35 = vld [vmem:[%s15536_s0 + $0x1b0] sm:$0xff] }
 0x35e   :  { %v7420_v42 = vmax.f32 %v15832_v59, %v6540_v44  ;;  %v7672_v2 = vmax.f32 %v15833_v58, %v6740_v52  ;;  %9725 = vmatmul.msk.bf16.gmra.mxu2 %vm2834_vm2, %v10300_v47  ;;  %9825 = vmatmul.msk.bf16.gmra.mxu3 %vm2834_vm2, %v10400_v34  ;;  %v15840_v52 = vld [vmem:[#allocation18_spill] sm:$0xff] }
 0x35f   :  { %v6916_v28 = vmax.f32 %v15834_v43, %v6141_v53  ;;  %v7169_v24 = vmax.f32 %v15835_v26, %v6341_v23  ;;  %v15841_v23 = vld [vmem:[#allocation19_spill] sm:$0xff] }
 0x360   :  { %v7445_v56 = vpack.c.bf16 %v7420_v42, %v7420_v42  ;;  %v7697_v17 = vpack.c.bf16 %v7672_v2, %v7672_v2  ;;  %v15842_v42 = vld [vmem:[#allocation20_spill] sm:$0xff]  ;;  %v15843_v2 = vld [vmem:[#allocation21_spill] sm:$0xff] }
 0x361   :  { %v6941_v54 = vpack.c.bf16 %v6916_v28, %v6916_v28  ;;  %v7194_v51 = vpack.c.bf16 %v7169_v24, %v7169_v24  ;;  %v5276_v6 = vpop.f32.mrf.mxu2  ;;  %v5776_v16 = vpop.f32.mrf.mxu3 }
 0x362   :  { %9961 = vst.msk [vmem:[%s15537_s3 + $0x1c8] sm:$0xf] %vm6951_vm3, %v7445_v56  ;;  %v5277_v29 = vadd.f32 %v12738_v32, %v5276_v6  ;;  %v5777_v30 = vadd.f32 %v12738_v32, %v5776_v16  ;;  %v4278_v36 = vpop.f32.mrf.mxu0  ;;  %v4778_v18 = vpop.f32.mrf.mxu1 }
 0x363   :  { %10011 = vst.msk [vmem:[%s15537_s3 + $0x290] sm:$0xf] %vm6951_vm3, %v7697_v17  ;;  %v4279_v63 = vadd.f32 %v12738_v32, %v4278_v36  ;;  %v4779_v7 = vadd.f32 %v12738_v32, %v4778_v18 }
 0x364   :  { %6967 = vst.msk [vmem:[%s15537_s3 + $0x3c] sm:$0xf] %vm6951_vm3, %v6941_v54  ;;  %v6541_v60 = vmax.f32 %v5277_v29, 0.0  ;;  %v6741_v37 = vmax.f32 %v5777_v30, 0.0 }
 0x365   :  { %9912 = vst.msk [vmem:[%s15537_s3 + $0x104] sm:$0xf] %vm6951_vm3, %v7194_v51  ;;  %v6142_v41 = vmax.f32 %v4279_v63, 0.0  ;;  %v6342_v0 = vmax.f32 %v4779_v7, 0.0 }
 0x366   :  { %v7421_v11 = vmax.f32 %v15836_v15, %v6541_v60  ;;  %v7673_v1 = vmax.f32 %v15837_v21, %v6741_v37  ;;  %v15844_v37 = vld [vmem:[#allocation22_spill] sm:$0xff] }
 0x367   :  { %v6917_v10 = vmax.f32 %v15838_v48, %v6142_v41  ;;  %v7170_v62 = vmax.f32 %v15839_v22, %v6342_v0  ;;  %v15845_v0 = vld [vmem:[#allocation23_spill] sm:$0xff] }
 0x368   :  { %v7446_v8 = vpack.c.bf16 %v7421_v11, %v7421_v11  ;;  %v7698_v38 = vpack.c.bf16 %v7673_v1, %v7673_v1  ;;  %v15846_v11 = vld [vmem:[#allocation24_spill] sm:$0xff]  ;;  %v15847_v1 = vld [vmem:[#allocation25_spill] sm:$0xff] }
 0x369   :  { %v6942_v20 = vpack.c.bf16 %v6917_v10, %v6917_v10  ;;  %v7195_v5 = vpack.c.bf16 %v7170_v62, %v7170_v62  ;;  %v5278_v3 = vpop.f32.mrf.mxu2  ;;  %v5778_v55 = vpop.f32.mrf.mxu3 }
 0x36a   :  { %9962 = vst.msk [vmem:[%s15537_s3 + $0x1cc] sm:$0xf] %vm6951_vm3, %v7446_v8  ;;  %v5279_v13 = vadd.f32 %v12738_v32, %v5278_v3  ;;  %v5779_v57 = vadd.f32 %v12738_v32, %v5778_v55  ;;  %v4281_v9 = vpop.f32.mrf.mxu0  ;;  %v4781_v40 = vpop.f32.mrf.mxu1  ;;  %v10202_v3 = vld [vmem:[%s15536_s0 + $0x4d8] sm:$0xff] }
 0x36b   :  { %10012 = vst.msk [vmem:[%s15537_s3 + $0x294] sm:$0xf] %vm6951_vm3, %v7698_v38  ;;  %v4282_v39 = vadd.f32 %v12738_v32, %v4281_v9  ;;  %v4782_v47 = vadd.f32 %v12738_v32, %v4781_v40  ;;  %v10402_v9 = vld [vmem:[%s15536_s0 + $0xb18] sm:$0xff] }
 0x36c   :  { %6968 = vst.msk [vmem:[%s15537_s3 + $0x40] sm:$0xf] %vm6951_vm3, %v6942_v20  ;;  %v6542_v34 = vmax.f32 %v5279_v13, 0.0  ;;  %v6742_v45 = vmax.f32 %v5779_v57, 0.0  ;;  %v10302_v57 = vld [vmem:[%s15536_s0 + $0x7f8] sm:$0xff] }
 0x36d   :  { %9913 = vst.msk [vmem:[%s15537_s3 + $0x108] sm:$0xf] %vm6951_vm3, %v7195_v5  ;;  %v6143_v31 = vmax.f32 %v4282_v39, 0.0  ;;  %v6343_v44 = vmax.f32 %v4782_v47, 0.0  ;;  %9526 = vmatmul.msk.bf16.gmra.mxu0 %vm2834_vm2, %v10101_v35  ;;  %9626 = vmatmul.msk.bf16.gmra.mxu1 %vm2834_vm2, %v10201_v33  ;;  %v10102_v5 = vld [vmem:[%s15536_s0 + $0x1b8] sm:$0xff] }
 0x36e   :  { %v7422_v53 = vmax.f32 %v15840_v52, %v6542_v34  ;;  %v7674_v59 = vmax.f32 %v15841_v23, %v6742_v45  ;;  %9726 = vmatmul.msk.bf16.gmra.mxu2 %vm2834_vm2, %v10301_v27  ;;  %9826 = vmatmul.msk.bf16.gmra.mxu3 %vm2834_vm2, %v10401_v14  ;;  %v15848_v45 = vld [vmem:[#allocation26_spill] sm:$0xff] }
 0x36f   :  { %v6918_v58 = vmax.f32 %v15842_v42, %v6143_v31  ;;  %v7171_v43 = vmax.f32 %v15843_v2, %v6343_v44  ;;  %v15849_v44 = vld [vmem:[#allocation27_spill] sm:$0xff] }
 0x370   :  { %v7447_v28 = vpack.c.bf16 %v7422_v53, %v7422_v53  ;;  %v7699_v26 = vpack.c.bf16 %v7674_v59, %v7674_v59  ;;  %v15850_v53 = vld [vmem:[#allocation28_spill] sm:$0xff]  ;;  %v15851_v59 = vld [vmem:[#allocation29_spill] sm:$0xff] }
 0x371   :  { %v6943_v24 = vpack.c.bf16 %v6918_v58, %v6918_v58  ;;  %v7196_v56 = vpack.c.bf16 %v7171_v43, %v7171_v43  ;;  %v5281_v17 = vpop.f32.mrf.mxu2  ;;  %v5781_v54 = vpop.f32.mrf.mxu3 }
 0x372   :  { %9963 = vst.msk [vmem:[%s15537_s3 + $0x1d0] sm:$0xf] %vm6951_vm3, %v7447_v28  ;;  %v5282_v51 = vadd.f32 %v12738_v32, %v5281_v17  ;;  %v5782_v6 = vadd.f32 %v12738_v32, %v5781_v54  ;;  %v4283_v16 = vpop.f32.mrf.mxu0  ;;  %v4783_v29 = vpop.f32.mrf.mxu1 }
 0x373   :  { %10013 = vst.msk [vmem:[%s15537_s3 + $0x298] sm:$0xf] %vm6951_vm3, %v7699_v26  ;;  %v4284_v30 = vadd.f32 %v12738_v32, %v4283_v16  ;;  %v4784_v36 = vadd.f32 %v12738_v32, %v4783_v29 }
 0x374   :  { %6969 = vst.msk [vmem:[%s15537_s3 + $0x44] sm:$0xf] %vm6951_vm3, %v6943_v24  ;;  %v6543_v18 = vmax.f32 %v5282_v51, 0.0  ;;  %v6743_v63 = vmax.f32 %v5782_v6, 0.0 }
 0x375   :  { %9914 = vst.msk [vmem:[%s15537_s3 + $0x10c] sm:$0xf] %vm6951_vm3, %v7196_v56  ;;  %v6144_v7 = vmax.f32 %v4284_v30, 0.0  ;;  %v6344_v60 = vmax.f32 %v4784_v36, 0.0 }
 0x376   :  { %v7423_v41 = vmax.f32 %v15844_v37, %v6543_v18  ;;  %v7675_v15 = vmax.f32 %v15845_v0, %v6743_v63  ;;  %v15852_v63 = vld [vmem:[#allocation30_spill] sm:$0xff] }
 0x377   :  { %v6919_v21 = vmax.f32 %v15846_v11, %v6144_v7  ;;  %v7172_v48 = vmax.f32 %v15847_v1, %v6344_v60  ;;  %v15853_v60 = vld [vmem:[#allocation31_spill] sm:$0xff] }
 0x378   :  { %v7448_v10 = vpack.c.bf16 %v7423_v41, %v7423_v41  ;;  %v7700_v22 = vpack.c.bf16 %v7675_v15, %v7675_v15  ;;  %v15854_v41 = vld [vmem:[#allocation32_spill] sm:$0xff]  ;;  %v15855_v15 = vld [vmem:[#allocation33_spill] sm:$0xff] }
 0x379   :  { %v6944_v62 = vpack.c.bf16 %v6919_v21, %v6919_v21  ;;  %v7197_v8 = vpack.c.bf16 %v7172_v48, %v7172_v48  ;;  %v5283_v38 = vpop.f32.mrf.mxu2  ;;  %v5783_v20 = vpop.f32.mrf.mxu3 }
 0x37a   :  { %9964 = vst.msk [vmem:[%s15537_s3 + $0x1d4] sm:$0xf] %vm6951_vm3, %v7448_v10  ;;  %v5284_v55 = vadd.f32 %v12738_v32, %v5283_v38  ;;  %v5784_v35 = vadd.f32 %v12738_v32, %v5783_v20  ;;  %v4286_v33 = vpop.f32.mrf.mxu0  ;;  %v4786_v13 = vpop.f32.mrf.mxu1  ;;  %v10203_v38 = vld [vmem:[%s15536_s0 + $0x4e0] sm:$0xff] }
 0x37b   :  { %10014 = vst.msk [vmem:[%s15537_s3 + $0x29c] sm:$0xf] %vm6951_vm3, %v7700_v22  ;;  %v4287_v40 = vadd.f32 %v12738_v32, %v4286_v33  ;;  %v4787_v27 = vadd.f32 %v12738_v32, %v4786_v13  ;;  %v10403_v33 = vld [vmem:[%s15536_s0 + $0xb20] sm:$0xff] }
 0x37c   :  { %6970 = vst.msk [vmem:[%s15537_s3 + $0x48] sm:$0xf] %vm6951_vm3, %v6944_v62  ;;  %v6544_v14 = vmax.f32 %v5284_v55, 0.0  ;;  %v6744_v39 = vmax.f32 %v5784_v35, 0.0  ;;  %v10303_v35 = vld [vmem:[%s15536_s0 + $0x800] sm:$0xff] }
 0x37d   :  { %9915 = vst.msk [vmem:[%s15537_s3 + $0x110] sm:$0xf] %vm6951_vm3, %v7197_v8  ;;  %v6145_v47 = vmax.f32 %v4287_v40, 0.0  ;;  %v6345_v34 = vmax.f32 %v4787_v27, 0.0  ;;  %9527 = vmatmul.msk.bf16.gmra.mxu0 %vm2834_vm2, %v10102_v5  ;;  %9627 = vmatmul.msk.bf16.gmra.mxu1 %vm2834_vm2, %v10202_v3  ;;  %v10103_v8 = vld [vmem:[%s15536_s0 + $0x1c0] sm:$0xff] }
 0x37e   :  { %v7424_v31 = vmax.f32 %v15848_v45, %v6544_v14  ;;  %v7676_v52 = vmax.f32 %v15849_v44, %v6744_v39  ;;  %9727 = vmatmul.msk.bf16.gmra.mxu2 %vm2834_vm2, %v10302_v57  ;;  %9827 = vmatmul.msk.bf16.gmra.mxu3 %vm2834_vm2, %v10402_v9  ;;  %v15857_v45 = vld [vmem:[#allocation35_spill] sm:$0xff]  ;;  %v15858_v44 = vld [vmem:[#allocation36_spill] sm:$0xff] }
 0x37f   :  { %v6920_v23 = vmax.f32 %v15850_v53, %v6145_v47  ;;  %v7173_v42 = vmax.f32 %v15851_v59, %v6345_v34  ;;  %v15856_v47 = vld [vmem:[#allocation34_spill] sm:$0xff] }
 0x380   :  { %v7449_v58 = vpack.c.bf16 %v7424_v31, %v7424_v31  ;;  %v7701_v2 = vpack.c.bf16 %v7676_v52, %v7676_v52 }
 0x381   :  { %v6945_v43 = vpack.c.bf16 %v6920_v23, %v6920_v23  ;;  %v7198_v28 = vpack.c.bf16 %v7173_v42, %v7173_v42  ;;  %v5286_v26 = vpop.f32.mrf.mxu2  ;;  %v5786_v24 = vpop.f32.mrf.mxu3 }
 0x382   :  { %9965 = vst.msk [vmem:[%s15537_s3 + $0x1d8] sm:$0xf] %vm6951_vm3, %v7449_v58  ;;  %v5287_v56 = vadd.f32 %v12738_v32, %v5286_v26  ;;  %v5787_v17 = vadd.f32 %v12738_v32, %v5786_v24  ;;  %v4288_v54 = vpop.f32.mrf.mxu0  ;;  %v4788_v51 = vpop.f32.mrf.mxu1 }
 0x383   :  { %10015 = vst.msk [vmem:[%s15537_s3 + $0x2a0] sm:$0xf] %vm6951_vm3, %v7701_v2  ;;  %v4289_v6 = vadd.f32 %v12738_v32, %v4288_v54  ;;  %v4789_v16 = vadd.f32 %v12738_v32, %v4788_v51 }
 0x384   :  { %6971 = vst.msk [vmem:[%s15537_s3 + $0x4c] sm:$0xf] %vm6951_vm3, %v6945_v43  ;;  %v6545_v29 = vmax.f32 %v5287_v56, 0.0  ;;  %v6745_v30 = vmax.f32 %v5787_v17, 0.0 }
 0x385   :  { %9916 = vst.msk [vmem:[%s15537_s3 + $0x114] sm:$0xf] %vm6951_vm3, %v7198_v28  ;;  %v6146_v36 = vmax.f32 %v4289_v6, 0.0  ;;  %v6346_v18 = vmax.f32 %v4789_v16, 0.0  ;;  %v15859_v16 = vld [vmem:[#allocation37_spill] sm:$0xff] }
 0x386   :  { %v7425_v7 = vmax.f32 %v15852_v63, %v6545_v29  ;;  %v7677_v37 = vmax.f32 %v15853_v60, %v6745_v30  ;;  %v15860_v30 = vld [vmem:[#allocation38_spill] sm:$0xff] }
 0x387   :  { %v6921_v0 = vmax.f32 %v15854_v41, %v6146_v36  ;;  %v7174_v11 = vmax.f32 %v15855_v15, %v6346_v18  ;;  %v15861_v18 = vld [vmem:[#allocation39_spill] sm:$0xff] }
 0x388   :  { %v7450_v21 = vpack.c.bf16 %v7425_v7, %v7425_v7  ;;  %v7702_v1 = vpack.c.bf16 %v7677_v37, %v7677_v37  ;;  %v15862_v7 = vld [vmem:[#allocation40_spill] sm:$0xff] }
 0x389   :  { %v6946_v48 = vpack.c.bf16 %v6921_v0, %v6921_v0  ;;  %v7199_v10 = vpack.c.bf16 %v7174_v11, %v7174_v11  ;;  %v5288_v22 = vpop.f32.mrf.mxu2  ;;  %v5788_v62 = vpop.f32.mrf.mxu3 }
 0x38a   :  { %9966 = vst.msk [vmem:[%s15537_s3 + $0x1dc] sm:$0xf] %vm6951_vm3, %v7450_v21  ;;  %v5289_v20 = vadd.f32 %v12738_v32, %v5288_v22  ;;  %v5789_v5 = vadd.f32 %v12738_v32, %v5788_v62  ;;  %v4291_v3 = vpop.f32.mrf.mxu0  ;;  %v4791_v55 = vpop.f32.mrf.mxu1 }
 0x38b   :  { %10016 = vst.msk [vmem:[%s15537_s3 + $0x2a4] sm:$0xf] %vm6951_vm3, %v7702_v1  ;;  %v4292_v13 = vadd.f32 %v12738_v32, %v4291_v3  ;;  %v4792_v57 = vadd.f32 %v12738_v32, %v4791_v55  ;;  %v10104_v1 = vld [vmem:[%s15536_s0 + $0x1c8] sm:$0xff] }
 0x38c   :  { %6972 = vst.msk [vmem:[%s15537_s3 + $0x50] sm:$0xf] %vm6951_vm3, %v6946_v48  ;;  %v6546_v9 = vmax.f32 %v5289_v20, 0.0  ;;  %v6746_v40 = vmax.f32 %v5789_v5, 0.0  ;;  %v10204_v48 = vld [vmem:[%s15536_s0 + $0x4e8] sm:$0xff] }
 0x38d   :  { %9917 = vst.msk [vmem:[%s15537_s3 + $0x118] sm:$0xf] %vm6951_vm3, %v7199_v10  ;;  %v6147_v27 = vmax.f32 %v4292_v13, 0.0  ;;  %v6347_v14 = vmax.f32 %v4792_v57, 0.0  ;;  %9528 = vmatmul.msk.bf16.gmra.mxu0 %vm2834_vm2, %v10103_v8  ;;  %9628 = vmatmul.msk.bf16.gmra.mxu1 %vm2834_vm2, %v10203_v38  ;;  %v10304_v38 = vld [vmem:[%s15536_s0 + $0x808] sm:$0xff] }
 0x38e   :  { %v7426_v39 = vmax.f32 %v12246_v12, %v6546_v9  ;;  %v7678_v34 = vmax.f32 %v15856_v47, %v6746_v40  ;;  %9728 = vmatmul.msk.bf16.gmra.mxu2 %vm2834_vm2, %v10303_v35  ;;  %9828 = vmatmul.msk.bf16.gmra.mxu3 %vm2834_vm2, %v10403_v33  ;;  %v10404_v20 = vld [vmem:[%s15536_s0 + $0xb28] sm:$0xff] }
 0x38f   :  { %v6922_v31 = vmax.f32 %v15857_v45, %v6147_v27  ;;  %v7175_v52 = vmax.f32 %v15858_v44, %v6347_v14  ;;  %v15863_v27 = vld [vmem:[#allocation41_spill] sm:$0xff] }
 0x390   :  { %v7451_v53 = vpack.c.bf16 %v7426_v39, %v7426_v39  ;;  %v7703_v23 = vpack.c.bf16 %v7678_v34, %v7678_v34 }
 0x391   :  { %v6947_v59 = vpack.c.bf16 %v6922_v31, %v6922_v31  ;;  %v7200_v42 = vpack.c.bf16 %v7175_v52, %v7175_v52  ;;  %v5291_v58 = vpop.f32.mrf.mxu2  ;;  %v5791_v2 = vpop.f32.mrf.mxu3 }
 0x392   :  { %9967 = vst.msk [vmem:[%s15537_s3 + $0x1e0] sm:$0xf] %vm6951_vm3, %v7451_v53  ;;  %v5292_v12 = vadd.f32 %v12738_v32, %v5291_v58  ;;  %v5792_v43 = vadd.f32 %v12738_v32, %v5791_v2  ;;  %v4293_v28 = vpop.f32.mrf.mxu0  ;;  %v4793_v26 = vpop.f32.mrf.mxu1 }
 0x393   :  { %10017 = vst.msk [vmem:[%s15537_s3 + $0x2a8] sm:$0xf] %vm6951_vm3, %v7703_v23  ;;  %v4294_v24 = vadd.f32 %v12738_v32, %v4293_v28  ;;  %v4794_v56 = vadd.f32 %v12738_v32, %v4793_v26  ;;  %v15864_v28 = vld [vmem:[#allocation42_spill] sm:$0xff] }
 0x394   :  { %6973 = vst.msk [vmem:[%s15537_s3 + $0x54] sm:$0xf] %vm6951_vm3, %v6947_v59  ;;  %v6547_v17 = vmax.f32 %v5292_v12, 0.0  ;;  %v6747_v54 = vmax.f32 %v5792_v43, 0.0 }
 0x395   :  { %9918 = vst.msk [vmem:[%s15537_s3 + $0x11c] sm:$0xf] %vm6951_vm3, %v7200_v42  ;;  %v6148_v51 = vmax.f32 %v4294_v24, 0.0  ;;  %v6348_v6 = vmax.f32 %v4794_v56, 0.0  ;;  %v15865_v24 = vld [vmem:[#allocation43_spill] sm:$0xff] }
 0x396   :  { %v7427_v29 = vmax.f32 %v15859_v16, %v6547_v17  ;;  %v7679_v36 = vmax.f32 %v15860_v30, %v6747_v54  ;;  %v10105_v30 = vld [vmem:[%s15536_s0 + $0x1d0] sm:$0xff] }
 0x397   :  { %v6923_v63 = vmax.f32 %v15861_v18, %v6148_v51  ;;  %v7176_v60 = vmax.f32 %v15862_v7, %v6348_v6  ;;  %v10305_v7 = vld [vmem:[%s15536_s0 + $0x810] sm:$0xff] }
 0x398   :  { %v7452_v37 = vpack.c.bf16 %v7427_v29, %v7427_v29  ;;  %v7704_v41 = vpack.c.bf16 %v7679_v36, %v7679_v36 }
 0x399   :  { %v6948_v0 = vpack.c.bf16 %v6923_v63, %v6923_v63  ;;  %v7201_v15 = vpack.c.bf16 %v7176_v60, %v7176_v60  ;;  %v5293_v11 = vpop.f32.mrf.mxu2  ;;  %v5793_v21 = vpop.f32.mrf.mxu3  ;;  %v10405_v60 = vld [vmem:[%s15536_s0 + $0xb30] sm:$0xff] }
 0x39a   :  { %9968 = vst.msk [vmem:[%s15537_s3 + $0x1e4] sm:$0xf] %vm6951_vm3, %v7452_v37  ;;  %v5294_v10 = vadd.f32 %v12738_v32, %v5293_v11  ;;  %v5794_v22 = vadd.f32 %v12738_v32, %v5793_v21  ;;  %v4296_v62 = vpop.f32.mrf.mxu0  ;;  %v4796_v8 = vpop.f32.mrf.mxu1 }
 0x39b   :  { %10018 = vst.msk [vmem:[%s15537_s3 + $0x2ac] sm:$0xf] %vm6951_vm3, %v7704_v41  ;;  %v4297_v5 = vadd.f32 %v12738_v32, %v4296_v62  ;;  %v4797_v3 = vadd.f32 %v12738_v32, %v4796_v8  ;;  %v10206_v62 = vld [vmem:[%s15536_s0 + $0x4f8] sm:$0xff] }
 0x39c   :  { %6974 = vst.msk [vmem:[%s15537_s3 + $0x58] sm:$0xf] %vm6951_vm3, %v6948_v0  ;;  %v6548_v55 = vmax.f32 %v5294_v10, 0.0  ;;  %v6748_v35 = vmax.f32 %v5794_v22, 0.0  ;;  %v10106_v22 = vld [vmem:[%s15536_s0 + $0x1d8] sm:$0xff] }
 0x39d   :  { %9919 = vst.msk [vmem:[%s15537_s3 + $0x120] sm:$0xf] %vm6951_vm3, %v7201_v15  ;;  %v6149_v33 = vmax.f32 %v4297_v5, 0.0  ;;  %v6349_v13 = vmax.f32 %v4797_v3, 0.0  ;;  %9529 = vmatmul.msk.bf16.gmra.mxu0 %vm2834_vm2, %v10104_v1  ;;  %9629 = vmatmul.msk.bf16.gmra.mxu1 %vm2834_vm2, %v10204_v48  ;;  %v10406_v5 = vld [vmem:[%s15536_s0 + $0xb38] sm:$0xff] }
 0x39e   :  { %v7428_v57 = vmax.f32 %v12294_v49, %v6548_v55  ;;  %v7680_v9 = vmax.f32 %v12297_v46, %v6748_v35  ;;  %9729 = vmatmul.msk.bf16.gmra.mxu2 %vm2834_vm2, %v10304_v38  ;;  %9829 = vmatmul.msk.bf16.gmra.mxu3 %vm2834_vm2, %v10404_v20  ;;  %v10306_v20 = vld [vmem:[%s15536_s0 + $0x818] sm:$0xff] }
 0x39f   :  { %v6924_v40 = vmax.f32 %v12300_v50, %v6149_v33  ;;  %v7177_v14 = vmax.f32 %v15863_v27, %v6349_v13 }
 0x3a0   :  { %v7453_v39 = vpack.c.bf16 %v7428_v57, %v7428_v57  ;;  %v7705_v47 = vpack.c.bf16 %v7680_v9, %v7680_v9  ;;  %v10107_v9 = vld [vmem:[%s15536_s0 + $0x1e0] sm:$0xff] }
 0x3a1   :  { %v6949_v34 = vpack.c.bf16 %v6924_v40, %v6924_v40  ;;  %v7202_v45 = vpack.c.bf16 %v7177_v14, %v7177_v14  ;;  %v5296_v31 = vpop.f32.mrf.mxu2  ;;  %v5796_v44 = vpop.f32.mrf.mxu3  ;;  %v10207_v40 = vld [vmem:[%s15536_s0 + $0x500] sm:$0xff] }
 0x3a2   :  { %9969 = vst.msk [vmem:[%s15537_s3 + $0x1e8] sm:$0xf] %vm6951_vm3, %v7453_v39  ;;  %v5297_v49 = vadd.f32 %v12738_v32, %v5296_v31  ;;  %v5797_v46 = vadd.f32 %v12738_v32, %v5796_v44  ;;  %v4298_v52 = vpop.f32.mrf.mxu0  ;;  %v4798_v53 = vpop.f32.mrf.mxu1  ;;  %v10307_v39 = vld [vmem:[%s15536_s0 + $0x820] sm:$0xff] }
 0x3a3   :  { %10019 = vst.msk [vmem:[%s15537_s3 + $0x2b0] sm:$0xf] %vm6951_vm3, %v7705_v47  ;;  %v4299_v50 = vadd.f32 %v12738_v32, %v4298_v52  ;;  %v4799_v23 = vadd.f32 %v12738_v32, %v4798_v53  ;;  %v10407_v47 = vld [vmem:[%s15536_s0 + $0xb40] sm:$0xff]  ;;  %v10108_v52 = vld [vmem:[%s15536_s0 + $0x1e8] sm:$0xff] }
 0x3a4   :  { %6975 = vst.msk [vmem:[%s15537_s3 + $0x5c] sm:$0xf] %vm6951_vm3, %v6949_v34  ;;  %v6549_v59 = vmax.f32 %v5297_v49, 0.0  ;;  %v6749_v42 = vmax.f32 %v5797_v46, 0.0  ;;  %v10208_v53 = vld [vmem:[%s15536_s0 + $0x508] sm:$0xff] }
 0x3a5   :  { %9920 = vst.msk [vmem:[%s15537_s3 + $0x124] sm:$0xf] %vm6951_vm3, %v7202_v45  ;;  %v6150_v58 = vmax.f32 %v4299_v50, 0.0  ;;  %v6350_v2 = vmax.f32 %v4799_v23, 0.0 }
 0x3a6   :  { %v7429_v12 = vmax.f32 %v12324_v25, %v6549_v59  ;;  %v7681_v43 = vmax.f32 %v12327_v61, %v6749_v42  ;;  %v10205_v25 = vld [vmem:[%s15536_s0 + $0x4f0] sm:$0xff]  ;;  %v10308_v59 = vld [vmem:[%s15536_s0 + $0x828] sm:$0xff] }
 0x3a7   :  { %v6925_v26 = vmax.f32 %v15864_v28, %v6150_v58  ;;  %v7178_v56 = vmax.f32 %v15865_v24, %v6350_v2  ;;  %v10408_v42 = vld [vmem:[%s15536_s0 + $0xb48] sm:$0xff]  ;;  %v10109_v24 = vld [vmem:[%s15536_s0 + $0x1f0] sm:$0xff] }
 0x3a8   :  { %v7454_v17 = vpack.c.bf16 %v7429_v12, %v7429_v12  ;;  %v7706_v54 = vpack.c.bf16 %v7681_v43, %v7681_v43 }
 0x3a9   :  { %v6950_v51 = vpack.c.bf16 %v6925_v26, %v6925_v26  ;;  %v7203_v6 = vpack.c.bf16 %v7178_v56, %v7178_v56  ;;  %v5298_v16 = vpop.f32.mrf.mxu2  ;;  %v5798_v29 = vpop.f32.mrf.mxu3  ;;  %v10209_v56 = vld [vmem:[%s15536_s0 + $0x510] sm:$0xff] }
 0x3aa   :  { %9970 = vst.msk [vmem:[%s15537_s3 + $0x1ec] sm:$0xf] %vm6951_vm3, %v7454_v17  ;;  %v5299_v61 = vadd.f32 %v12738_v32, %v5298_v16  ;;  %v5799_v36 = vadd.f32 %v12738_v32, %v5798_v29  ;;  %v13126_v18 = vpop.f32.mrf.mxu0  ;;  %v13128_v63 = vpop.f32.mrf.mxu1 }
 0x3ab   :  { %10020 = vst.msk [vmem:[%s15537_s3 + $0x2b4] sm:$0xf] %vm6951_vm3, %v7706_v54 }
 0x3ac   :  { %6977 = vst.msk [vmem:[%s15537_s3 + $0x60] sm:$0x3] %vm6976_vm4, %v6950_v51  ;;  %v6550_v32 = vmax.f32 %v5299_v61, 0.0  ;;  %v6750_v37 = vmax.f32 %v5799_v36, 0.0  ;;  %v10309_v51 = vld [vmem:[%s15536_s0 + $0x830] sm:$0xff] }
 0x3ad   :  { %9921 = vst.msk [vmem:[%s15537_s3 + $0x128] sm:$0x3] %vm6976_vm4, %v7203_v6  ;;  %9530 = vmatmul.msk.bf16.gmra.mxu0 %vm2834_vm2, %v10105_v30  ;;  %9630 = vmatmul.msk.bf16.gmra.mxu1 %vm2834_vm2, %v10205_v25  ;;  %v10409_v6 = vld [vmem:[%s15536_s0 + $0xb50] sm:$0xff] }
 0x3ae   :  { %v7430_v41 = vmax.f32 %v12342_v19, %v6550_v32  ;;  %v7682_v0 = vmax.f32 %v12345_v4, %v6750_v37  ;;  %9730 = vmatmul.msk.bf16.gmra.mxu2 %vm2834_vm2, %v10305_v7  ;;  %9830 = vmatmul.msk.bf16.gmra.mxu3 %vm2834_vm2, %v10405_v60  ;;  %v10110_v7 = vld [vmem:[%s15536_s0 + $0x1f8] sm:$0xff] }
 0x3af   :  { %v10210_v60 = vld [vmem:[%s15536_s0 + $0x518] sm:$0xff] }
 0x3b0   :  { %v7455_v15 = vpack.c.bf16 %v7430_v41, %v7430_v41  ;;  %v7707_v11 = vpack.c.bf16 %v7682_v0, %v7682_v0  ;;  %v10310_v41 = vld [vmem:[%s15536_s0 + $0x838] sm:$0xff] }
 0x3b1   :  { %v13154_v21 = vpop.f32.mrf.mxu2  ;;  %v13156_v1 = vpop.f32.mrf.mxu3  ;;  %v10410_v0 = vld [vmem:[%s15536_s0 + $0xb58] sm:$0xff] }
 0x3b2   :  { %9971 = vst.msk [vmem:[%s15537_s3 + $0x1f0] sm:$0x3] %vm6976_vm4, %v7455_v15  ;;  %v13162_v48 = vpop.f32.mrf.mxu0  ;;  %v13164_v19 = vpop.f32.mrf.mxu1 }
 0x3b3   :  { %10021 = vst.msk [vmem:[%s15537_s3 + $0x2b8] sm:$0x3] %vm6976_vm4, %v7707_v11 }
 0x3b9   :  { %v13170_v4 = vpop.f32.mrf.mxu2  ;;  %v13172_v10 = vpop.f32.mrf.mxu3 }
 0x3ba   :  { %v13180_v8 = vpop.f32.mrf.mxu0  ;;  %v13182_v38 = vpop.f32.mrf.mxu1 }
 0x3bd   :  { %9531 = vmatmul.msk.bf16.gmra.mxu0 %vm2834_vm2, %v10106_v22  ;;  %9631 = vmatmul.msk.bf16.gmra.mxu1 %vm2834_vm2, %v10206_v62 }
 0x3be   :  { %9731 = vmatmul.msk.bf16.gmra.mxu2 %vm2834_vm2, %v10306_v20  ;;  %9831 = vmatmul.msk.bf16.gmra.mxu3 %vm2834_vm2, %v10406_v5 }
 0x3c1   :  { %v13194_v3 = vpop.f32.mrf.mxu2  ;;  %v13196_v55 = vpop.f32.mrf.mxu3 }
 0x3c2   :  { %v13198_v35 = vpop.f32.mrf.mxu0  ;;  %v13200_v33 = vpop.f32.mrf.mxu1 }
 0x3c9   :  { %v13202_v13 = vpop.f32.mrf.mxu2  ;;  %v13204_v57 = vpop.f32.mrf.mxu3 }
 0x3ca   :  { %v13212_v27 = vpop.f32.mrf.mxu0  ;;  %v13214_v14 = vpop.f32.mrf.mxu1 }
 0x3cd   :  { %9532 = vmatmul.msk.bf16.gmra.mxu0 %vm2834_vm2, %v10107_v9  ;;  %9632 = vmatmul.msk.bf16.gmra.mxu1 %vm2834_vm2, %v10207_v40  ;;  %v10111_v9 = vld [vmem:[%s15536_s0 + $0x200] sm:$0xff] }
 0x3ce   :  { %9732 = vmatmul.msk.bf16.gmra.mxu2 %vm2834_vm2, %v10307_v39  ;;  %9832 = vmatmul.msk.bf16.gmra.mxu3 %vm2834_vm2, %v10407_v47  ;;  %v10211_v40 = vld [vmem:[%s15536_s0 + $0x520] sm:$0xff] }
 0x3d1   :  { %v13226_v34 = vpop.f32.mrf.mxu2  ;;  %v13228_v45 = vpop.f32.mrf.mxu3 }
 0x3d2   :  { %v13230_v31 = vpop.f32.mrf.mxu0  ;;  %v13232_v44 = vpop.f32.mrf.mxu1 }
 0x3d9   :  { %v13234_v49 = vpop.f32.mrf.mxu2  ;;  %v13236_v46 = vpop.f32.mrf.mxu3 }
 0x3da   :  { %v13244_v50 = vpop.f32.mrf.mxu0  ;;  %v13246_v23 = vpop.f32.mrf.mxu1 }
 0x3dd   :  { %9533 = vmatmul.msk.bf16.gmra.mxu0 %vm2834_vm2, %v10108_v52  ;;  %9633 = vmatmul.msk.bf16.gmra.mxu1 %vm2834_vm2, %v10208_v53  ;;  %v10311_v52 = vld [vmem:[%s15536_s0 + $0x840] sm:$0xff] }
 0x3de   :  { %9733 = vmatmul.msk.bf16.gmra.mxu2 %vm2834_vm2, %v10308_v59  ;;  %9833 = vmatmul.msk.bf16.gmra.mxu3 %vm2834_vm2, %v10408_v42  ;;  %v10411_v53 = vld [vmem:[%s15536_s0 + $0xb60] sm:$0xff] }
 0x3e1   :  { %v13258_v58 = vpop.f32.mrf.mxu2  ;;  %v13260_v2 = vpop.f32.mrf.mxu3 }
 0x3e2   :  { %v13262_v12 = vpop.f32.mrf.mxu0  ;;  %v13264_v43 = vpop.f32.mrf.mxu1 }
 0x3e9   :  { %v13266_v28 = vpop.f32.mrf.mxu2  ;;  %v13268_v26 = vpop.f32.mrf.mxu3 }
 0x3ea   :  { %v13276_v17 = vpop.f32.mrf.mxu0  ;;  %v13278_v54 = vpop.f32.mrf.mxu1 }
 0x3ed   :  { %9534 = vmatmul.msk.bf16.gmra.mxu0 %vm2834_vm2, %v10109_v24  ;;  %9634 = vmatmul.msk.bf16.gmra.mxu1 %vm2834_vm2, %v10209_v56 }
 0x3ee   :  { %9734 = vmatmul.msk.bf16.gmra.mxu2 %vm2834_vm2, %v10309_v51  ;;  %9834 = vmatmul.msk.bf16.gmra.mxu3 %vm2834_vm2, %v10409_v6 }
 0x3f1   :  { %v13290_v16 = vpop.f32.mrf.mxu2  ;;  %v13292_v29 = vpop.f32.mrf.mxu3 }
 0x3f2   :  { %v13294_v30 = vpop.f32.mrf.mxu0  ;;  %v13296_v25 = vpop.f32.mrf.mxu1 }
 0x3f9   :  { %v13298_v61 = vpop.f32.mrf.mxu2  ;;  %v13300_v36 = vpop.f32.mrf.mxu3 }
 0x3fa   :  { %v13308_v32 = vpop.f32.mrf.mxu0  ;;  %v13310_v37 = vpop.f32.mrf.mxu1 }
 0x3fd   :  { %9535 = vmatmul.msk.bf16.gmra.mxu0 %vm2834_vm2, %v10110_v7  ;;  %9635 = vmatmul.msk.bf16.gmra.mxu1 %vm2834_vm2, %v10210_v60  ;;  %v10112_v7 = vld [vmem:[%s15536_s0 + $0x208] sm:$0xff] }
 0x3fe   :  { %9735 = vmatmul.msk.bf16.gmra.mxu2 %vm2834_vm2, %v10310_v41  ;;  %9835 = vmatmul.msk.bf16.gmra.mxu3 %vm2834_vm2, %v10410_v0  ;;  %v10212_v60 = vld [vmem:[%s15536_s0 + $0x528] sm:$0xff] }
 0x401   :  { %v13322_v15 = vpop.f32.mrf.mxu2  ;;  %v13324_v11 = vpop.f32.mrf.mxu3 }
 0x402   :  { %v13326_v22 = vpop.f32.mrf.mxu0  ;;  %v13328_v62 = vpop.f32.mrf.mxu1 }
 0x403   :  { %15866 = vst [vmem:[#allocation44_spill] sm:$0xff] %v13328_v62 }
 0x409   :  { %v13330_v20 = vpop.f32.mrf.mxu2  ;;  %v13332_v5 = vpop.f32.mrf.mxu3 }
 0x40a   :  { %15867 = vst [vmem:[#allocation45_spill] sm:$0xff] %v13330_v20  ;;  %v13340_v39 = vpop.f32.mrf.mxu0  ;;  %v13342_v47 = vpop.f32.mrf.mxu1 }
 0x40b   :  { %15868 = vst [vmem:[#allocation46_spill] sm:$0xff] %v13332_v5 }
 0x40c   :  { %15869 = vst [vmem:[#allocation47_spill] sm:$0xff] %v13340_v39 }
 0x40d   :  { %15870 = vst [vmem:[#allocation48_spill] sm:$0xff] %v13342_v47  ;;  %9536 = vmatmul.msk.bf16.gmra.mxu0 %vm2834_vm2, %v10111_v9  ;;  %9636 = vmatmul.msk.bf16.gmra.mxu1 %vm2834_vm2, %v10211_v40  ;;  %v10312_v9 = vld [vmem:[%s15536_s0 + $0x848] sm:$0xff] }
 0x40e   :  { %9736 = vmatmul.msk.bf16.gmra.mxu2 %vm2834_vm2, %v10311_v52  ;;  %9836 = vmatmul.msk.bf16.gmra.mxu3 %vm2834_vm2, %v10411_v53  ;;  %v10412_v40 = vld [vmem:[%s15536_s0 + $0xb68] sm:$0xff] }
 0x411   :  { %v13354_v59 = vpop.f32.mrf.mxu2  ;;  %v13356_v42 = vpop.f32.mrf.mxu3 }
 0x412   :  { %15871 = vst [vmem:[#allocation49_spill] sm:$0xff] %v13354_v59  ;;  %v13358_v24 = vpop.f32.mrf.mxu0  ;;  %v13360_v56 = vpop.f32.mrf.mxu1 }
 0x413   :  { %15872 = vst [vmem:[#allocation50_spill] sm:$0xff] %v13356_v42 }
 0x414   :  { %15873 = vst [vmem:[#allocation51_spill] sm:$0xff] %v13358_v24 }
 0x415   :  { %15874 = vst [vmem:[#allocation52_spill] sm:$0xff] %v13360_v56 }
 0x419   :  { %v13362_v51 = vpop.f32.mrf.mxu2  ;;  %v13364_v6 = vpop.f32.mrf.mxu3 }
 0x41a   :  { %15875 = vst [vmem:[#allocation53_spill] sm:$0xff] %v13362_v51  ;;  %v13372_v41 = vpop.f32.mrf.mxu0  ;;  %v13374_v0 = vpop.f32.mrf.mxu1 }
 0x41b   :  { %15876 = vst [vmem:[#allocation54_spill] sm:$0xff] %v13364_v6 }
 0x41c   :  { %15877 = vst [vmem:[#allocation55_spill] sm:$0xff] %v13372_v41 }
 0x41d   :  { %15878 = vst [vmem:[#allocation56_spill] sm:$0xff] %v13374_v0  ;;  %9537 = vmatmul.msk.bf16.gmra.mxu0 %vm2834_vm2, %v10112_v7  ;;  %9637 = vmatmul.msk.bf16.gmra.mxu1 %vm2834_vm2, %v10212_v60  ;;  %v10113_v7 = vld [vmem:[%s15536_s0 + $0x210] sm:$0xff] }
 0x41e   :  { %9737 = vmatmul.msk.bf16.gmra.mxu2 %vm2834_vm2, %v10312_v9  ;;  %9837 = vmatmul.msk.bf16.gmra.mxu3 %vm2834_vm2, %v10412_v40  ;;  %v10213_v60 = vld [vmem:[%s15536_s0 + $0x530] sm:$0xff] }
 0x421   :  { %v13386_v52 = vpop.f32.mrf.mxu2  ;;  %v13388_v53 = vpop.f32.mrf.mxu3 }
 0x422   :  { %15879 = vst [vmem:[#allocation57_spill] sm:$0xff] %v13386_v52  ;;  %v13390_v0 = vpop.f32.mrf.mxu0  ;;  %v13392_v41 = vpop.f32.mrf.mxu1 }
 0x423   :  { %15880 = vst [vmem:[#allocation58_spill] sm:$0xff] %v13388_v53 }
 0x424   :  { %15881 = vst [vmem:[#allocation59_spill] sm:$0xff] %v13390_v0 }
 0x425   :  { %15882 = vst [vmem:[#allocation2_spill] sm:$0xff] %v13392_v41  ;;  %v10313_v41 = vld [vmem:[%s15536_s0 + $0x850] sm:$0xff] }
 0x429   :  { %v13394_v6 = vpop.f32.mrf.mxu2  ;;  %v13396_v51 = vpop.f32.mrf.mxu3 }
 0x42a   :  { %15883 = vst [vmem:[#allocation60_spill] sm:$0xff] %v13394_v6  ;;  %v13404_v9 = vpop.f32.mrf.mxu0  ;;  %v13406_v40 = vpop.f32.mrf.mxu1 }
 0x42b   :  { %15884 = vst [vmem:[#allocation61_spill] sm:$0xff] %v13396_v51  ;;  %v10413_v51 = vld [vmem:[%s15536_s0 + $0xb70] sm:$0xff] }
 0x42c   :  { %15885 = vst [vmem:[#allocation62_spill] sm:$0xff] %v13404_v9 }
 0x42d   :  { %15886 = vst [vmem:[#allocation3_spill] sm:$0xff] %v13406_v40  ;;  %9538 = vmatmul.msk.bf16.gmra.mxu0 %vm2834_vm2, %v10113_v7  ;;  %9638 = vmatmul.msk.bf16.gmra.mxu1 %vm2834_vm2, %v10213_v60  ;;  %v10114_v7 = vld [vmem:[%s15536_s0 + $0x218] sm:$0xff] }
 0x42e   :  { %9738 = vmatmul.msk.bf16.gmra.mxu2 %vm2834_vm2, %v10313_v41  ;;  %9838 = vmatmul.msk.bf16.gmra.mxu3 %vm2834_vm2, %v10413_v51  ;;  %v10214_v51 = vld [vmem:[%s15536_s0 + $0x538] sm:$0xff] }
 0x431   :  { %v13418_v6 = vpop.f32.mrf.mxu2  ;;  %v13420_v9 = vpop.f32.mrf.mxu3 }
 0x432   :  { %15887 = vst [vmem:[#allocation4_spill] sm:$0xff] %v13418_v6  ;;  %v13422_v40 = vpop.f32.mrf.mxu0  ;;  %v13424_v0 = vpop.f32.mrf.mxu1 }
 0x433   :  { %15888 = vst [vmem:[#allocation5_spill] sm:$0xff] %v13420_v9 }
 0x434   :  { %15889 = vst [vmem:[#allocation6_spill] sm:$0xff] %v13422_v40 }
 0x435   :  { %15890 = vst [vmem:[#allocation7_spill] sm:$0xff] %v13424_v0  ;;  %v10314_v0 = vld [vmem:[%s15536_s0 + $0x858] sm:$0xff] }
 0x439   :  { %v13426_v53 = vpop.f32.mrf.mxu2  ;;  %v13428_v52 = vpop.f32.mrf.mxu3 }
 0x43a   :  { %15891 = vst [vmem:[#allocation8_spill] sm:$0xff] %v13426_v53  ;;  %v13436_v41 = vpop.f32.mrf.mxu0  ;;  %v13438_v60 = vpop.f32.mrf.mxu1 }
 0x43b   :  { %15892 = vst [vmem:[#allocation9_spill] sm:$0xff] %v13428_v52  ;;  %v10414_v52 = vld [vmem:[%s15536_s0 + $0xb78] sm:$0xff] }
 0x43c   :  { %15893 = vst [vmem:[#allocation10_spill] sm:$0xff] %v13436_v41 }
 0x43d   :  { %15894 = vst [vmem:[#allocation11_spill] sm:$0xff] %v13438_v60  ;;  %9539 = vmatmul.msk.bf16.gmra.mxu0 %vm2834_vm2, %v10114_v7  ;;  %9639 = vmatmul.msk.bf16.gmra.mxu1 %vm2834_vm2, %v10214_v51  ;;  %v10115_v7 = vld [vmem:[%s15536_s0 + $0x220] sm:$0xff] }
 0x43e   :  { %9739 = vmatmul.msk.bf16.gmra.mxu2 %vm2834_vm2, %v10314_v0  ;;  %9839 = vmatmul.msk.bf16.gmra.mxu3 %vm2834_vm2, %v10414_v52  ;;  %v10215_v0 = vld [vmem:[%s15536_s0 + $0x540] sm:$0xff] }
 0x441   :  { %v13450_v53 = vpop.f32.mrf.mxu2  ;;  %v13452_v41 = vpop.f32.mrf.mxu3 }
 0x442   :  { %15895 = vst [vmem:[#allocation12_spill] sm:$0xff] %v13450_v53  ;;  %v13454_v60 = vpop.f32.mrf.mxu0  ;;  %v13456_v40 = vpop.f32.mrf.mxu1 }
 0x443   :  { %15896 = vst [vmem:[#allocation13_spill] sm:$0xff] %v13452_v41 }
 0x444   :  { %15897 = vst [vmem:[#allocation14_spill] sm:$0xff] %v13454_v60 }
 0x445   :  { %15898 = vst [vmem:[#allocation15_spill] sm:$0xff] %v13456_v40  ;;  %v10315_v40 = vld [vmem:[%s15536_s0 + $0x860] sm:$0xff] }
 0x449   :  { %v13458_v9 = vpop.f32.mrf.mxu2  ;;  %v13460_v6 = vpop.f32.mrf.mxu3 }
 0x44a   :  { %15899 = vst [vmem:[#allocation16_spill] sm:$0xff] %v13458_v9  ;;  %v13468_v52 = vpop.f32.mrf.mxu0  ;;  %v13470_v51 = vpop.f32.mrf.mxu1 }
 0x44b   :  { %15900 = vst [vmem:[#allocation17_spill] sm:$0xff] %v13460_v6  ;;  %v10415_v6 = vld [vmem:[%s15536_s0 + $0xb80] sm:$0xff] }
 0x44c   :  { %15901 = vst [vmem:[#allocation18_spill] sm:$0xff] %v13468_v52 }
 0x44d   :  { %15902 = vst [vmem:[#allocation19_spill] sm:$0xff] %v13470_v51  ;;  %9540 = vmatmul.msk.bf16.gmra.mxu0 %vm2834_vm2, %v10115_v7  ;;  %9640 = vmatmul.msk.bf16.gmra.mxu1 %vm2834_vm2, %v10215_v0  ;;  %v10116_v7 = vld [vmem:[%s15536_s0 + $0x228] sm:$0xff] }
 0x44e   :  { %9740 = vmatmul.msk.bf16.gmra.mxu2 %vm2834_vm2, %v10315_v40  ;;  %9840 = vmatmul.msk.bf16.gmra.mxu3 %vm2834_vm2, %v10415_v6  ;;  %v10216_v6 = vld [vmem:[%s15536_s0 + $0x548] sm:$0xff] }
 0x451   :  { %v13482_v9 = vpop.f32.mrf.mxu2  ;;  %v13484_v52 = vpop.f32.mrf.mxu3 }
 0x452   :  { %15903 = vst [vmem:[#allocation20_spill] sm:$0xff] %v13482_v9  ;;  %v13486_v51 = vpop.f32.mrf.mxu0  ;;  %v13488_v60 = vpop.f32.mrf.mxu1 }
 0x453   :  { %15904 = vst [vmem:[#allocation21_spill] sm:$0xff] %v13484_v52 }
 0x454   :  { %15905 = vst [vmem:[#allocation22_spill] sm:$0xff] %v13486_v51 }
 0x455   :  { %15906 = vst [vmem:[#allocation23_spill] sm:$0xff] %v13488_v60  ;;  %v10316_v60 = vld [vmem:[%s15536_s0 + $0x868] sm:$0xff] }
 0x459   :  { %v13490_v41 = vpop.f32.mrf.mxu2  ;;  %v13492_v53 = vpop.f32.mrf.mxu3 }
 0x45a   :  { %15907 = vst [vmem:[#allocation24_spill] sm:$0xff] %v13490_v41  ;;  %v13500_v40 = vpop.f32.mrf.mxu0  ;;  %v13502_v0 = vpop.f32.mrf.mxu1 }
 0x45b   :  { %15908 = vst [vmem:[#allocation25_spill] sm:$0xff] %v13492_v53  ;;  %v10416_v53 = vld [vmem:[%s15536_s0 + $0xb88] sm:$0xff] }
 0x45c   :  { %15909 = vst [vmem:[#allocation26_spill] sm:$0xff] %v13500_v40 }
 0x45d   :  { %15910 = vst [vmem:[#allocation27_spill] sm:$0xff] %v13502_v0  ;;  %9541 = vmatmul.msk.bf16.gmra.mxu0 %vm2834_vm2, %v10116_v7  ;;  %9641 = vmatmul.msk.bf16.gmra.mxu1 %vm2834_vm2, %v10216_v6  ;;  %v10117_v7 = vld [vmem:[%s15536_s0 + $0x230] sm:$0xff] }
 0x45e   :  { %9741 = vmatmul.msk.bf16.gmra.mxu2 %vm2834_vm2, %v10316_v60  ;;  %9841 = vmatmul.msk.bf16.gmra.mxu3 %vm2834_vm2, %v10416_v53  ;;  %v10217_v53 = vld [vmem:[%s15536_s0 + $0x550] sm:$0xff] }
 0x461   :  { %v13514_v41 = vpop.f32.mrf.mxu2  ;;  %v13516_v40 = vpop.f32.mrf.mxu3 }
 0x462   :  { %15911 = vst [vmem:[#allocation28_spill] sm:$0xff] %v13514_v41  ;;  %v13518_v0 = vpop.f32.mrf.mxu0  ;;  %v13520_v51 = vpop.f32.mrf.mxu1 }
 0x463   :  { %15912 = vst [vmem:[#allocation29_spill] sm:$0xff] %v13516_v40 }
 0x464   :  { %15913 = vst [vmem:[#allocation30_spill] sm:$0xff] %v13518_v0 }
 0x465   :  { %15914 = vst [vmem:[#allocation31_spill] sm:$0xff] %v13520_v51  ;;  %v10317_v51 = vld [vmem:[%s15536_s0 + $0x870] sm:$0xff] }
 0x469   :  { %v13522_v52 = vpop.f32.mrf.mxu2  ;;  %v13524_v9 = vpop.f32.mrf.mxu3 }
 0x46a   :  { %15915 = vst [vmem:[#allocation32_spill] sm:$0xff] %v13522_v52  ;;  %v13532_v60 = vpop.f32.mrf.mxu0  ;;  %v13534_v6 = vpop.f32.mrf.mxu1 }
 0x46b   :  { %15916 = vst [vmem:[#allocation33_spill] sm:$0xff] %v13524_v9  ;;  %v10417_v9 = vld [vmem:[%s15536_s0 + $0xb90] sm:$0xff] }
 0x46c   :  { %15917 = vst [vmem:[#allocation34_spill] sm:$0xff] %v13532_v60 }
 0x46d   :  { %15918 = vst [vmem:[#allocation35_spill] sm:$0xff] %v13534_v6  ;;  %9542 = vmatmul.msk.bf16.gmra.mxu0 %vm2834_vm2, %v10117_v7  ;;  %9642 = vmatmul.msk.bf16.gmra.mxu1 %vm2834_vm2, %v10217_v53  ;;  %v13549_v6 = vld [vmem:[%s15535_s2] ss:$0 sm:$0xff] }
 0x46e   :  { %9742 = vmatmul.msk.bf16.gmra.mxu2 %vm2834_vm2, %v10317_v51  ;;  %9842 = vmatmul.msk.bf16.gmra.mxu3 %vm2834_vm2, %v10417_v9  ;;  %v4302_v60 = vadd.f32 %v13549_v6, %v13126_v18  ;;  %v4802_v52 = vadd.f32 %v13549_v6, %v13128_v63  ;;  %v5302_v63 = vadd.f32 %v13549_v6, %v13154_v21 }
 0x470   :  { %v6151_v41 = vmax.f32 %v4302_v60, 0.0  ;;  %v6351_v56 = vmax.f32 %v4802_v52, 0.0 }
 0x471   :  { %v13555_v0 = vpop.f32.mrf.mxu2  ;;  %v13557_v7 = vpop.f32.mrf.mxu3 }
 0x472   :  { %15919 = vst [vmem:[#allocation36_spill] sm:$0xff] %v13555_v0  ;;  %v4363_v53 = vpop.f32.mrf.mxu0  ;;  %v4863_v40 = vpop.f32.mrf.mxu1  ;;  %v4304_v0 = vadd.f32 %v13549_v6, %v13162_v48  ;;  %v10318_v48 = vld [vmem:[%s15536_s0 + $0x878] sm:$0xff] }
 0x473   :  { %15920 = vst [vmem:[#allocation37_spill] sm:$0xff] %v13557_v7  ;;  %v4364_v51 = vadd.f32 %v13549_v6, %v4363_v53  ;;  %v4864_v9 = vadd.f32 %v13549_v6, %v4863_v40  ;;  %v5802_v7 = vadd.f32 %v13549_v6, %v13156_v1  ;;  %v4804_v40 = vadd.f32 %v13549_v6, %v13164_v19  ;;  %v10418_v19 = vld [vmem:[%s15536_s0 + $0xb98] sm:$0xff] }
 0x474   :  { %v6152_v47 = vmax.f32 %v4304_v0, 0.0  ;;  %v5304_v0 = vadd.f32 %v13549_v6, %v13170_v4 }
 0x475   :  { %v6176_v24 = vmax.f32 %v4364_v51, 0.0  ;;  %v6376_v42 = vmax.f32 %v4864_v9, 0.0  ;;  %v6551_v9 = vmax.f32 %v5302_v63, 0.0 }
 0x477   :  { %v13561_v59 = vmax.f32 %v6151_v41, %v6176_v24  ;;  %v13563_v18 = vmax.f32 %v6351_v56, %v6376_v42  ;;  %v10118_v24 = vld [vmem:[%s15536_s0 + $0x238] sm:$0xff] }
 0x478   :  { %v10218_v42 = vld [vmem:[%s15536_s0 + $0x558] sm:$0xff] }
 0x479   :  { %15921 = vst [vmem:[#allocation38_spill] sm:$0xff] %v13561_v59  ;;  %v5363_v60 = vpop.f32.mrf.mxu2  ;;  %v5863_v52 = vpop.f32.mrf.mxu3 }
 0x47a   :  { %15922 = vst [vmem:[#allocation39_spill] sm:$0xff] %v13563_v18  ;;  %v5364_v21 = vadd.f32 %v13549_v6, %v5363_v60  ;;  %v5864_v1 = vadd.f32 %v13549_v6, %v5863_v52  ;;  %v4366_v56 = vpop.f32.mrf.mxu0  ;;  %v4866_v41 = vpop.f32.mrf.mxu1  ;;  %v6751_v18 = vmax.f32 %v5802_v7, 0.0  ;;  %v6352_v52 = vmax.f32 %v4804_v40, 0.0 }
 0x47b   :  { %v4367_v53 = vadd.f32 %v13549_v6, %v4366_v56  ;;  %v4867_v51 = vadd.f32 %v13549_v6, %v4866_v41  ;;  %v5804_v40 = vadd.f32 %v13549_v6, %v13172_v10  ;;  %v6552_v56 = vmax.f32 %v5304_v0, 0.0 }
 0x47c   :  { %v6576_v59 = vmax.f32 %v5364_v21, 0.0  ;;  %v6776_v60 = vmax.f32 %v5864_v1, 0.0  ;;  %v5807_v0 = vadd.f32 %v13549_v6, %v13196_v55 }
 0x47d   :  { %v6177_v39 = vmax.f32 %v4367_v53, 0.0  ;;  %v6377_v5 = vmax.f32 %v4867_v51, 0.0  ;;  %9543 = vmatmul.msk.bf16.gmra.mxu0 %vm2834_vm2, %v10118_v24  ;;  %9643 = vmatmul.msk.bf16.gmra.mxu1 %vm2834_vm2, %v10218_v42  ;;  %v6752_v10 = vmax.f32 %v5804_v40, 0.0  ;;  %v4309_v40 = vadd.f32 %v13549_v6, %v13198_v35  ;;  %v10319_v35 = vld [vmem:[%s15536_s0 + $0x880] sm:$0xff] }
 0x47e   :  { %v13591_v20 = vmax.f32 %v6551_v9, %v6576_v59  ;;  %v13593_v62 = vmax.f32 %v6751_v18, %v6776_v60  ;;  %9743 = vmatmul.msk.bf16.gmra.mxu2 %vm2834_vm2, %v10318_v48  ;;  %9843 = vmatmul.msk.bf16.gmra.mxu3 %vm2834_vm2, %v10418_v19  ;;  %v4307_v59 = vadd.f32 %v13549_v6, %v13180_v8 }
 0x47f   :  { %v13597_v63 = vmax.f32 %v6152_v47, %v6177_v39  ;;  %v13599_v7 = vmax.f32 %v6352_v52, %v6377_v5  ;;  %v4807_v18 = vadd.f32 %v13549_v6, %v13182_v38 }
 0x480   :  { %v6153_v8 = vmax.f32 %v4307_v59, 0.0  ;;  %v4809_v59 = vadd.f32 %v13549_v6, %v13200_v33  ;;  %v10419_v33 = vld [vmem:[%s15536_s0 + $0xba0] sm:$0xff] }
 0x481   :  { %v5366_v24 = vpop.f32.mrf.mxu2  ;;  %v5866_v42 = vpop.f32.mrf.mxu3  ;;  %v6353_v19 = vmax.f32 %v4807_v18, 0.0 }
 0x482   :  { %v5367_v21 = vadd.f32 %v13549_v6, %v5366_v24  ;;  %v5867_v39 = vadd.f32 %v13549_v6, %v5866_v42  ;;  %v4368_v5 = vpop.f32.mrf.mxu0  ;;  %v4868_v47 = vpop.f32.mrf.mxu1  ;;  %v5307_v24 = vadd.f32 %v13549_v6, %v13194_v3 }
 0x483   :  { %v4369_v1 = vadd.f32 %v13549_v6, %v4368_v5  ;;  %v4869_v4 = vadd.f32 %v13549_v6, %v4868_v47 }
 0x484   :  { %v6577_v41 = vmax.f32 %v5367_v21, 0.0  ;;  %v6777_v48 = vmax.f32 %v5867_v39, 0.0  ;;  %v10119_v21 = vld [vmem:[%s15536_s0 + $0x240] sm:$0xff] }
 0x485   :  { %v6178_v53 = vmax.f32 %v4369_v1, 0.0  ;;  %v6378_v38 = vmax.f32 %v4869_v4, 0.0  ;;  %v10219_v39 = vld [vmem:[%s15536_s0 + $0x560] sm:$0xff] }
 0x486   :  { %v13613_v51 = vmax.f32 %v6552_v56, %v6577_v41  ;;  %v13615_v9 = vmax.f32 %v6752_v10, %v6777_v48  ;;  %v6553_v56 = vmax.f32 %v5307_v24, 0.0  ;;  %v6753_v10 = vmax.f32 %v5807_v0, 0.0 }
 0x487   :  { %v13617_v60 = vmax.f32 %v6153_v8, %v6178_v53  ;;  %v13619_v52 = vmax.f32 %v6353_v19, %v6378_v38  ;;  %v6154_v8 = vmax.f32 %v4309_v40, 0.0  ;;  %v6354_v19 = vmax.f32 %v4809_v59, 0.0 }
 0x488   :  { %v5309_v40 = vadd.f32 %v13549_v6, %v13202_v13  ;;  %v5809_v59 = vadd.f32 %v13549_v6, %v13204_v57 }
 0x489   :  { %v5368_v18 = vpop.f32.mrf.mxu2  ;;  %v5868_v42 = vpop.f32.mrf.mxu3 }
 0x48a   :  { %v5369_v3 = vadd.f32 %v13549_v6, %v5368_v18  ;;  %v5869_v55 = vadd.f32 %v13549_v6, %v5868_v42  ;;  %v4371_v5 = vpop.f32.mrf.mxu0  ;;  %v4871_v47 = vpop.f32.mrf.mxu1  ;;  %v6754_v57 = vmax.f32 %v5809_v59, 0.0  ;;  %v4314_v59 = vadd.f32 %v13549_v6, %v13230_v31  ;;  %v10320_v31 = vld [vmem:[%s15536_s0 + $0x888] sm:$0xff] }
 0x48b   :  { %v4372_v1 = vadd.f32 %v13549_v6, %v4371_v5  ;;  %v4872_v4 = vadd.f32 %v13549_v6, %v4871_v47 }
 0x48c   :  { %v6578_v41 = vmax.f32 %v5369_v3, 0.0  ;;  %v6778_v48 = vmax.f32 %v5869_v55, 0.0 }
 0x48d   :  { %v6179_v53 = vmax.f32 %v4372_v1, 0.0  ;;  %v6379_v38 = vmax.f32 %v4872_v4, 0.0  ;;  %9544 = vmatmul.msk.bf16.gmra.mxu0 %vm2834_vm2, %v10119_v21  ;;  %9644 = vmatmul.msk.bf16.gmra.mxu1 %vm2834_vm2, %v10219_v39  ;;  %v4312_v21 = vadd.f32 %v13549_v6, %v13212_v27  ;;  %v4812_v39 = vadd.f32 %v13549_v6, %v13214_v14 }
 0x48e   :  { %v13647_v18 = vmax.f32 %v6553_v56, %v6578_v41  ;;  %v13649_v42 = vmax.f32 %v6753_v10, %v6778_v48  ;;  %9744 = vmatmul.msk.bf16.gmra.mxu2 %vm2834_vm2, %v10319_v35  ;;  %9844 = vmatmul.msk.bf16.gmra.mxu3 %vm2834_vm2, %v10419_v33  ;;  %v6554_v4 = vmax.f32 %v5309_v40, 0.0  ;;  %v5812_v40 = vadd.f32 %v13549_v6, %v13228_v45 }
 0x48f   :  { %v13653_v24 = vmax.f32 %v6154_v8, %v6179_v53  ;;  %v13655_v0 = vmax.f32 %v6354_v19, %v6379_v38  ;;  %v6155_v27 = vmax.f32 %v4312_v21, 0.0  ;;  %v6355_v41 = vmax.f32 %v4812_v39, 0.0 }
 0x490   :  { %v4814_v21 = vadd.f32 %v13549_v6, %v13232_v44  ;;  %v10420_v44 = vld [vmem:[%s15536_s0 + $0xba8] sm:$0xff] }
 0x491   :  { %v5371_v3 = vpop.f32.mrf.mxu2  ;;  %v5871_v55 = vpop.f32.mrf.mxu3 }
 0x492   :  { %v5372_v5 = vadd.f32 %v13549_v6, %v5371_v3  ;;  %v5872_v47 = vadd.f32 %v13549_v6, %v5871_v55  ;;  %v4373_v35 = vpop.f32.mrf.mxu0  ;;  %v4873_v33 = vpop.f32.mrf.mxu1  ;;  %v5312_v3 = vadd.f32 %v13549_v6, %v13226_v34 }
 0x493   :  { %v4374_v1 = vadd.f32 %v13549_v6, %v4373_v35  ;;  %v4874_v13 = vadd.f32 %v13549_v6, %v4873_v33 }
 0x494   :  { %v6579_v56 = vmax.f32 %v5372_v5, 0.0  ;;  %v6779_v10 = vmax.f32 %v5872_v47, 0.0  ;;  %v10120_v5 = vld [vmem:[%s15536_s0 + $0x248] sm:$0xff] }
 0x495   :  { %v6180_v48 = vmax.f32 %v4374_v1, 0.0  ;;  %v6380_v14 = vmax.f32 %v4874_v13, 0.0  ;;  %v10220_v47 = vld [vmem:[%s15536_s0 + $0x568] sm:$0xff] }
 0x496   :  { %v13669_v8 = vmax.f32 %v6554_v4, %v6579_v56  ;;  %v13671_v19 = vmax.f32 %v6754_v57, %v6779_v10  ;;  %v6555_v4 = vmax.f32 %v5312_v3, 0.0  ;;  %v6755_v57 = vmax.f32 %v5812_v40, 0.0 }
 0x497   :  { %v13673_v53 = vmax.f32 %v6155_v27, %v6180_v48  ;;  %v13675_v38 = vmax.f32 %v6355_v41, %v6380_v14  ;;  %v6156_v27 = vmax.f32 %v4314_v59, 0.0  ;;  %v6356_v41 = vmax.f32 %v4814_v21, 0.0 }
 0x498   :  { %v5314_v59 = vadd.f32 %v13549_v6, %v13234_v49  ;;  %v5814_v21 = vadd.f32 %v13549_v6, %v13236_v46 }
 0x499   :  { %v5373_v39 = vpop.f32.mrf.mxu2  ;;  %v5873_v55 = vpop.f32.mrf.mxu3 }
 0x49a   :  { %v5374_v34 = vadd.f32 %v13549_v6, %v5373_v39  ;;  %v5874_v45 = vadd.f32 %v13549_v6, %v5873_v55  ;;  %v4376_v35 = vpop.f32.mrf.mxu0  ;;  %v4876_v33 = vpop.f32.mrf.mxu1  ;;  %v6756_v46 = vmax.f32 %v5814_v21, 0.0  ;;  %v4319_v21 = vadd.f32 %v13549_v6, %v13262_v12  ;;  %v10321_v12 = vld [vmem:[%s15536_s0 + $0x890] sm:$0xff] }
 0x49b   :  { %v4377_v1 = vadd.f32 %v13549_v6, %v4376_v35  ;;  %v4877_v13 = vadd.f32 %v13549_v6, %v4876_v33 }
 0x49c   :  { %v6580_v56 = vmax.f32 %v5374_v34, 0.0  ;;  %v6780_v10 = vmax.f32 %v5874_v45, 0.0 }
 0x49d   :  { %v6181_v48 = vmax.f32 %v4377_v1, 0.0  ;;  %v6381_v14 = vmax.f32 %v4877_v13, 0.0  ;;  %9545 = vmatmul.msk.bf16.gmra.mxu0 %vm2834_vm2, %v10120_v5  ;;  %9645 = vmatmul.msk.bf16.gmra.mxu1 %vm2834_vm2, %v10220_v47  ;;  %v4317_v5 = vadd.f32 %v13549_v6, %v13244_v50  ;;  %v4817_v47 = vadd.f32 %v13549_v6, %v13246_v23 }
 0x49e   :  { %v13703_v39 = vmax.f32 %v6555_v4, %v6580_v56  ;;  %v13705_v55 = vmax.f32 %v6755_v57, %v6780_v10  ;;  %9745 = vmatmul.msk.bf16.gmra.mxu2 %vm2834_vm2, %v10320_v31  ;;  %9845 = vmatmul.msk.bf16.gmra.mxu3 %vm2834_vm2, %v10420_v44  ;;  %v6556_v13 = vmax.f32 %v5314_v59, 0.0  ;;  %v5817_v59 = vadd.f32 %v13549_v6, %v13260_v2 }
 0x49f   :  { %v13709_v3 = vmax.f32 %v6156_v27, %v6181_v48  ;;  %v13711_v40 = vmax.f32 %v6356_v41, %v6381_v14  ;;  %v6157_v50 = vmax.f32 %v4317_v5, 0.0  ;;  %v6357_v56 = vmax.f32 %v4817_v47, 0.0 }
 0x4a0   :  { %v4819_v5 = vadd.f32 %v13549_v6, %v13264_v43  ;;  %v10421_v43 = vld [vmem:[%s15536_s0 + $0xbb0] sm:$0xff] }
 0x4a1   :  { %v5376_v34 = vpop.f32.mrf.mxu2  ;;  %v5876_v45 = vpop.f32.mrf.mxu3 }
 0x4a2   :  { %v5377_v35 = vadd.f32 %v13549_v6, %v5376_v34  ;;  %v5877_v33 = vadd.f32 %v13549_v6, %v5876_v45  ;;  %v4378_v31 = vpop.f32.mrf.mxu0  ;;  %v4878_v44 = vpop.f32.mrf.mxu1  ;;  %v5317_v34 = vadd.f32 %v13549_v6, %v13258_v58 }
 0x4a3   :  { %v4379_v1 = vadd.f32 %v13549_v6, %v4378_v31  ;;  %v4879_v49 = vadd.f32 %v13549_v6, %v4878_v44 }
 0x4a4   :  { %v6581_v4 = vmax.f32 %v5377_v35, 0.0  ;;  %v6781_v57 = vmax.f32 %v5877_v33, 0.0  ;;  %v10121_v35 = vld [vmem:[%s15536_s0 + $0x250] sm:$0xff] }
 0x4a5   :  { %v6182_v10 = vmax.f32 %v4379_v1, 0.0  ;;  %v6382_v23 = vmax.f32 %v4879_v49, 0.0  ;;  %v10221_v33 = vld [vmem:[%s15536_s0 + $0x570] sm:$0xff] }
 0x4a6   :  { %v13725_v27 = vmax.f32 %v6556_v13, %v6581_v4  ;;  %v13727_v41 = vmax.f32 %v6756_v46, %v6781_v57  ;;  %v6557_v13 = vmax.f32 %v5317_v34, 0.0  ;;  %v6757_v46 = vmax.f32 %v5817_v59, 0.0 }
 0x4a7   :  { %v13729_v48 = vmax.f32 %v6157_v50, %v6182_v10  ;;  %v13731_v14 = vmax.f32 %v6357_v56, %v6382_v23  ;;  %v6158_v50 = vmax.f32 %v4319_v21, 0.0  ;;  %v6358_v56 = vmax.f32 %v4819_v5, 0.0 }
 0x4a8   :  { %v5319_v21 = vadd.f32 %v13549_v6, %v13266_v28  ;;  %v5819_v5 = vadd.f32 %v13549_v6, %v13268_v26 }
 0x4a9   :  { %v5378_v47 = vpop.f32.mrf.mxu2  ;;  %v5878_v45 = vpop.f32.mrf.mxu3 }
 0x4aa   :  { %v5379_v58 = vadd.f32 %v13549_v6, %v5378_v47  ;;  %v5879_v2 = vadd.f32 %v13549_v6, %v5878_v45  ;;  %v4381_v31 = vpop.f32.mrf.mxu0  ;;  %v4881_v44 = vpop.f32.mrf.mxu1  ;;  %v6758_v26 = vmax.f32 %v5819_v5, 0.0  ;;  %v4324_v5 = vadd.f32 %v13549_v6, %v13294_v30  ;;  %v10322_v30 = vld [vmem:[%s15536_s0 + $0x898] sm:$0xff] }
 0x4ab   :  { %v4382_v1 = vadd.f32 %v13549_v6, %v4381_v31  ;;  %v4882_v49 = vadd.f32 %v13549_v6, %v4881_v44 }
 0x4ac   :  { %v6582_v4 = vmax.f32 %v5379_v58, 0.0  ;;  %v6782_v57 = vmax.f32 %v5879_v2, 0.0 }
 0x4ad   :  { %v6183_v10 = vmax.f32 %v4382_v1, 0.0  ;;  %v6383_v23 = vmax.f32 %v4882_v49, 0.0  ;;  %9546 = vmatmul.msk.bf16.gmra.mxu0 %vm2834_vm2, %v10121_v35  ;;  %9646 = vmatmul.msk.bf16.gmra.mxu1 %vm2834_vm2, %v10221_v33  ;;  %v4322_v35 = vadd.f32 %v13549_v6, %v13276_v17  ;;  %v4822_v33 = vadd.f32 %v13549_v6, %v13278_v54 }
 0x4ae   :  { %v13759_v47 = vmax.f32 %v6557_v13, %v6582_v4  ;;  %v13761_v45 = vmax.f32 %v6757_v46, %v6782_v57  ;;  %9746 = vmatmul.msk.bf16.gmra.mxu2 %vm2834_vm2, %v10321_v12  ;;  %9846 = vmatmul.msk.bf16.gmra.mxu3 %vm2834_vm2, %v10421_v43  ;;  %v6558_v49 = vmax.f32 %v5319_v21, 0.0  ;;  %v5822_v21 = vadd.f32 %v13549_v6, %v13292_v29 }
 0x4af   :  { %v13765_v34 = vmax.f32 %v6158_v50, %v6183_v10  ;;  %v13767_v59 = vmax.f32 %v6358_v56, %v6383_v23  ;;  %v6159_v17 = vmax.f32 %v4322_v35, 0.0  ;;  %v6359_v4 = vmax.f32 %v4822_v33, 0.0 }
 0x4b0   :  { %v4824_v35 = vadd.f32 %v13549_v6, %v13296_v25  ;;  %v10422_v25 = vld [vmem:[%s15536_s0 + $0xbb8] sm:$0xff] }
 0x4b1   :  { %v5381_v58 = vpop.f32.mrf.mxu2  ;;  %v5881_v2 = vpop.f32.mrf.mxu3 }
 0x4b2   :  { %v5382_v31 = vadd.f32 %v13549_v6, %v5381_v58  ;;  %v5882_v44 = vadd.f32 %v13549_v6, %v5881_v2  ;;  %v4383_v12 = vpop.f32.mrf.mxu0  ;;  %v4883_v43 = vpop.f32.mrf.mxu1  ;;  %v5322_v58 = vadd.f32 %v13549_v6, %v13290_v16 }
 0x4b3   :  { %v4384_v1 = vadd.f32 %v13549_v6, %v4383_v12  ;;  %v4884_v28 = vadd.f32 %v13549_v6, %v4883_v43 }
 0x4b4   :  { %v6583_v13 = vmax.f32 %v5382_v31, 0.0  ;;  %v6783_v46 = vmax.f32 %v5882_v44, 0.0  ;;  %v10122_v31 = vld [vmem:[%s15536_s0 + $0x258] sm:$0xff] }
 0x4b5   :  { %v6184_v57 = vmax.f32 %v4384_v1, 0.0  ;;  %v6384_v54 = vmax.f32 %v4884_v28, 0.0  ;;  %v10222_v44 = vld [vmem:[%s15536_s0 + $0x578] sm:$0xff] }
 0x4b6   :  { %v13781_v50 = vmax.f32 %v6558_v49, %v6583_v13  ;;  %v13783_v56 = vmax.f32 %v6758_v26, %v6783_v46  ;;  %v6559_v49 = vmax.f32 %v5322_v58, 0.0  ;;  %v6759_v26 = vmax.f32 %v5822_v21, 0.0 }
 0x4b7   :  { %v13785_v10 = vmax.f32 %v6159_v17, %v6184_v57  ;;  %v13787_v23 = vmax.f32 %v6359_v4, %v6384_v54  ;;  %v6160_v17 = vmax.f32 %v4324_v5, 0.0  ;;  %v6360_v4 = vmax.f32 %v4824_v35, 0.0 }
 0x4b8   :  { %v5324_v5 = vadd.f32 %v13549_v6, %v13298_v61  ;;  %v5824_v35 = vadd.f32 %v13549_v6, %v13300_v36 }
 0x4b9   :  { %v5383_v33 = vpop.f32.mrf.mxu2  ;;  %v5883_v2 = vpop.f32.mrf.mxu3 }
 0x4ba   :  { %v5384_v16 = vadd.f32 %v13549_v6, %v5383_v33  ;;  %v5884_v29 = vadd.f32 %v13549_v6, %v5883_v2  ;;  %v4386_v12 = vpop.f32.mrf.mxu0  ;;  %v4886_v43 = vpop.f32.mrf.mxu1  ;;  %v6760_v36 = vmax.f32 %v5824_v35, 0.0  ;;  %v4329_v35 = vadd.f32 %v13549_v6, %v13326_v22  ;;  %v10323_v22 = vld [vmem:[%s15536_s0 + $0x8a0] sm:$0xff] }
 0x4bb   :  { %v4387_v1 = vadd.f32 %v13549_v6, %v4386_v12  ;;  %v4887_v28 = vadd.f32 %v13549_v6, %v4886_v43 }
 0x4bc   :  { %v6584_v13 = vmax.f32 %v5384_v16, 0.0  ;;  %v6784_v46 = vmax.f32 %v5884_v29, 0.0 }
 0x4bd   :  { %v6185_v57 = vmax.f32 %v4387_v1, 0.0  ;;  %v6385_v54 = vmax.f32 %v4887_v28, 0.0  ;;  %9547 = vmatmul.msk.bf16.gmra.mxu0 %vm2834_vm2, %v10122_v31  ;;  %9647 = vmatmul.msk.bf16.gmra.mxu1 %vm2834_vm2, %v10222_v44  ;;  %v4327_v31 = vadd.f32 %v13549_v6, %v13308_v32  ;;  %v4827_v44 = vadd.f32 %v13549_v6, %v13310_v37 }
 0x4be   :  { %v13815_v33 = vmax.f32 %v6559_v49, %v6584_v13  ;;  %v13817_v2 = vmax.f32 %v6759_v26, %v6784_v46  ;;  %9747 = vmatmul.msk.bf16.gmra.mxu2 %vm2834_vm2, %v10322_v30  ;;  %9847 = vmatmul.msk.bf16.gmra.mxu3 %vm2834_vm2, %v10422_v25  ;;  %v6560_v28 = vmax.f32 %v5324_v5, 0.0  ;;  %v5827_v5 = vadd.f32 %v13549_v6, %v13324_v11 }
 0x4bf   :  { %v13821_v58 = vmax.f32 %v6160_v17, %v6185_v57  ;;  %v13823_v21 = vmax.f32 %v6360_v4, %v6385_v54  ;;  %v6161_v32 = vmax.f32 %v4327_v31, 0.0  ;;  %v6361_v13 = vmax.f32 %v4827_v44, 0.0  ;;  %v15924_v31 = vld [vmem:[#allocation44_spill] sm:$0xff] }
 0x4c0   :  { %v4829_v44 = vadd.f32 %v13549_v6, %v15924_v31 }
 0x4c1   :  { %v5386_v16 = vpop.f32.mrf.mxu2  ;;  %v5886_v29 = vpop.f32.mrf.mxu3 }
 0x4c2   :  { %v5387_v12 = vadd.f32 %v13549_v6, %v5386_v16  ;;  %v5887_v43 = vadd.f32 %v13549_v6, %v5886_v29  ;;  %v4388_v30 = vpop.f32.mrf.mxu0  ;;  %v4888_v25 = vpop.f32.mrf.mxu1  ;;  %v5327_v16 = vadd.f32 %v13549_v6, %v13322_v15 }
 0x4c3   :  { %v4389_v1 = vadd.f32 %v13549_v6, %v4388_v30  ;;  %v4889_v61 = vadd.f32 %v13549_v6, %v4888_v25  ;;  %v10223_v30 = vld [vmem:[%s15536_s0 + $0x580] sm:$0xff] }
 0x4c4   :  { %v6585_v49 = vmax.f32 %v5387_v12, 0.0  ;;  %v6785_v26 = vmax.f32 %v5887_v43, 0.0  ;;  %v10123_v43 = vld [vmem:[%s15536_s0 + $0x260] sm:$0xff] }
 0x4c5   :  { %v6186_v46 = vmax.f32 %v4389_v1, 0.0  ;;  %v6386_v37 = vmax.f32 %v4889_v61, 0.0  ;;  %v10423_v61 = vld [vmem:[%s15536_s0 + $0xbc0] sm:$0xff] }
 0x4c6   :  { %v13837_v17 = vmax.f32 %v6560_v28, %v6585_v49  ;;  %v13839_v4 = vmax.f32 %v6760_v36, %v6785_v26  ;;  %v6561_v49 = vmax.f32 %v5327_v16, 0.0  ;;  %v6761_v26 = vmax.f32 %v5827_v5, 0.0 }
 0x4c7   :  { %v13841_v57 = vmax.f32 %v6161_v32, %v6186_v46  ;;  %v13843_v54 = vmax.f32 %v6361_v13, %v6386_v37  ;;  %v6162_v46 = vmax.f32 %v4329_v35, 0.0  ;;  %v6362_v37 = vmax.f32 %v4829_v44, 0.0  ;;  %v15929_v35 = vld [vmem:[#allocation45_spill] sm:$0xff] }
 0x4c8   :  { %v5329_v44 = vadd.f32 %v13549_v6, %v15929_v35 }
 0x4c9   :  { %15923 = vst [vmem:[#allocation40_spill] sm:$0xff] %v13843_v54  ;;  %v5388_v29 = vpop.f32.mrf.mxu2  ;;  %v5888_v12 = vpop.f32.mrf.mxu3 }
 0x4ca   :  { %v5389_v15 = vadd.f32 %v13549_v6, %v5388_v29  ;;  %v5889_v11 = vadd.f32 %v13549_v6, %v5888_v12  ;;  %v4391_v25 = vpop.f32.mrf.mxu0  ;;  %v4891_v1 = vpop.f32.mrf.mxu1 }
 0x4cb   :  { %v4392_v28 = vadd.f32 %v13549_v6, %v4391_v25  ;;  %v4892_v36 = vadd.f32 %v13549_v6, %v4891_v1  ;;  %v15932_v25 = vld [vmem:[#allocation48_spill] sm:$0xff] }
 0x4cc   :  { %v6586_v32 = vmax.f32 %v5389_v15, 0.0  ;;  %v6786_v13 = vmax.f32 %v5889_v11, 0.0  ;;  %v15930_v15 = vld [vmem:[#allocation46_spill] sm:$0xff]  ;;  %v15931_v11 = vld [vmem:[#allocation47_spill] sm:$0xff]  ;;  %v4832_v1 = vadd.f32 %v13549_v6, %v15932_v25 }
 0x4cd   :  { %v6187_v31 = vmax.f32 %v4392_v28, 0.0  ;;  %v6387_v29 = vmax.f32 %v4892_v36, 0.0  ;;  %9548 = vmatmul.msk.bf16.gmra.mxu0 %vm2834_vm2, %v10123_v43  ;;  %9648 = vmatmul.msk.bf16.gmra.mxu1 %vm2834_vm2, %v10223_v30  ;;  %v5829_v43 = vadd.f32 %v13549_v6, %v15930_v15  ;;  %v4332_v30 = vadd.f32 %v13549_v6, %v15931_v11 }
 0x4ce   :  { %v13871_v12 = vmax.f32 %v6561_v49, %v6586_v32  ;;  %v13873_v54 = vmax.f32 %v6761_v26, %v6786_v13  ;;  %9748 = vmatmul.msk.bf16.gmra.mxu2 %vm2834_vm2, %v10323_v22  ;;  %9848 = vmatmul.msk.bf16.gmra.mxu3 %vm2834_vm2, %v10423_v61  ;;  %v6363_v15 = vmax.f32 %v4832_v1, 0.0  ;;  %v15940_v1 = vld [vmem:[#allocation52_spill] sm:$0xff] }
 0x4cf   :  { %v13877_v16 = vmax.f32 %v6162_v46, %v6187_v31  ;;  %v13879_v5 = vmax.f32 %v6362_v37, %v6387_v29  ;;  %v6562_v46 = vmax.f32 %v5329_v44, 0.0  ;;  %v6762_v37 = vmax.f32 %v5829_v43, 0.0  ;;  %v15939_v43 = vld [vmem:[#allocation51_spill] sm:$0xff] }
 0x4d0   :  { %15925 = vst [vmem:[#allocation41_spill] sm:$0xff] %v13871_v12  ;;  %v6163_v35 = vmax.f32 %v4332_v30, 0.0  ;;  %v4334_v30 = vadd.f32 %v13549_v6, %v15939_v43 }
 0x4d1   :  { %15926 = vst [vmem:[#allocation42_spill] sm:$0xff] %v13873_v54  ;;  %v5391_v28 = vpop.f32.mrf.mxu2  ;;  %v5891_v22 = vpop.f32.mrf.mxu3  ;;  %v15937_v54 = vld [vmem:[#allocation49_spill] sm:$0xff] }
 0x4d2   :  { %15927 = vst [vmem:[#allocation43_spill] sm:$0xff] %v13877_v16  ;;  %v5392_v61 = vadd.f32 %v13549_v6, %v5391_v28  ;;  %v5892_v36 = vadd.f32 %v13549_v6, %v5891_v22  ;;  %v4393_v49 = vpop.f32.mrf.mxu0  ;;  %v4893_v26 = vpop.f32.mrf.mxu1 }
 0x4d3   :  { %15928 = vst [vmem:[#allocation44_spill] sm:$0xff] %v13879_v5  ;;  %v4394_v32 = vadd.f32 %v13549_v6, %v4393_v49  ;;  %v4894_v13 = vadd.f32 %v13549_v6, %v4893_v26  ;;  %v5332_v49 = vadd.f32 %v13549_v6, %v15937_v54  ;;  %v15938_v26 = vld [vmem:[#allocation50_spill] sm:$0xff] }
 0x4d4   :  { %v6587_v31 = vmax.f32 %v5392_v61, 0.0  ;;  %v6787_v29 = vmax.f32 %v5892_v36, 0.0  ;;  %v5832_v44 = vadd.f32 %v13549_v6, %v15938_v26  ;;  %v4834_v61 = vadd.f32 %v13549_v6, %v15940_v1 }
 0x4d5   :  { %v6188_v11 = vmax.f32 %v4394_v32, 0.0  ;;  %v6388_v25 = vmax.f32 %v4894_v13, 0.0  ;;  %v10124_v13 = vld [vmem:[%s15536_s0 + $0x268] sm:$0xff]  ;;  %v6563_v26 = vmax.f32 %v5332_v49, 0.0 }
 0x4d6   :  { %v13893_v5 = vmax.f32 %v6562_v46, %v6587_v31  ;;  %v13895_v16 = vmax.f32 %v6762_v37, %v6787_v29  ;;  %v10224_v46 = vld [vmem:[%s15536_s0 + $0x588] sm:$0xff]  ;;  %v6763_v43 = vmax.f32 %v5832_v44, 0.0 }
 0x4d7   :  { %v13897_v28 = vmax.f32 %v6163_v35, %v6188_v11  ;;  %v13899_v22 = vmax.f32 %v6363_v15, %v6388_v25  ;;  %v10324_v35 = vld [vmem:[%s15536_s0 + $0x8a8] sm:$0xff] }
 0x4d8   :  { %15933 = vst [vmem:[#allocation45_spill] sm:$0xff] %v13893_v5  ;;  %v10424_v15 = vld [vmem:[%s15536_s0 + $0xbc8] sm:$0xff] }
 0x4d9   :  { %15934 = vst [vmem:[#allocation46_spill] sm:$0xff] %v13895_v16  ;;  %v5393_v36 = vpop.f32.mrf.mxu2  ;;  %v5893_v32 = vpop.f32.mrf.mxu3 }
 0x4da   :  { %15935 = vst [vmem:[#allocation47_spill] sm:$0xff] %v13897_v28  ;;  %v5394_v54 = vadd.f32 %v13549_v6, %v5393_v36  ;;  %v5894_v37 = vadd.f32 %v13549_v6, %v5893_v32  ;;  %v4396_v31 = vpop.f32.mrf.mxu0  ;;  %v4896_v29 = vpop.f32.mrf.mxu1  ;;  %v6364_v32 = vmax.f32 %v4834_v61, 0.0 }
 0x4db   :  { %15936 = vst [vmem:[#allocation48_spill] sm:$0xff] %v13899_v22  ;;  %v4397_v11 = vadd.f32 %v13549_v6, %v4396_v31  ;;  %v4897_v25 = vadd.f32 %v13549_v6, %v4896_v29  ;;  %v6164_v22 = vmax.f32 %v4334_v30, 0.0  ;;  %v15945_v30 = vld [vmem:[#allocation53_spill] sm:$0xff]  ;;  %v15948_v31 = vld [vmem:[#allocation56_spill] sm:$0xff] }
 0x4dc   :  { %v6588_v1 = vmax.f32 %v5394_v54, 0.0  ;;  %v6788_v36 = vmax.f32 %v5894_v37, 0.0  ;;  %v5334_v61 = vadd.f32 %v13549_v6, %v15945_v30  ;;  %v15946_v54 = vld [vmem:[#allocation54_spill] sm:$0xff]  ;;  %v15947_v37 = vld [vmem:[#allocation55_spill] sm:$0xff]  ;;  %v4837_v29 = vadd.f32 %v13549_v6, %v15948_v31 }
 0x4dd   :  { %v6189_v28 = vmax.f32 %v4397_v11, 0.0  ;;  %v6389_v16 = vmax.f32 %v4897_v25, 0.0  ;;  %9549 = vmatmul.msk.bf16.gmra.mxu0 %vm2834_vm2, %v10124_v13  ;;  %9649 = vmatmul.msk.bf16.gmra.mxu1 %vm2834_vm2, %v10224_v46  ;;  %v5834_v13 = vadd.f32 %v13549_v6, %v15946_v54  ;;  %v4337_v46 = vadd.f32 %v13549_v6, %v15947_v37 }
 0x4de   :  { %v13927_v5 = vmax.f32 %v6563_v26, %v6588_v1  ;;  %v13929_v12 = vmax.f32 %v6763_v43, %v6788_v36  ;;  %9749 = vmatmul.msk.bf16.gmra.mxu2 %vm2834_vm2, %v10324_v35  ;;  %9849 = vmatmul.msk.bf16.gmra.mxu3 %vm2834_vm2, %v10424_v15  ;;  %v6564_v43 = vmax.f32 %v5334_v61, 0.0  ;;  %v6365_v54 = vmax.f32 %v4837_v29, 0.0  ;;  %v15956_v29 = vld [vmem:[#allocation2_spill] sm:$0xff] }
 0x4df   :  { %v13933_v49 = vmax.f32 %v6164_v22, %v6189_v28  ;;  %v13935_v44 = vmax.f32 %v6364_v32, %v6389_v16  ;;  %v6764_v1 = vmax.f32 %v5834_v13, 0.0  ;;  %v6165_v30 = vmax.f32 %v4337_v46, 0.0  ;;  %v15955_v13 = vld [vmem:[#allocation59_spill] sm:$0xff] }
 0x4e0   :  { %15941 = vst [vmem:[#allocation49_spill] sm:$0xff] %v13927_v5  ;;  %v4339_v46 = vadd.f32 %v13549_v6, %v15955_v13 }
 0x4e1   :  { %15942 = vst [vmem:[#allocation50_spill] sm:$0xff] %v13929_v12  ;;  %v5396_v11 = vpop.f32.mrf.mxu2  ;;  %v5896_v35 = vpop.f32.mrf.mxu3  ;;  %v15953_v12 = vld [vmem:[#allocation57_spill] sm:$0xff] }
 0x4e2   :  { %15943 = vst [vmem:[#allocation51_spill] sm:$0xff] %v13933_v49  ;;  %v5397_v15 = vadd.f32 %v13549_v6, %v5396_v11  ;;  %v5897_v28 = vadd.f32 %v13549_v6, %v5896_v35  ;;  %v4398_v16 = vpop.f32.mrf.mxu0  ;;  %v4898_v22 = vpop.f32.mrf.mxu1 }
 0x4e3   :  { %15944 = vst [vmem:[#allocation52_spill] sm:$0xff] %v13935_v44  ;;  %v4399_v25 = vadd.f32 %v13549_v6, %v4398_v16  ;;  %v4899_v26 = vadd.f32 %v13549_v6, %v4898_v22  ;;  %v5337_v16 = vadd.f32 %v13549_v6, %v15953_v12  ;;  %v15954_v22 = vld [vmem:[#allocation58_spill] sm:$0xff] }
 0x4e4   :  { %v6589_v36 = vmax.f32 %v5397_v15, 0.0  ;;  %v6789_v32 = vmax.f32 %v5897_v28, 0.0  ;;  %v5837_v61 = vadd.f32 %v13549_v6, %v15954_v22  ;;  %v4839_v15 = vadd.f32 %v13549_v6, %v15956_v29 }
 0x4e5   :  { %v6190_v37 = vmax.f32 %v4399_v25, 0.0  ;;  %v6390_v31 = vmax.f32 %v4899_v26, 0.0  ;;  %v10125_v26 = vld [vmem:[%s15536_s0 + $0x270] sm:$0xff]  ;;  %v6565_v22 = vmax.f32 %v5337_v16, 0.0 }
 0x4e6   :  { %v13949_v44 = vmax.f32 %v6564_v43, %v6589_v36  ;;  %v13951_v49 = vmax.f32 %v6764_v1, %v6789_v32  ;;  %v10225_v43 = vld [vmem:[%s15536_s0 + $0x590] sm:$0xff]  ;;  %v6765_v13 = vmax.f32 %v5837_v61, 0.0 }
 0x4e7   :  { %v13953_v11 = vmax.f32 %v6165_v30, %v6190_v37  ;;  %v13955_v35 = vmax.f32 %v6365_v54, %v6390_v31  ;;  %v10325_v30 = vld [vmem:[%s15536_s0 + $0x8b0] sm:$0xff] }
 0x4e8   :  { %15949 = vst [vmem:[#allocation53_spill] sm:$0xff] %v13949_v44  ;;  %v10425_v54 = vld [vmem:[%s15536_s0 + $0xbd0] sm:$0xff] }
 0x4e9   :  { %15950 = vst [vmem:[#allocation54_spill] sm:$0xff] %v13951_v49  ;;  %v5398_v28 = vpop.f32.mrf.mxu2  ;;  %v5898_v25 = vpop.f32.mrf.mxu3 }
 0x4ea   :  { %15951 = vst [vmem:[#allocation55_spill] sm:$0xff] %v13953_v11  ;;  %v5399_v12 = vadd.f32 %v13549_v6, %v5398_v28  ;;  %v5899_v1 = vadd.f32 %v13549_v6, %v5898_v25  ;;  %v4401_v36 = vpop.f32.mrf.mxu0  ;;  %v4901_v32 = vpop.f32.mrf.mxu1  ;;  %v6366_v25 = vmax.f32 %v4839_v15, 0.0 }
 0x4eb   :  { %15952 = vst [vmem:[#allocation56_spill] sm:$0xff] %v13955_v35  ;;  %v4402_v37 = vadd.f32 %v13549_v6, %v4401_v36  ;;  %v4902_v31 = vadd.f32 %v13549_v6, %v4901_v32  ;;  %v6166_v35 = vmax.f32 %v4339_v46, 0.0  ;;  %v15961_v46 = vld [vmem:[#allocation60_spill] sm:$0xff]  ;;  %v15964_v36 = vld [vmem:[#allocation3_spill] sm:$0xff] }
 0x4ec   :  { %v6590_v29 = vmax.f32 %v5399_v12, 0.0  ;;  %v6790_v28 = vmax.f32 %v5899_v1, 0.0  ;;  %v5339_v15 = vadd.f32 %v13549_v6, %v15961_v46  ;;  %v15962_v12 = vld [vmem:[#allocation61_spill] sm:$0xff]  ;;  %v15963_v1 = vld [vmem:[#allocation62_spill] sm:$0xff]  ;;  %v4842_v32 = vadd.f32 %v13549_v6, %v15964_v36 }
 0x4ed   :  { %v6191_v11 = vmax.f32 %v4402_v37, 0.0  ;;  %v6391_v49 = vmax.f32 %v4902_v31, 0.0  ;;  %9550 = vmatmul.msk.bf16.gmra.mxu0 %vm2834_vm2, %v10125_v26  ;;  %9650 = vmatmul.msk.bf16.gmra.mxu1 %vm2834_vm2, %v10225_v43  ;;  %v5839_v26 = vadd.f32 %v13549_v6, %v15962_v12  ;;  %v4342_v43 = vadd.f32 %v13549_v6, %v15963_v1 }
 0x4ee   :  { %v13983_v44 = vmax.f32 %v6565_v22, %v6590_v29  ;;  %v13985_v5 = vmax.f32 %v6765_v13, %v6790_v28  ;;  %9750 = vmatmul.msk.bf16.gmra.mxu2 %vm2834_vm2, %v10325_v30  ;;  %9850 = vmatmul.msk.bf16.gmra.mxu3 %vm2834_vm2, %v10425_v54  ;;  %v6566_v13 = vmax.f32 %v5339_v15, 0.0  ;;  %v6367_v12 = vmax.f32 %v4842_v32, 0.0  ;;  %v15972_v32 = vld [vmem:[#allocation7_spill] sm:$0xff] }
 0x4ef   :  { %v13989_v16 = vmax.f32 %v6166_v35, %v6191_v11  ;;  %v13991_v61 = vmax.f32 %v6366_v25, %v6391_v49  ;;  %v6766_v29 = vmax.f32 %v5839_v26, 0.0  ;;  %v6167_v46 = vmax.f32 %v4342_v43, 0.0  ;;  %v15971_v26 = vld [vmem:[#allocation6_spill] sm:$0xff] }
 0x4f0   :  { %15957 = vst [vmem:[#allocation57_spill] sm:$0xff] %v13983_v44  ;;  %v4344_v43 = vadd.f32 %v13549_v6, %v15971_v26 }
 0x4f1   :  { %15958 = vst [vmem:[#allocation58_spill] sm:$0xff] %v13985_v5  ;;  %v5401_v37 = vpop.f32.mrf.mxu2  ;;  %v5901_v30 = vpop.f32.mrf.mxu3  ;;  %v15969_v5 = vld [vmem:[#allocation4_spill] sm:$0xff] }
 0x4f2   :  { %15959 = vst [vmem:[#allocation59_spill] sm:$0xff] %v13989_v16  ;;  %v5402_v54 = vadd.f32 %v13549_v6, %v5401_v37  ;;  %v5902_v11 = vadd.f32 %v13549_v6, %v5901_v30  ;;  %v4403_v49 = vpop.f32.mrf.mxu0  ;;  %v4903_v35 = vpop.f32.mrf.mxu1 }
 0x4f3   :  { %15960 = vst [vmem:[#allocation2_spill] sm:$0xff] %v13991_v61  ;;  %v4404_v31 = vadd.f32 %v13549_v6, %v4403_v49  ;;  %v4904_v22 = vadd.f32 %v13549_v6, %v4903_v35  ;;  %v5342_v49 = vadd.f32 %v13549_v6, %v15969_v5  ;;  %v15970_v35 = vld [vmem:[#allocation5_spill] sm:$0xff] }
 0x4f4   :  { %v6591_v28 = vmax.f32 %v5402_v54, 0.0  ;;  %v6791_v25 = vmax.f32 %v5902_v11, 0.0  ;;  %v5842_v15 = vadd.f32 %v13549_v6, %v15970_v35  ;;  %v4844_v54 = vadd.f32 %v13549_v6, %v15972_v32 }
 0x4f5   :  { %v6192_v1 = vmax.f32 %v4404_v31, 0.0  ;;  %v6392_v36 = vmax.f32 %v4904_v22, 0.0  ;;  %v10126_v22 = vld [vmem:[%s15536_s0 + $0x278] sm:$0xff]  ;;  %v6567_v35 = vmax.f32 %v5342_v49, 0.0 }
 0x4f6   :  { %v14005_v61 = vmax.f32 %v6566_v13, %v6591_v28  ;;  %v14007_v16 = vmax.f32 %v6766_v29, %v6791_v25  ;;  %v10226_v13 = vld [vmem:[%s15536_s0 + $0x598] sm:$0xff]  ;;  %v6767_v26 = vmax.f32 %v5842_v15, 0.0 }
 0x4f7   :  { %v14009_v37 = vmax.f32 %v6167_v46, %v6192_v1  ;;  %v14011_v30 = vmax.f32 %v6367_v12, %v6392_v36  ;;  %v10326_v46 = vld [vmem:[%s15536_s0 + $0x8b8] sm:$0xff] }
 0x4f8   :  { %15965 = vst [vmem:[#allocation60_spill] sm:$0xff] %v14005_v61  ;;  %v10426_v12 = vld [vmem:[%s15536_s0 + $0xbd8] sm:$0xff] }
 0x4f9   :  { %15966 = vst [vmem:[#allocation61_spill] sm:$0xff] %v14007_v16  ;;  %v5403_v11 = vpop.f32.mrf.mxu2  ;;  %v5903_v31 = vpop.f32.mrf.mxu3 }
 0x4fa   :  { %15967 = vst [vmem:[#allocation62_spill] sm:$0xff] %v14009_v37  ;;  %v5404_v5 = vadd.f32 %v13549_v6, %v5403_v11  ;;  %v5904_v29 = vadd.f32 %v13549_v6, %v5903_v31  ;;  %v4406_v28 = vpop.f32.mrf.mxu0  ;;  %v4906_v25 = vpop.f32.mrf.mxu1  ;;  %v6368_v31 = vmax.f32 %v4844_v54, 0.0 }
 0x4fb   :  { %15968 = vst [vmem:[#allocation3_spill] sm:$0xff] %v14011_v30  ;;  %v4407_v1 = vadd.f32 %v13549_v6, %v4406_v28  ;;  %v4907_v36 = vadd.f32 %v13549_v6, %v4906_v25  ;;  %v6168_v30 = vmax.f32 %v4344_v43, 0.0  ;;  %v15977_v43 = vld [vmem:[#allocation8_spill] sm:$0xff]  ;;  %v15980_v28 = vld [vmem:[#allocation11_spill] sm:$0xff] }
 0x4fc   :  { %v6592_v32 = vmax.f32 %v5404_v5, 0.0  ;;  %v6792_v11 = vmax.f32 %v5904_v29, 0.0  ;;  %v5344_v54 = vadd.f32 %v13549_v6, %v15977_v43  ;;  %v15978_v5 = vld [vmem:[#allocation9_spill] sm:$0xff]  ;;  %v15979_v29 = vld [vmem:[#allocation10_spill] sm:$0xff]  ;;  %v4847_v25 = vadd.f32 %v13549_v6, %v15980_v28 }
 0x4fd   :  { %v6193_v37 = vmax.f32 %v4407_v1, 0.0  ;;  %v6393_v16 = vmax.f32 %v4907_v36, 0.0  ;;  %9551 = vmatmul.msk.bf16.gmra.mxu0 %vm2834_vm2, %v10126_v22  ;;  %9651 = vmatmul.msk.bf16.gmra.mxu1 %vm2834_vm2, %v10226_v13  ;;  %v5844_v22 = vadd.f32 %v13549_v6, %v15978_v5  ;;  %v4347_v13 = vadd.f32 %v13549_v6, %v15979_v29 }
 0x4fe   :  { %v14039_v61 = vmax.f32 %v6567_v35, %v6592_v32  ;;  %v14041_v44 = vmax.f32 %v6767_v26, %v6792_v11  ;;  %9751 = vmatmul.msk.bf16.gmra.mxu2 %vm2834_vm2, %v10326_v46  ;;  %9851 = vmatmul.msk.bf16.gmra.mxu3 %vm2834_vm2, %v10426_v12  ;;  %v6568_v26 = vmax.f32 %v5344_v54, 0.0  ;;  %v6369_v5 = vmax.f32 %v4847_v25, 0.0  ;;  %v15985_v54 = vld [vmem:[#allocation12_spill] sm:$0xff] }
 0x4ff   :  { %v14045_v49 = vmax.f32 %v6168_v30, %v6193_v37  ;;  %v14047_v15 = vmax.f32 %v6368_v31, %v6393_v16  ;;  %v6768_v32 = vmax.f32 %v5844_v22, 0.0  ;;  %v6169_v43 = vmax.f32 %v4347_v13, 0.0  ;;  %v15986_v13 = vld [vmem:[#allocation13_spill] sm:$0xff] }
 0x500   :  { %15973 = vst [vmem:[#allocation4_spill] sm:$0xff] %v14039_v61 }
 0x501   :  { %15974 = vst [vmem:[#allocation5_spill] sm:$0xff] %v14041_v44  ;;  %v5406_v1 = vpop.f32.mrf.mxu2  ;;  %v5906_v46 = vpop.f32.mrf.mxu3 }
 0x502   :  { %15975 = vst [vmem:[#allocation6_spill] sm:$0xff] %v14045_v49  ;;  %v5407_v12 = vadd.f32 %v13549_v6, %v5406_v1  ;;  %v5907_v37 = vadd.f32 %v13549_v6, %v5906_v46  ;;  %v4408_v16 = vpop.f32.mrf.mxu0  ;;  %v4908_v30 = vpop.f32.mrf.mxu1 }
 0x503   :  { %15976 = vst [vmem:[#allocation7_spill] sm:$0xff] %v14047_v15  ;;  %v4409_v36 = vadd.f32 %v13549_v6, %v4408_v16  ;;  %v4909_v35 = vadd.f32 %v13549_v6, %v4908_v30  ;;  %v14072_v6 = vld [vmem:[%s15535_s2] ss:$0 sm:$0xff]  ;;  %v15988_v16 = vld [vmem:[#allocation15_spill] sm:$0xff] }
 0x504   :  { %v6593_v11 = vmax.f32 %v5407_v12, 0.0  ;;  %v6793_v31 = vmax.f32 %v5907_v37, 0.0  ;;  %v5347_v22 = vadd.f32 %v14072_v6, %v15985_v54  ;;  %v5847_v25 = vadd.f32 %v14072_v6, %v15986_v13  ;;  %v15987_v12 = vld [vmem:[#allocation14_spill] sm:$0xff] }
 0x505   :  { %v6194_v29 = vmax.f32 %v4409_v36, 0.0  ;;  %v6394_v28 = vmax.f32 %v4909_v35, 0.0  ;;  %v4349_v37 = vadd.f32 %v14072_v6, %v15987_v12  ;;  %v4849_v30 = vadd.f32 %v14072_v6, %v15988_v16 }
 0x506   :  { %v14061_v15 = vmax.f32 %v6568_v26, %v6593_v11  ;;  %v14063_v49 = vmax.f32 %v6768_v32, %v6793_v31  ;;  %v10127_v26 = vld [vmem:[%s15536_s0 + $0x280] sm:$0xff]  ;;  %v6569_v12 = vmax.f32 %v5347_v22, 0.0  ;;  %v6769_v16 = vmax.f32 %v5847_v25, 0.0 }
 0x507   :  { %v14065_v1 = vmax.f32 %v6169_v43, %v6194_v29  ;;  %v14067_v46 = vmax.f32 %v6369_v5, %v6394_v28  ;;  %v10227_v32 = vld [vmem:[%s15536_s0 + $0x5a0] sm:$0xff] }
 0x508   :  { %15981 = vst [vmem:[#allocation8_spill] sm:$0xff] %v14061_v15  ;;  %v10327_v29 = vld [vmem:[%s15536_s0 + $0x8c0] sm:$0xff] }
 0x509   :  { %15982 = vst [vmem:[#allocation9_spill] sm:$0xff] %v14063_v49  ;;  %v5408_v36 = vpop.f32.mrf.mxu2  ;;  %v5908_v35 = vpop.f32.mrf.mxu3  ;;  %v10427_v28 = vld [vmem:[%s15536_s0 + $0xbe0] sm:$0xff] }
 0x50a   :  { %15983 = vst [vmem:[#allocation10_spill] sm:$0xff] %v14065_v1  ;;  %v5409_v11 = vadd.f32 %v14072_v6, %v5408_v36  ;;  %v5909_v31 = vadd.f32 %v14072_v6, %v5908_v35  ;;  %v4411_v43 = vpop.f32.mrf.mxu0  ;;  %v4911_v5 = vpop.f32.mrf.mxu1  ;;  %v6170_v1 = vmax.f32 %v4349_v37, 0.0  ;;  %v6370_v35 = vmax.f32 %v4849_v30, 0.0  ;;  %v15993_v37 = vld [vmem:[#allocation16_spill] sm:$0xff] }
 0x50b   :  { %15984 = vst [vmem:[#allocation11_spill] sm:$0xff] %v14067_v46  ;;  %v4412_v54 = vadd.f32 %v14072_v6, %v4411_v43  ;;  %v4912_v13 = vadd.f32 %v14072_v6, %v4911_v5  ;;  %v5349_v30 = vadd.f32 %v14072_v6, %v15993_v37 }
 0x50c   :  { %v6594_v46 = vmax.f32 %v5409_v11, 0.0  ;;  %v6794_v36 = vmax.f32 %v5909_v31, 0.0  ;;  %v15994_v11 = vld [vmem:[#allocation17_spill] sm:$0xff]  ;;  %v15995_v31 = vld [vmem:[#allocation18_spill] sm:$0xff] }
 0x50d   :  { %v6195_v49 = vmax.f32 %v4412_v54, 0.0  ;;  %v6395_v15 = vmax.f32 %v4912_v13, 0.0  ;;  %9552 = vmatmul.msk.bf16.gmra.mxu0 %vm2834_vm2, %v10127_v26  ;;  %9652 = vmatmul.msk.bf16.gmra.mxu1 %vm2834_vm2, %v10227_v32  ;;  %v5849_v26 = vadd.f32 %v14072_v6, %v15994_v11  ;;  %v15996_v32 = vld [vmem:[#allocation19_spill] sm:$0xff] }
 0x50e   :  { %v14100_v44 = vmax.f32 %v6569_v12, %v6594_v46  ;;  %v14102_v61 = vmax.f32 %v6769_v16, %v6794_v36  ;;  %9752 = vmatmul.msk.bf16.gmra.mxu2 %vm2834_vm2, %v10327_v29  ;;  %9852 = vmatmul.msk.bf16.gmra.mxu3 %vm2834_vm2, %v10427_v28  ;;  %v4352_v46 = vadd.f32 %v14072_v6, %v15995_v31  ;;  %v6570_v12 = vmax.f32 %v5349_v30, 0.0 }
 0x50f   :  { %v14106_v22 = vmax.f32 %v6170_v1, %v6195_v49  ;;  %v14108_v25 = vmax.f32 %v6370_v35, %v6395_v15  ;;  %v4852_v43 = vadd.f32 %v14072_v6, %v15996_v32  ;;  %v6770_v16 = vmax.f32 %v5849_v26, 0.0  ;;  %v16003_v26 = vld [vmem:[#allocation22_spill] sm:$0xff] }
 0x510   :  { %15989 = vst [vmem:[#allocation12_spill] sm:$0xff] %v14100_v44  ;;  %v6171_v37 = vmax.f32 %v4352_v46, 0.0  ;;  %v4354_v46 = vadd.f32 %v14072_v6, %v16003_v26 }
 0x511   :  { %15990 = vst [vmem:[#allocation13_spill] sm:$0xff] %v14102_v61  ;;  %v5411_v5 = vpop.f32.mrf.mxu2  ;;  %v5911_v29 = vpop.f32.mrf.mxu3  ;;  %v6371_v11 = vmax.f32 %v4852_v43, 0.0  ;;  %v16001_v61 = vld [vmem:[#allocation20_spill] sm:$0xff]  ;;  %v16004_v43 = vld [vmem:[#allocation23_spill] sm:$0xff] }
 0x512   :  { %15991 = vst [vmem:[#allocation14_spill] sm:$0xff] %v14106_v22  ;;  %v5412_v28 = vadd.f32 %v14072_v6, %v5411_v5  ;;  %v5912_v49 = vadd.f32 %v14072_v6, %v5911_v29  ;;  %v4413_v15 = vpop.f32.mrf.mxu0  ;;  %v4913_v1 = vpop.f32.mrf.mxu1 }
 0x513   :  { %15992 = vst [vmem:[#allocation15_spill] sm:$0xff] %v14108_v25  ;;  %v4414_v54 = vadd.f32 %v14072_v6, %v4413_v15  ;;  %v4914_v13 = vadd.f32 %v14072_v6, %v4913_v1  ;;  %v5352_v15 = vadd.f32 %v14072_v6, %v16001_v61  ;;  %v16002_v1 = vld [vmem:[#allocation21_spill] sm:$0xff] }
 0x514   :  { %v6595_v36 = vmax.f32 %v5412_v28, 0.0  ;;  %v6795_v35 = vmax.f32 %v5912_v49, 0.0  ;;  %v5852_v30 = vadd.f32 %v14072_v6, %v16002_v1  ;;  %v4854_v28 = vadd.f32 %v14072_v6, %v16004_v43 }
 0x515   :  { %v6196_v31 = vmax.f32 %v4414_v54, 0.0  ;;  %v6396_v32 = vmax.f32 %v4914_v13, 0.0  ;;  %v10128_v13 = vld [vmem:[%s15536_s0 + $0x288] sm:$0xff]  ;;  %v6571_v1 = vmax.f32 %v5352_v15, 0.0 }
 0x516   :  { %v14122_v25 = vmax.f32 %v6570_v12, %v6595_v36  ;;  %v14124_v22 = vmax.f32 %v6770_v16, %v6795_v35  ;;  %v10228_v12 = vld [vmem:[%s15536_s0 + $0x5a8] sm:$0xff]  ;;  %v6771_v26 = vmax.f32 %v5852_v30, 0.0 }
 0x517   :  { %v14126_v5 = vmax.f32 %v6171_v37, %v6196_v31  ;;  %v14128_v29 = vmax.f32 %v6371_v11, %v6396_v32  ;;  %v10328_v37 = vld [vmem:[%s15536_s0 + $0x8c8] sm:$0xff] }
 0x518   :  { %15997 = vst [vmem:[#allocation16_spill] sm:$0xff] %v14122_v25  ;;  %v10428_v11 = vld [vmem:[%s15536_s0 + $0xbe8] sm:$0xff] }
 0x519   :  { %15998 = vst [vmem:[#allocation17_spill] sm:$0xff] %v14124_v22  ;;  %v5413_v49 = vpop.f32.mrf.mxu2  ;;  %v5913_v54 = vpop.f32.mrf.mxu3 }
 0x51a   :  { %15999 = vst [vmem:[#allocation18_spill] sm:$0xff] %v14126_v5  ;;  %v5414_v61 = vadd.f32 %v14072_v6, %v5413_v49  ;;  %v5914_v16 = vadd.f32 %v14072_v6, %v5913_v54  ;;  %v4416_v36 = vpop.f32.mrf.mxu0  ;;  %v4916_v35 = vpop.f32.mrf.mxu1  ;;  %v6372_v54 = vmax.f32 %v4854_v28, 0.0 }
 0x51b   :  { %16000 = vst [vmem:[#allocation19_spill] sm:$0xff] %v14128_v29  ;;  %v4417_v31 = vadd.f32 %v14072_v6, %v4416_v36  ;;  %v4917_v32 = vadd.f32 %v14072_v6, %v4916_v35  ;;  %v6172_v29 = vmax.f32 %v4354_v46, 0.0  ;;  %v16009_v46 = vld [vmem:[#allocation24_spill] sm:$0xff]  ;;  %v16012_v36 = vld [vmem:[#allocation27_spill] sm:$0xff] }
 0x51c   :  { %v6596_v43 = vmax.f32 %v5414_v61, 0.0  ;;  %v6796_v49 = vmax.f32 %v5914_v16, 0.0  ;;  %v5354_v28 = vadd.f32 %v14072_v6, %v16009_v46  ;;  %v16010_v61 = vld [vmem:[#allocation25_spill] sm:$0xff]  ;;  %v16011_v16 = vld [vmem:[#allocation26_spill] sm:$0xff]  ;;  %v4857_v35 = vadd.f32 %v14072_v6, %v16012_v36 }
 0x51d   :  { %v6197_v5 = vmax.f32 %v4417_v31, 0.0  ;;  %v6397_v22 = vmax.f32 %v4917_v32, 0.0  ;;  %9553 = vmatmul.msk.bf16.gmra.mxu0 %vm2834_vm2, %v10128_v13  ;;  %9653 = vmatmul.msk.bf16.gmra.mxu1 %vm2834_vm2, %v10228_v12  ;;  %v5854_v13 = vadd.f32 %v14072_v6, %v16010_v61  ;;  %v4357_v12 = vadd.f32 %v14072_v6, %v16011_v16 }
 0x51e   :  { %v14156_v25 = vmax.f32 %v6571_v1, %v6596_v43  ;;  %v14158_v44 = vmax.f32 %v6771_v26, %v6796_v49  ;;  %9753 = vmatmul.msk.bf16.gmra.mxu2 %vm2834_vm2, %v10328_v37  ;;  %9853 = vmatmul.msk.bf16.gmra.mxu3 %vm2834_vm2, %v10428_v11  ;;  %v6572_v26 = vmax.f32 %v5354_v28, 0.0  ;;  %v6373_v61 = vmax.f32 %v4857_v35, 0.0  ;;  %v16020_v35 = vld [vmem:[#allocation31_spill] sm:$0xff] }
 0x51f   :  { %v14162_v15 = vmax.f32 %v6172_v29, %v6197_v5  ;;  %v14164_v30 = vmax.f32 %v6372_v54, %v6397_v22  ;;  %v6772_v43 = vmax.f32 %v5854_v13, 0.0  ;;  %v6173_v46 = vmax.f32 %v4357_v12, 0.0  ;;  %v16019_v13 = vld [vmem:[#allocation30_spill] sm:$0xff] }
 0x520   :  { %16005 = vst [vmem:[#allocation20_spill] sm:$0xff] %v14156_v25  ;;  %v4359_v12 = vadd.f32 %v14072_v6, %v16019_v13 }
 0x521   :  { %16006 = vst [vmem:[#allocation21_spill] sm:$0xff] %v14158_v44  ;;  %v5416_v31 = vpop.f32.mrf.mxu2  ;;  %v5916_v37 = vpop.f32.mrf.mxu3  ;;  %v16017_v44 = vld [vmem:[#allocation28_spill] sm:$0xff] }
 0x522   :  { %16007 = vst [vmem:[#allocation22_spill] sm:$0xff] %v14162_v15  ;;  %v5417_v11 = vadd.f32 %v14072_v6, %v5416_v31  ;;  %v5917_v5 = vadd.f32 %v14072_v6, %v5916_v37  ;;  %v4418_v22 = vpop.f32.mrf.mxu0  ;;  %v4918_v29 = vpop.f32.mrf.mxu1 }
 0x523   :  { %16008 = vst [vmem:[#allocation23_spill] sm:$0xff] %v14164_v30  ;;  %v4419_v32 = vadd.f32 %v14072_v6, %v4418_v22  ;;  %v4919_v1 = vadd.f32 %v14072_v6, %v4918_v29  ;;  %v5357_v22 = vadd.f32 %v14072_v6, %v16017_v44  ;;  %v16018_v29 = vld [vmem:[#allocation29_spill] sm:$0xff] }
 0x524   :  { %v6597_v49 = vmax.f32 %v5417_v11, 0.0  ;;  %v6797_v54 = vmax.f32 %v5917_v5, 0.0  ;;  %v5857_v28 = vadd.f32 %v14072_v6, %v16018_v29  ;;  %v4859_v11 = vadd.f32 %v14072_v6, %v16020_v35 }
 0x525   :  { %v6198_v16 = vmax.f32 %v4419_v32, 0.0  ;;  %v6398_v36 = vmax.f32 %v4919_v1, 0.0  ;;  %v10129_v1 = vld [vmem:[%s15536_s0 + $0x290] sm:$0xff]  ;;  %v6573_v29 = vmax.f32 %v5357_v22, 0.0 }
 0x526   :  { %v14178_v30 = vmax.f32 %v6572_v26, %v6597_v49  ;;  %v14180_v15 = vmax.f32 %v6772_v43, %v6797_v54  ;;  %v10229_v26 = vld [vmem:[%s15536_s0 + $0x5b0] sm:$0xff]  ;;  %v6773_v13 = vmax.f32 %v5857_v28, 0.0 }
 0x527   :  { %v14182_v31 = vmax.f32 %v6173_v46, %v6198_v16  ;;  %v14184_v37 = vmax.f32 %v6373_v61, %v6398_v36  ;;  %v10329_v46 = vld [vmem:[%s15536_s0 + $0x8d0] sm:$0xff] }
 0x528   :  { %16013 = vst [vmem:[#allocation24_spill] sm:$0xff] %v14178_v30  ;;  %v10429_v61 = vld [vmem:[%s15536_s0 + $0xbf0] sm:$0xff] }
 0x529   :  { %16014 = vst [vmem:[#allocation25_spill] sm:$0xff] %v14180_v15  ;;  %v5418_v5 = vpop.f32.mrf.mxu2  ;;  %v5918_v32 = vpop.f32.mrf.mxu3 }
 0x52a   :  { %16015 = vst [vmem:[#allocation26_spill] sm:$0xff] %v14182_v31  ;;  %v5419_v44 = vadd.f32 %v14072_v6, %v5418_v5  ;;  %v5919_v43 = vadd.f32 %v14072_v6, %v5918_v32  ;;  %v4421_v49 = vpop.f32.mrf.mxu0  ;;  %v4921_v54 = vpop.f32.mrf.mxu1  ;;  %v6374_v32 = vmax.f32 %v4859_v11, 0.0 }
 0x52b   :  { %16016 = vst [vmem:[#allocation27_spill] sm:$0xff] %v14184_v37  ;;  %v4422_v16 = vadd.f32 %v14072_v6, %v4421_v49  ;;  %v4922_v36 = vadd.f32 %v14072_v6, %v4921_v54  ;;  %v6174_v37 = vmax.f32 %v4359_v12, 0.0  ;;  %v16024_v12 = vld [vmem:[#allocation32_spill] sm:$0xff]  ;;  %v16027_v49 = vld [vmem:[#allocation35_spill] sm:$0xff] }
 0x52c   :  { %v6598_v35 = vmax.f32 %v5419_v44, 0.0  ;;  %v6798_v5 = vmax.f32 %v5919_v43, 0.0  ;;  %v5359_v11 = vadd.f32 %v14072_v6, %v16024_v12  ;;  %v16025_v44 = vld [vmem:[#allocation33_spill] sm:$0xff]  ;;  %v16026_v43 = vld [vmem:[#allocation34_spill] sm:$0xff]  ;;  %v4862_v54 = vadd.f32 %v14072_v6, %v16027_v49 }
 0x52d   :  { %v6199_v31 = vmax.f32 %v4422_v16, 0.0  ;;  %v6399_v15 = vmax.f32 %v4922_v36, 0.0  ;;  %9554 = vmatmul.msk.bf16.gmra.mxu0 %vm2834_vm2, %v10129_v1  ;;  %9654 = vmatmul.msk.bf16.gmra.mxu1 %vm2834_vm2, %v10229_v26  ;;  %v5859_v1 = vadd.f32 %v14072_v6, %v16025_v44  ;;  %v4362_v26 = vadd.f32 %v14072_v6, %v16026_v43 }
 0x52e   :  { %v14212_v30 = vmax.f32 %v6573_v29, %v6598_v35  ;;  %v14214_v25 = vmax.f32 %v6773_v13, %v6798_v5  ;;  %9754 = vmatmul.msk.bf16.gmra.mxu2 %vm2834_vm2, %v10329_v46  ;;  %9854 = vmatmul.msk.bf16.gmra.mxu3 %vm2834_vm2, %v10429_v61  ;;  %v6574_v13 = vmax.f32 %v5359_v11, 0.0  ;;  %v6375_v44 = vmax.f32 %v4862_v54, 0.0  ;;  %v10230_v54 = vld [vmem:[%s15536_s0 + $0x5b8] sm:$0xff] }
 0x52f   :  { %v14218_v22 = vmax.f32 %v6174_v37, %v6199_v31  ;;  %v14220_v28 = vmax.f32 %v6374_v32, %v6399_v15  ;;  %v6774_v35 = vmax.f32 %v5859_v1, 0.0  ;;  %v6175_v12 = vmax.f32 %v4362_v26, 0.0  ;;  %v10130_v26 = vld [vmem:[%s15536_s0 + $0x298] sm:$0xff] }
 0x530   :  { %16021 = vst [vmem:[#allocation28_spill] sm:$0xff] %v14214_v25  ;;  %v16029_v25 = vld [vmem:[#allocation36_spill] sm:$0xff] }
 0x531   :  { %16022 = vst [vmem:[#allocation29_spill] sm:$0xff] %v14218_v22  ;;  %v5421_v16 = vpop.f32.mrf.mxu2  ;;  %v5921_v46 = vpop.f32.mrf.mxu3 }
 0x532   :  { %16023 = vst [vmem:[#allocation30_spill] sm:$0xff] %v14220_v28  ;;  %v5422_v61 = vadd.f32 %v14072_v6, %v5421_v16  ;;  %v5922_v31 = vadd.f32 %v14072_v6, %v5921_v46  ;;  %v4423_v15 = vpop.f32.mrf.mxu0  ;;  %v4923_v37 = vpop.f32.mrf.mxu1 }
 0x533   :  { %v4424_v36 = vadd.f32 %v14072_v6, %v4423_v15  ;;  %v4924_v29 = vadd.f32 %v14072_v6, %v4923_v37  ;;  %v5362_v15 = vadd.f32 %v14072_v6, %v16029_v25  ;;  %v16030_v37 = vld [vmem:[#allocation37_spill] sm:$0xff] }
 0x534   :  { %v6599_v5 = vmax.f32 %v5422_v61, 0.0  ;;  %v6799_v32 = vmax.f32 %v5922_v31, 0.0  ;;  %v5862_v11 = vadd.f32 %v14072_v6, %v16030_v37  ;;  %v10330_v25 = vld [vmem:[%s15536_s0 + $0x8d8] sm:$0xff] }
 0x535   :  { %v6200_v43 = vmax.f32 %v4424_v36, 0.0  ;;  %v6400_v49 = vmax.f32 %v4924_v29, 0.0 }
 0x536   :  { %v14234_v28 = vmax.f32 %v6574_v13, %v6599_v5  ;;  %v14236_v22 = vmax.f32 %v6774_v35, %v6799_v32  ;;  %v10430_v35 = vld [vmem:[%s15536_s0 + $0xbf8] sm:$0xff] }
 0x537   :  { %v14238_v16 = vmax.f32 %v6175_v12, %v6200_v43  ;;  %v14240_v46 = vmax.f32 %v6375_v44, %v6400_v49  ;;  %v6575_v12 = vmax.f32 %v5362_v15, 0.0  ;;  %v6775_v44 = vmax.f32 %v5862_v11, 0.0  ;;  %v16032_v15 = vld [vmem:[#allocation39_spill] sm:$0xff] }
 0x539   :  { %16028 = vst [vmem:[#allocation31_spill] sm:$0xff] %v14240_v46  ;;  %v5423_v1 = vpop.f32.mrf.mxu2  ;;  %v5923_v61 = vpop.f32.mrf.mxu3 }
 0x53a   :  { %v5424_v31 = vadd.f32 %v14072_v6, %v5423_v1  ;;  %v5924_v36 = vadd.f32 %v14072_v6, %v5923_v61  ;;  %v4426_v29 = vpop.f32.mrf.mxu0  ;;  %v4926_v13 = vpop.f32.mrf.mxu1 }
 0x53b   :  { %v4427_v5 = vadd.f32 %v14072_v6, %v4426_v29  ;;  %v4927_v32 = vadd.f32 %v14072_v6, %v4926_v13  ;;  %v16031_v29 = vld [vmem:[#allocation38_spill] sm:$0xff] }
 0x53c   :  { %v6600_v43 = vmax.f32 %v5424_v31, 0.0  ;;  %v6800_v49 = vmax.f32 %v5924_v36, 0.0 }
 0x53d   :  { %v6201_v37 = vmax.f32 %v4427_v5, 0.0  ;;  %v6401_v1 = vmax.f32 %v4927_v32, 0.0  ;;  %9555 = vmatmul.msk.bf16.gmra.mxu0 %vm2834_vm2, %v10130_v26  ;;  %9655 = vmatmul.msk.bf16.gmra.mxu1 %vm2834_vm2, %v10230_v54 }
 0x53e   :  { %v14264_v61 = vmax.f32 %v6575_v12, %v6600_v43  ;;  %v14266_v46 = vmax.f32 %v6775_v44, %v6800_v49  ;;  %9755 = vmatmul.msk.bf16.gmra.mxu2 %vm2834_vm2, %v10330_v25  ;;  %9855 = vmatmul.msk.bf16.gmra.mxu3 %vm2834_vm2, %v10430_v35 }
 0x53f   :  { %v14271_v13 = vmax.f32 %v16031_v29, %v6201_v37  ;;  %v14274_v11 = vmax.f32 %v16032_v15, %v6401_v1 }
 0x541   :  { %v5426_v31 = vpop.f32.mrf.mxu2  ;;  %v5926_v36 = vpop.f32.mrf.mxu3 }
 0x542   :  { %v5427_v26 = vadd.f32 %v14072_v6, %v5426_v31  ;;  %v5927_v54 = vadd.f32 %v14072_v6, %v5926_v36  ;;  %v4428_v5 = vpop.f32.mrf.mxu0  ;;  %v4928_v32 = vpop.f32.mrf.mxu1 }
 0x543   :  { %v4429_v12 = vadd.f32 %v14072_v6, %v4428_v5  ;;  %v4929_v25 = vadd.f32 %v14072_v6, %v4928_v32  ;;  %v10431_v32 = vld [vmem:[%s15536_s0 + $0xc00] sm:$0xff] }
 0x544   :  { %v6601_v44 = vmax.f32 %v5427_v26, 0.0  ;;  %v6801_v35 = vmax.f32 %v5927_v54, 0.0  ;;  %v10131_v26 = vld [vmem:[%s15536_s0 + $0x2a0] sm:$0xff] }
 0x545   :  { %v6202_v43 = vmax.f32 %v4429_v12, 0.0  ;;  %v6402_v49 = vmax.f32 %v4929_v25, 0.0 }
 0x546   :  { %v14281_v37 = vmax.f32 %v13591_v20, %v6601_v44  ;;  %v14284_v1 = vmax.f32 %v13593_v62, %v6801_v35  ;;  %v10231_v20 = vld [vmem:[%s15536_s0 + $0x5c0] sm:$0xff] }
 0x547   :  { %v14287_v29 = vmax.f32 %v13597_v63, %v6202_v43  ;;  %v14290_v15 = vmax.f32 %v13599_v7, %v6402_v49  ;;  %v10331_v7 = vld [vmem:[%s15536_s0 + $0x8e0] sm:$0xff] }
 0x549   :  { %v5428_v31 = vpop.f32.mrf.mxu2  ;;  %v5928_v36 = vpop.f32.mrf.mxu3 }
 0x54a   :  { %v5429_v54 = vadd.f32 %v14072_v6, %v5428_v31  ;;  %v5929_v62 = vadd.f32 %v14072_v6, %v5928_v36  ;;  %v4431_v5 = vpop.f32.mrf.mxu0  ;;  %v4931_v63 = vpop.f32.mrf.mxu1 }
 0x54b   :  { %v4432_v12 = vadd.f32 %v14072_v6, %v4431_v5  ;;  %v4932_v25 = vadd.f32 %v14072_v6, %v4931_v63 }
 0x54c   :  { %v6602_v44 = vmax.f32 %v5429_v54, 0.0  ;;  %v6802_v35 = vmax.f32 %v5929_v62, 0.0 }
 0x54d   :  { %v6203_v43 = vmax.f32 %v4432_v12, 0.0  ;;  %v6403_v49 = vmax.f32 %v4932_v25, 0.0  ;;  %9556 = vmatmul.msk.bf16.gmra.mxu0 %vm2834_vm2, %v10131_v26  ;;  %9656 = vmatmul.msk.bf16.gmra.mxu1 %vm2834_vm2, %v10231_v20 }
 0x54e   :  { %v14311_v31 = vmax.f32 %v13613_v51, %v6602_v44  ;;  %v14314_v36 = vmax.f32 %v13615_v9, %v6802_v35  ;;  %9756 = vmatmul.msk.bf16.gmra.mxu2 %vm2834_vm2, %v10331_v7  ;;  %9856 = vmatmul.msk.bf16.gmra.mxu3 %vm2834_vm2, %v10431_v32 }
 0x54f   :  { %v14319_v5 = vmax.f32 %v13617_v60, %v6203_v43  ;;  %v14322_v54 = vmax.f32 %v13619_v52, %v6403_v49 }
 0x551   :  { %v5431_v62 = vpop.f32.mrf.mxu2  ;;  %v5931_v26 = vpop.f32.mrf.mxu3 }
 0x552   :  { %v5432_v20 = vadd.f32 %v14072_v6, %v5431_v62  ;;  %v5932_v51 = vadd.f32 %v14072_v6, %v5931_v26  ;;  %v4433_v63 = vpop.f32.mrf.mxu0  ;;  %v4933_v12 = vpop.f32.mrf.mxu1 }
 0x553   :  { %v4434_v9 = vadd.f32 %v14072_v6, %v4433_v63  ;;  %v4934_v7 = vadd.f32 %v14072_v6, %v4933_v12  ;;  %v10432_v12 = vld [vmem:[%s15536_s0 + $0xc08] sm:$0xff] }
 0x554   :  { %v6603_v25 = vmax.f32 %v5432_v20, 0.0  ;;  %v6803_v32 = vmax.f32 %v5932_v51, 0.0  ;;  %v10132_v20 = vld [vmem:[%s15536_s0 + $0x2a8] sm:$0xff] }
 0x555   :  { %v6204_v44 = vmax.f32 %v4434_v9, 0.0  ;;  %v6404_v60 = vmax.f32 %v4934_v7, 0.0 }
 0x556   :  { %v14329_v35 = vmax.f32 %v13647_v18, %v6603_v25  ;;  %v14332_v52 = vmax.f32 %v13649_v42, %v6803_v32  ;;  %v10232_v18 = vld [vmem:[%s15536_s0 + $0x5c8] sm:$0xff] }
 0x557   :  { %v14335_v43 = vmax.f32 %v13653_v24, %v6204_v44  ;;  %v14338_v49 = vmax.f32 %v13655_v0, %v6404_v60  ;;  %v10332_v0 = vld [vmem:[%s15536_s0 + $0x8e8] sm:$0xff] }
 0x559   :  { %v5433_v62 = vpop.f32.mrf.mxu2  ;;  %v5933_v26 = vpop.f32.mrf.mxu3 }
 0x55a   :  { %v5434_v51 = vadd.f32 %v14072_v6, %v5433_v62  ;;  %v5934_v42 = vadd.f32 %v14072_v6, %v5933_v26  ;;  %v4436_v63 = vpop.f32.mrf.mxu0  ;;  %v4936_v24 = vpop.f32.mrf.mxu1 }
 0x55b   :  { %v4437_v9 = vadd.f32 %v14072_v6, %v4436_v63  ;;  %v4937_v7 = vadd.f32 %v14072_v6, %v4936_v24 }
 0x55c   :  { %v6604_v25 = vmax.f32 %v5434_v51, 0.0  ;;  %v6804_v32 = vmax.f32 %v5934_v42, 0.0 }
 0x55d   :  { %v6205_v44 = vmax.f32 %v4437_v9, 0.0  ;;  %v6405_v60 = vmax.f32 %v4937_v7, 0.0  ;;  %9557 = vmatmul.msk.bf16.gmra.mxu0 %vm2834_vm2, %v10132_v20  ;;  %9657 = vmatmul.msk.bf16.gmra.mxu1 %vm2834_vm2, %v10232_v18 }
 0x55e   :  { %v14359_v62 = vmax.f32 %v13669_v8, %v6604_v25  ;;  %v14362_v26 = vmax.f32 %v13671_v19, %v6804_v32  ;;  %9757 = vmatmul.msk.bf16.gmra.mxu2 %vm2834_vm2, %v10332_v0  ;;  %9857 = vmatmul.msk.bf16.gmra.mxu3 %vm2834_vm2, %v10432_v12 }
 0x55f   :  { %v14367_v63 = vmax.f32 %v13673_v53, %v6205_v44  ;;  %v14370_v51 = vmax.f32 %v13675_v38, %v6405_v60 }
 0x561   :  { %v5436_v42 = vpop.f32.mrf.mxu2  ;;  %v5936_v20 = vpop.f32.mrf.mxu3 }
 0x562   :  { %v5437_v18 = vadd.f32 %v14072_v6, %v5436_v42  ;;  %v5937_v8 = vadd.f32 %v14072_v6, %v5936_v20  ;;  %v4438_v24 = vpop.f32.mrf.mxu0  ;;  %v4938_v9 = vpop.f32.mrf.mxu1 }
 0x563   :  { %v4439_v19 = vadd.f32 %v14072_v6, %v4438_v24  ;;  %v4939_v0 = vadd.f32 %v14072_v6, %v4938_v9  ;;  %v10433_v9 = vld [vmem:[%s15536_s0 + $0xc10] sm:$0xff] }
 0x564   :  { %v6605_v7 = vmax.f32 %v5437_v18, 0.0  ;;  %v6805_v12 = vmax.f32 %v5937_v8, 0.0  ;;  %v10133_v18 = vld [vmem:[%s15536_s0 + $0x2b0] sm:$0xff] }
 0x565   :  { %v6206_v25 = vmax.f32 %v4439_v19, 0.0  ;;  %v6406_v53 = vmax.f32 %v4939_v0, 0.0 }
 0x566   :  { %v14377_v32 = vmax.f32 %v13703_v39, %v6605_v7  ;;  %v14380_v38 = vmax.f32 %v13705_v55, %v6805_v12  ;;  %v10233_v39 = vld [vmem:[%s15536_s0 + $0x5d0] sm:$0xff] }
 0x567   :  { %v14383_v44 = vmax.f32 %v13709_v3, %v6206_v25  ;;  %v14386_v60 = vmax.f32 %v13711_v40, %v6406_v53  ;;  %v10333_v40 = vld [vmem:[%s15536_s0 + $0x8f0] sm:$0xff] }
 0x569   :  { %v5438_v42 = vpop.f32.mrf.mxu2  ;;  %v5938_v20 = vpop.f32.mrf.mxu3 }
 0x56a   :  { %v5439_v8 = vadd.f32 %v14072_v6, %v5438_v42  ;;  %v5939_v55 = vadd.f32 %v14072_v6, %v5938_v20  ;;  %v4441_v24 = vpop.f32.mrf.mxu0  ;;  %v4941_v3 = vpop.f32.mrf.mxu1 }
 0x56b   :  { %v4442_v19 = vadd.f32 %v14072_v6, %v4441_v24  ;;  %v4942_v0 = vadd.f32 %v14072_v6, %v4941_v3 }
 0x56c   :  { %v6606_v7 = vmax.f32 %v5439_v8, 0.0  ;;  %v6806_v12 = vmax.f32 %v5939_v55, 0.0 }
 0x56d   :  { %v6207_v25 = vmax.f32 %v4442_v19, 0.0  ;;  %v6407_v53 = vmax.f32 %v4942_v0, 0.0  ;;  %9558 = vmatmul.msk.bf16.gmra.mxu0 %vm2834_vm2, %v10133_v18  ;;  %9658 = vmatmul.msk.bf16.gmra.mxu1 %vm2834_vm2, %v10233_v39 }
 0x56e   :  { %v14407_v42 = vmax.f32 %v13725_v27, %v6606_v7  ;;  %v14410_v20 = vmax.f32 %v13727_v41, %v6806_v12  ;;  %9758 = vmatmul.msk.bf16.gmra.mxu2 %vm2834_vm2, %v10333_v40  ;;  %9858 = vmatmul.msk.bf16.gmra.mxu3 %vm2834_vm2, %v10433_v9 }
 0x56f   :  { %v14415_v24 = vmax.f32 %v13729_v48, %v6207_v25  ;;  %v14418_v8 = vmax.f32 %v13731_v14, %v6407_v53 }
 0x571   :  { %v5441_v55 = vpop.f32.mrf.mxu2  ;;  %v5941_v18 = vpop.f32.mrf.mxu3 }
 0x572   :  { %v5442_v39 = vadd.f32 %v14072_v6, %v5441_v55  ;;  %v5942_v27 = vadd.f32 %v14072_v6, %v5941_v18  ;;  %v4443_v3 = vpop.f32.mrf.mxu0  ;;  %v4943_v19 = vpop.f32.mrf.mxu1 }
 0x573   :  { %v4444_v41 = vadd.f32 %v14072_v6, %v4443_v3  ;;  %v4944_v40 = vadd.f32 %v14072_v6, %v4943_v19  ;;  %v10434_v19 = vld [vmem:[%s15536_s0 + $0xc18] sm:$0xff] }
 0x574   :  { %v6607_v0 = vmax.f32 %v5442_v39, 0.0  ;;  %v6807_v9 = vmax.f32 %v5942_v27, 0.0  ;;  %v10134_v39 = vld [vmem:[%s15536_s0 + $0x2b8] sm:$0xff] }
 0x575   :  { %v6208_v7 = vmax.f32 %v4444_v41, 0.0  ;;  %v6408_v48 = vmax.f32 %v4944_v40, 0.0 }
 0x576   :  { %v14425_v12 = vmax.f32 %v13759_v47, %v6607_v0  ;;  %v14428_v14 = vmax.f32 %v13761_v45, %v6807_v9  ;;  %v10234_v47 = vld [vmem:[%s15536_s0 + $0x5d8] sm:$0xff] }
 0x577   :  { %v14431_v25 = vmax.f32 %v13765_v34, %v6208_v7  ;;  %v14434_v53 = vmax.f32 %v13767_v59, %v6408_v48  ;;  %v10334_v59 = vld [vmem:[%s15536_s0 + $0x8f8] sm:$0xff] }
 0x579   :  { %v5443_v55 = vpop.f32.mrf.mxu2  ;;  %v5943_v18 = vpop.f32.mrf.mxu3 }
 0x57a   :  { %v5444_v27 = vadd.f32 %v14072_v6, %v5443_v55  ;;  %v5944_v45 = vadd.f32 %v14072_v6, %v5943_v18  ;;  %v4446_v3 = vpop.f32.mrf.mxu0  ;;  %v4946_v34 = vpop.f32.mrf.mxu1 }
 0x57b   :  { %v4447_v41 = vadd.f32 %v14072_v6, %v4446_v3  ;;  %v4947_v40 = vadd.f32 %v14072_v6, %v4946_v34 }
 0x57c   :  { %v6608_v0 = vmax.f32 %v5444_v27, 0.0  ;;  %v6808_v9 = vmax.f32 %v5944_v45, 0.0 }
 0x57d   :  { %v6209_v7 = vmax.f32 %v4447_v41, 0.0  ;;  %v6409_v48 = vmax.f32 %v4947_v40, 0.0  ;;  %9559 = vmatmul.msk.bf16.gmra.mxu0 %vm2834_vm2, %v10134_v39  ;;  %9659 = vmatmul.msk.bf16.gmra.mxu1 %vm2834_vm2, %v10234_v47 }
 0x57e   :  { %v14455_v55 = vmax.f32 %v13781_v50, %v6608_v0  ;;  %v14458_v18 = vmax.f32 %v13783_v56, %v6808_v9  ;;  %9759 = vmatmul.msk.bf16.gmra.mxu2 %vm2834_vm2, %v10334_v59  ;;  %9859 = vmatmul.msk.bf16.gmra.mxu3 %vm2834_vm2, %v10434_v19 }
 0x57f   :  { %v14463_v3 = vmax.f32 %v13785_v10, %v6209_v7  ;;  %v14466_v27 = vmax.f32 %v13787_v23, %v6409_v48 }
 0x581   :  { %v5446_v45 = vpop.f32.mrf.mxu2  ;;  %v5946_v39 = vpop.f32.mrf.mxu3 }
 0x582   :  { %v5447_v47 = vadd.f32 %v14072_v6, %v5446_v45  ;;  %v5947_v50 = vadd.f32 %v14072_v6, %v5946_v39  ;;  %v4448_v34 = vpop.f32.mrf.mxu0  ;;  %v4948_v41 = vpop.f32.mrf.mxu1 }
 0x583   :  { %v4449_v56 = vadd.f32 %v14072_v6, %v4448_v34  ;;  %v4949_v59 = vadd.f32 %v14072_v6, %v4948_v41  ;;  %v10435_v41 = vld [vmem:[%s15536_s0 + $0xc20] sm:$0xff] }
 0x584   :  { %v6609_v40 = vmax.f32 %v5447_v47, 0.0  ;;  %v6809_v19 = vmax.f32 %v5947_v50, 0.0  ;;  %v10135_v47 = vld [vmem:[%s15536_s0 + $0x2c0] sm:$0xff] }
 0x585   :  { %v6210_v0 = vmax.f32 %v4449_v56, 0.0  ;;  %v6410_v10 = vmax.f32 %v4949_v59, 0.0 }
 0x586   :  { %v14473_v9 = vmax.f32 %v13815_v33, %v6609_v40  ;;  %v14476_v23 = vmax.f32 %v13817_v2, %v6809_v19  ;;  %v10235_v33 = vld [vmem:[%s15536_s0 + $0x5e0] sm:$0xff] }
 0x587   :  { %v14479_v7 = vmax.f32 %v13821_v58, %v6210_v0  ;;  %v14482_v48 = vmax.f32 %v13823_v21, %v6410_v10  ;;  %v10335_v21 = vld [vmem:[%s15536_s0 + $0x900] sm:$0xff] }
 0x589   :  { %v5448_v45 = vpop.f32.mrf.mxu2  ;;  %v5948_v39 = vpop.f32.mrf.mxu3 }
 0x58a   :  { %v5449_v50 = vadd.f32 %v14072_v6, %v5448_v45  ;;  %v5949_v2 = vadd.f32 %v14072_v6, %v5948_v39  ;;  %v4451_v34 = vpop.f32.mrf.mxu0  ;;  %v4951_v58 = vpop.f32.mrf.mxu1 }
 0x58b   :  { %v4452_v56 = vadd.f32 %v14072_v6, %v4451_v34  ;;  %v4952_v59 = vadd.f32 %v14072_v6, %v4951_v58 }
 0x58c   :  { %v6610_v40 = vmax.f32 %v5449_v50, 0.0  ;;  %v6810_v19 = vmax.f32 %v5949_v2, 0.0  ;;  %v16036_v50 = vld [vmem:[#allocation40_spill] sm:$0xff] }
 0x58d   :  { %v6211_v0 = vmax.f32 %v4452_v56, 0.0  ;;  %v6411_v10 = vmax.f32 %v4952_v59, 0.0  ;;  %9560 = vmatmul.msk.bf16.gmra.mxu0 %vm2834_vm2, %v10135_v47  ;;  %9660 = vmatmul.msk.bf16.gmra.mxu1 %vm2834_vm2, %v10235_v33 }
 0x58e   :  { %v14503_v45 = vmax.f32 %v13837_v17, %v6610_v40  ;;  %v14506_v39 = vmax.f32 %v13839_v4, %v6810_v19  ;;  %9760 = vmatmul.msk.bf16.gmra.mxu2 %vm2834_vm2, %v10335_v21  ;;  %9860 = vmatmul.msk.bf16.gmra.mxu3 %vm2834_vm2, %v10435_v41 }
 0x58f   :  { %v14511_v34 = vmax.f32 %v13841_v57, %v6211_v0  ;;  %v14514_v2 = vmax.f32 %v16036_v50, %v6411_v10  ;;  %v16038_v0 = vld [vmem:[#allocation41_spill] sm:$0xff]  ;;  %v16040_v10 = vld [vmem:[#allocation42_spill] sm:$0xff] }
 0x590   :  { %16033 = vst [vmem:[#allocation32_spill] sm:$0xff] %v14503_v45 }
 0x591   :  { %16034 = vst [vmem:[#allocation33_spill] sm:$0xff] %v14506_v39  ;;  %v5451_v58 = vpop.f32.mrf.mxu2  ;;  %v5951_v47 = vpop.f32.mrf.mxu3 }
 0x592   :  { %16035 = vst [vmem:[#allocation34_spill] sm:$0xff] %v14511_v34  ;;  %v5452_v33 = vadd.f32 %v14072_v6, %v5451_v58  ;;  %v5952_v17 = vadd.f32 %v14072_v6, %v5951_v47  ;;  %v4453_v56 = vpop.f32.mrf.mxu0  ;;  %v4953_v59 = vpop.f32.mrf.mxu1  ;;  %v16044_v47 = vld [vmem:[#allocation44_spill] sm:$0xff] }
 0x593   :  { %16037 = vst [vmem:[#allocation35_spill] sm:$0xff] %v14514_v2  ;;  %v4454_v4 = vadd.f32 %v14072_v6, %v4453_v56  ;;  %v4954_v21 = vadd.f32 %v14072_v6, %v4953_v59  ;;  %v16042_v2 = vld [vmem:[#allocation43_spill] sm:$0xff] }
 0x594   :  { %v6611_v40 = vmax.f32 %v5452_v33, 0.0  ;;  %v6811_v41 = vmax.f32 %v5952_v17, 0.0  ;;  %v10136_v33 = vld [vmem:[%s15536_s0 + $0x2c8] sm:$0xff] }
 0x595   :  { %v6212_v19 = vmax.f32 %v4454_v4, 0.0  ;;  %v6412_v57 = vmax.f32 %v4954_v21, 0.0  ;;  %v10236_v17 = vld [vmem:[%s15536_s0 + $0x5e8] sm:$0xff] }
 0x596   :  { %v14521_v34 = vmax.f32 %v16038_v0, %v6611_v40  ;;  %v14524_v50 = vmax.f32 %v16040_v10, %v6811_v41  ;;  %v10336_v40 = vld [vmem:[%s15536_s0 + $0x908] sm:$0xff] }
 0x597   :  { %v14527_v58 = vmax.f32 %v16042_v2, %v6212_v19  ;;  %v14530_v39 = vmax.f32 %v16044_v47, %v6412_v57  ;;  %v10436_v41 = vld [vmem:[%s15536_s0 + $0xc28] sm:$0xff] }
 0x598   :  { %16039 = vst [vmem:[#allocation36_spill] sm:$0xff] %v14521_v34 }
 0x599   :  { %16041 = vst [vmem:[#allocation37_spill] sm:$0xff] %v14524_v50  ;;  %v5453_v45 = vpop.f32.mrf.mxu2  ;;  %v5953_v56 = vpop.f32.mrf.mxu3 }
 0x59a   :  { %16043 = vst [vmem:[#allocation38_spill] sm:$0xff] %v14527_v58  ;;  %v5454_v59 = vadd.f32 %v14072_v6, %v5453_v45  ;;  %v5954_v4 = vadd.f32 %v14072_v6, %v5953_v56  ;;  %v4456_v21 = vpop.f32.mrf.mxu0  ;;  %v4956_v2 = vpop.f32.mrf.mxu1  ;;  %v16046_v56 = vld [vmem:[#allocation45_spill] sm:$0xff]  ;;  %v16048_v58 = vld [vmem:[#allocation46_spill] sm:$0xff] }
 0x59b   :  { %16045 = vst [vmem:[#allocation39_spill] sm:$0xff] %v14530_v39  ;;  %v4457_v19 = vadd.f32 %v14072_v6, %v4456_v21  ;;  %v4957_v57 = vadd.f32 %v14072_v6, %v4956_v2  ;;  %v16050_v21 = vld [vmem:[#allocation47_spill] sm:$0xff] }
 0x59c   :  { %v6612_v0 = vmax.f32 %v5454_v59, 0.0  ;;  %v6812_v10 = vmax.f32 %v5954_v4, 0.0  ;;  %v16052_v59 = vld [vmem:[#allocation48_spill] sm:$0xff] }
 0x59d   :  { %v6213_v47 = vmax.f32 %v4457_v19, 0.0  ;;  %v6413_v45 = vmax.f32 %v4957_v57, 0.0  ;;  %9561 = vmatmul.msk.bf16.gmra.mxu0 %vm2834_vm2, %v10136_v33  ;;  %9661 = vmatmul.msk.bf16.gmra.mxu1 %vm2834_vm2, %v10236_v17 }
 0x59e   :  { %v14551_v39 = vmax.f32 %v16046_v56, %v6612_v0  ;;  %v14554_v50 = vmax.f32 %v16048_v58, %v6812_v10  ;;  %9761 = vmatmul.msk.bf16.gmra.mxu2 %vm2834_vm2, %v10336_v40  ;;  %9861 = vmatmul.msk.bf16.gmra.mxu3 %vm2834_vm2, %v10436_v41 }
 0x59f   :  { %v14559_v2 = vmax.f32 %v16050_v21, %v6213_v47  ;;  %v14562_v4 = vmax.f32 %v16052_v59, %v6413_v45  ;;  %v16054_v21 = vld [vmem:[#allocation49_spill] sm:$0xff]  ;;  %v16056_v45 = vld [vmem:[#allocation50_spill] sm:$0xff] }
 0x5a0   :  { %16047 = vst [vmem:[#allocation40_spill] sm:$0xff] %v14551_v39 }
 0x5a1   :  { %16049 = vst [vmem:[#allocation41_spill] sm:$0xff] %v14554_v50  ;;  %v5456_v19 = vpop.f32.mrf.mxu2  ;;  %v5956_v33 = vpop.f32.mrf.mxu3 }
 0x5a2   :  { %16051 = vst [vmem:[#allocation42_spill] sm:$0xff] %v14559_v2  ;;  %v5457_v17 = vadd.f32 %v14072_v6, %v5456_v19  ;;  %v5957_v57 = vadd.f32 %v14072_v6, %v5956_v33  ;;  %v4458_v0 = vpop.f32.mrf.mxu0  ;;  %v4958_v56 = vpop.f32.mrf.mxu1  ;;  %v16060_v33 = vld [vmem:[#allocation52_spill] sm:$0xff] }
 0x5a3   :  { %16053 = vst [vmem:[#allocation43_spill] sm:$0xff] %v14562_v4  ;;  %v4459_v58 = vadd.f32 %v14072_v6, %v4458_v0  ;;  %v4959_v40 = vadd.f32 %v14072_v6, %v4958_v56  ;;  %v16058_v4 = vld [vmem:[#allocation51_spill] sm:$0xff] }
 0x5a4   :  { %v6613_v10 = vmax.f32 %v5457_v17, 0.0  ;;  %v6813_v41 = vmax.f32 %v5957_v57, 0.0  ;;  %v10137_v17 = vld [vmem:[%s15536_s0 + $0x2d0] sm:$0xff] }
 0x5a5   :  { %v6214_v50 = vmax.f32 %v4459_v58, 0.0  ;;  %v6414_v47 = vmax.f32 %v4959_v40, 0.0  ;;  %v10237_v57 = vld [vmem:[%s15536_s0 + $0x5f0] sm:$0xff] }
 0x5a6   :  { %v14569_v2 = vmax.f32 %v16054_v21, %v6613_v10  ;;  %v14572_v59 = vmax.f32 %v16056_v45, %v6813_v41  ;;  %v10437_v10 = vld [vmem:[%s15536_s0 + $0xc30] sm:$0xff] }
 0x5a7   :  { %v14575_v19 = vmax.f32 %v16058_v4, %v6214_v50  ;;  %v14578_v39 = vmax.f32 %v16060_v33, %v6414_v47  ;;  %v10337_v4 = vld [vmem:[%s15536_s0 + $0x910] sm:$0xff] }
 0x5a8   :  { %16055 = vst [vmem:[#allocation44_spill] sm:$0xff] %v14569_v2 }
 0x5a9   :  { %16057 = vst [vmem:[#allocation45_spill] sm:$0xff] %v14572_v59  ;;  %v5458_v34 = vpop.f32.mrf.mxu2  ;;  %v5958_v0 = vpop.f32.mrf.mxu3 }
 0x5aa   :  { %16059 = vst [vmem:[#allocation46_spill] sm:$0xff] %v14575_v19  ;;  %v5459_v56 = vadd.f32 %v14072_v6, %v5458_v34  ;;  %v5959_v58 = vadd.f32 %v14072_v6, %v5958_v0  ;;  %v4461_v40 = vpop.f32.mrf.mxu0  ;;  %v4961_v50 = vpop.f32.mrf.mxu1  ;;  %v16062_v0 = vld [vmem:[#allocation53_spill] sm:$0xff]  ;;  %v16064_v19 = vld [vmem:[#allocation54_spill] sm:$0xff] }
 0x5ab   :  { %16061 = vst [vmem:[#allocation47_spill] sm:$0xff] %v14578_v39  ;;  %v4462_v41 = vadd.f32 %v14072_v6, %v4461_v40  ;;  %v4962_v47 = vadd.f32 %v14072_v6, %v4961_v50  ;;  %v16066_v40 = vld [vmem:[#allocation55_spill] sm:$0xff] }
 0x5ac   :  { %v6614_v21 = vmax.f32 %v5459_v56, 0.0  ;;  %v6814_v45 = vmax.f32 %v5959_v58, 0.0  ;;  %v16068_v56 = vld [vmem:[#allocation56_spill] sm:$0xff] }
 0x5ad   :  { %v6215_v33 = vmax.f32 %v4462_v41, 0.0  ;;  %v6415_v34 = vmax.f32 %v4962_v47, 0.0  ;;  %9562 = vmatmul.msk.bf16.gmra.mxu0 %vm2834_vm2, %v10137_v17  ;;  %9662 = vmatmul.msk.bf16.gmra.mxu1 %vm2834_vm2, %v10237_v57 }
 0x5ae   :  { %v14599_v39 = vmax.f32 %v16062_v0, %v6614_v21  ;;  %v14602_v59 = vmax.f32 %v16064_v19, %v6814_v45  ;;  %9762 = vmatmul.msk.bf16.gmra.mxu2 %vm2834_vm2, %v10337_v4  ;;  %9862 = vmatmul.msk.bf16.gmra.mxu3 %vm2834_vm2, %v10437_v10 }
 0x5af   :  { %v14607_v50 = vmax.f32 %v16066_v40, %v6215_v33  ;;  %v14610_v58 = vmax.f32 %v16068_v56, %v6415_v34  ;;  %v16070_v40 = vld [vmem:[#allocation57_spill] sm:$0xff]  ;;  %v16072_v34 = vld [vmem:[#allocation58_spill] sm:$0xff] }
 0x5b0   :  { %16063 = vst [vmem:[#allocation48_spill] sm:$0xff] %v14599_v39 }
 0x5b1   :  { %16065 = vst [vmem:[#allocation49_spill] sm:$0xff] %v14602_v59  ;;  %v5461_v41 = vpop.f32.mrf.mxu2  ;;  %v5961_v17 = vpop.f32.mrf.mxu3 }
 0x5b2   :  { %16067 = vst [vmem:[#allocation50_spill] sm:$0xff] %v14607_v50  ;;  %v5462_v57 = vadd.f32 %v14072_v6, %v5461_v41  ;;  %v5962_v47 = vadd.f32 %v14072_v6, %v5961_v17  ;;  %v4463_v21 = vpop.f32.mrf.mxu0  ;;  %v4963_v0 = vpop.f32.mrf.mxu1  ;;  %v16076_v17 = vld [vmem:[#allocation2_spill] sm:$0xff] }
 0x5b3   :  { %16069 = vst [vmem:[#allocation51_spill] sm:$0xff] %v14610_v58  ;;  %v4464_v19 = vadd.f32 %v14072_v6, %v4463_v21  ;;  %v4964_v4 = vadd.f32 %v14072_v6, %v4963_v0  ;;  %v16074_v58 = vld [vmem:[#allocation59_spill] sm:$0xff] }
 0x5b4   :  { %v6615_v45 = vmax.f32 %v5462_v57, 0.0  ;;  %v6815_v10 = vmax.f32 %v5962_v47, 0.0  ;;  %v10138_v57 = vld [vmem:[%s15536_s0 + $0x2d8] sm:$0xff] }
 0x5b5   :  { %v6216_v59 = vmax.f32 %v4464_v19, 0.0  ;;  %v6416_v33 = vmax.f32 %v4964_v4, 0.0  ;;  %v10238_v47 = vld [vmem:[%s15536_s0 + $0x5f8] sm:$0xff] }
 0x5b6   :  { %v14617_v50 = vmax.f32 %v16070_v40, %v6615_v45  ;;  %v14620_v56 = vmax.f32 %v16072_v34, %v6815_v10  ;;  %v10438_v45 = vld [vmem:[%s15536_s0 + $0xc38] sm:$0xff] }
 0x5b7   :  { %v14623_v41 = vmax.f32 %v16074_v58, %v6216_v59  ;;  %v14626_v39 = vmax.f32 %v16076_v17, %v6416_v33  ;;  %v10338_v58 = vld [vmem:[%s15536_s0 + $0x918] sm:$0xff] }
 0x5b8   :  { %16071 = vst [vmem:[#allocation52_spill] sm:$0xff] %v14617_v50 }
 0x5b9   :  { %16073 = vst [vmem:[#allocation53_spill] sm:$0xff] %v14620_v56  ;;  %v5463_v2 = vpop.f32.mrf.mxu2  ;;  %v5963_v21 = vpop.f32.mrf.mxu3 }
 0x5ba   :  { %16075 = vst [vmem:[#allocation54_spill] sm:$0xff] %v14623_v41  ;;  %v5464_v0 = vadd.f32 %v14072_v6, %v5463_v2  ;;  %v5964_v19 = vadd.f32 %v14072_v6, %v5963_v21  ;;  %v4466_v4 = vpop.f32.mrf.mxu0  ;;  %v4966_v59 = vpop.f32.mrf.mxu1  ;;  %v16078_v21 = vld [vmem:[#allocation60_spill] sm:$0xff]  ;;  %v16080_v41 = vld [vmem:[#allocation61_spill] sm:$0xff] }
 0x5bb   :  { %16077 = vst [vmem:[#allocation55_spill] sm:$0xff] %v14626_v39  ;;  %v4467_v10 = vadd.f32 %v14072_v6, %v4466_v4  ;;  %v4967_v33 = vadd.f32 %v14072_v6, %v4966_v59  ;;  %v16082_v4 = vld [vmem:[#allocation62_spill] sm:$0xff] }
 0x5bc   :  { %v6616_v40 = vmax.f32 %v5464_v0, 0.0  ;;  %v6816_v34 = vmax.f32 %v5964_v19, 0.0  ;;  %v16084_v0 = vld [vmem:[#allocation3_spill] sm:$0xff] }
 0x5bd   :  { %v6217_v17 = vmax.f32 %v4467_v10, 0.0  ;;  %v6417_v2 = vmax.f32 %v4967_v33, 0.0  ;;  %9563 = vmatmul.msk.bf16.gmra.mxu0 %vm2834_vm2, %v10138_v57  ;;  %9663 = vmatmul.msk.bf16.gmra.mxu1 %vm2834_vm2, %v10238_v47  ;;  %v14663_v47 = vld [vmem:[%s15535_s2] ss:$0 sm:$0xff] }
 0x5be   :  { %v14647_v39 = vmax.f32 %v16078_v21, %v6616_v40  ;;  %v14650_v56 = vmax.f32 %v16080_v41, %v6816_v34  ;;  %9763 = vmatmul.msk.bf16.gmra.mxu2 %vm2834_vm2, %v10338_v58  ;;  %9863 = vmatmul.msk.bf16.gmra.mxu3 %vm2834_vm2, %v10438_v45 }
 0x5bf   :  { %v14655_v6 = vmax.f32 %v16082_v4, %v6217_v17  ;;  %v14658_v19 = vmax.f32 %v16084_v0, %v6417_v2  ;;  %v16086_v4 = vld [vmem:[#allocation4_spill] sm:$0xff] }
 0x5c0   :  { %16079 = vst [vmem:[#allocation56_spill] sm:$0xff] %v14647_v39 }
 0x5c1   :  { %16081 = vst [vmem:[#allocation57_spill] sm:$0xff] %v14650_v56  ;;  %v5466_v59 = vpop.f32.mrf.mxu2  ;;  %v5966_v57 = vpop.f32.mrf.mxu3  ;;  %v16090_v56 = vld [vmem:[#allocation6_spill] sm:$0xff] }
 0x5c2   :  { %16083 = vst [vmem:[#allocation58_spill] sm:$0xff] %v14655_v6  ;;  %v5467_v41 = vadd.f32 %v14663_v47, %v5466_v59  ;;  %v5967_v10 = vadd.f32 %v14663_v47, %v5966_v57  ;;  %v4468_v58 = vpop.f32.mrf.mxu0  ;;  %v4968_v33 = vpop.f32.mrf.mxu1  ;;  %v16092_v57 = vld [vmem:[#allocation7_spill] sm:$0xff] }
 0x5c3   :  { %16085 = vst [vmem:[#allocation59_spill] sm:$0xff] %v14658_v19  ;;  %v4469_v45 = vadd.f32 %v14663_v47, %v4468_v58  ;;  %v4969_v40 = vadd.f32 %v14663_v47, %v4968_v33  ;;  %v16088_v19 = vld [vmem:[#allocation5_spill] sm:$0xff] }
 0x5c4   :  { %v6617_v34 = vmax.f32 %v5467_v41, 0.0  ;;  %v6817_v17 = vmax.f32 %v5967_v10, 0.0  ;;  %v10139_v41 = vld [vmem:[%s15536_s0 + $0x2e0] sm:$0xff] }
 0x5c5   :  { %v6218_v2 = vmax.f32 %v4469_v45, 0.0  ;;  %v6418_v21 = vmax.f32 %v4969_v40, 0.0  ;;  %v10239_v10 = vld [vmem:[%s15536_s0 + $0x600] sm:$0xff] }
 0x5c6   :  { %v14670_v0 = vmax.f32 %v16086_v4, %v6617_v34  ;;  %v14673_v6 = vmax.f32 %v16088_v19, %v6817_v17  ;;  %v10339_v40 = vld [vmem:[%s15536_s0 + $0x920] sm:$0xff] }
 0x5c7   :  { %v14676_v59 = vmax.f32 %v16090_v56, %v6218_v2  ;;  %v14679_v39 = vmax.f32 %v16092_v57, %v6418_v21  ;;  %v10439_v34 = vld [vmem:[%s15536_s0 + $0xc40] sm:$0xff] }
 0x5c8   :  { %16087 = vst [vmem:[#allocation2_spill] sm:$0xff] %v14670_v0 }
 0x5c9   :  { %16089 = vst [vmem:[#allocation60_spill] sm:$0xff] %v14673_v6  ;;  %v5468_v50 = vpop.f32.mrf.mxu2  ;;  %v5968_v58 = vpop.f32.mrf.mxu3 }
 0x5ca   :  { %16091 = vst [vmem:[#allocation61_spill] sm:$0xff] %v14676_v59  ;;  %v5469_v33 = vadd.f32 %v14663_v47, %v5468_v50  ;;  %v5969_v19 = vadd.f32 %v14663_v47, %v5968_v58  ;;  %v4471_v45 = vpop.f32.mrf.mxu0  ;;  %v4971_v56 = vpop.f32.mrf.mxu1  ;;  %v16094_v58 = vld [vmem:[#allocation8_spill] sm:$0xff]  ;;  %v16096_v59 = vld [vmem:[#allocation9_spill] sm:$0xff] }
 0x5cb   :  { %16093 = vst [vmem:[#allocation62_spill] sm:$0xff] %v14679_v39  ;;  %v4472_v17 = vadd.f32 %v14663_v47, %v4471_v45  ;;  %v4972_v2 = vadd.f32 %v14663_v47, %v4971_v56  ;;  %v16098_v45 = vld [vmem:[#allocation10_spill] sm:$0xff] }
 0x5cc   :  { %v6618_v21 = vmax.f32 %v5469_v33, 0.0  ;;  %v6818_v4 = vmax.f32 %v5969_v19, 0.0  ;;  %v16100_v33 = vld [vmem:[#allocation11_spill] sm:$0xff] }
 0x5cd   :  { %v6219_v57 = vmax.f32 %v4472_v17, 0.0  ;;  %v6419_v50 = vmax.f32 %v4972_v2, 0.0  ;;  %9564 = vmatmul.msk.bf16.gmra.mxu0 %vm2834_vm2, %v10139_v41  ;;  %9664 = vmatmul.msk.bf16.gmra.mxu1 %vm2834_vm2, %v10239_v10 }
 0x5ce   :  { %v14700_v39 = vmax.f32 %v16094_v58, %v6618_v21  ;;  %v14703_v6 = vmax.f32 %v16096_v59, %v6818_v4  ;;  %9764 = vmatmul.msk.bf16.gmra.mxu2 %vm2834_vm2, %v10339_v40  ;;  %9864 = vmatmul.msk.bf16.gmra.mxu3 %vm2834_vm2, %v10439_v34 }
 0x5cf   :  { %v14708_v56 = vmax.f32 %v16098_v45, %v6219_v57  ;;  %v14711_v19 = vmax.f32 %v16100_v33, %v6419_v50  ;;  %v16102_v45 = vld [vmem:[#allocation12_spill] sm:$0xff]  ;;  %v16104_v50 = vld [vmem:[#allocation13_spill] sm:$0xff] }
 0x5d0   :  { %16095 = vst [vmem:[#allocation3_spill] sm:$0xff] %v14700_v39 }
 0x5d1   :  { %16097 = vst [vmem:[#allocation4_spill] sm:$0xff] %v14703_v6  ;;  %v5471_v17 = vpop.f32.mrf.mxu2  ;;  %v5971_v41 = vpop.f32.mrf.mxu3 }
 0x5d2   :  { %16099 = vst [vmem:[#allocation5_spill] sm:$0xff] %v14708_v56  ;;  %v5472_v10 = vadd.f32 %v14663_v47, %v5471_v17  ;;  %v5972_v2 = vadd.f32 %v14663_v47, %v5971_v41  ;;  %v4473_v21 = vpop.f32.mrf.mxu0  ;;  %v4973_v58 = vpop.f32.mrf.mxu1  ;;  %v16108_v41 = vld [vmem:[#allocation15_spill] sm:$0xff] }
 0x5d3   :  { %16101 = vst [vmem:[#allocation6_spill] sm:$0xff] %v14711_v19  ;;  %v4474_v59 = vadd.f32 %v14663_v47, %v4473_v21  ;;  %v4974_v40 = vadd.f32 %v14663_v47, %v4973_v58  ;;  %v16106_v19 = vld [vmem:[#allocation14_spill] sm:$0xff] }
 0x5d4   :  { %v6619_v4 = vmax.f32 %v5472_v10, 0.0  ;;  %v6819_v34 = vmax.f32 %v5972_v2, 0.0  ;;  %v10140_v10 = vld [vmem:[%s15536_s0 + $0x2e8] sm:$0xff] }
 0x5d5   :  { %v6220_v6 = vmax.f32 %v4474_v59, 0.0  ;;  %v6420_v57 = vmax.f32 %v4974_v40, 0.0  ;;  %v10240_v2 = vld [vmem:[%s15536_s0 + $0x608] sm:$0xff] }
 0x5d6   :  { %v14718_v56 = vmax.f32 %v16102_v45, %v6619_v4  ;;  %v14721_v33 = vmax.f32 %v16104_v50, %v6819_v34  ;;  %v10440_v4 = vld [vmem:[%s15536_s0 + $0xc48] sm:$0xff] }
 0x5d7   :  { %v14724_v17 = vmax.f32 %v16106_v19, %v6220_v6  ;;  %v14727_v39 = vmax.f32 %v16108_v41, %v6420_v57  ;;  %v10340_v19 = vld [vmem:[%s15536_s0 + $0x928] sm:$0xff] }
 0x5d8   :  { %16103 = vst [vmem:[#allocation7_spill] sm:$0xff] %v14718_v56 }
 0x5d9   :  { %16105 = vst [vmem:[#allocation8_spill] sm:$0xff] %v14721_v33  ;;  %v5473_v0 = vpop.f32.mrf.mxu2  ;;  %v5973_v21 = vpop.f32.mrf.mxu3 }
 0x5da   :  { %16107 = vst [vmem:[#allocation9_spill] sm:$0xff] %v14724_v17  ;;  %v5474_v58 = vadd.f32 %v14663_v47, %v5473_v0  ;;  %v5974_v59 = vadd.f32 %v14663_v47, %v5973_v21  ;;  %v4476_v40 = vpop.f32.mrf.mxu0  ;;  %v4976_v6 = vpop.f32.mrf.mxu1  ;;  %v16110_v21 = vld [vmem:[#allocation16_spill] sm:$0xff]  ;;  %v16112_v17 = vld [vmem:[#allocation17_spill] sm:$0xff] }
 0x5db   :  { %16109 = vst [vmem:[#allocation10_spill] sm:$0xff] %v14727_v39  ;;  %v4477_v34 = vadd.f32 %v14663_v47, %v4476_v40  ;;  %v4977_v57 = vadd.f32 %v14663_v47, %v4976_v6  ;;  %v16114_v40 = vld [vmem:[#allocation18_spill] sm:$0xff] }
 0x5dc   :  { %v6620_v45 = vmax.f32 %v5474_v58, 0.0  ;;  %v6820_v50 = vmax.f32 %v5974_v59, 0.0  ;;  %v16116_v58 = vld [vmem:[#allocation19_spill] sm:$0xff] }
 0x5dd   :  { %v6221_v41 = vmax.f32 %v4477_v34, 0.0  ;;  %v6421_v0 = vmax.f32 %v4977_v57, 0.0  ;;  %9565 = vmatmul.msk.bf16.gmra.mxu0 %vm2834_vm2, %v10140_v10  ;;  %9665 = vmatmul.msk.bf16.gmra.mxu1 %vm2834_vm2, %v10240_v2 }
 0x5de   :  { %v14748_v39 = vmax.f32 %v16110_v21, %v6620_v45  ;;  %v14751_v33 = vmax.f32 %v16112_v17, %v6820_v50  ;;  %9765 = vmatmul.msk.bf16.gmra.mxu2 %vm2834_vm2, %v10340_v19  ;;  %9865 = vmatmul.msk.bf16.gmra.mxu3 %vm2834_vm2, %v10440_v4 }
 0x5df   :  { %v14756_v6 = vmax.f32 %v16114_v40, %v6221_v41  ;;  %v14759_v59 = vmax.f32 %v16116_v58, %v6421_v0  ;;  %v16118_v40 = vld [vmem:[#allocation20_spill] sm:$0xff]  ;;  %v16119_v0 = vld [vmem:[#allocation21_spill] sm:$0xff] }
 0x5e0   :  { %16111 = vst [vmem:[#allocation11_spill] sm:$0xff] %v14748_v39 }
 0x5e1   :  { %16113 = vst [vmem:[#allocation12_spill] sm:$0xff] %v14751_v33  ;;  %v5476_v34 = vpop.f32.mrf.mxu2  ;;  %v5976_v10 = vpop.f32.mrf.mxu3 }
 0x5e2   :  { %16115 = vst [vmem:[#allocation13_spill] sm:$0xff] %v14756_v6  ;;  %v5477_v2 = vadd.f32 %v14663_v47, %v5476_v34  ;;  %v5977_v57 = vadd.f32 %v14663_v47, %v5976_v10  ;;  %v4478_v45 = vpop.f32.mrf.mxu0  ;;  %v4978_v21 = vpop.f32.mrf.mxu1  ;;  %v16123_v10 = vld [vmem:[#allocation23_spill] sm:$0xff] }
 0x5e3   :  { %16117 = vst [vmem:[#allocation14_spill] sm:$0xff] %v14759_v59  ;;  %v4479_v17 = vadd.f32 %v14663_v47, %v4478_v45  ;;  %v4979_v19 = vadd.f32 %v14663_v47, %v4978_v21  ;;  %v16121_v59 = vld [vmem:[#allocation22_spill] sm:$0xff] }
 0x5e4   :  { %v6621_v50 = vmax.f32 %v5477_v2, 0.0  ;;  %v6821_v4 = vmax.f32 %v5977_v57, 0.0  ;;  %v10141_v2 = vld [vmem:[%s15536_s0 + $0x2f0] sm:$0xff] }
 0x5e5   :  { %v6222_v33 = vmax.f32 %v4479_v17, 0.0  ;;  %v6422_v41 = vmax.f32 %v4979_v19, 0.0  ;;  %v10241_v57 = vld [vmem:[%s15536_s0 + $0x610] sm:$0xff] }
 0x5e6   :  { %v14766_v6 = vmax.f32 %v16118_v40, %v6621_v50  ;;  %v14769_v58 = vmax.f32 %v16119_v0, %v6821_v4  ;;  %v10441_v50 = vld [vmem:[%s15536_s0 + $0xc50] sm:$0xff] }
 0x5e7   :  { %v14772_v34 = vmax.f32 %v16121_v59, %v6222_v33  ;;  %v14775_v39 = vmax.f32 %v16123_v10, %v6422_v41  ;;  %v10341_v59 = vld [vmem:[%s15536_s0 + $0x930] sm:$0xff] }
 0x5e8   :  { %16120 = vst [vmem:[#allocation15_spill] sm:$0xff] %v14769_v58 }
 0x5e9   :  { %16122 = vst [vmem:[#allocation16_spill] sm:$0xff] %v14772_v34  ;;  %v5478_v56 = vpop.f32.mrf.mxu2  ;;  %v5978_v45 = vpop.f32.mrf.mxu3  ;;  %v16127_v34 = vld [vmem:[#allocation25_spill] sm:$0xff] }
 0x5ea   :  { %16124 = vst [vmem:[#allocation17_spill] sm:$0xff] %v14775_v39  ;;  %v5479_v21 = vadd.f32 %v14663_v47, %v5478_v56  ;;  %v5979_v17 = vadd.f32 %v14663_v47, %v5978_v45  ;;  %v4481_v19 = vpop.f32.mrf.mxu0  ;;  %v4981_v33 = vpop.f32.mrf.mxu1  ;;  %v16125_v45 = vld [vmem:[#allocation24_spill] sm:$0xff] }
 0x5eb   :  { %v4482_v4 = vadd.f32 %v14663_v47, %v4481_v19  ;;  %v4982_v41 = vadd.f32 %v14663_v47, %v4981_v33  ;;  %v16129_v19 = vld [vmem:[#allocation26_spill] sm:$0xff] }
 0x5ec   :  { %v6622_v40 = vmax.f32 %v5479_v21, 0.0  ;;  %v6822_v0 = vmax.f32 %v5979_v17, 0.0  ;;  %v16131_v21 = vld [vmem:[#allocation27_spill] sm:$0xff] }
 0x5ed   :  { %v6223_v10 = vmax.f32 %v4482_v4, 0.0  ;;  %v6423_v56 = vmax.f32 %v4982_v41, 0.0  ;;  %9566 = vmatmul.msk.bf16.gmra.mxu0 %vm2834_vm2, %v10141_v2  ;;  %9666 = vmatmul.msk.bf16.gmra.mxu1 %vm2834_vm2, %v10241_v57 }
 0x5ee   :  { %v14796_v39 = vmax.f32 %v16125_v45, %v6622_v40  ;;  %v14799_v58 = vmax.f32 %v16127_v34, %v6822_v0  ;;  %9766 = vmatmul.msk.bf16.gmra.mxu2 %vm2834_vm2, %v10341_v59  ;;  %9866 = vmatmul.msk.bf16.gmra.mxu3 %vm2834_vm2, %v10441_v50 }
 0x5ef   :  { %v14804_v33 = vmax.f32 %v16129_v19, %v6223_v10  ;;  %v14807_v17 = vmax.f32 %v16131_v21, %v6423_v56  ;;  %v16133_v56 = vld [vmem:[#allocation28_spill] sm:$0xff] }
 0x5f0   :  { %16126 = vst [vmem:[#allocation18_spill] sm:$0xff] %v14796_v39 }
 0x5f1   :  { %16128 = vst [vmem:[#allocation19_spill] sm:$0xff] %v14799_v58  ;;  %v5481_v4 = vpop.f32.mrf.mxu2  ;;  %v5981_v2 = vpop.f32.mrf.mxu3 }
 0x5f2   :  { %16130 = vst [vmem:[#allocation20_spill] sm:$0xff] %v14804_v33  ;;  %v5482_v57 = vadd.f32 %v14663_v47, %v5481_v4  ;;  %v5982_v41 = vadd.f32 %v14663_v47, %v5981_v2  ;;  %v4483_v40 = vpop.f32.mrf.mxu0  ;;  %v4983_v45 = vpop.f32.mrf.mxu1  ;;  %v16135_v2 = vld [vmem:[#allocation30_spill] sm:$0xff] }
 0x5f3   :  { %16132 = vst [vmem:[#allocation21_spill] sm:$0xff] %v14807_v17  ;;  %v4484_v34 = vadd.f32 %v14663_v47, %v4483_v40  ;;  %v4984_v59 = vadd.f32 %v14663_v47, %v4983_v45  ;;  %v16134_v17 = vld [vmem:[#allocation29_spill] sm:$0xff] }
 0x5f4   :  { %v6623_v0 = vmax.f32 %v5482_v57, 0.0  ;;  %v6823_v50 = vmax.f32 %v5982_v41, 0.0  ;;  %v10142_v57 = vld [vmem:[%s15536_s0 + $0x2f8] sm:$0xff] }
 0x5f5   :  { %v6224_v58 = vmax.f32 %v4484_v34, 0.0  ;;  %v6424_v10 = vmax.f32 %v4984_v59, 0.0  ;;  %v10442_v59 = vld [vmem:[%s15536_s0 + $0xc58] sm:$0xff] }
 0x5f6   :  { %v14814_v19 = vmax.f32 %v14212_v30, %v6623_v0  ;;  %v14817_v21 = vmax.f32 %v16133_v56, %v6823_v50  ;;  %v10242_v30 = vld [vmem:[%s15536_s0 + $0x618] sm:$0xff] }
 0x5f7   :  { %v14820_v4 = vmax.f32 %v16134_v17, %v6224_v58  ;;  %v14823_v33 = vmax.f32 %v16135_v2, %v6424_v10  ;;  %v10342_v17 = vld [vmem:[%s15536_s0 + $0x938] sm:$0xff] }
 0x5f9   :  { %16136 = vst [vmem:[#allocation22_spill] sm:$0xff] %v14823_v33  ;;  %v5483_v39 = vpop.f32.mrf.mxu2  ;;  %v5983_v40 = vpop.f32.mrf.mxu3 }
 0x5fa   :  { %v5484_v41 = vadd.f32 %v14663_v47, %v5483_v39  ;;  %v5984_v45 = vadd.f32 %v14663_v47, %v5983_v40  ;;  %v4486_v34 = vpop.f32.mrf.mxu0  ;;  %v4986_v58 = vpop.f32.mrf.mxu1 }
 0x5fb   :  { %v4487_v0 = vadd.f32 %v14663_v47, %v4486_v34  ;;  %v4987_v50 = vadd.f32 %v14663_v47, %v4986_v58 }
 0x5fc   :  { %v6624_v10 = vmax.f32 %v5484_v41, 0.0  ;;  %v6824_v56 = vmax.f32 %v5984_v45, 0.0  ;;  %v16138_v41 = vld [vmem:[#allocation31_spill] sm:$0xff] }
 0x5fd   :  { %v6225_v2 = vmax.f32 %v4487_v0, 0.0  ;;  %v6425_v39 = vmax.f32 %v4987_v50, 0.0  ;;  %9567 = vmatmul.msk.bf16.gmra.mxu0 %vm2834_vm2, %v10142_v57  ;;  %9667 = vmatmul.msk.bf16.gmra.mxu1 %vm2834_vm2, %v10242_v30 }
 0x5fe   :  { %v14844_v40 = vmax.f32 %v14234_v28, %v6624_v10  ;;  %v14847_v33 = vmax.f32 %v14236_v22, %v6824_v56  ;;  %9767 = vmatmul.msk.bf16.gmra.mxu2 %vm2834_vm2, %v10342_v17  ;;  %9867 = vmatmul.msk.bf16.gmra.mxu3 %vm2834_vm2, %v10442_v59 }
 0x5ff   :  { %v14852_v34 = vmax.f32 %v14238_v16, %v6225_v2  ;;  %v14855_v45 = vmax.f32 %v16138_v41, %v6425_v39 }
 0x601   :  { %16137 = vst [vmem:[#allocation23_spill] sm:$0xff] %v14852_v34  ;;  %v5486_v58 = vpop.f32.mrf.mxu2  ;;  %v5986_v57 = vpop.f32.mrf.mxu3 }
 0x602   :  { %16139 = vst [vmem:[#allocation24_spill] sm:$0xff] %v14855_v45  ;;  %v5487_v30 = vadd.f32 %v14663_v47, %v5486_v58  ;;  %v5987_v28 = vadd.f32 %v14663_v47, %v5986_v57  ;;  %v4488_v0 = vpop.f32.mrf.mxu0  ;;  %v4988_v50 = vpop.f32.mrf.mxu1 }
 0x603   :  { %v4489_v22 = vadd.f32 %v14663_v47, %v4488_v0  ;;  %v4989_v17 = vadd.f32 %v14663_v47, %v4988_v50 }
 0x604   :  { %v6625_v10 = vmax.f32 %v5487_v30, 0.0  ;;  %v6825_v59 = vmax.f32 %v5987_v28, 0.0  ;;  %v10143_v30 = vld [vmem:[%s15536_s0 + $0x300] sm:$0xff] }
 0x605   :  { %v6226_v56 = vmax.f32 %v4489_v22, 0.0  ;;  %v6426_v16 = vmax.f32 %v4989_v17, 0.0  ;;  %v10443_v22 = vld [vmem:[%s15536_s0 + $0xc60] sm:$0xff] }
 0x606   :  { %v14862_v2 = vmax.f32 %v14264_v61, %v6625_v10  ;;  %v14865_v39 = vmax.f32 %v14266_v46, %v6825_v59  ;;  %v10243_v61 = vld [vmem:[%s15536_s0 + $0x620] sm:$0xff] }
 0x607   :  { %v7028_v41 = vmax.f32 %v14271_v13, %v6226_v56  ;;  %v7280_v58 = vmax.f32 %v14274_v11, %v6426_v16  ;;  %v10343_v11 = vld [vmem:[%s15536_s0 + $0x940] sm:$0xff] }
 0x609   :  { %v7053_v57 = vpack.c.bf16 %v7028_v41, %v7028_v41  ;;  %v7305_v45 = vpack.c.bf16 %v7280_v58, %v7280_v58  ;;  %v5488_v34 = vpop.f32.mrf.mxu2  ;;  %v5988_v0 = vpop.f32.mrf.mxu3 }
 0x60a   :  { %v5489_v28 = vadd.f32 %v14663_v47, %v5488_v34  ;;  %v5989_v46 = vadd.f32 %v14663_v47, %v5988_v0  ;;  %v4491_v50 = vpop.f32.mrf.mxu0  ;;  %v4991_v13 = vpop.f32.mrf.mxu1 }
 0x60b   :  { %9872 = vst.msk [vmem:[%s15537_s3 + $0x64] sm:$0xf] %vm6951_vm3, %v7053_v57  ;;  %v4492_v17 = vadd.f32 %v14663_v47, %v4491_v50  ;;  %v4992_v34 = vadd.f32 %v14663_v47, %v4991_v13 }
 0x60c   :  { %9922 = vst.msk [vmem:[%s15537_s3 + $0x12c] sm:$0xf] %vm6951_vm3, %v7305_v45  ;;  %v6626_v10 = vmax.f32 %v5489_v28, 0.0  ;;  %v6826_v59 = vmax.f32 %v5989_v46, 0.0 }
 0x60d   :  { %v6227_v56 = vmax.f32 %v4492_v17, 0.0  ;;  %v6427_v16 = vmax.f32 %v4992_v34, 0.0  ;;  %9568 = vmatmul.msk.bf16.gmra.mxu0 %vm2834_vm2, %v10143_v30  ;;  %9668 = vmatmul.msk.bf16.gmra.mxu1 %vm2834_vm2, %v10243_v61 }
 0x60e   :  { %v7532_v41 = vmax.f32 %v14281_v37, %v6626_v10  ;;  %v7784_v58 = vmax.f32 %v14284_v1, %v6826_v59  ;;  %9768 = vmatmul.msk.bf16.gmra.mxu2 %vm2834_vm2, %v10343_v11  ;;  %9868 = vmatmul.msk.bf16.gmra.mxu3 %vm2834_vm2, %v10443_v22 }
 0x60f   :  { %v7029_v57 = vmax.f32 %v14287_v29, %v6227_v56  ;;  %v7281_v45 = vmax.f32 %v14290_v15, %v6427_v16 }
 0x610   :  { %v7557_v0 = vpack.c.bf16 %v7532_v41, %v7532_v41  ;;  %v7809_v28 = vpack.c.bf16 %v7784_v58, %v7784_v58 }
 0x611   :  { %v7054_v46 = vpack.c.bf16 %v7029_v57, %v7029_v57  ;;  %v7306_v50 = vpack.c.bf16 %v7281_v45, %v7281_v45  ;;  %v5491_v13 = vpop.f32.mrf.mxu2  ;;  %v5991_v30 = vpop.f32.mrf.mxu3 }
 0x612   :  { %9972 = vst.msk [vmem:[%s15537_s3 + $0x1f4] sm:$0xf] %vm6951_vm3, %v7557_v0  ;;  %v5492_v37 = vadd.f32 %v14663_v47, %v5491_v13  ;;  %v5992_v1 = vadd.f32 %v14663_v47, %v5991_v30  ;;  %v4493_v61 = vpop.f32.mrf.mxu0  ;;  %v4993_v11 = vpop.f32.mrf.mxu1  ;;  %v10344_v30 = vld [vmem:[%s15536_s0 + $0x948] sm:$0xff] }
 0x613   :  { %10022 = vst.msk [vmem:[%s15537_s3 + $0x2bc] sm:$0xf] %vm6951_vm3, %v7809_v28  ;;  %v4494_v29 = vadd.f32 %v14663_v47, %v4493_v61  ;;  %v4994_v15 = vadd.f32 %v14663_v47, %v4993_v11 }
 0x614   :  { %9873 = vst.msk [vmem:[%s15537_s3 + $0x68] sm:$0xf] %vm6951_vm3, %v7054_v46  ;;  %v6627_v22 = vmax.f32 %v5492_v37, 0.0  ;;  %v6827_v17 = vmax.f32 %v5992_v1, 0.0  ;;  %v10444_v37 = vld [vmem:[%s15536_s0 + $0xc68] sm:$0xff] }
 0x615   :  { %9923 = vst.msk [vmem:[%s15537_s3 + $0x130] sm:$0xf] %vm6951_vm3, %v7306_v50  ;;  %v6228_v34 = vmax.f32 %v4494_v29, 0.0  ;;  %v6428_v10 = vmax.f32 %v4994_v15, 0.0  ;;  %v10144_v50 = vld [vmem:[%s15536_s0 + $0x308] sm:$0xff] }
 0x616   :  { %v7533_v59 = vmax.f32 %v14311_v31, %v6627_v22  ;;  %v7785_v56 = vmax.f32 %v14314_v36, %v6827_v17  ;;  %v10244_v31 = vld [vmem:[%s15536_s0 + $0x628] sm:$0xff] }
 0x617   :  { %v7030_v16 = vmax.f32 %v14319_v5, %v6228_v34  ;;  %v7282_v41 = vmax.f32 %v14322_v54, %v6428_v10 }
 0x618   :  { %v7558_v58 = vpack.c.bf16 %v7533_v59, %v7533_v59  ;;  %v7810_v57 = vpack.c.bf16 %v7785_v56, %v7785_v56 }
 0x619   :  { %v7055_v45 = vpack.c.bf16 %v7030_v16, %v7030_v16  ;;  %v7307_v0 = vpack.c.bf16 %v7282_v41, %v7282_v41  ;;  %v5493_v28 = vpop.f32.mrf.mxu2  ;;  %v5993_v46 = vpop.f32.mrf.mxu3 }
 0x61a   :  { %9973 = vst.msk [vmem:[%s15537_s3 + $0x1f8] sm:$0xf] %vm6951_vm3, %v7558_v58  ;;  %v5494_v36 = vadd.f32 %v14663_v47, %v5493_v28  ;;  %v5994_v5 = vadd.f32 %v14663_v47, %v5993_v46  ;;  %v4496_v54 = vpop.f32.mrf.mxu0  ;;  %v4996_v13 = vpop.f32.mrf.mxu1 }
 0x61b   :  { %10023 = vst.msk [vmem:[%s15537_s3 + $0x2c0] sm:$0xf] %vm6951_vm3, %v7810_v57  ;;  %v4497_v1 = vadd.f32 %v14663_v47, %v4496_v54  ;;  %v4997_v61 = vadd.f32 %v14663_v47, %v4996_v13 }
 0x61c   :  { %9874 = vst.msk [vmem:[%s15537_s3 + $0x6c] sm:$0xf] %vm6951_vm3, %v7055_v45  ;;  %v6628_v11 = vmax.f32 %v5494_v36, 0.0  ;;  %v6828_v29 = vmax.f32 %v5994_v5, 0.0 }
 0x61d   :  { %9924 = vst.msk [vmem:[%s15537_s3 + $0x134] sm:$0xf] %vm6951_vm3, %v7307_v0  ;;  %v6229_v15 = vmax.f32 %v4497_v1, 0.0  ;;  %v6429_v22 = vmax.f32 %v4997_v61, 0.0  ;;  %9569 = vmatmul.msk.bf16.gmra.mxu0 %vm2834_vm2, %v10144_v50  ;;  %9669 = vmatmul.msk.bf16.gmra.mxu1 %vm2834_vm2, %v10244_v31 }
 0x61e   :  { %v7534_v17 = vmax.f32 %v14329_v35, %v6628_v11  ;;  %v7786_v34 = vmax.f32 %v14332_v52, %v6828_v29  ;;  %9769 = vmatmul.msk.bf16.gmra.mxu2 %vm2834_vm2, %v10344_v30  ;;  %9869 = vmatmul.msk.bf16.gmra.mxu3 %vm2834_vm2, %v10444_v37 }
 0x61f   :  { %v7031_v10 = vmax.f32 %v14335_v43, %v6229_v15  ;;  %v7283_v59 = vmax.f32 %v14338_v49, %v6429_v22  ;;  %v10145_v22 = vld [vmem:[%s15536_s0 + $0x310] sm:$0xff] }
 0x620   :  { %v7559_v56 = vpack.c.bf16 %v7534_v17, %v7534_v17  ;;  %v7811_v16 = vpack.c.bf16 %v7786_v34, %v7786_v34  ;;  %v10345_v34 = vld [vmem:[%s15536_s0 + $0x950] sm:$0xff] }
 0x621   :  { %v7056_v41 = vpack.c.bf16 %v7031_v10, %v7031_v10  ;;  %v7308_v58 = vpack.c.bf16 %v7283_v59, %v7283_v59  ;;  %v5496_v57 = vpop.f32.mrf.mxu2  ;;  %v5996_v45 = vpop.f32.mrf.mxu3  ;;  %v10445_v10 = vld [vmem:[%s15536_s0 + $0xc70] sm:$0xff] }
 0x622   :  { %9974 = vst.msk [vmem:[%s15537_s3 + $0x1fc] sm:$0xf] %vm6951_vm3, %v7559_v56  ;;  %v5497_v35 = vadd.f32 %v14663_v47, %v5496_v57  ;;  %v5997_v52 = vadd.f32 %v14663_v47, %v5996_v45  ;;  %v4498_v0 = vpop.f32.mrf.mxu0  ;;  %v4998_v28 = vpop.f32.mrf.mxu1 }
 0x623   :  { %10024 = vst.msk [vmem:[%s15537_s3 + $0x2c4] sm:$0xf] %vm6951_vm3, %v7811_v16  ;;  %v4499_v43 = vadd.f32 %v14663_v47, %v4498_v0  ;;  %v4999_v49 = vadd.f32 %v14663_v47, %v4998_v28 }
 0x624   :  { %9875 = vst.msk [vmem:[%s15537_s3 + $0x70] sm:$0xf] %vm6951_vm3, %v7056_v41  ;;  %v6629_v46 = vmax.f32 %v5497_v35, 0.0  ;;  %v6829_v50 = vmax.f32 %v5997_v52, 0.0 }
 0x625   :  { %9925 = vst.msk [vmem:[%s15537_s3 + $0x138] sm:$0xf] %vm6951_vm3, %v7308_v58  ;;  %v6230_v31 = vmax.f32 %v4499_v43, 0.0  ;;  %v6430_v36 = vmax.f32 %v4999_v49, 0.0 }
 0x626   :  { %v7535_v5 = vmax.f32 %v14359_v62, %v6629_v46  ;;  %v7787_v54 = vmax.f32 %v14362_v26, %v6829_v50  ;;  %v10245_v62 = vld [vmem:[%s15536_s0 + $0x630] sm:$0xff] }
 0x627   :  { %v7032_v13 = vmax.f32 %v14367_v63, %v6230_v31  ;;  %v7284_v30 = vmax.f32 %v14370_v51, %v6430_v36 }
 0x628   :  { %v7560_v37 = vpack.c.bf16 %v7535_v5, %v7535_v5  ;;  %v7812_v1 = vpack.c.bf16 %v7787_v54, %v7787_v54 }
 0x629   :  { %v7057_v61 = vpack.c.bf16 %v7032_v13, %v7032_v13  ;;  %v7309_v11 = vpack.c.bf16 %v7284_v30, %v7284_v30  ;;  %v5498_v29 = vpop.f32.mrf.mxu2  ;;  %v5998_v15 = vpop.f32.mrf.mxu3 }
 0x62a   :  { %9975 = vst.msk [vmem:[%s15537_s3 + $0x200] sm:$0xf] %vm6951_vm3, %v7560_v37  ;;  %v5499_v26 = vadd.f32 %v14663_v47, %v5498_v29  ;;  %v5999_v63 = vadd.f32 %v14663_v47, %v5998_v15  ;;  %v4501_v51 = vpop.f32.mrf.mxu0  ;;  %v5001_v17 = vpop.f32.mrf.mxu1 }
 0x62b   :  { %10025 = vst.msk [vmem:[%s15537_s3 + $0x2c8] sm:$0xf] %vm6951_vm3, %v7812_v1  ;;  %v4502_v59 = vadd.f32 %v14663_v47, %v4501_v51  ;;  %v5002_v56 = vadd.f32 %v14663_v47, %v5001_v17  ;;  %v10146_v17 = vld [vmem:[%s15536_s0 + $0x318] sm:$0xff] }
 0x62c   :  { %9876 = vst.msk [vmem:[%s15537_s3 + $0x74] sm:$0xf] %vm6951_vm3, %v7057_v61  ;;  %v6630_v16 = vmax.f32 %v5499_v26, 0.0  ;;  %v6830_v41 = vmax.f32 %v5999_v63, 0.0 }
 0x62d   :  { %9926 = vst.msk [vmem:[%s15537_s3 + $0x13c] sm:$0xf] %vm6951_vm3, %v7309_v11  ;;  %v6231_v58 = vmax.f32 %v4502_v59, 0.0  ;;  %v6431_v57 = vmax.f32 %v5002_v56, 0.0  ;;  %9570 = vmatmul.msk.bf16.gmra.mxu0 %vm2834_vm2, %v10145_v22  ;;  %9670 = vmatmul.msk.bf16.gmra.mxu1 %vm2834_vm2, %v10245_v62  ;;  %v10446_v59 = vld [vmem:[%s15536_s0 + $0xc78] sm:$0xff] }
 0x62e   :  { %v7536_v45 = vmax.f32 %v14377_v32, %v6630_v16  ;;  %v7788_v35 = vmax.f32 %v14380_v38, %v6830_v41  ;;  %9770 = vmatmul.msk.bf16.gmra.mxu2 %vm2834_vm2, %v10345_v34  ;;  %9870 = vmatmul.msk.bf16.gmra.mxu3 %vm2834_vm2, %v10445_v10  ;;  %v10346_v10 = vld [vmem:[%s15536_s0 + $0x958] sm:$0xff] }
 0x62f   :  { %v7033_v52 = vmax.f32 %v14383_v44, %v6231_v58  ;;  %v7285_v0 = vmax.f32 %v14386_v60, %v6431_v57 }
 0x630   :  { %v7561_v28 = vpack.c.bf16 %v7536_v45, %v7536_v45  ;;  %v7813_v43 = vpack.c.bf16 %v7788_v35, %v7788_v35 }
 0x631   :  { %v7058_v49 = vpack.c.bf16 %v7033_v52, %v7033_v52  ;;  %v7310_v46 = vpack.c.bf16 %v7285_v0, %v7285_v0  ;;  %v5501_v50 = vpop.f32.mrf.mxu2  ;;  %v6001_v31 = vpop.f32.mrf.mxu3 }
 0x632   :  { %9976 = vst.msk [vmem:[%s15537_s3 + $0x204] sm:$0xf] %vm6951_vm3, %v7561_v28  ;;  %v5502_v32 = vadd.f32 %v14663_v47, %v5501_v50  ;;  %v6002_v38 = vadd.f32 %v14663_v47, %v6001_v31  ;;  %v4503_v36 = vpop.f32.mrf.mxu0  ;;  %v5003_v5 = vpop.f32.mrf.mxu1 }
 0x633   :  { %10026 = vst.msk [vmem:[%s15537_s3 + $0x2cc] sm:$0xf] %vm6951_vm3, %v7813_v43  ;;  %v4504_v44 = vadd.f32 %v14663_v47, %v4503_v36  ;;  %v5004_v60 = vadd.f32 %v14663_v47, %v5003_v5 }
 0x634   :  { %9877 = vst.msk [vmem:[%s15537_s3 + $0x78] sm:$0xf] %vm6951_vm3, %v7058_v49  ;;  %v6631_v54 = vmax.f32 %v5502_v32, 0.0  ;;  %v6831_v13 = vmax.f32 %v6002_v38, 0.0 }
 0x635   :  { %9927 = vst.msk [vmem:[%s15537_s3 + $0x140] sm:$0xf] %vm6951_vm3, %v7310_v46  ;;  %v6232_v30 = vmax.f32 %v4504_v44, 0.0  ;;  %v6432_v37 = vmax.f32 %v5004_v60, 0.0 }
 0x636   :  { %v7537_v1 = vmax.f32 %v14407_v42, %v6631_v54  ;;  %v7789_v61 = vmax.f32 %v14410_v20, %v6831_v13  ;;  %v10246_v42 = vld [vmem:[%s15536_s0 + $0x638] sm:$0xff] }
 0x637   :  { %v7034_v11 = vmax.f32 %v14415_v24, %v6232_v30  ;;  %v7286_v29 = vmax.f32 %v14418_v8, %v6432_v37 }
 0x638   :  { %v7562_v15 = vpack.c.bf16 %v7537_v1, %v7537_v1  ;;  %v7814_v22 = vpack.c.bf16 %v7789_v61, %v7789_v61 }
 0x639   :  { %v7059_v62 = vpack.c.bf16 %v7034_v11, %v7034_v11  ;;  %v7311_v26 = vpack.c.bf16 %v7286_v29, %v7286_v29  ;;  %v5503_v63 = vpop.f32.mrf.mxu2  ;;  %v6003_v51 = vpop.f32.mrf.mxu3 }
 0x63a   :  { %9977 = vst.msk [vmem:[%s15537_s3 + $0x208] sm:$0xf] %vm6951_vm3, %v7562_v15  ;;  %v5504_v20 = vadd.f32 %v14663_v47, %v5503_v63  ;;  %v6004_v24 = vadd.f32 %v14663_v47, %v6003_v51  ;;  %v4506_v8 = vpop.f32.mrf.mxu0  ;;  %v5006_v34 = vpop.f32.mrf.mxu1 }
 0x63b   :  { %10027 = vst.msk [vmem:[%s15537_s3 + $0x2d0] sm:$0xf] %vm6951_vm3, %v7814_v22  ;;  %v4507_v56 = vadd.f32 %v14663_v47, %v4506_v8  ;;  %v5007_v16 = vadd.f32 %v14663_v47, %v5006_v34 }
 0x63c   :  { %9878 = vst.msk [vmem:[%s15537_s3 + $0x7c] sm:$0xf] %vm6951_vm3, %v7059_v62  ;;  %v6632_v41 = vmax.f32 %v5504_v20, 0.0  ;;  %v6832_v58 = vmax.f32 %v6004_v24, 0.0 }
 0x63d   :  { %9928 = vst.msk [vmem:[%s15537_s3 + $0x144] sm:$0xf] %vm6951_vm3, %v7311_v26  ;;  %v6233_v57 = vmax.f32 %v4507_v56, 0.0  ;;  %v6433_v45 = vmax.f32 %v5007_v16, 0.0  ;;  %9571 = vmatmul.msk.bf16.gmra.mxu0 %vm2834_vm2, %v10146_v17  ;;  %9671 = vmatmul.msk.bf16.gmra.mxu1 %vm2834_vm2, %v10246_v42 }
 0x63e   :  { %v7538_v35 = vmax.f32 %v14425_v12, %v6632_v41  ;;  %v7790_v52 = vmax.f32 %v14428_v14, %v6832_v58  ;;  %9771 = vmatmul.msk.bf16.gmra.mxu2 %vm2834_vm2, %v10346_v10  ;;  %9871 = vmatmul.msk.bf16.gmra.mxu3 %vm2834_vm2, %v10446_v59 }
 0x63f   :  { %v7035_v0 = vmax.f32 %v14431_v25, %v6233_v57  ;;  %v7287_v28 = vmax.f32 %v14434_v53, %v6433_v45 }
 0x640   :  { %v7563_v43 = vpack.c.bf16 %v7538_v35, %v7538_v35  ;;  %v7815_v49 = vpack.c.bf16 %v7790_v52, %v7790_v52 }
 0x641   :  { %v7060_v46 = vpack.c.bf16 %v7035_v0, %v7035_v0  ;;  %v7312_v50 = vpack.c.bf16 %v7287_v28, %v7287_v28  ;;  %v5506_v31 = vpop.f32.mrf.mxu2  ;;  %v6006_v32 = vpop.f32.mrf.mxu3 }
 0x642   :  { %9978 = vst.msk [vmem:[%s15537_s3 + $0x20c] sm:$0xf] %vm6951_vm3, %v7563_v43  ;;  %v5507_v12 = vadd.f32 %v14663_v47, %v5506_v31  ;;  %v6007_v14 = vadd.f32 %v14663_v47, %v6006_v32  ;;  %v4508_v38 = vpop.f32.mrf.mxu0  ;;  %v5008_v36 = vpop.f32.mrf.mxu1  ;;  %v16142_v32 = vld [vmem:[#allocation34_spill] sm:$0xff] }
 0x643   :  { %10028 = vst.msk [vmem:[%s15537_s3 + $0x2d4] sm:$0xf] %vm6951_vm3, %v7815_v49  ;;  %v4509_v25 = vadd.f32 %v14663_v47, %v4508_v38  ;;  %v5009_v53 = vadd.f32 %v14663_v47, %v5008_v36  ;;  %v16140_v49 = vld [vmem:[#allocation32_spill] sm:$0xff] }
 0x644   :  { %9879 = vst.msk [vmem:[%s15537_s3 + $0x80] sm:$0xf] %vm6951_vm3, %v7060_v46  ;;  %v6633_v5 = vmax.f32 %v5507_v12, 0.0  ;;  %v6833_v44 = vmax.f32 %v6007_v14, 0.0  ;;  %v16143_v14 = vld [vmem:[#allocation35_spill] sm:$0xff] }
 0x645   :  { %9929 = vst.msk [vmem:[%s15537_s3 + $0x148] sm:$0xf] %vm6951_vm3, %v7312_v50  ;;  %v6234_v60 = vmax.f32 %v4509_v25, 0.0  ;;  %v6434_v54 = vmax.f32 %v5009_v53, 0.0  ;;  %v16141_v50 = vld [vmem:[#allocation33_spill] sm:$0xff] }
 0x646   :  { %v7539_v13 = vmax.f32 %v14455_v55, %v6633_v5  ;;  %v7791_v30 = vmax.f32 %v14458_v18, %v6833_v44 }
 0x647   :  { %v7036_v37 = vmax.f32 %v14463_v3, %v6234_v60  ;;  %v7288_v1 = vmax.f32 %v14466_v27, %v6434_v54 }
 0x648   :  { %v7564_v61 = vpack.c.bf16 %v7539_v13, %v7539_v13  ;;  %v7816_v11 = vpack.c.bf16 %v7791_v30, %v7791_v30 }
 0x649   :  { %v7061_v29 = vpack.c.bf16 %v7036_v37, %v7036_v37  ;;  %v7313_v15 = vpack.c.bf16 %v7288_v1, %v7288_v1  ;;  %v5508_v22 = vpop.f32.mrf.mxu2  ;;  %v6008_v62 = vpop.f32.mrf.mxu3 }
 0x64a   :  { %9979 = vst.msk [vmem:[%s15537_s3 + $0x210] sm:$0xf] %vm6951_vm3, %v7564_v61  ;;  %v5509_v26 = vadd.f32 %v14663_v47, %v5508_v22  ;;  %v6009_v55 = vadd.f32 %v14663_v47, %v6008_v62  ;;  %v4511_v18 = vpop.f32.mrf.mxu0  ;;  %v5011_v63 = vpop.f32.mrf.mxu1  ;;  %v16144_v62 = vld [vmem:[#allocation36_spill] sm:$0xff] }
 0x64b   :  { %10029 = vst.msk [vmem:[%s15537_s3 + $0x2d8] sm:$0xf] %vm6951_vm3, %v7816_v11  ;;  %v4512_v3 = vadd.f32 %v14663_v47, %v4511_v18  ;;  %v5012_v27 = vadd.f32 %v14663_v47, %v5011_v63  ;;  %v16146_v63 = vld [vmem:[#allocation38_spill] sm:$0xff] }
 0x64c   :  { %9880 = vst.msk [vmem:[%s15537_s3 + $0x84] sm:$0xf] %vm6951_vm3, %v7061_v29  ;;  %v6634_v51 = vmax.f32 %v5509_v26, 0.0  ;;  %v6834_v17 = vmax.f32 %v6009_v55, 0.0  ;;  %v16145_v55 = vld [vmem:[#allocation37_spill] sm:$0xff] }
 0x64d   :  { %9930 = vst.msk [vmem:[%s15537_s3 + $0x14c] sm:$0xf] %vm6951_vm3, %v7313_v15  ;;  %v6235_v42 = vmax.f32 %v4512_v3, 0.0  ;;  %v6435_v20 = vmax.f32 %v5012_v27, 0.0  ;;  %v16147_v27 = vld [vmem:[#allocation39_spill] sm:$0xff] }
 0x64e   :  { %v7540_v24 = vmax.f32 %v14473_v9, %v6634_v51  ;;  %v7792_v8 = vmax.f32 %v14476_v23, %v6834_v17 }
 0x64f   :  { %v7037_v34 = vmax.f32 %v14479_v7, %v6235_v42  ;;  %v7289_v10 = vmax.f32 %v14482_v48, %v6435_v20 }
 0x650   :  { %v7565_v59 = vpack.c.bf16 %v7540_v24, %v7540_v24  ;;  %v7817_v56 = vpack.c.bf16 %v7792_v8, %v7792_v8 }
 0x651   :  { %v7062_v16 = vpack.c.bf16 %v7037_v34, %v7037_v34  ;;  %v7314_v41 = vpack.c.bf16 %v7289_v10, %v7289_v10  ;;  %v5511_v58 = vpop.f32.mrf.mxu2  ;;  %v6011_v57 = vpop.f32.mrf.mxu3 }
 0x652   :  { %9980 = vst.msk [vmem:[%s15537_s3 + $0x214] sm:$0xf] %vm6951_vm3, %v7565_v59  ;;  %v5512_v45 = vadd.f32 %v14663_v47, %v5511_v58  ;;  %v6012_v9 = vadd.f32 %v14663_v47, %v6011_v57  ;;  %v4513_v23 = vpop.f32.mrf.mxu0  ;;  %v5013_v35 = vpop.f32.mrf.mxu1 }
 0x653   :  { %10030 = vst.msk [vmem:[%s15537_s3 + $0x2dc] sm:$0xf] %vm6951_vm3, %v7817_v56  ;;  %v4514_v7 = vadd.f32 %v14663_v47, %v4513_v23  ;;  %v5014_v48 = vadd.f32 %v14663_v47, %v5013_v35  ;;  %v16148_v35 = vld [vmem:[#allocation40_spill] sm:$0xff] }
 0x654   :  { %9881 = vst.msk [vmem:[%s15537_s3 + $0x88] sm:$0xf] %vm6951_vm3, %v7062_v16  ;;  %v6635_v52 = vmax.f32 %v5512_v45, 0.0  ;;  %v6835_v0 = vmax.f32 %v6012_v9, 0.0 }
 0x655   :  { %9931 = vst.msk [vmem:[%s15537_s3 + $0x150] sm:$0xf] %vm6951_vm3, %v7314_v41  ;;  %v6236_v28 = vmax.f32 %v4514_v7, 0.0  ;;  %v6436_v43 = vmax.f32 %v5014_v48, 0.0  ;;  %v16149_v48 = vld [vmem:[#allocation41_spill] sm:$0xff] }
 0x656   :  { %v7541_v46 = vmax.f32 %v16140_v49, %v6635_v52  ;;  %v7793_v31 = vmax.f32 %v16141_v50, %v6835_v0  ;;  %v16150_v0 = vld [vmem:[#allocation42_spill] sm:$0xff] }
 0x657   :  { %v7038_v12 = vmax.f32 %v16142_v32, %v6236_v28  ;;  %v7290_v38 = vmax.f32 %v16143_v14, %v6436_v43  ;;  %v16151_v43 = vld [vmem:[#allocation43_spill] sm:$0xff] }
 0x658   :  { %v7566_v36 = vpack.c.bf16 %v7541_v46, %v7541_v46  ;;  %v7818_v25 = vpack.c.bf16 %v7793_v31, %v7793_v31 }
 0x659   :  { %v7063_v53 = vpack.c.bf16 %v7038_v12, %v7038_v12  ;;  %v7315_v5 = vpack.c.bf16 %v7290_v38, %v7290_v38  ;;  %v5513_v44 = vpop.f32.mrf.mxu2  ;;  %v6013_v60 = vpop.f32.mrf.mxu3 }
 0x65a   :  { %9981 = vst.msk [vmem:[%s15537_s3 + $0x218] sm:$0xf] %vm6951_vm3, %v7566_v36  ;;  %v5514_v54 = vadd.f32 %v14663_v47, %v5513_v44  ;;  %v6014_v13 = vadd.f32 %v14663_v47, %v6013_v60  ;;  %v4516_v30 = vpop.f32.mrf.mxu0  ;;  %v5016_v37 = vpop.f32.mrf.mxu1 }
 0x65b   :  { %10031 = vst.msk [vmem:[%s15537_s3 + $0x2e0] sm:$0xf] %vm6951_vm3, %v7818_v25  ;;  %v4517_v1 = vadd.f32 %v14663_v47, %v4516_v30  ;;  %v5017_v61 = vadd.f32 %v14663_v47, %v5016_v37  ;;  %v16152_v37 = vld [vmem:[#allocation44_spill] sm:$0xff] }
 0x65c   :  { %9882 = vst.msk [vmem:[%s15537_s3 + $0x8c] sm:$0xf] %vm6951_vm3, %v7063_v53  ;;  %v6636_v11 = vmax.f32 %v5514_v54, 0.0  ;;  %v6836_v29 = vmax.f32 %v6014_v13, 0.0 }
 0x65d   :  { %9932 = vst.msk [vmem:[%s15537_s3 + $0x154] sm:$0xf] %vm6951_vm3, %v7315_v5  ;;  %v6237_v15 = vmax.f32 %v4517_v1, 0.0  ;;  %v6437_v22 = vmax.f32 %v5017_v61, 0.0  ;;  %v16153_v61 = vld [vmem:[#allocation45_spill] sm:$0xff] }
 0x65e   :  { %v7542_v26 = vmax.f32 %v16144_v62, %v6636_v11  ;;  %v7794_v18 = vmax.f32 %v16145_v55, %v6836_v29  ;;  %v16154_v29 = vld [vmem:[#allocation46_spill] sm:$0xff] }
 0x65f   :  { %v7039_v3 = vmax.f32 %v16146_v63, %v6237_v15  ;;  %v7291_v51 = vmax.f32 %v16147_v27, %v6437_v22  ;;  %v16155_v15 = vld [vmem:[#allocation47_spill] sm:$0xff]  ;;  %v15244_v27 = vld [vmem:[%s15535_s2] ss:$0 sm:$0xff] }
 0x660   :  { %v7567_v17 = vpack.c.bf16 %v7542_v26, %v7542_v26  ;;  %v7819_v42 = vpack.c.bf16 %v7794_v18, %v7794_v18 }
 0x661   :  { %v7064_v20 = vpack.c.bf16 %v7039_v3, %v7039_v3  ;;  %v7316_v24 = vpack.c.bf16 %v7291_v51, %v7291_v51  ;;  %v5516_v8 = vpop.f32.mrf.mxu2  ;;  %v6016_v34 = vpop.f32.mrf.mxu3 }
 0x662   :  { %9982 = vst.msk [vmem:[%s15537_s3 + $0x21c] sm:$0xf] %vm6951_vm3, %v7567_v17  ;;  %v5517_v10 = vadd.f32 %v14663_v47, %v5516_v8  ;;  %v6017_v59 = vadd.f32 %v14663_v47, %v6016_v34  ;;  %v4518_v56 = vpop.f32.mrf.mxu0  ;;  %v5018_v16 = vpop.f32.mrf.mxu1 }
 0x663   :  { %10032 = vst.msk [vmem:[%s15537_s3 + $0x2e4] sm:$0xf] %vm6951_vm3, %v7819_v42  ;;  %v4519_v41 = vadd.f32 %v14663_v47, %v4518_v56  ;;  %v5019_v58 = vadd.f32 %v14663_v47, %v5018_v16  ;;  %v16156_v16 = vld [vmem:[#allocation48_spill] sm:$0xff] }
 0x664   :  { %9883 = vst.msk [vmem:[%s15537_s3 + $0x90] sm:$0xf] %vm6951_vm3, %v7064_v20  ;;  %v6637_v57 = vmax.f32 %v5517_v10, 0.0  ;;  %v6837_v45 = vmax.f32 %v6017_v59, 0.0 }
 0x665   :  { %9933 = vst.msk [vmem:[%s15537_s3 + $0x158] sm:$0xf] %vm6951_vm3, %v7316_v24  ;;  %v6238_v9 = vmax.f32 %v4519_v41, 0.0  ;;  %v6438_v23 = vmax.f32 %v5019_v58, 0.0  ;;  %v16157_v58 = vld [vmem:[#allocation49_spill] sm:$0xff] }
 0x666   :  { %v7543_v7 = vmax.f32 %v16148_v35, %v6637_v57  ;;  %v7795_v52 = vmax.f32 %v16149_v48, %v6837_v45  ;;  %v16158_v45 = vld [vmem:[#allocation50_spill] sm:$0xff] }
 0x667   :  { %v7040_v28 = vmax.f32 %v16150_v0, %v6238_v9  ;;  %v7292_v49 = vmax.f32 %v16151_v43, %v6438_v23  ;;  %v16159_v23 = vld [vmem:[#allocation51_spill] sm:$0xff] }
 0x668   :  { %v7568_v46 = vpack.c.bf16 %v7543_v7, %v7543_v7  ;;  %v7820_v50 = vpack.c.bf16 %v7795_v52, %v7795_v52 }
 0x669   :  { %v7065_v31 = vpack.c.bf16 %v7040_v28, %v7040_v28  ;;  %v7317_v32 = vpack.c.bf16 %v7292_v49, %v7292_v49  ;;  %v5518_v12 = vpop.f32.mrf.mxu2  ;;  %v6018_v14 = vpop.f32.mrf.mxu3 }
 0x66a   :  { %9983 = vst.msk [vmem:[%s15537_s3 + $0x220] sm:$0xf] %vm6951_vm3, %v7568_v46  ;;  %v5519_v38 = vadd.f32 %v14663_v47, %v5518_v12  ;;  %v6019_v36 = vadd.f32 %v14663_v47, %v6018_v14  ;;  %v4521_v25 = vpop.f32.mrf.mxu0  ;;  %v5021_v53 = vpop.f32.mrf.mxu1 }
 0x66b   :  { %10033 = vst.msk [vmem:[%s15537_s3 + $0x2e8] sm:$0xf] %vm6951_vm3, %v7820_v50  ;;  %v4522_v5 = vadd.f32 %v14663_v47, %v4521_v25  ;;  %v5022_v44 = vadd.f32 %v14663_v47, %v5021_v53  ;;  %v16160_v53 = vld [vmem:[#allocation52_spill] sm:$0xff] }
 0x66c   :  { %9884 = vst.msk [vmem:[%s15537_s3 + $0x94] sm:$0xf] %vm6951_vm3, %v7065_v31  ;;  %v6638_v60 = vmax.f32 %v5519_v38, 0.0  ;;  %v6838_v54 = vmax.f32 %v6019_v36, 0.0 }
 0x66d   :  { %9934 = vst.msk [vmem:[%s15537_s3 + $0x15c] sm:$0xf] %vm6951_vm3, %v7317_v32  ;;  %v6239_v13 = vmax.f32 %v4522_v5, 0.0  ;;  %v6439_v30 = vmax.f32 %v5022_v44, 0.0  ;;  %v16161_v44 = vld [vmem:[#allocation53_spill] sm:$0xff] }
 0x66e   :  { %v7544_v1 = vmax.f32 %v16152_v37, %v6638_v60  ;;  %v7796_v11 = vmax.f32 %v16153_v61, %v6838_v54  ;;  %v16162_v54 = vld [vmem:[#allocation54_spill] sm:$0xff] }
 0x66f   :  { %v7041_v47 = vmax.f32 %v16154_v29, %v6239_v13  ;;  %v7293_v22 = vmax.f32 %v16155_v15, %v6439_v30  ;;  %v16163_v30 = vld [vmem:[#allocation55_spill] sm:$0xff] }
 0x670   :  { %v7569_v62 = vpack.c.bf16 %v7544_v1, %v7544_v1  ;;  %v7821_v26 = vpack.c.bf16 %v7796_v11, %v7796_v11 }
 0x671   :  { %v7066_v55 = vpack.c.bf16 %v7041_v47, %v7041_v47  ;;  %v7318_v18 = vpack.c.bf16 %v7293_v22, %v7293_v22  ;;  %v5521_v63 = vpop.f32.mrf.mxu2  ;;  %v6021_v3 = vpop.f32.mrf.mxu3 }
 0x672   :  { %9984 = vst.msk [vmem:[%s15537_s3 + $0x224] sm:$0xf] %vm6951_vm3, %v7569_v62  ;;  %v5522_v51 = vadd.f32 %v15244_v27, %v5521_v63  ;;  %v6022_v17 = vadd.f32 %v15244_v27, %v6021_v3  ;;  %v4523_v42 = vpop.f32.mrf.mxu0  ;;  %v5023_v20 = vpop.f32.mrf.mxu1 }
 0x673   :  { %10034 = vst.msk [vmem:[%s15537_s3 + $0x2ec] sm:$0xf] %vm6951_vm3, %v7821_v26  ;;  %v4524_v24 = vadd.f32 %v15244_v27, %v4523_v42  ;;  %v5024_v8 = vadd.f32 %v15244_v27, %v5023_v20  ;;  %v16164_v20 = vld [vmem:[#allocation56_spill] sm:$0xff] }
 0x674   :  { %9885 = vst.msk [vmem:[%s15537_s3 + $0x98] sm:$0xf] %vm6951_vm3, %v7066_v55  ;;  %v6639_v34 = vmax.f32 %v5522_v51, 0.0  ;;  %v6839_v10 = vmax.f32 %v6022_v17, 0.0 }
 0x675   :  { %9935 = vst.msk [vmem:[%s15537_s3 + $0x160] sm:$0xf] %vm6951_vm3, %v7318_v18  ;;  %v6240_v59 = vmax.f32 %v4524_v24, 0.0  ;;  %v6440_v56 = vmax.f32 %v5024_v8, 0.0  ;;  %v16165_v8 = vld [vmem:[#allocation57_spill] sm:$0xff] }
 0x676   :  { %v7545_v41 = vmax.f32 %v16156_v16, %v6639_v34  ;;  %v7797_v57 = vmax.f32 %v16157_v58, %v6839_v10  ;;  %v16166_v10 = vld [vmem:[#allocation58_spill] sm:$0xff] }
 0x677   :  { %v7042_v9 = vmax.f32 %v16158_v45, %v6240_v59  ;;  %v7294_v35 = vmax.f32 %v16159_v23, %v6440_v56  ;;  %v16167_v56 = vld [vmem:[#allocation59_spill] sm:$0xff] }
 0x678   :  { %v7570_v7 = vpack.c.bf16 %v7545_v41, %v7545_v41  ;;  %v7822_v48 = vpack.c.bf16 %v7797_v57, %v7797_v57 }
 0x679   :  { %v7067_v52 = vpack.c.bf16 %v7042_v9, %v7042_v9  ;;  %v7319_v0 = vpack.c.bf16 %v7294_v35, %v7294_v35  ;;  %v5523_v28 = vpop.f32.mrf.mxu2  ;;  %v6023_v43 = vpop.f32.mrf.mxu3 }
 0x67a   :  { %9985 = vst.msk [vmem:[%s15537_s3 + $0x228] sm:$0xf] %vm6951_vm3, %v7570_v7  ;;  %v5524_v49 = vadd.f32 %v15244_v27, %v5523_v28  ;;  %v6024_v46 = vadd.f32 %v15244_v27, %v6023_v43  ;;  %v4526_v50 = vpop.f32.mrf.mxu0  ;;  %v5026_v31 = vpop.f32.mrf.mxu1 }
 0x67b   :  { %10035 = vst.msk [vmem:[%s15537_s3 + $0x2f0] sm:$0xf] %vm6951_vm3, %v7822_v48  ;;  %v4527_v32 = vadd.f32 %v15244_v27, %v4526_v50  ;;  %v5027_v12 = vadd.f32 %v15244_v27, %v5026_v31  ;;  %v16168_v31 = vld [vmem:[#allocation2_spill] sm:$0xff] }
 0x67c   :  { %9886 = vst.msk [vmem:[%s15537_s3 + $0x9c] sm:$0xf] %vm6951_vm3, %v7067_v52  ;;  %v6640_v14 = vmax.f32 %v5524_v49, 0.0  ;;  %v6840_v38 = vmax.f32 %v6024_v46, 0.0 }
 0x67d   :  { %9936 = vst.msk [vmem:[%s15537_s3 + $0x164] sm:$0xf] %vm6951_vm3, %v7319_v0  ;;  %v6241_v36 = vmax.f32 %v4527_v32, 0.0  ;;  %v6441_v25 = vmax.f32 %v5027_v12, 0.0  ;;  %v16169_v12 = vld [vmem:[#allocation60_spill] sm:$0xff] }
 0x67e   :  { %v7546_v5 = vmax.f32 %v16160_v53, %v6640_v14  ;;  %v7798_v60 = vmax.f32 %v16161_v44, %v6840_v38  ;;  %v16170_v38 = vld [vmem:[#allocation61_spill] sm:$0xff] }
 0x67f   :  { %v7043_v13 = vmax.f32 %v16162_v54, %v6241_v36  ;;  %v7295_v37 = vmax.f32 %v16163_v30, %v6441_v25  ;;  %v16171_v25 = vld [vmem:[#allocation62_spill] sm:$0xff] }
 0x680   :  { %v7571_v1 = vpack.c.bf16 %v7546_v5, %v7546_v5  ;;  %v7823_v61 = vpack.c.bf16 %v7798_v60, %v7798_v60 }
 0x681   :  { %v7068_v11 = vpack.c.bf16 %v7043_v13, %v7043_v13  ;;  %v7320_v29 = vpack.c.bf16 %v7295_v37, %v7295_v37  ;;  %v5526_v47 = vpop.f32.mrf.mxu2  ;;  %v6026_v15 = vpop.f32.mrf.mxu3 }
 0x682   :  { %9986 = vst.msk [vmem:[%s15537_s3 + $0x22c] sm:$0xf] %vm6951_vm3, %v7571_v1  ;;  %v5527_v22 = vadd.f32 %v15244_v27, %v5526_v47  ;;  %v6027_v62 = vadd.f32 %v15244_v27, %v6026_v15  ;;  %v4528_v26 = vpop.f32.mrf.mxu0  ;;  %v5028_v55 = vpop.f32.mrf.mxu1 }
 0x683   :  { %10036 = vst.msk [vmem:[%s15537_s3 + $0x2f4] sm:$0xf] %vm6951_vm3, %v7823_v61  ;;  %v4529_v18 = vadd.f32 %v15244_v27, %v4528_v26  ;;  %v5029_v63 = vadd.f32 %v15244_v27, %v5028_v55  ;;  %v16172_v55 = vld [vmem:[#allocation3_spill] sm:$0xff] }
 0x684   :  { %9887 = vst.msk [vmem:[%s15537_s3 + $0xa0] sm:$0xf] %vm6951_vm3, %v7068_v11  ;;  %v6641_v3 = vmax.f32 %v5527_v22, 0.0  ;;  %v6841_v51 = vmax.f32 %v6027_v62, 0.0 }
 0x685   :  { %9937 = vst.msk [vmem:[%s15537_s3 + $0x168] sm:$0xf] %vm6951_vm3, %v7320_v29  ;;  %v6242_v17 = vmax.f32 %v4529_v18, 0.0  ;;  %v6442_v42 = vmax.f32 %v5029_v63, 0.0  ;;  %v16173_v63 = vld [vmem:[#allocation4_spill] sm:$0xff] }
 0x686   :  { %v7547_v24 = vmax.f32 %v16164_v20, %v6641_v3  ;;  %v7799_v34 = vmax.f32 %v16165_v8, %v6841_v51  ;;  %v16174_v51 = vld [vmem:[#allocation5_spill] sm:$0xff] }
 0x687   :  { %v7044_v59 = vmax.f32 %v16166_v10, %v6242_v17  ;;  %v7296_v16 = vmax.f32 %v16167_v56, %v6442_v42  ;;  %v16175_v42 = vld [vmem:[#allocation6_spill] sm:$0xff] }
 0x688   :  { %v7572_v41 = vpack.c.bf16 %v7547_v24, %v7547_v24  ;;  %v7824_v58 = vpack.c.bf16 %v7799_v34, %v7799_v34 }
 0x689   :  { %v7069_v57 = vpack.c.bf16 %v7044_v59, %v7044_v59  ;;  %v7321_v45 = vpack.c.bf16 %v7296_v16, %v7296_v16  ;;  %v5528_v9 = vpop.f32.mrf.mxu2  ;;  %v6028_v23 = vpop.f32.mrf.mxu3 }
 0x68a   :  { %9987 = vst.msk [vmem:[%s15537_s3 + $0x230] sm:$0xf] %vm6951_vm3, %v7572_v41  ;;  %v5529_v35 = vadd.f32 %v15244_v27, %v5528_v9  ;;  %v6029_v7 = vadd.f32 %v15244_v27, %v6028_v23  ;;  %v4531_v48 = vpop.f32.mrf.mxu0  ;;  %v5031_v52 = vpop.f32.mrf.mxu1 }
 0x68b   :  { %10037 = vst.msk [vmem:[%s15537_s3 + $0x2f8] sm:$0xf] %vm6951_vm3, %v7824_v58  ;;  %v4532_v0 = vadd.f32 %v15244_v27, %v4531_v48  ;;  %v5032_v28 = vadd.f32 %v15244_v27, %v5031_v52  ;;  %v16176_v52 = vld [vmem:[#allocation7_spill] sm:$0xff] }
 0x68c   :  { %9888 = vst.msk [vmem:[%s15537_s3 + $0xa4] sm:$0xf] %vm6951_vm3, %v7069_v57  ;;  %v6642_v43 = vmax.f32 %v5529_v35, 0.0  ;;  %v6842_v49 = vmax.f32 %v6029_v7, 0.0 }
 0x68d   :  { %9938 = vst.msk [vmem:[%s15537_s3 + $0x16c] sm:$0xf] %vm6951_vm3, %v7321_v45  ;;  %v6243_v46 = vmax.f32 %v4532_v0, 0.0  ;;  %v6443_v50 = vmax.f32 %v5032_v28, 0.0  ;;  %v16177_v28 = vld [vmem:[#allocation8_spill] sm:$0xff] }
 0x68e   :  { %v7548_v32 = vmax.f32 %v16168_v31, %v6642_v43  ;;  %v7800_v14 = vmax.f32 %v16169_v12, %v6842_v49  ;;  %v16178_v49 = vld [vmem:[#allocation9_spill] sm:$0xff] }
 0x68f   :  { %v7045_v36 = vmax.f32 %v16170_v38, %v6243_v46  ;;  %v7297_v53 = vmax.f32 %v16171_v25, %v6443_v50  ;;  %v16179_v50 = vld [vmem:[#allocation10_spill] sm:$0xff] }
 0x690   :  { %v7573_v5 = vpack.c.bf16 %v7548_v32, %v7548_v32  ;;  %v7825_v44 = vpack.c.bf16 %v7800_v14, %v7800_v14 }
 0x691   :  { %v7070_v60 = vpack.c.bf16 %v7045_v36, %v7045_v36  ;;  %v7322_v54 = vpack.c.bf16 %v7297_v53, %v7297_v53  ;;  %v5531_v13 = vpop.f32.mrf.mxu2  ;;  %v6031_v30 = vpop.f32.mrf.mxu3 }
 0x692   :  { %9988 = vst.msk [vmem:[%s15537_s3 + $0x234] sm:$0xf] %vm6951_vm3, %v7573_v5  ;;  %v5532_v37 = vadd.f32 %v15244_v27, %v5531_v13  ;;  %v6032_v1 = vadd.f32 %v15244_v27, %v6031_v30  ;;  %v4533_v61 = vpop.f32.mrf.mxu0  ;;  %v5033_v11 = vpop.f32.mrf.mxu1 }
 0x693   :  { %10038 = vst.msk [vmem:[%s15537_s3 + $0x2fc] sm:$0xf] %vm6951_vm3, %v7825_v44  ;;  %v4534_v29 = vadd.f32 %v15244_v27, %v4533_v61  ;;  %v5034_v47 = vadd.f32 %v15244_v27, %v5033_v11  ;;  %v16180_v11 = vld [vmem:[#allocation11_spill] sm:$0xff] }
 0x694   :  { %9889 = vst.msk [vmem:[%s15537_s3 + $0xa8] sm:$0xf] %vm6951_vm3, %v7070_v60  ;;  %v6643_v15 = vmax.f32 %v5532_v37, 0.0  ;;  %v6843_v22 = vmax.f32 %v6032_v1, 0.0 }
 0x695   :  { %9939 = vst.msk [vmem:[%s15537_s3 + $0x170] sm:$0xf] %vm6951_vm3, %v7322_v54  ;;  %v6244_v62 = vmax.f32 %v4534_v29, 0.0  ;;  %v6444_v26 = vmax.f32 %v5034_v47, 0.0  ;;  %v16181_v47 = vld [vmem:[#allocation12_spill] sm:$0xff] }
 0x696   :  { %v7549_v18 = vmax.f32 %v16172_v55, %v6643_v15  ;;  %v7801_v3 = vmax.f32 %v16173_v63, %v6843_v22  ;;  %v16182_v22 = vld [vmem:[#allocation13_spill] sm:$0xff] }
 0x697   :  { %v7046_v17 = vmax.f32 %v16174_v51, %v6244_v62  ;;  %v7298_v20 = vmax.f32 %v16175_v42, %v6444_v26  ;;  %v16183_v26 = vld [vmem:[#allocation14_spill] sm:$0xff] }
 0x698   :  { %v7574_v24 = vpack.c.bf16 %v7549_v18, %v7549_v18  ;;  %v7826_v8 = vpack.c.bf16 %v7801_v3, %v7801_v3 }
 0x699   :  { %v7071_v34 = vpack.c.bf16 %v7046_v17, %v7046_v17  ;;  %v7323_v10 = vpack.c.bf16 %v7298_v20, %v7298_v20  ;;  %v5533_v59 = vpop.f32.mrf.mxu2  ;;  %v6033_v56 = vpop.f32.mrf.mxu3 }
 0x69a   :  { %9989 = vst.msk [vmem:[%s15537_s3 + $0x238] sm:$0xf] %vm6951_vm3, %v7574_v24  ;;  %v5534_v16 = vadd.f32 %v15244_v27, %v5533_v59  ;;  %v6034_v41 = vadd.f32 %v15244_v27, %v6033_v56  ;;  %v4536_v58 = vpop.f32.mrf.mxu0  ;;  %v5036_v57 = vpop.f32.mrf.mxu1 }
 0x69b   :  { %10039 = vst.msk [vmem:[%s15537_s3 + $0x300] sm:$0xf] %vm6951_vm3, %v7826_v8  ;;  %v4537_v45 = vadd.f32 %v15244_v27, %v4536_v58  ;;  %v5037_v9 = vadd.f32 %v15244_v27, %v5036_v57 }
 0x69c   :  { %9890 = vst.msk [vmem:[%s15537_s3 + $0xac] sm:$0xf] %vm6951_vm3, %v7071_v34  ;;  %v6644_v23 = vmax.f32 %v5534_v16, 0.0  ;;  %v6844_v35 = vmax.f32 %v6034_v41, 0.0 }
 0x69d   :  { %9940 = vst.msk [vmem:[%s15537_s3 + $0x174] sm:$0xf] %vm6951_vm3, %v7323_v10  ;;  %v6245_v7 = vmax.f32 %v4537_v45, 0.0  ;;  %v6445_v48 = vmax.f32 %v5037_v9, 0.0  ;;  %v16184_v45 = vld [vmem:[#allocation15_spill] sm:$0xff] }
 0x69e   :  { %v7550_v0 = vmax.f32 %v16176_v52, %v6644_v23  ;;  %v7802_v43 = vmax.f32 %v16177_v28, %v6844_v35  ;;  %v16185_v23 = vld [vmem:[#allocation16_spill] sm:$0xff] }
 0x69f   :  { %v7047_v46 = vmax.f32 %v16178_v49, %v6245_v7  ;;  %v7299_v31 = vmax.f32 %v16179_v50, %v6445_v48  ;;  %v16186_v7 = vld [vmem:[#allocation17_spill] sm:$0xff] }
 0x6a0   :  { %v7575_v32 = vpack.c.bf16 %v7550_v0, %v7550_v0  ;;  %v7827_v12 = vpack.c.bf16 %v7802_v43, %v7802_v43 }
 0x6a1   :  { %v7072_v14 = vpack.c.bf16 %v7047_v46, %v7047_v46  ;;  %v7324_v38 = vpack.c.bf16 %v7299_v31, %v7299_v31  ;;  %v5536_v36 = vpop.f32.mrf.mxu2  ;;  %v6036_v25 = vpop.f32.mrf.mxu3 }
 0x6a2   :  { %9990 = vst.msk [vmem:[%s15537_s3 + $0x23c] sm:$0xf] %vm6951_vm3, %v7575_v32  ;;  %v5537_v53 = vadd.f32 %v15244_v27, %v5536_v36  ;;  %v6037_v5 = vadd.f32 %v15244_v27, %v6036_v25  ;;  %v4538_v44 = vpop.f32.mrf.mxu0  ;;  %v5038_v60 = vpop.f32.mrf.mxu1 }
 0x6a3   :  { %10040 = vst.msk [vmem:[%s15537_s3 + $0x304] sm:$0xf] %vm6951_vm3, %v7827_v12  ;;  %v4539_v54 = vadd.f32 %v15244_v27, %v4538_v44  ;;  %v5039_v13 = vadd.f32 %v15244_v27, %v5038_v60  ;;  %v16188_v60 = vld [vmem:[#allocation19_spill] sm:$0xff] }
 0x6a4   :  { %9891 = vst.msk [vmem:[%s15537_s3 + $0xb0] sm:$0xf] %vm6951_vm3, %v7072_v14  ;;  %v6645_v30 = vmax.f32 %v5537_v53, 0.0  ;;  %v6845_v37 = vmax.f32 %v6037_v5, 0.0  ;;  %v16187_v5 = vld [vmem:[#allocation18_spill] sm:$0xff] }
 0x6a5   :  { %9941 = vst.msk [vmem:[%s15537_s3 + $0x178] sm:$0xf] %vm6951_vm3, %v7324_v38  ;;  %v6246_v1 = vmax.f32 %v4539_v54, 0.0  ;;  %v6446_v61 = vmax.f32 %v5039_v13, 0.0  ;;  %v16189_v13 = vld [vmem:[#allocation20_spill] sm:$0xff] }
 0x6a6   :  { %v7551_v29 = vmax.f32 %v16180_v11, %v6645_v30  ;;  %v7803_v15 = vmax.f32 %v16181_v47, %v6845_v37  ;;  %v16190_v37 = vld [vmem:[#allocation21_spill] sm:$0xff] }
 0x6a7   :  { %v7048_v62 = vmax.f32 %v16182_v22, %v6246_v1  ;;  %v7300_v55 = vmax.f32 %v16183_v26, %v6446_v61 }
 0x6a8   :  { %v7576_v18 = vpack.c.bf16 %v7551_v29, %v7551_v29  ;;  %v7828_v63 = vpack.c.bf16 %v7803_v15, %v7803_v15 }
 0x6a9   :  { %v7073_v3 = vpack.c.bf16 %v7048_v62, %v7048_v62  ;;  %v7325_v51 = vpack.c.bf16 %v7300_v55, %v7300_v55  ;;  %v5538_v17 = vpop.f32.mrf.mxu2  ;;  %v6038_v42 = vpop.f32.mrf.mxu3 }
 0x6aa   :  { %9991 = vst.msk [vmem:[%s15537_s3 + $0x240] sm:$0xf] %vm6951_vm3, %v7576_v18  ;;  %v5539_v20 = vadd.f32 %v15244_v27, %v5538_v17  ;;  %v6039_v24 = vadd.f32 %v15244_v27, %v6038_v42  ;;  %v4541_v8 = vpop.f32.mrf.mxu0  ;;  %v5041_v34 = vpop.f32.mrf.mxu1 }
 0x6ab   :  { %10041 = vst.msk [vmem:[%s15537_s3 + $0x308] sm:$0xf] %vm6951_vm3, %v7828_v63  ;;  %v4542_v10 = vadd.f32 %v15244_v27, %v4541_v8  ;;  %v5042_v59 = vadd.f32 %v15244_v27, %v5041_v34 }
 0x6ac   :  { %9892 = vst.msk [vmem:[%s15537_s3 + $0xb4] sm:$0xf] %vm6951_vm3, %v7073_v3  ;;  %v6646_v56 = vmax.f32 %v5539_v20, 0.0  ;;  %v6846_v16 = vmax.f32 %v6039_v24, 0.0 }
 0x6ad   :  { %9942 = vst.msk [vmem:[%s15537_s3 + $0x17c] sm:$0xf] %vm6951_vm3, %v7325_v51  ;;  %v6247_v41 = vmax.f32 %v4542_v10, 0.0  ;;  %v6447_v58 = vmax.f32 %v5042_v59, 0.0  ;;  %v16191_v10 = vld [vmem:[#allocation22_spill] sm:$0xff] }
 0x6ae   :  { %v7552_v57 = vmax.f32 %v14766_v6, %v6646_v56  ;;  %v7804_v9 = vmax.f32 %v16184_v45, %v6846_v16 }
 0x6af   :  { %v7049_v35 = vmax.f32 %v16185_v23, %v6247_v41  ;;  %v7301_v48 = vmax.f32 %v16186_v7, %v6447_v58 }
 0x6b0   :  { %v7577_v52 = vpack.c.bf16 %v7552_v57, %v7552_v57  ;;  %v7829_v0 = vpack.c.bf16 %v7804_v9, %v7804_v9 }
 0x6b1   :  { %v7074_v28 = vpack.c.bf16 %v7049_v35, %v7049_v35  ;;  %v7326_v43 = vpack.c.bf16 %v7301_v48, %v7301_v48  ;;  %v5541_v49 = vpop.f32.mrf.mxu2  ;;  %v6041_v46 = vpop.f32.mrf.mxu3 }
 0x6b2   :  { %9992 = vst.msk [vmem:[%s15537_s3 + $0x244] sm:$0xf] %vm6951_vm3, %v7577_v52  ;;  %v5542_v50 = vadd.f32 %v15244_v27, %v5541_v49  ;;  %v6042_v6 = vadd.f32 %v15244_v27, %v6041_v46  ;;  %v4543_v31 = vpop.f32.mrf.mxu0  ;;  %v5043_v32 = vpop.f32.mrf.mxu1  ;;  %v16192_v49 = vld [vmem:[#allocation23_spill] sm:$0xff] }
 0x6b3   :  { %10042 = vst.msk [vmem:[%s15537_s3 + $0x30c] sm:$0xf] %vm6951_vm3, %v7829_v0  ;;  %v4544_v12 = vadd.f32 %v15244_v27, %v4543_v31  ;;  %v5044_v14 = vadd.f32 %v15244_v27, %v5043_v32 }
 0x6b4   :  { %9893 = vst.msk [vmem:[%s15537_s3 + $0xb8] sm:$0xf] %vm6951_vm3, %v7074_v28  ;;  %v6647_v38 = vmax.f32 %v5542_v50, 0.0  ;;  %v6847_v36 = vmax.f32 %v6042_v6, 0.0  ;;  %v16193_v50 = vld [vmem:[#allocation24_spill] sm:$0xff] }
 0x6b5   :  { %9943 = vst.msk [vmem:[%s15537_s3 + $0x180] sm:$0xf] %vm6951_vm3, %v7326_v43  ;;  %v6248_v25 = vmax.f32 %v4544_v12, 0.0  ;;  %v6448_v53 = vmax.f32 %v5044_v14, 0.0 }
 0x6b6   :  { %v7553_v44 = vmax.f32 %v16187_v5, %v6647_v38  ;;  %v7805_v54 = vmax.f32 %v16188_v60, %v6847_v36 }
 0x6b7   :  { %v7050_v30 = vmax.f32 %v16189_v13, %v6248_v25  ;;  %v7302_v1 = vmax.f32 %v16190_v37, %v6448_v53 }
 0x6b8   :  { %v7578_v61 = vpack.c.bf16 %v7553_v44, %v7553_v44  ;;  %v7830_v11 = vpack.c.bf16 %v7805_v54, %v7805_v54 }
 0x6b9   :  { %v7075_v29 = vpack.c.bf16 %v7050_v30, %v7050_v30  ;;  %v7327_v47 = vpack.c.bf16 %v7302_v1, %v7302_v1  ;;  %v5543_v15 = vpop.f32.mrf.mxu2  ;;  %v6043_v22 = vpop.f32.mrf.mxu3 }
 0x6ba   :  { %9993 = vst.msk [vmem:[%s15537_s3 + $0x248] sm:$0xf] %vm6951_vm3, %v7578_v61  ;;  %v5544_v62 = vadd.f32 %v15244_v27, %v5543_v15  ;;  %v6044_v26 = vadd.f32 %v15244_v27, %v6043_v22  ;;  %v4546_v55 = vpop.f32.mrf.mxu0  ;;  %v5046_v18 = vpop.f32.mrf.mxu1 }
 0x6bb   :  { %10043 = vst.msk [vmem:[%s15537_s3 + $0x310] sm:$0xf] %vm6951_vm3, %v7830_v11  ;;  %v4547_v63 = vadd.f32 %v15244_v27, %v4546_v55  ;;  %v5047_v3 = vadd.f32 %v15244_v27, %v5046_v18 }
 0x6bc   :  { %9894 = vst.msk [vmem:[%s15537_s3 + $0xbc] sm:$0xf] %vm6951_vm3, %v7075_v29  ;;  %v6648_v51 = vmax.f32 %v5544_v62, 0.0  ;;  %v6848_v17 = vmax.f32 %v6044_v26, 0.0 }
 0x6bd   :  { %9944 = vst.msk [vmem:[%s15537_s3 + $0x184] sm:$0xf] %vm6951_vm3, %v7327_v47  ;;  %v6249_v42 = vmax.f32 %v4547_v63, 0.0  ;;  %v6449_v20 = vmax.f32 %v5047_v3, 0.0 }
 0x6be   :  { %v7554_v24 = vmax.f32 %v14814_v19, %v6648_v51  ;;  %v7806_v8 = vmax.f32 %v14817_v21, %v6848_v17 }
 0x6bf   :  { %v7051_v34 = vmax.f32 %v14820_v4, %v6249_v42  ;;  %v7303_v59 = vmax.f32 %v16191_v10, %v6449_v20 }
 0x6c0   :  { %v7579_v56 = vpack.c.bf16 %v7554_v24, %v7554_v24  ;;  %v7831_v16 = vpack.c.bf16 %v7806_v8, %v7806_v8 }
 0x6c1   :  { %v7076_v41 = vpack.c.bf16 %v7051_v34, %v7051_v34  ;;  %v7328_v58 = vpack.c.bf16 %v7303_v59, %v7303_v59  ;;  %v5546_v57 = vpop.f32.mrf.mxu2  ;;  %v6046_v45 = vpop.f32.mrf.mxu3 }
 0x6c2   :  { %9994 = vst.msk [vmem:[%s15537_s3 + $0x24c] sm:$0xf] %vm6951_vm3, %v7579_v56  ;;  %v5547_v9 = vadd.f32 %v15244_v27, %v5546_v57  ;;  %v6047_v19 = vadd.f32 %v15244_v27, %v6046_v45  ;;  %v4548_v21 = vpop.f32.mrf.mxu0  ;;  %v5048_v23 = vpop.f32.mrf.mxu1 }
 0x6c3   :  { %10044 = vst.msk [vmem:[%s15537_s3 + $0x314] sm:$0xf] %vm6951_vm3, %v7831_v16  ;;  %v4549_v4 = vadd.f32 %v15244_v27, %v4548_v21  ;;  %v5049_v35 = vadd.f32 %v15244_v27, %v5048_v23 }
 0x6c4   :  { %9895 = vst.msk [vmem:[%s15537_s3 + $0xc0] sm:$0xf] %vm6951_vm3, %v7076_v41  ;;  %v6649_v7 = vmax.f32 %v5547_v9, 0.0  ;;  %v6849_v48 = vmax.f32 %v6047_v19, 0.0 }
 0x6c5   :  { %9945 = vst.msk [vmem:[%s15537_s3 + $0x188] sm:$0xf] %vm6951_vm3, %v7328_v58  ;;  %v6250_v52 = vmax.f32 %v4549_v4, 0.0  ;;  %v6450_v0 = vmax.f32 %v5049_v35, 0.0 }
 0x6c6   :  { %v7555_v28 = vmax.f32 %v14844_v40, %v6649_v7  ;;  %v7807_v43 = vmax.f32 %v14847_v33, %v6849_v48 }
 0x6c7   :  { %v7052_v46 = vmax.f32 %v16192_v49, %v6250_v52  ;;  %v7304_v6 = vmax.f32 %v16193_v50, %v6450_v0 }
 0x6c8   :  { %v7580_v31 = vpack.c.bf16 %v7555_v28, %v7555_v28  ;;  %v7832_v32 = vpack.c.bf16 %v7807_v43, %v7807_v43 }
 0x6c9   :  { %v7077_v12 = vpack.c.bf16 %v7052_v46, %v7052_v46  ;;  %v7329_v14 = vpack.c.bf16 %v7304_v6, %v7304_v6  ;;  %v5548_v38 = vpop.f32.mrf.mxu2  ;;  %v6048_v36 = vpop.f32.mrf.mxu3 }
 0x6ca   :  { %9995 = vst.msk [vmem:[%s15537_s3 + $0x250] sm:$0xf] %vm6951_vm3, %v7580_v31  ;;  %v5549_v25 = vadd.f32 %v15244_v27, %v5548_v38  ;;  %v6049_v40 = vadd.f32 %v15244_v27, %v6048_v36 }
 0x6cb   :  { %10045 = vst.msk [vmem:[%s15537_s3 + $0x318] sm:$0xf] %vm6951_vm3, %v7832_v32 }
 0x6cc   :  { %9896 = vst.msk [vmem:[%s15537_s3 + $0xc4] sm:$0x3] %vm6976_vm4, %v7077_v12  ;;  %v6650_v33 = vmax.f32 %v5549_v25, 0.0  ;;  %v6850_v53 = vmax.f32 %v6049_v40, 0.0 }
 0x6cd   :  { %9946 = vst.msk [vmem:[%s15537_s3 + $0x18c] sm:$0x3] %vm6976_vm4, %v7329_v14 }
 0x6ce   :  { %v7556_v5 = vmax.f32 %v14862_v2, %v6650_v33  ;;  %v7808_v27 = vmax.f32 %v14865_v39, %v6850_v53 }
 0x6d0   :  { %v7581_v44 = vpack.c.bf16 %v7556_v5, %v7556_v5  ;;  %v7833_v60 = vpack.c.bf16 %v7808_v27, %v7808_v27 }
 0x6d2   :  { %9996 = vst.msk [vmem:[%s15537_s3 + $0x254] sm:$0x3] %vm6976_vm4, %v7581_v44 }
 0x6d3   :  { %10046 = vst.msk [vmem:[%s15537_s3 + $0x31c] sm:$0x3] %vm6976_vm4, %v7833_v60 }

// kernel: model_m3_forward.3
= control target key start
LH: loop header
LB: loop body
LE: loop exit
PB: predicated region body
PF: predicated region fallthrough
CT: control target
= control target key end

     0   :  { %vm1010_vm0 = vcmask 1042432   ;;  %vm817_vm1 = vcmask 179200   ;;  %vm1849_vm2 = vcmask 130048   ;;  %s5031_s1 = inlined_call_operand.vmem [shape: bf16[150,16], index: 1, kind: input, shape index: {}]   ;;  %s5032_s0 = inlined_call_operand.vmem [shape: bf16[1,1024,150], index: 0, kind: input, shape index: {}]   ;;  %s5033_s2 = inlined_call_operand.vmem [shape: f32[1,16], index: 2, kind: input, shape index: {}]   ;;  %s5034_s3 = inlined_call_operand.vmem [shape: bf16[25,16,128], index: 3, kind: input, shape index: {}]   ;;  %s5035_s4 = inlined_call_operand.vmem [shape: f32[1,128], index: 4, kind: input, shape index: {}]   ;;  %s5036_s6 = inlined_call_operand.vmem [shape: f32[1,128], index: 6, kind: input, shape index: {}]   ;;  %s5037_s5 = inlined_call_operand.vmem [shape: bf16[128,128], index: 5, kind: input, shape index: {}]   ;;  %s5038_s7 = inlined_call_operand.vmem [shape: f32[128,128], index: 7, kind: input, shape index: {}]   ;;  %s5039_s8 = inlined_call_operand.vmem [shape: f32[1,128], index: 8, kind: input, shape index: {}]   ;;  %s5040_s9 = inlined_call_operand.vmem [shape: f32[8,128], index: 9, kind: output, shape index: {}]  }
   0x1   :  { %v3476_v0 = vld [vmem:[%s5031_s1 + $0x38] sm:$0xff]  ;;  %v179_v1 = vld [vmem:[%s5031_s1 + $0x48] sm:$0x7]  ;;  %v3475_v3 = vld [vmem:[%s5031_s1 + $0x30] sm:$0xff] }
   0x2   :  { %v797_v2 = vunpack.c.l.b16 %v179_v1  ;;  %1014 = vmatpush.bf16.msra.mxu0 %v3476_v0  ;;  %3511 = vmatpush.bf16.msra.mxu3 %v3476_v0  ;;  %v3477_v6 = vld [vmem:[%s5031_s1 + $0x40] sm:$0xff]  ;;  %v3474_v7 = vld [vmem:[%s5031_s1 + $0x28] sm:$0xff]  ;;  %v3472_v12 = vld [vmem:[%s5031_s1 + $0x18] sm:$0xff] }
   0x3   :  { %v3341_v8 = vld [vmem:[%s5032_s0 + $0x4] sm:$0xf]  ;;  %v2576_v9 = vld [vmem:[%s5032_s0 + $0x8] sm:$0xf0]  ;;  %v3471_v13 = vld [vmem:[%s5031_s1 + $0x10] sm:$0xff] }
   0x4   :  { %v807_v4 = vpack.c.b16 %v797_v2, %v797_v2  ;;  %v2579_v10 = vor.u32 %v3341_v8, %v2576_v9  ;;  %v3473_v11 = vld [vmem:[%s5031_s1 + $0x20] sm:$0xff]  ;;  %v3470_v14 = vld [vmem:[%s5031_s1 + $0x8] sm:$0xff]  ;;  %v3343_v15 = vld [vmem:[%s5032_s0 + $0x14] sm:$0xf] }
   0x5   :  { %v2584_v16 = vld [vmem:[%s5032_s0 + $0x18] sm:$0xf0]  ;;  %v3469_v18 = vld [vmem:[%s5031_s1] sm:$0xff]  ;;  %v3342_v20 = vld [vmem:[%s5032_s0 + $0x4] sm:$0xf0] }
   0x6   :  { %v1012_v5 = vsel %vm1010_vm0, %v807_v4, 0  ;;  %1015 = vmatpush.bf16.msra.mxu0 %v3475_v3  ;;  %3512 = vmatpush.bf16.msra.mxu3 %v3475_v3  ;;  %v2587_v17 = vor.u32 %v3343_v15, %v2584_v16  ;;  %v2574_v19 = vld [vmem:[%s5032_s0] sm:$0xf]  ;;  %v3345_v22 = vld [vmem:[%s5032_s0 + $0x24] sm:$0xf] }
   0x7   :  { %1321 = vmatpush.bf16.msra.mxu1 %v1012_v5  ;;  %3519 = vmatpush.bf16.msra.mxu2 %v1012_v5  ;;  %v2575_v21 = vor.u32 %v3342_v20, %v2574_v19  ;;  %v2592_v23 = vld [vmem:[%s5032_s0 + $0x28] sm:$0xf0]  ;;  %v2582_v25 = vld [vmem:[%s5032_s0 + $0x10] sm:$0xf]  ;;  %v3344_v26 = vld [vmem:[%s5032_s0 + $0x14] sm:$0xf0] }
   0x8   :  { %v2595_v24 = vor.u32 %v3345_v22, %v2592_v23  ;;  %v2583_v27 = vor.u32 %v3344_v26, %v2582_v25  ;;  %v3347_v28 = vld [vmem:[%s5032_s0 + $0x34] sm:$0xf]  ;;  %v2600_v29 = vld [vmem:[%s5032_s0 + $0x38] sm:$0xf0]  ;;  %v2590_v31 = vld [vmem:[%s5032_s0 + $0x20] sm:$0xf] }
   0x9   :  { %v2603_v30 = vor.u32 %v3347_v28, %v2600_v29  ;;  %v3346_v32 = vld [vmem:[%s5032_s0 + $0x24] sm:$0xf0]  ;;  %v3349_v34 = vld [vmem:[%s5032_s0 + $0x44] sm:$0xf]  ;;  %v2608_v35 = vld [vmem:[%s5032_s0 + $0x48] sm:$0xf0] }
   0xa   :  { %1016 = vmatpush.bf16.msra.mxu0 %v3474_v7  ;;  %3513 = vmatpush.bf16.msra.mxu3 %v3474_v7  ;;  %v2591_v33 = vor.u32 %v3346_v32, %v2590_v31  ;;  %v2611_v36 = vor.u32 %v3349_v34, %v2608_v35  ;;  %v2598_v37 = vld [vmem:[%s5032_s0 + $0x30] sm:$0xf]  ;;  %v3348_v38 = vld [vmem:[%s5032_s0 + $0x34] sm:$0xf0]  ;;  %v3351_v40 = vld [vmem:[%s5032_s0 + $0x54] sm:$0xf] }
   0xb   :  { %1322 = vmatpush.bf16.msra.mxu1 %v3477_v6  ;;  %3520 = vmatpush.bf16.msra.mxu2 %v3477_v6  ;;  %v2599_v39 = vor.u32 %v3348_v38, %v2598_v37  ;;  %v2616_v41 = vld [vmem:[%s5032_s0 + $0x58] sm:$0xf0]  ;;  %v2606_v43 = vld [vmem:[%s5032_s0 + $0x40] sm:$0xf]  ;;  %v3350_v44 = vld [vmem:[%s5032_s0 + $0x44] sm:$0xf0] }
   0xc   :  { %v2619_v42 = vor.u32 %v3351_v40, %v2616_v41  ;;  %v2607_v45 = vor.u32 %v3350_v44, %v2606_v43  ;;  %v3353_v46 = vld [vmem:[%s5032_s0 + $0x64] sm:$0xf]  ;;  %v2624_v47 = vld [vmem:[%s5032_s0 + $0x68] sm:$0xf0]  ;;  %v2614_v49 = vld [vmem:[%s5032_s0 + $0x50] sm:$0xf] }
   0xd   :  { %v2627_v48 = vor.u32 %v3353_v46, %v2624_v47  ;;  %v3352_v50 = vld [vmem:[%s5032_s0 + $0x54] sm:$0xf0]  ;;  %v2886_v51 = vld [vmem:[%s5032_s0 + $0x270] sm:$0xf]  ;;  %v3355_v55 = vld [vmem:[%s5032_s0 + $0x74] sm:$0xf] }
   0xe   :  { %3120 = vmatmul.msk.bf16.vlgmr.msra.gmra.mxu1 %vm817_vm1, %v2579_v10  ;;  %1017 = vmatpush.bf16.msra.mxu0 %v3473_v11  ;;  %v3420_v52 = vld [vmem:[%s5032_s0 + $0x274] sm:$0xf0]  ;;  %v2615_v53 = vor.u32 %v3352_v50, %v2614_v49  ;;  %v2632_v56 = vld [vmem:[%s5032_s0 + $0x78] sm:$0xf0]  ;;  %v2622_v58 = vld [vmem:[%s5032_s0 + $0x60] sm:$0xf] }
   0xf   :  { %3514 = vmatpush.bf16.msra.mxu3 %v3473_v11  ;;  %v2887_v54 = vor.u32 %v3420_v52, %v2886_v51  ;;  %v2635_v57 = vor.u32 %v3355_v55, %v2632_v56  ;;  %v3354_v59 = vld [vmem:[%s5032_s0 + $0x64] sm:$0xf0]  ;;  %v2894_v60 = vld [vmem:[%s5032_s0 + $0x280] sm:$0xf]  ;;  %v3421_v0 = vld [vmem:[%s5032_s0 + $0x284] sm:$0xf] }
  0x10   :  { %v3422_v61 = vld [vmem:[%s5032_s0 + $0x284] sm:$0xf0]  ;;  %v2623_v62 = vor.u32 %v3354_v59, %v2622_v58  ;;  %v2896_v1 = vld [vmem:[%s5032_s0 + $0x288] sm:$0xf0]  ;;  %v3357_v3 = vld [vmem:[%s5032_s0 + $0x84] sm:$0xf] }
  0x11   :  { %v2895_v63 = vor.u32 %v3422_v61, %v2894_v60  ;;  %v2899_v2 = vor.u32 %v3421_v0, %v2896_v1  ;;  %v2640_v4 = vld [vmem:[%s5032_s0 + $0x88] sm:$0xf0]  ;;  %v2630_v7 = vld [vmem:[%s5032_s0 + $0x70] sm:$0xf]  ;;  %v3356_v8 = vld [vmem:[%s5032_s0 + $0x74] sm:$0xf0] }
  0x12   :  { %1018 = vmatpush.bf16.msra.mxu0 %v3472_v12  ;;  %v2643_v5 = vor.u32 %v3357_v3, %v2640_v4  ;;  %v2902_v9 = vld [vmem:[%s5032_s0 + $0x290] sm:$0xf]  ;;  %v3424_v10 = vld [vmem:[%s5032_s0 + $0x294] sm:$0xf0]  ;;  %v2631_v11 = vor.u32 %v3356_v8, %v2630_v7  ;;  %v3358_v22 = vld [vmem:[%s5032_s0 + $0x84] sm:$0xf0] }
  0x13   :  { %3515 = vmatpush.bf16.msra.mxu3 %v3472_v12  ;;  %3160 = vmatmul.msk.bf16.vlgmr.msra.gmra.mxu2 %vm817_vm1, %v2899_v2  ;;  %v2903_v12 = vor.u32 %v3424_v10, %v2902_v9  ;;  %v3765_v23 = vld [vmem:[%s5033_s2] ss:$0 sm:$0xff]  ;;  %v3426_v25 = vld [vmem:[%s5032_s0 + $0x2a4] sm:$0xf0]  ;;  %v3425_v29 = vld [vmem:[%s5032_s0 + $0x2a4] sm:$0xf] }
  0x14   :  { %v2912_v31 = vld [vmem:[%s5032_s0 + $0x2a8] sm:$0xf0]  ;;  %v3360_v43 = vld [vmem:[%s5032_s0 + $0x94] sm:$0xf0]  ;;  %v2918_v44 = vld [vmem:[%s5032_s0 + $0x2b0] sm:$0xf] }
  0x15   :  { %v2915_v32 = vor.u32 %v3425_v29, %v2912_v31  ;;  %v2656_v37 = vld [vmem:[%s5032_s0 + $0xa8] sm:$0xf0]  ;;  %v3427_v49 = vld [vmem:[%s5032_s0 + $0x2b4] sm:$0xf]  ;;  %v2920_v51 = vld [vmem:[%s5032_s0 + $0x2b8] sm:$0xf0] }
  0x16   :  { %1019 = vmatpush.bf16.msra.mxu0 %v3471_v13  ;;  %v2923_v52 = vor.u32 %v3427_v49, %v2920_v51  ;;  %v3363_v56 = vld [vmem:[%s5032_s0 + $0xb4] sm:$0xf]  ;;  %v2926_v0 = vld [vmem:[%s5032_s0 + $0x2c0] sm:$0xf]  ;;  %v3430_v1 = vld [vmem:[%s5032_s0 + $0x2c4] sm:$0xf0] }
  0x17   :  { %3516 = vmatpush.bf16.msra.mxu3 %v3471_v13  ;;  %v3423_v13 = vld [vmem:[%s5032_s0 + $0x294] sm:$0xf]  ;;  %v2927_v3 = vor.u32 %v3430_v1, %v2926_v0  ;;  %v2928_v7 = vld [vmem:[%s5032_s0 + $0x2c8] sm:$0xf0]  ;;  %v3368_v0 = vld [vmem:[%s5032_s0 + $0xd4] sm:$0xf0] }
  0x18   :  { %v2950_v1 = vld [vmem:[%s5032_s0 + $0x2f0] sm:$0xf] }
  0x1a   :  { %1020 = vmatpush.bf16.msra.mxu0 %v3470_v14 }
  0x1b   :  { %3517 = vmatpush.bf16.msra.mxu3 %v3470_v14  ;;  %v2904_v14 = vld [vmem:[%s5032_s0 + $0x298] sm:$0xf0] }
  0x1c   :  { %v2907_v15 = vor.u32 %v3423_v13, %v2904_v14  ;;  %v2672_v13 = vld [vmem:[%s5032_s0 + $0xc8] sm:$0xf0] }
  0x1e   :  { %3121 = vmatmul.msk.bf16.gmra.mxu1 %vm817_vm1, %v2587_v17  ;;  %1021 = vmatpush.bf16.msra.mxu0 %v3469_v18  ;;  %v3359_v17 = vld [vmem:[%s5032_s0 + $0x94] sm:$0xf] }
  0x1f   :  { %3518 = vmatpush.bf16.msra.mxu3 %v3469_v18  ;;  %v2648_v18 = vld [vmem:[%s5032_s0 + $0x98] sm:$0xf0] }
  0x20   :  { %v2651_v19 = vor.u32 %v3359_v17, %v2648_v18  ;;  %v2662_v18 = vld [vmem:[%s5032_s0 + $0xb0] sm:$0xf] }
  0x21   :  { %1022 = vmatmul.bf16.vlgmr.msra.gmra.mxu0 %v2575_v21  ;;  %v2638_v21 = vld [vmem:[%s5032_s0 + $0x80] sm:$0xf] }
  0x22   :  { %1203 = vmatmul.bf16.vlgmr.msra.gmra.mxu3 %v2887_v54  ;;  %v2639_v26 = vor.u32 %v3358_v22, %v2638_v21  ;;  %v3432_v21 = vld [vmem:[%s5032_s0 + $0x2d4] sm:$0xf0] }
  0x23   :  { %3161 = vmatmul.msk.bf16.gmra.mxu2 %vm817_vm1, %v2907_v15 }
  0x2e   :  { %3122 = vmatmul.msk.bf16.gmra.mxu1 %vm817_vm1, %v2595_v24  ;;  %v2910_v24 = vld [vmem:[%s5032_s0 + $0x2a0] sm:$0xf] }
  0x31   :  { %1027 = vmatmul.bf16.gmra.mxu0 %v2583_v27  ;;  %v2911_v27 = vor.u32 %v3426_v25, %v2910_v24 }
  0x32   :  { %1208 = vmatmul.bf16.gmra.mxu3 %v2895_v63  ;;  %v3362_v63 = vld [vmem:[%s5032_s0 + $0xa4] sm:$0xf0] }
  0x33   :  { %3162 = vmatmul.msk.bf16.gmra.mxu2 %vm817_vm1, %v2915_v32 }
  0x3e   :  { %3123 = vmatmul.msk.bf16.gmra.mxu1 %vm817_vm1, %v2603_v30 }
  0x41   :  { %1032 = vmatmul.bf16.gmra.mxu0 %v2591_v33 }
  0x42   :  { %1213 = vmatmul.bf16.gmra.mxu3 %v2903_v12  ;;  %v3365_v12 = vld [vmem:[%s5032_s0 + $0xc4] sm:$0xf] }
  0x43   :  { %3163 = vmatmul.msk.bf16.gmra.mxu2 %vm817_vm1, %v2923_v52 }
  0x4e   :  { %3124 = vmatmul.msk.bf16.gmra.mxu1 %vm817_vm1, %v2611_v36  ;;  %v3361_v36 = vld [vmem:[%s5032_s0 + $0xa4] sm:$0xf] }
  0x4f   :  { %v2659_v40 = vor.u32 %v3361_v36, %v2656_v37 }
  0x51   :  { %1037 = vmatmul.bf16.gmra.mxu0 %v2599_v39 }
  0x52   :  { %1218 = vmatmul.bf16.gmra.mxu3 %v2911_v27 }
  0x5e   :  { %3125 = vmatmul.msk.bf16.gmra.mxu1 %vm817_vm1, %v2619_v42  ;;  %v2646_v42 = vld [vmem:[%s5032_s0 + $0x90] sm:$0xf] }
  0x5f   :  { %v2647_v46 = vor.u32 %v3360_v43, %v2646_v42  ;;  %v3366_v42 = vld [vmem:[%s5032_s0 + $0xc4] sm:$0xf0]  ;;  %v2942_v43 = vld [vmem:[%s5032_s0 + $0x2e0] sm:$0xf] }
  0x61   :  { %1042 = vmatmul.bf16.gmra.mxu0 %v2607_v45  ;;  %v3428_v45 = vld [vmem:[%s5032_s0 + $0x2b4] sm:$0xf0] }
  0x62   :  { %v2919_v47 = vor.u32 %v3428_v45, %v2918_v44  ;;  %v3434_v44 = vld [vmem:[%s5032_s0 + $0x2e4] sm:$0xf0] }
  0x64   :  { %1223 = vmatmul.bf16.gmra.mxu3 %v2919_v47 }
  0x6e   :  { %3126 = vmatmul.msk.bf16.gmra.mxu1 %vm817_vm1, %v2627_v48 }
  0x71   :  { %1047 = vmatmul.bf16.gmra.mxu0 %v2615_v53 }
  0x74   :  { %1228 = vmatmul.bf16.gmra.mxu3 %v2927_v3 }
  0x7e   :  { %3127 = vmatmul.msk.bf16.gmra.mxu1 %vm817_vm1, %v2635_v57  ;;  %v2664_v57 = vld [vmem:[%s5032_s0 + $0xb8] sm:$0xf0] }
  0x7f   :  { %v2667_v60 = vor.u32 %v3363_v56, %v2664_v57  ;;  %v3369_v56 = vld [vmem:[%s5032_s0 + $0xe4] sm:$0xf]  ;;  %v2688_v57 = vld [vmem:[%s5032_s0 + $0xe8] sm:$0xf0] }
  0x81   :  { %1052 = vmatmul.bf16.gmra.mxu0 %v2623_v62  ;;  %v2654_v62 = vld [vmem:[%s5032_s0 + $0xa0] sm:$0xf] }
  0x82   :  { %v2655_v2 = vor.u32 %v3362_v63, %v2654_v62  ;;  %v2678_v63 = vld [vmem:[%s5032_s0 + $0xd0] sm:$0xf] }
  0x83   :  { %v2679_v3 = vor.u32 %v3368_v0, %v2678_v63 }
  0x8b   :  { %v1324_v6 = vpop.f32.mrf.mxu1 }
  0x8e   :  { %3128 = vmatmul.msk.bf16.gmra.mxu1 %vm817_vm1, %v2643_v5  ;;  %v3429_v5 = vld [vmem:[%s5032_s0 + $0x2c4] sm:$0xf] }
  0x8f   :  { %v2931_v8 = vor.u32 %v3429_v5, %v2928_v7 }
  0x91   :  { %1057 = vmatmul.bf16.gmra.mxu0 %v2631_v11  ;;  %3164 = vmatmul.msk.bf16.gmra.mxu2 %vm817_vm1, %v2931_v8  ;;  %v2952_v8 = vld [vmem:[%s5032_s0 + $0x2f8] sm:$0xf0] }
  0x93   :  { %v1326_v16 = vpop.f32.mrf.mxu1 }
  0x9b   :  { %v1329_v20 = vpop.f32.mrf.mxu1 }
  0x9e   :  { %3129 = vmatmul.msk.bf16.gmra.mxu1 %vm817_vm1, %v2651_v19  ;;  %v1023_v28 = vpop.f32.mrf.mxu0  ;;  %v3364_v19 = vld [vmem:[%s5032_s0 + $0xb4] sm:$0xf0] }
  0x9f   :  { %v1024_v30 = vadd.f32 %v3765_v23, %v1023_v28  ;;  %v2663_v22 = vor.u32 %v3364_v19, %v2662_v18  ;;  %v2936_v28 = vld [vmem:[%s5032_s0 + $0x2d8] sm:$0xf0] }
  0xa1   :  { %v3781_v33 = vadd.f32 %v1324_v6, %v1024_v30  ;;  %1062 = vmatmul.bf16.gmra.mxu0 %v2639_v26  ;;  %v3431_v26 = vld [vmem:[%s5032_s0 + $0x2d4] sm:$0xf] }
  0xa2   :  { %v2939_v29 = vor.u32 %v3431_v26, %v2936_v28  ;;  %v2958_v26 = vld [vmem:[%s5032_s0 + $0x300] sm:$0xf] }
  0xa3   :  { %v1331_v34 = vpop.f32.mrf.mxu1 }
  0xa4   :  { %3165 = vmatmul.msk.bf16.gmra.mxu2 %vm817_vm1, %v2939_v29 }
  0xa6   :  { %v1025_v35 = vpop.f32.mrf.mxu0 }
  0xa7   :  { %v1026_v38 = vadd.f32 %v3765_v23, %v1025_v35  ;;  %v2680_v35 = vld [vmem:[%s5032_s0 + $0xd8] sm:$0xf0] }
  0xa9   :  { %v3791_v39 = vadd.f32 %v1326_v16, %v1026_v38  ;;  %v2675_v16 = vor.u32 %v3365_v12, %v2672_v13  ;;  %v3944_v13 = vpop.f32.mrf.mxu3 }
  0xaa   :  { %5041 = vst [vmem:[#allocation2_spill] sm:$0xff] %v3944_v13  ;;  %v3397_v13 = vld [vmem:[%s5032_s0 + $0x1c4] sm:$0xf] }
  0xab   :  { %v1334_v41 = vpop.f32.mrf.mxu1 }
  0xae   :  { %3130 = vmatmul.msk.bf16.gmra.mxu1 %vm817_vm1, %v2659_v40  ;;  %v1028_v48 = vpop.f32.mrf.mxu0 }
  0xaf   :  { %v1029_v50 = vadd.f32 %v3765_v23, %v1028_v48  ;;  %v3433_v48 = vld [vmem:[%s5032_s0 + $0x2e4] sm:$0xf] }
  0xb1   :  { %v3813_v53 = vadd.f32 %v1329_v20, %v1029_v50  ;;  %1067 = vmatmul.bf16.gmra.mxu0 %v2647_v46  ;;  %v2934_v20 = vld [vmem:[%s5032_s0 + $0x2d0] sm:$0xf]  ;;  %v2943_v46 = vor.u32 %v3434_v44, %v2942_v43  ;;  %v2944_v50 = vld [vmem:[%s5032_s0 + $0x2e8] sm:$0xf0]  ;;  %v1510_v43 = vpop.f32.mrf.mxu2 }
  0xb2   :  { %v2935_v24 = vor.u32 %v3432_v21, %v2934_v20  ;;  %v2947_v51 = vor.u32 %v3433_v48, %v2944_v50 }
  0xb3   :  { %v1336_v54 = vpop.f32.mrf.mxu1 }
  0xb4   :  { %1232 = vmatmul.bf16.gmra.mxu3 %v2935_v24  ;;  %3166 = vmatmul.msk.bf16.gmra.mxu2 %vm817_vm1, %v2947_v51  ;;  %v3370_v24 = vld [vmem:[%s5032_s0 + $0xe4] sm:$0xf0] }
  0xb6   :  { %v1030_v55 = vpop.f32.mrf.mxu0 }
  0xb7   :  { %v1031_v58 = vadd.f32 %v3765_v23, %v1030_v55 }
  0xb9   :  { %v3823_v59 = vadd.f32 %v1331_v34, %v1031_v58  ;;  %v3367_v34 = vld [vmem:[%s5032_s0 + $0xd4] sm:$0xf]  ;;  %v1512_v63 = vpop.f32.mrf.mxu2 }
  0xba   :  { %v2683_v38 = vor.u32 %v3367_v34, %v2680_v35  ;;  %v2960_v35 = vld [vmem:[%s5032_s0 + $0x308] sm:$0xf0] }
  0xbb   :  { %v1339_v61 = vpop.f32.mrf.mxu1 }
  0xbe   :  { %3131 = vmatmul.msk.bf16.gmra.mxu1 %vm817_vm1, %v2667_v60  ;;  %v1033_v4 = vpop.f32.mrf.mxu0 }
  0xbf   :  { %v1034_v6 = vadd.f32 %v3765_v23, %v1033_v4 }
  0xc1   :  { %v3845_v9 = vadd.f32 %v1334_v41, %v1034_v6  ;;  %1072 = vmatmul.bf16.gmra.mxu0 %v2655_v2  ;;  %v2670_v41 = vld [vmem:[%s5032_s0 + $0xc0] sm:$0xf]  ;;  %v3436_v2 = vld [vmem:[%s5032_s0 + $0x2f4] sm:$0xf0]  ;;  %v3435_v6 = vld [vmem:[%s5032_s0 + $0x2f4] sm:$0xf] }
  0xc2   :  { %v2671_v45 = vor.u32 %v3366_v42, %v2670_v41  ;;  %v2951_v4 = vor.u32 %v3436_v2, %v2950_v1 }
  0xc3   :  { %v1341_v10 = vpop.f32.mrf.mxu1 }
  0xc4   :  { %1235 = vmatmul.bf16.gmra.mxu3 %v2943_v46  ;;  %v2704_v46 = vld [vmem:[%s5032_s0 + $0x108] sm:$0xf0] }
  0xc6   :  { %v1035_v11 = vpop.f32.mrf.mxu0 }
  0xc7   :  { %v1036_v14 = vadd.f32 %v3765_v23, %v1035_v11 }
  0xc9   :  { %v3855_v15 = vadd.f32 %v1336_v54, %v1036_v14 }
  0xcb   :  { %v1344_v17 = vpop.f32.mrf.mxu1 }
  0xce   :  { %3132 = vmatmul.msk.bf16.gmra.mxu1 %vm817_vm1, %v2675_v16  ;;  %v1038_v25 = vpop.f32.mrf.mxu0  ;;  %v3371_v16 = vld [vmem:[%s5032_s0 + $0xf4] sm:$0xf] }
  0xcf   :  { %v1039_v27 = vadd.f32 %v3765_v23, %v1038_v25  ;;  %v3961_v25 = vpop.f32.mrf.mxu3 }
  0xd0   :  { %5042 = vst [vmem:[#allocation3_spill] sm:$0xff] %v3961_v25 }
  0xd1   :  { %v3877_v30 = vadd.f32 %v1339_v61, %v1039_v27  ;;  %1077 = vmatmul.bf16.gmra.mxu0 %v2663_v22  ;;  %v2691_v61 = vor.u32 %v3369_v56, %v2688_v57  ;;  %v2686_v22 = vld [vmem:[%s5032_s0 + $0xe0] sm:$0xf]  ;;  %v3438_v27 = vld [vmem:[%s5032_s0 + $0x304] sm:$0xf0] }
  0xd2   :  { %v2687_v28 = vor.u32 %v3370_v24, %v2686_v22  ;;  %v2959_v29 = vor.u32 %v3438_v27, %v2958_v26 }
  0xd3   :  { %v1346_v31 = vpop.f32.mrf.mxu1 }
  0xd4   :  { %1238 = vmatmul.bf16.gmra.mxu3 %v2951_v4 }
  0xd6   :  { %v1040_v32 = vpop.f32.mrf.mxu0 }
  0xd7   :  { %v1041_v36 = vadd.f32 %v3765_v23, %v1040_v32  ;;  %v3437_v32 = vld [vmem:[%s5032_s0 + $0x304] sm:$0xf]  ;;  %v1209_v41 = vpop.f32.mrf.mxu3 }
  0xd8   :  { %v1210_v42 = vadd.f32 %v3765_v23, %v1209_v41 }
  0xd9   :  { %v3887_v37 = vadd.f32 %v1341_v10, %v1041_v36  ;;  %v2955_v10 = vor.u32 %v3435_v6, %v2952_v8  ;;  %v2963_v36 = vor.u32 %v3437_v32, %v2960_v35  ;;  %v2974_v35 = vld [vmem:[%s5032_s0 + $0x320] sm:$0xf] }
  0xdb   :  { %v1349_v40 = vpop.f32.mrf.mxu1  ;;  %3167 = vmatmul.msk.bf16.gmra.mxu2 %vm817_vm1, %v2955_v10 }
  0xde   :  { %3133 = vmatmul.msk.bf16.gmra.mxu1 %vm817_vm1, %v2683_v38  ;;  %v1043_v47 = vpop.f32.mrf.mxu0 }
  0xdf   :  { %v1044_v49 = vadd.f32 %v3765_v23, %v1043_v47  ;;  %v3987_v47 = vadd.f32 %v1510_v43, %v1210_v42  ;;  %v1211_v56 = vpop.f32.mrf.mxu3 }
  0xe0   :  { %v1212_v57 = vadd.f32 %v3765_v23, %v1211_v56 }
  0xe1   :  { %v3909_v52 = vadd.f32 %v1344_v17, %v1044_v49  ;;  %1082 = vmatmul.bf16.gmra.mxu0 %v2671_v45  ;;  %v2696_v17 = vld [vmem:[%s5032_s0 + $0xf8] sm:$0xf0]  ;;  %v3373_v45 = vld [vmem:[%s5032_s0 + $0x104] sm:$0xf] }
  0xe2   :  { %v2699_v20 = vor.u32 %v3371_v16, %v2696_v17  ;;  %v2707_v50 = vor.u32 %v3373_v45, %v2704_v46  ;;  %v4006_v2 = vadd.f32 %v1512_v63, %v1212_v57  ;;  %v3479_v16 = vld [vmem:[%s5034_s3 + $0x8] sm:$0xff]  ;;  %v1515_v17 = vpop.f32.mrf.mxu2  ;;  %v3441_v45 = vld [vmem:[%s5032_s0 + $0x324] sm:$0xf] }
  0xe3   :  { %v1351_v54 = vpop.f32.mrf.mxu1  ;;  %1860 = vmatpush.bf16.msrb.mxu2 %v3479_v16  ;;  %v2720_v63 = vld [vmem:[%s5032_s0 + $0x128] sm:$0xf0] }
  0xe4   :  { %1241 = vmatmul.bf16.gmra.mxu3 %v2959_v29  ;;  %v2702_v29 = vld [vmem:[%s5032_s0 + $0x100] sm:$0xf] }
  0xe6   :  { %v1045_v55 = vpop.f32.mrf.mxu0 }
  0xe7   :  { %v1046_v58 = vadd.f32 %v3765_v23, %v1045_v55  ;;  %v3372_v55 = vld [vmem:[%s5032_s0 + $0xf4] sm:$0xf0]  ;;  %v1214_v10 = vpop.f32.mrf.mxu3 }
  0xe9   :  { %v3919_v60 = vadd.f32 %v1346_v31, %v1046_v58  ;;  %v2966_v58 = vld [vmem:[%s5032_s0 + $0x310] sm:$0xf] }
  0xea   :  { %v1517_v41 = vpop.f32.mrf.mxu2 }
  0xeb   :  { %v1354_v62 = vpop.f32.mrf.mxu1  ;;  %3168 = vmatmul.msk.bf16.gmra.mxu2 %vm817_vm1, %v2963_v36  ;;  %v3442_v36 = vld [vmem:[%s5032_s0 + $0x324] sm:$0xf0] }
  0xec   :  { %v2975_v42 = vor.u32 %v3442_v36, %v2974_v35 }
  0xee   :  { %3134 = vmatmul.msk.bf16.gmra.mxu1 %vm817_vm1, %v2691_v61  ;;  %v1048_v5 = vpop.f32.mrf.mxu0  ;;  %v3440_v61 = vld [vmem:[%s5032_s0 + $0x314] sm:$0xf0] }
  0xef   :  { %v1049_v7 = vadd.f32 %v3765_v23, %v1048_v5  ;;  %v2967_v0 = vor.u32 %v3440_v61, %v2966_v58  ;;  %v2968_v5 = vld [vmem:[%s5032_s0 + $0x318] sm:$0xf0]  ;;  %v1216_v32 = vpop.f32.mrf.mxu3 }
  0xf1   :  { %v3941_v11 = vadd.f32 %v1349_v40, %v1049_v7  ;;  %1086 = vmatmul.bf16.gmra.mxu0 %v2679_v3  ;;  %v3439_v3 = vld [vmem:[%s5032_s0 + $0x314] sm:$0xf] }
  0xf2   :  { %v2971_v6 = vor.u32 %v3439_v3, %v2968_v5  ;;  %v1520_v58 = vpop.f32.mrf.mxu2  ;;  %v2710_v5 = vld [vmem:[%s5032_s0 + $0x110] sm:$0xf] }
  0xf3   :  { %v1356_v12 = vpop.f32.mrf.mxu1 }
  0xf4   :  { %1246 = vmatmul.bf16.gmra.mxu3 %v2967_v0 }
  0xf6   :  { %v1050_v14 = vpop.f32.mrf.mxu0 }
  0xf7   :  { %v1051_v18 = vadd.f32 %v3765_v23, %v1050_v14  ;;  %v1215_v14 = vadd.f32 %v3765_v23, %v1214_v10  ;;  %v1219_v56 = vpop.f32.mrf.mxu3 }
  0xf8   :  { %v1220_v57 = vadd.f32 %v3765_v23, %v1219_v56  ;;  %v2718_v56 = vld [vmem:[%s5032_s0 + $0x120] sm:$0xf] }
  0xf9   :  { %v3953_v19 = vadd.f32 %v1351_v54, %v1051_v18  ;;  %v2694_v54 = vld [vmem:[%s5032_s0 + $0xf0] sm:$0xf]  ;;  %v4031_v22 = vadd.f32 %v1515_v17, %v1215_v14 }
  0xfa   :  { %v4069_v0 = vadd.f32 %v1520_v58, %v1220_v57  ;;  %v2982_v14 = vld [vmem:[%s5032_s0 + $0x330] sm:$0xf]  ;;  %v1522_v17 = vpop.f32.mrf.mxu2  ;;  %v3378_v57 = vld [vmem:[%s5032_s0 + $0x124] sm:$0xf0] }
  0xfb   :  { %v1359_v21 = vpop.f32.mrf.mxu1  ;;  %3169 = vmatmul.msk.bf16.gmra.mxu2 %vm817_vm1, %v2971_v6  ;;  %v3376_v6 = vld [vmem:[%s5032_s0 + $0x114] sm:$0xf0] }
  0xfc   :  { %v2711_v16 = vor.u32 %v3376_v6, %v2710_v5 }
  0xfe   :  { %3135 = vmatmul.msk.bf16.gmra.mxu1 %vm817_vm1, %v2699_v20  ;;  %v1053_v31 = vpop.f32.mrf.mxu0  ;;  %v3375_v20 = vld [vmem:[%s5032_s0 + $0x114] sm:$0xf] }
  0xff   :  { %v1054_v34 = vadd.f32 %v3765_v23, %v1053_v31  ;;  %v3374_v31 = vld [vmem:[%s5032_s0 + $0x104] sm:$0xf0]  ;;  %v1221_v10 = vpop.f32.mrf.mxu3 }
 0x101   :  { %v3977_v38 = vadd.f32 %v1354_v62, %v1054_v34  ;;  %1089 = vmatmul.bf16.gmra.mxu0 %v2687_v28  ;;  %v2695_v62 = vor.u32 %v3372_v55, %v2694_v54  ;;  %v1217_v34 = vadd.f32 %v3765_v23, %v1216_v32 }
 0x103   :  { %v1361_v40 = vpop.f32.mrf.mxu1 }
 0x104   :  { %1251 = vmatmul.bf16.gmra.mxu3 %v2975_v42  ;;  %v3379_v42 = vld [vmem:[%s5032_s0 + $0x134] sm:$0xf] }
 0x106   :  { %v1055_v44 = vpop.f32.mrf.mxu0 }
 0x107   :  { %v1056_v48 = vadd.f32 %v3765_v23, %v1055_v44  ;;  %v4050_v44 = vadd.f32 %v1517_v41, %v1217_v34  ;;  %v1224_v35 = vpop.f32.mrf.mxu3 }
 0x108   :  { %v1225_v36 = vadd.f32 %v3765_v23, %v1224_v35 }
 0x109   :  { %v3990_v49 = vadd.f32 %v1356_v12, %v1056_v48  ;;  %v3478_v12 = vld [vmem:[%s5034_s3] sm:$0xff]  ;;  %v2976_v48 = vld [vmem:[%s5032_s0 + $0x328] sm:$0xf0] }
 0x10a   :  { %1882 = vmatpush.bf16.msrb.mxu3 %v3478_v12  ;;  %v1222_v12 = vadd.f32 %v3765_v23, %v1221_v10  ;;  %v3445_v10 = vld [vmem:[%s5032_s0 + $0x344] sm:$0xf] }
 0x10b   :  { %v1364_v51 = vpop.f32.mrf.mxu1 }
 0x10e   :  { %3136 = vmatmul.msk.bf16.gmra.mxu1 %vm817_vm1, %v2707_v50  ;;  %v1058_v1 = vpop.f32.mrf.mxu0  ;;  %v2979_v50 = vor.u32 %v3441_v45, %v2976_v48 }
 0x10f   :  { %v1059_v4 = vadd.f32 %v3765_v23, %v1058_v1  ;;  %v1226_v58 = vpop.f32.mrf.mxu3 }
 0x110   :  { %3170 = vmatmul.msk.bf16.gmra.mxu2 %vm817_vm1, %v2979_v50 }
 0x111   :  { %v4015_v7 = vadd.f32 %v1359_v21, %v1059_v4  ;;  %1092 = vmatmul.bf16.gmra.mxu0 %v2695_v62  ;;  %v2712_v21 = vld [vmem:[%s5032_s0 + $0x118] sm:$0xf0]  ;;  %v3377_v62 = vld [vmem:[%s5032_s0 + $0x124] sm:$0xf] }
 0x112   :  { %v2715_v27 = vor.u32 %v3375_v20, %v2712_v21  ;;  %v2723_v3 = vor.u32 %v3377_v62, %v2720_v63  ;;  %v4088_v21 = vadd.f32 %v1522_v17, %v1222_v12  ;;  %v2990_v62 = vld [vmem:[%s5032_s0 + $0x340] sm:$0xf]  ;;  %v2719_v63 = vor.u32 %v3378_v57, %v2718_v56 }
 0x113   :  { %v1366_v8 = vpop.f32.mrf.mxu1 }
 0x116   :  { %v1060_v18 = vpop.f32.mrf.mxu0 }
 0x117   :  { %v1061_v24 = vadd.f32 %v3765_v23, %v1060_v18 }
 0x119   :  { %v4034_v26 = vadd.f32 %v1361_v40, %v1061_v24  ;;  %v2703_v40 = vor.u32 %v3374_v31, %v2702_v29  ;;  %v3443_v24 = vld [vmem:[%s5032_s0 + $0x334] sm:$0xf]  ;;  %v2984_v29 = vld [vmem:[%s5032_s0 + $0x338] sm:$0xf0] }
 0x11a   :  { %v2987_v31 = vor.u32 %v3443_v24, %v2984_v29  ;;  %v3381_v29 = vld [vmem:[%s5032_s0 + $0x144] sm:$0xf] }
 0x11b   :  { %v1369_v28 = vpop.f32.mrf.mxu1 }
 0x11e   :  { %3137 = vmatmul.msk.bf16.gmra.mxu1 %vm817_vm1, %v2715_v27  ;;  %v1063_v43 = vpop.f32.mrf.mxu0 }
 0x11f   :  { %v1064_v46 = vadd.f32 %v3765_v23, %v1063_v43  ;;  %v2728_v43 = vld [vmem:[%s5032_s0 + $0x138] sm:$0xf0] }
 0x120   :  { %3171 = vmatmul.msk.bf16.gmra.mxu2 %vm817_vm1, %v2987_v31  ;;  %v2731_v48 = vor.u32 %v3379_v42, %v2728_v43  ;;  %v2736_v31 = vld [vmem:[%s5032_s0 + $0x148] sm:$0xf0]  ;;  %v2726_v42 = vld [vmem:[%s5032_s0 + $0x130] sm:$0xf]  ;;  %v3380_v43 = vld [vmem:[%s5032_s0 + $0x134] sm:$0xf0] }
 0x121   :  { %v4059_v54 = vadd.f32 %v1364_v51, %v1064_v46  ;;  %1095 = vmatmul.bf16.gmra.mxu0 %v2703_v40  ;;  %v1525_v40 = vpop.f32.mrf.mxu2  ;;  %v2727_v56 = vor.u32 %v3380_v43, %v2726_v42 }
 0x122   :  { %v4107_v45 = vadd.f32 %v1525_v40, %v1225_v36  ;;  %v2739_v40 = vor.u32 %v3381_v29, %v2736_v31  ;;  %v2734_v29 = vld [vmem:[%s5032_s0 + $0x140] sm:$0xf]  ;;  %v3382_v31 = vld [vmem:[%s5032_s0 + $0x144] sm:$0xf0] }
 0x123   :  { %v1371_v55 = vpop.f32.mrf.mxu1  ;;  %v2735_v42 = vor.u32 %v3382_v31, %v2734_v29 }
 0x126   :  { %v1065_v61 = vpop.f32.mrf.mxu0 }
 0x127   :  { %v1066_v51 = vadd.f32 %v3765_v23, %v1065_v61  ;;  %v1227_v61 = vadd.f32 %v3765_v23, %v1226_v58 }
 0x129   :  { %v4072_v1 = vadd.f32 %v1366_v8, %v1066_v51  ;;  %v3444_v8 = vld [vmem:[%s5032_s0 + $0x334] sm:$0xf0]  ;;  %v1527_v51 = vpop.f32.mrf.mxu2 }
 0x12a   :  { %v2983_v18 = vor.u32 %v3444_v8, %v2982_v14  ;;  %v4126_v6 = vadd.f32 %v1527_v51, %v1227_v61  ;;  %v2992_v14 = vld [vmem:[%s5032_s0 + $0x348] sm:$0xf0] }
 0x12b   :  { %v1374_v4 = vpop.f32.mrf.mxu1  ;;  %v2995_v8 = vor.u32 %v3445_v10, %v2992_v14 }
 0x12c   :  { %1256 = vmatmul.bf16.gmra.mxu3 %v2983_v18  ;;  %v1229_v18 = vpop.f32.mrf.mxu3 }
 0x12e   :  { %3138 = vmatmul.msk.bf16.gmra.mxu1 %vm817_vm1, %v2723_v3  ;;  %v1068_v20 = vpop.f32.mrf.mxu0 }
 0x12f   :  { %v1069_v27 = vadd.f32 %v3765_v23, %v1068_v20  ;;  %v1230_v20 = vadd.f32 %v3765_v23, %v1229_v18  ;;  %v2744_v18 = vld [vmem:[%s5032_s0 + $0x158] sm:$0xf0] }
 0x130   :  { %3172 = vmatmul.msk.bf16.gmra.mxu2 %vm817_vm1, %v2995_v8  ;;  %v3383_v8 = vld [vmem:[%s5032_s0 + $0x154] sm:$0xf] }
 0x131   :  { %v4097_v32 = vadd.f32 %v1369_v28, %v1069_v27  ;;  %1100 = vmatmul.bf16.gmra.mxu0 %v2711_v16  ;;  %v1530_v24 = vpop.f32.mrf.mxu2 }
 0x132   :  { %v4145_v35 = vadd.f32 %v1530_v24, %v1230_v20 }
 0x133   :  { %v1376_v34 = vpop.f32.mrf.mxu1 }
 0x136   :  { %v1070_v41 = vpop.f32.mrf.mxu0 }
 0x137   :  { %v1071_v28 = vadd.f32 %v3765_v23, %v1070_v41 }
 0x139   :  { %v4110_v46 = vadd.f32 %v1371_v55, %v1071_v28  ;;  %v3446_v55 = vld [vmem:[%s5032_s0 + $0x344] sm:$0xf0]  ;;  %v1231_v28 = vpop.f32.mrf.mxu3  ;;  %v1532_v57 = vpop.f32.mrf.mxu2 }
 0x13a   :  { %v2991_v3 = vor.u32 %v3446_v55, %v2990_v62  ;;  %v3447_v62 = vld [vmem:[%s5032_s0 + $0x354] sm:$0xf]  ;;  %v3008_v57 = vld [vmem:[%s5032_s0 + $0x368] sm:$0xf0] }
 0x13b   :  { %v1379_v50 = vpop.f32.mrf.mxu1 }
 0x13c   :  { %1261 = vmatmul.bf16.gmra.mxu3 %v2991_v3 }
 0x13e   :  { %3139 = vmatmul.msk.bf16.gmra.mxu1 %vm817_vm1, %v2731_v48  ;;  %v1073_v5 = vpop.f32.mrf.mxu0  ;;  %v2998_v48 = vld [vmem:[%s5032_s0 + $0x350] sm:$0xf] }
 0x13f   :  { %v1074_v12 = vadd.f32 %v3765_v23, %v1073_v5 }
 0x141   :  { %v4135_v16 = vadd.f32 %v1374_v4, %v1074_v12  ;;  %1105 = vmatmul.bf16.gmra.mxu0 %v2719_v63  ;;  %v3000_v63 = vld [vmem:[%s5032_s0 + $0x358] sm:$0xf0]  ;;  %v1233_v10 = vpop.f32.mrf.mxu3  ;;  %v1534_v12 = vpop.f32.mrf.mxu2 }
 0x142   :  { %v3003_v51 = vor.u32 %v3447_v62, %v3000_v63  ;;  %v2752_v10 = vld [vmem:[%s5032_s0 + $0x168] sm:$0xf0] }
 0x143   :  { %v1381_v17 = vpop.f32.mrf.mxu1 }
 0x144   :  { %3173 = vmatmul.msk.bf16.gmra.mxu2 %vm817_vm1, %v3003_v51 }
 0x146   :  { %v1075_v27 = vpop.f32.mrf.mxu0 }
 0x147   :  { %v1076_v4 = vadd.f32 %v3765_v23, %v1075_v27 }
 0x149   :  { %v4148_v36 = vadd.f32 %v1376_v34, %v1076_v4  ;;  %v3448_v34 = vld [vmem:[%s5032_s0 + $0x354] sm:$0xf0]  ;;  %v1234_v4 = vpop.f32.mrf.mxu3  ;;  %v1535_v43 = vpop.f32.mrf.mxu2 }
 0x14a   :  { %v2999_v58 = vor.u32 %v3448_v34, %v2998_v48  ;;  %v3449_v34 = vld [vmem:[%s5032_s0 + $0x364] sm:$0xf] }
 0x14b   :  { %v1384_v41 = vpop.f32.mrf.mxu1 }
 0x14c   :  { %1266 = vmatmul.bf16.gmra.mxu3 %v2999_v58  ;;  %v3011_v58 = vor.u32 %v3449_v34, %v3008_v57  ;;  %v2760_v57 = vld [vmem:[%s5032_s0 + $0x178] sm:$0xf0] }
 0x14e   :  { %3140 = vmatmul.msk.bf16.gmra.mxu1 %vm817_vm1, %v2739_v40  ;;  %v1078_v61 = vpop.f32.mrf.mxu0  ;;  %v3006_v40 = vld [vmem:[%s5032_s0 + $0x360] sm:$0xf] }
 0x14f   :  { %v1079_v55 = vadd.f32 %v3765_v23, %v1078_v61 }
 0x151   :  { %v4170_v3 = vadd.f32 %v1379_v50, %v1079_v55  ;;  %1110 = vmatmul.bf16.gmra.mxu0 %v2727_v56  ;;  %v2747_v50 = vor.u32 %v3383_v8, %v2744_v18  ;;  %v1236_v55 = vpop.f32.mrf.mxu3  ;;  %v1537_v63 = vpop.f32.mrf.mxu2  ;;  %v3384_v8 = vld [vmem:[%s5032_s0 + $0x154] sm:$0xf0] }
 0x152   :  { %v2750_v55 = vld [vmem:[%s5032_s0 + $0x160] sm:$0xf]  ;;  %v3386_v63 = vld [vmem:[%s5032_s0 + $0x164] sm:$0xf0] }
 0x153   :  { %v1386_v5 = vpop.f32.mrf.mxu1 }
 0x154   :  { %3174 = vmatmul.msk.bf16.gmra.mxu2 %vm817_vm1, %v3011_v58  ;;  %v3385_v5 = vld [vmem:[%s5032_s0 + $0x164] sm:$0xf] }
 0x155   :  { %v2755_v12 = vor.u32 %v3385_v5, %v2752_v10  ;;  %v3022_v5 = vld [vmem:[%s5032_s0 + $0x380] sm:$0xf]  ;;  %v3454_v10 = vld [vmem:[%s5032_s0 + $0x384] sm:$0xf0] }
 0x156   :  { %v1080_v14 = vpop.f32.mrf.mxu0 }
 0x157   :  { %v1081_v20 = vadd.f32 %v3765_v23, %v1080_v14 }
 0x159   :  { %v4180_v24 = vadd.f32 %v1381_v17, %v1081_v20  ;;  %v3450_v17 = vld [vmem:[%s5032_s0 + $0x364] sm:$0xf0]  ;;  %v1237_v18 = vpop.f32.mrf.mxu3  ;;  %v3014_v20 = vld [vmem:[%s5032_s0 + $0x370] sm:$0xf]  ;;  %v1538_v29 = vpop.f32.mrf.mxu2 }
 0x15a   :  { %v3007_v28 = vor.u32 %v3450_v17, %v3006_v40  ;;  %v3451_v40 = vld [vmem:[%s5032_s0 + $0x374] sm:$0xf]  ;;  %v3016_v17 = vld [vmem:[%s5032_s0 + $0x378] sm:$0xf0]  ;;  %v3453_v18 = vld [vmem:[%s5032_s0 + $0x384] sm:$0xf] }
 0x15b   :  { %v1388_v27 = vpop.f32.mrf.mxu1 }
 0x15c   :  { %1271 = vmatmul.bf16.gmra.mxu3 %v3007_v28 }
 0x15e   :  { %3141 = vmatmul.msk.bf16.gmra.mxu1 %vm817_vm1, %v2747_v50  ;;  %v1083_v48 = vpop.f32.mrf.mxu0  ;;  %v3452_v50 = vld [vmem:[%s5032_s0 + $0x374] sm:$0xf0] }
 0x15f   :  { %v1084_v56 = vadd.f32 %v3765_v23, %v1083_v48  ;;  %v3015_v31 = vor.u32 %v3452_v50, %v3014_v20  ;;  %v3024_v20 = vld [vmem:[%s5032_s0 + $0x388] sm:$0xf0] }
 0x160   :  { %v3027_v50 = vor.u32 %v3453_v18, %v3024_v20 }
 0x161   :  { %v4202_v61 = vadd.f32 %v1384_v41, %v1084_v56  ;;  %1115 = vmatmul.bf16.gmra.mxu0 %v2735_v42  ;;  %v2742_v41 = vld [vmem:[%s5032_s0 + $0x150] sm:$0xf]  ;;  %v3019_v42 = vor.u32 %v3451_v40, %v3016_v17  ;;  %v1239_v28 = vpop.f32.mrf.mxu3  ;;  %v1540_v48 = vpop.f32.mrf.mxu2  ;;  %v3387_v56 = vld [vmem:[%s5032_s0 + $0x174] sm:$0xf]  ;;  %v3389_v17 = vld [vmem:[%s5032_s0 + $0x184] sm:$0xf] }
 0x162   :  { %v2743_v27 = vor.u32 %v3384_v8, %v2742_v41  ;;  %v2763_v58 = vor.u32 %v3387_v56, %v2760_v57  ;;  %v3023_v41 = vor.u32 %v3454_v10, %v3022_v5  ;;  %v3388_v56 = vld [vmem:[%s5032_s0 + $0x174] sm:$0xf0] }
 0x163   :  { %v1389_v62 = vpop.f32.mrf.mxu1 }
 0x164   :  { %3175 = vmatmul.msk.bf16.gmra.mxu2 %vm817_vm1, %v3019_v42  ;;  %v2768_v42 = vld [vmem:[%s5032_s0 + $0x188] sm:$0xf0] }
 0x165   :  { %v2771_v28 = vor.u32 %v3389_v17, %v2768_v42 }
 0x166   :  { %v1085_v51 = vpop.f32.mrf.mxu0 }
 0x169   :  { %v1240_v51 = vpop.f32.mrf.mxu3 }
 0x16b   :  { %v1391_v14 = vpop.f32.mrf.mxu1 }
 0x16c   :  { %1276 = vmatmul.bf16.gmra.mxu3 %v3015_v31  ;;  %v1541_v14 = vpop.f32.mrf.mxu2 }
 0x16e   :  { %3142 = vmatmul.msk.bf16.gmra.mxu1 %vm817_vm1, %v2755_v12  ;;  %v1087_v4 = vpop.f32.mrf.mxu0  ;;  %v2751_v12 = vor.u32 %v3386_v63, %v2750_v55 }
 0x171   :  { %1120 = vmatmul.bf16.gmra.mxu0 %v2743_v27  ;;  %v1242_v29 = vpop.f32.mrf.mxu3 }
 0x172   :  { %v1243_v31 = vadd.f32 %v3765_v23, %v1242_v29 }
 0x173   :  { %v1392_v43 = vpop.f32.mrf.mxu1 }
 0x174   :  { %3176 = vmatmul.msk.bf16.gmra.mxu2 %vm817_vm1, %v3027_v50  ;;  %v1543_v4 = vpop.f32.mrf.mxu2 }
 0x175   :  { %v4264_v43 = vadd.f32 %v1543_v4, %v1243_v31  ;;  %v3391_v31 = vld [vmem:[%s5032_s0 + $0x194] sm:$0xf]  ;;  %v2776_v4 = vld [vmem:[%s5032_s0 + $0x198] sm:$0xf0] }
 0x176   :  { %v1088_v34 = vpop.f32.mrf.mxu0  ;;  %v2779_v17 = vor.u32 %v3391_v31, %v2776_v4 }
 0x177   :  { %v2758_v34 = vld [vmem:[%s5032_s0 + $0x170] sm:$0xf] }
 0x178   :  { %v2759_v55 = vor.u32 %v3388_v56, %v2758_v34  ;;  %v3390_v34 = vld [vmem:[%s5032_s0 + $0x184] sm:$0xf0] }
 0x179   :  { %v1244_v57 = vpop.f32.mrf.mxu3 }
 0x17a   :  { %v1245_v63 = vadd.f32 %v3765_v23, %v1244_v57  ;;  %v3038_v57 = vld [vmem:[%s5032_s0 + $0x3a0] sm:$0xf] }
 0x17b   :  { %v1394_v62 = vpop.f32.mrf.mxu1 }
 0x17c   :  { %1281 = vmatmul.bf16.gmra.mxu3 %v3023_v41  ;;  %v3456_v62 = vld [vmem:[%s5032_s0 + $0x394] sm:$0xf0]  ;;  %v1545_v51 = vpop.f32.mrf.mxu2  ;;  %v3032_v41 = vld [vmem:[%s5032_s0 + $0x398] sm:$0xf0] }
 0x17d   :  { %v4283_v14 = vadd.f32 %v1545_v51, %v1245_v63 }
 0x17e   :  { %3143 = vmatmul.msk.bf16.gmra.mxu1 %vm817_vm1, %v2763_v58  ;;  %v1090_v8 = vpop.f32.mrf.mxu0  ;;  %v3030_v58 = vld [vmem:[%s5032_s0 + $0x390] sm:$0xf] }
 0x17f   :  { %v3031_v5 = vor.u32 %v3456_v62, %v3030_v58  ;;  %v3458_v58 = vld [vmem:[%s5032_s0 + $0x3a4] sm:$0xf0] }
 0x180   :  { %v3039_v63 = vor.u32 %v3458_v58, %v3038_v57 }
 0x181   :  { %1125 = vmatmul.bf16.gmra.mxu0 %v2751_v12  ;;  %v3455_v12 = vld [vmem:[%s5032_s0 + $0x394] sm:$0xf]  ;;  %v1247_v20 = vpop.f32.mrf.mxu3 }
 0x182   :  { %v3035_v8 = vor.u32 %v3455_v12, %v3032_v41  ;;  %v1248_v50 = vadd.f32 %v3765_v23, %v1247_v20  ;;  %v3040_v12 = vld [vmem:[%s5032_s0 + $0x3a8] sm:$0xf0] }
 0x183   :  { %v1395_v27 = vpop.f32.mrf.mxu1 }
 0x184   :  { %3177 = vmatmul.msk.bf16.gmra.mxu2 %vm817_vm1, %v3035_v8  ;;  %v1548_v27 = vpop.f32.mrf.mxu2 }
 0x186   :  { %v1091_v40 = vpop.f32.mrf.mxu0 }
 0x187   :  { %v4296_v40 = vadd.f32 %v1548_v27, %v1248_v50  ;;  %v1616_v27 = vmax.f32 %v3781_v33, 0.0 }
 0x189   :  { %v4304_v56 = vpop.f32.mrf.mxu3 }
 0x18b   :  { %v1397_v48 = vpop.f32.mrf.mxu1 }
 0x18c   :  { %1286 = vmatmul.bf16.gmra.mxu3 %v3031_v5  ;;  %v3457_v5 = vld [vmem:[%s5032_s0 + $0x3a4] sm:$0xf] }
 0x18d   :  { %v3043_v41 = vor.u32 %v3457_v5, %v3040_v12  ;;  %v3392_v5 = vld [vmem:[%s5032_s0 + $0x194] sm:$0xf0]  ;;  %v1617_v12 = vmax.f32 %v3791_v39, 0.0  ;;  %v3459_v39 = vld [vmem:[%s5032_s0 + $0x3b4] sm:$0xf] }
 0x18e   :  { %3144 = vmatmul.msk.bf16.gmra.mxu1 %vm817_vm1, %v2771_v28  ;;  %v1093_v10 = vpop.f32.mrf.mxu0  ;;  %v2766_v28 = vld [vmem:[%s5032_s0 + $0x180] sm:$0xf] }
 0x18f   :  { %v2767_v62 = vor.u32 %v3390_v34, %v2766_v28  ;;  %v3393_v34 = vld [vmem:[%s5032_s0 + $0x1a4] sm:$0xf] }
 0x191   :  { %1130 = vmatmul.bf16.gmra.mxu0 %v2759_v55  ;;  %v4313_v55 = vpop.f32.mrf.mxu2  ;;  %v1252_v50 = vpop.f32.mrf.mxu3 }
 0x192   :  { %v1253_v4 = vadd.f32 %v3765_v23, %v1252_v50 }
 0x193   :  { %v1399_v18 = vpop.f32.mrf.mxu1 }
 0x194   :  { %3178 = vmatmul.msk.bf16.gmra.mxu2 %vm817_vm1, %v3043_v41 }
 0x196   :  { %v1094_v29 = vpop.f32.mrf.mxu0 }
 0x19b   :  { %v1402_v42 = vpop.f32.mrf.mxu1 }
 0x19c   :  { %1291 = vmatmul.bf16.gmra.mxu3 %v3039_v63 }
 0x19e   :  { %3145 = vmatmul.msk.bf16.gmra.mxu1 %vm817_vm1, %v2779_v17  ;;  %v1096_v51 = vpop.f32.mrf.mxu0  ;;  %v1553_v17 = vpop.f32.mrf.mxu2 }
 0x19f   :  { %v1097_v10 = vadd.f32 %v3765_v23, %v1096_v51  ;;  %v4334_v58 = vadd.f32 %v1553_v17, %v1253_v4  ;;  %v2774_v51 = vld [vmem:[%s5032_s0 + $0x190] sm:$0xf] }
 0x1a1   :  { %v1398_v8 = vadd.f32 %v1397_v48, %v1097_v10  ;;  %1135 = vmatmul.bf16.gmra.mxu0 %v2767_v62  ;;  %v2784_v48 = vld [vmem:[%s5032_s0 + $0x1a8] sm:$0xf0]  ;;  %v4342_v10 = vpop.f32.mrf.mxu3 }
 0x1a2   :  { %v2787_v62 = vor.u32 %v3393_v34, %v2784_v48  ;;  %v3048_v34 = vld [vmem:[%s5032_s0 + $0x3b8] sm:$0xf0] }
 0x1a3   :  { %v1404_v20 = vpop.f32.mrf.mxu1  ;;  %v1641_v29 = vmax.f32 %v1398_v8, 0.0  ;;  %v3046_v8 = vld [vmem:[%s5032_s0 + $0x3b0] sm:$0xf]  ;;  %v3051_v48 = vor.u32 %v3459_v39, %v3048_v34  ;;  %v2782_v34 = vld [vmem:[%s5032_s0 + $0x1a0] sm:$0xf] }
 0x1a5   :  { %v4324_v31 = vmax.f32 %v1616_v27, %v1641_v29  ;;  %v2775_v27 = vor.u32 %v3392_v5, %v2774_v51  ;;  %3179 = vmatmul.msk.bf16.gmra.mxu2 %vm817_vm1, %v3051_v48  ;;  %v1618_v51 = vmax.f32 %v3813_v53, 0.0  ;;  %v3394_v48 = vld [vmem:[%s5032_s0 + $0x1a4] sm:$0xf0] }
 0x1a6   :  { %v1098_v28 = vpop.f32.mrf.mxu0  ;;  %v4354_v29 = vpop.f32.mrf.mxu2 }
 0x1a7   :  { %v1099_v57 = vadd.f32 %v3765_v23, %v1098_v28 }
 0x1a9   :  { %v1400_v33 = vadd.f32 %v1399_v18, %v1099_v57  ;;  %v3460_v18 = vld [vmem:[%s5032_s0 + $0x3b4] sm:$0xf0] }
 0x1aa   :  { %v3047_v4 = vor.u32 %v3460_v18, %v3046_v8 }
 0x1ab   :  { %v1407_v63 = vpop.f32.mrf.mxu1  ;;  %v1642_v41 = vmax.f32 %v1400_v33, 0.0 }
 0x1ac   :  { %1296 = vmatmul.bf16.gmra.mxu3 %v3047_v4  ;;  %v3395_v4 = vld [vmem:[%s5032_s0 + $0x1b4] sm:$0xf] }
 0x1ad   :  { %v4351_v50 = vmax.f32 %v1617_v12, %v1642_v41 }
 0x1ae   :  { %3146 = vmatmul.msk.bf16.gmra.mxu1 %vm817_vm1, %v2787_v62  ;;  %v1101_v17 = vpop.f32.mrf.mxu0  ;;  %v1558_v8 = vpop.f32.mrf.mxu2 }
 0x1af   :  { %v1102_v28 = vadd.f32 %v3765_v23, %v1101_v17  ;;  %v1257_v62 = vpop.f32.mrf.mxu3 }
 0x1b0   :  { %v1258_v41 = vadd.f32 %v3765_v23, %v1257_v62  ;;  %v1619_v62 = vmax.f32 %v3823_v59, 0.0  ;;  %v3461_v59 = vld [vmem:[%s5032_s0 + $0x3c4] sm:$0xf] }
 0x1b1   :  { %v1403_v57 = vadd.f32 %v1402_v42, %v1102_v28  ;;  %1140 = vmatmul.bf16.gmra.mxu0 %v2775_v27  ;;  %v2792_v42 = vld [vmem:[%s5032_s0 + $0x1b8] sm:$0xf0] }
 0x1b2   :  { %v4375_v17 = vadd.f32 %v1558_v8, %v1258_v41  ;;  %v2795_v39 = vor.u32 %v3395_v4, %v2792_v42  ;;  %v2783_v41 = vor.u32 %v3394_v48, %v2782_v34  ;;  %v4403_v42 = vld [vmem:[%s5033_s2] ss:$0 sm:$0xff] }
 0x1b3   :  { %v1409_v33 = vpop.f32.mrf.mxu1  ;;  %v1643_v5 = vmax.f32 %v1403_v57, 0.0 }
 0x1b5   :  { %v4365_v12 = vmax.f32 %v1618_v51, %v1643_v5 }
 0x1b6   :  { %v1103_v18 = vpop.f32.mrf.mxu0  ;;  %v4395_v8 = vpop.f32.mrf.mxu2 }
 0x1b7   :  { %v1104_v27 = vadd.f32 %v3765_v23, %v1103_v18  ;;  %v4383_v57 = vpop.f32.mrf.mxu3  ;;  %v3054_v23 = vld [vmem:[%s5032_s0 + $0x3c0] sm:$0xf]  ;;  %5044 = vst [vmem:[#allocation5_spill] sm:$0xff] %v4395_v8 }
 0x1b8   :  { %5043 = vst [vmem:[#allocation4_spill] sm:$0xff] %v4383_v57 }
 0x1b9   :  { %v1405_v53 = vadd.f32 %v1404_v20, %v1104_v27  ;;  %v3462_v20 = vld [vmem:[%s5032_s0 + $0x3c4] sm:$0xf0] }
 0x1ba   :  { %v3055_v18 = vor.u32 %v3462_v20, %v3054_v23 }
 0x1bb   :  { %v1412_v28 = vpop.f32.mrf.mxu1  ;;  %v1644_v51 = vmax.f32 %v1405_v53, 0.0  ;;  %v3056_v53 = vld [vmem:[%s5032_s0 + $0x3c8] sm:$0xf0] }
 0x1bc   :  { %1301 = vmatmul.bf16.gmra.mxu3 %v3055_v18 }
 0x1bd   :  { %v4392_v5 = vmax.f32 %v1619_v62, %v1644_v51  ;;  %v1620_v51 = vmax.f32 %v3845_v9, 0.0 }
 0x1be   :  { %3147 = vmatmul.msk.bf16.gmra.mxu1 %vm817_vm1, %v2795_v39  ;;  %v1106_v4 = vpop.f32.mrf.mxu0  ;;  %v3059_v39 = vor.u32 %v3461_v59, %v3056_v53 }
 0x1bf   :  { %v1107_v27 = vadd.f32 %v4403_v42, %v1106_v4  ;;  %v1262_v62 = vpop.f32.mrf.mxu3  ;;  %v1563_v4 = vpop.f32.mrf.mxu2 }
 0x1c0   :  { %3180 = vmatmul.msk.bf16.gmra.mxu2 %vm817_vm1, %v3059_v39  ;;  %v1263_v25 = vadd.f32 %v4403_v42, %v1262_v62  ;;  %v2790_v39 = vld [vmem:[%s5032_s0 + $0x1b0] sm:$0xf] }
 0x1c1   :  { %v1408_v34 = vadd.f32 %v1407_v63, %v1107_v27  ;;  %1145 = vmatmul.bf16.gmra.mxu0 %v2783_v41  ;;  %v2800_v63 = vld [vmem:[%s5032_s0 + $0x1c8] sm:$0xf0] }
 0x1c2   :  { %v4421_v59 = vadd.f32 %v1563_v4, %v1263_v25  ;;  %v2803_v27 = vor.u32 %v3397_v13, %v2800_v63 }
 0x1c3   :  { %v1414_v48 = vpop.f32.mrf.mxu1  ;;  %v1645_v23 = vmax.f32 %v1408_v34, 0.0  ;;  %v3396_v34 = vld [vmem:[%s5032_s0 + $0x1b4] sm:$0xf0] }
 0x1c4   :  { %5045 = vst [vmem:[#allocation6_spill] sm:$0xff] %v4421_v59  ;;  %v2791_v25 = vor.u32 %v3396_v34, %v2790_v39  ;;  %v1622_v59 = vmax.f32 %v3877_v30, 0.0 }
 0x1c5   :  { %v4411_v20 = vmax.f32 %v1620_v51, %v1645_v23  ;;  %v1621_v51 = vmax.f32 %v3855_v15, 0.0 }
 0x1c6   :  { %v1108_v18 = vpop.f32.mrf.mxu0 }
 0x1c7   :  { %v1109_v41 = vadd.f32 %v4403_v42, %v1108_v18  ;;  %v4429_v62 = vpop.f32.mrf.mxu3  ;;  %v4435_v13 = vpop.f32.mrf.mxu2 }
 0x1c8   :  { %5046 = vst [vmem:[#allocation7_spill] sm:$0xff] %v4429_v62 }
 0x1c9   :  { %v1410_v9 = vadd.f32 %v1409_v33, %v1109_v41  ;;  %5047 = vst [vmem:[#allocation8_spill] sm:$0xff] %v4435_v13 }
 0x1cb   :  { %v1417_v53 = vpop.f32.mrf.mxu1  ;;  %v1646_v23 = vmax.f32 %v1410_v9, 0.0 }
 0x1cd   :  { %v4432_v8 = vmax.f32 %v1621_v51, %v1646_v23 }
 0x1ce   :  { %3148 = vmatmul.msk.bf16.gmra.mxu1 %vm817_vm1, %v2803_v27  ;;  %v1111_v33 = vpop.f32.mrf.mxu0  ;;  %v3399_v27 = vld [vmem:[%s5032_s0 + $0x1d4] sm:$0xf] }
 0x1cf   :  { %v1112_v4 = vadd.f32 %v4403_v42, %v1111_v33  ;;  %v1267_v41 = vpop.f32.mrf.mxu3  ;;  %v1568_v9 = vpop.f32.mrf.mxu2 }
 0x1d0   :  { %v1268_v15 = vadd.f32 %v4403_v42, %v1267_v41 }
 0x1d1   :  { %v1413_v18 = vadd.f32 %v1412_v28, %v1112_v4  ;;  %1150 = vmatmul.bf16.gmra.mxu0 %v2791_v25  ;;  %v2808_v28 = vld [vmem:[%s5032_s0 + $0x1d8] sm:$0xf0]  ;;  %v3398_v25 = vld [vmem:[%s5032_s0 + $0x1c4] sm:$0xf0]  ;;  %v1623_v4 = vmax.f32 %v3887_v37, 0.0 }
 0x1d2   :  { %v4449_v34 = vadd.f32 %v1568_v9, %v1268_v15  ;;  %v2811_v23 = vor.u32 %v3399_v27, %v2808_v28 }
 0x1d3   :  { %v1419_v63 = vpop.f32.mrf.mxu1  ;;  %v1647_v62 = vmax.f32 %v1413_v18, 0.0 }
 0x1d4   :  { %5048 = vst [vmem:[#allocation9_spill] sm:$0xff] %v4449_v34  ;;  %v1624_v34 = vmax.f32 %v3909_v52, 0.0 }
 0x1d5   :  { %v4439_v57 = vmax.f32 %v1622_v59, %v1647_v62  ;;  %v2798_v62 = vld [vmem:[%s5032_s0 + $0x1c0] sm:$0xf] }
 0x1d6   :  { %v1113_v51 = vpop.f32.mrf.mxu0 }
 0x1d7   :  { %v1114_v39 = vadd.f32 %v4403_v42, %v1113_v51  ;;  %v4457_v33 = vpop.f32.mrf.mxu3  ;;  %v4463_v15 = vpop.f32.mrf.mxu2 }
 0x1d8   :  { %5049 = vst [vmem:[#allocation10_spill] sm:$0xff] %v4457_v33 }
 0x1d9   :  { %v1415_v30 = vadd.f32 %v1414_v48, %v1114_v39  ;;  %v2799_v48 = vor.u32 %v3398_v25, %v2798_v62 }
 0x1db   :  { %v1422_v59 = vpop.f32.mrf.mxu1  ;;  %v1648_v18 = vmax.f32 %v1415_v30, 0.0 }
 0x1dd   :  { %v4460_v41 = vmax.f32 %v1623_v4, %v1648_v18 }
 0x1de   :  { %3149 = vmatmul.msk.bf16.gmra.mxu1 %vm817_vm1, %v2811_v23  ;;  %v1116_v9 = vpop.f32.mrf.mxu0  ;;  %v3401_v23 = vld [vmem:[%s5032_s0 + $0x1e4] sm:$0xf] }
 0x1df   :  { %v1117_v51 = vadd.f32 %v4403_v42, %v1116_v9  ;;  %v1272_v39 = vpop.f32.mrf.mxu3  ;;  %v1573_v30 = vpop.f32.mrf.mxu2 }
 0x1e0   :  { %v1273_v37 = vadd.f32 %v4403_v42, %v1272_v39 }
 0x1e1   :  { %v1418_v27 = vadd.f32 %v1417_v53, %v1117_v51  ;;  %1155 = vmatmul.bf16.gmra.mxu0 %v2799_v48  ;;  %v2816_v53 = vld [vmem:[%s5032_s0 + $0x1e8] sm:$0xf0]  ;;  %v3400_v48 = vld [vmem:[%s5032_s0 + $0x1d4] sm:$0xf0]  ;;  %v1625_v51 = vmax.f32 %v3919_v60, 0.0 }
 0x1e2   :  { %v4477_v25 = vadd.f32 %v1573_v30, %v1273_v37  ;;  %v2819_v18 = vor.u32 %v3401_v23, %v2816_v53 }
 0x1e3   :  { %v1424_v28 = vpop.f32.mrf.mxu1  ;;  %v1649_v33 = vmax.f32 %v1418_v27, 0.0 }
 0x1e4   :  { %5050 = vst [vmem:[#allocation11_spill] sm:$0xff] %v4477_v25  ;;  %v1626_v25 = vmax.f32 %v3941_v11, 0.0 }
 0x1e5   :  { %v4467_v13 = vmax.f32 %v1624_v34, %v1649_v33  ;;  %v2806_v33 = vld [vmem:[%s5032_s0 + $0x1d0] sm:$0xf] }
 0x1e6   :  { %v1118_v4 = vpop.f32.mrf.mxu0 }
 0x1e7   :  { %v1119_v62 = vadd.f32 %v4403_v42, %v1118_v4  ;;  %v4485_v9 = vpop.f32.mrf.mxu3  ;;  %v4491_v37 = vpop.f32.mrf.mxu2 }
 0x1e8   :  { %5051 = vst [vmem:[#allocation12_spill] sm:$0xff] %v4485_v9 }
 0x1e9   :  { %v1420_v52 = vadd.f32 %v1419_v63, %v1119_v62  ;;  %v2807_v63 = vor.u32 %v3400_v48, %v2806_v33  ;;  %5052 = vst [vmem:[#allocation13_spill] sm:$0xff] %v4491_v37 }
 0x1eb   :  { %v1427_v34 = vpop.f32.mrf.mxu1  ;;  %v1650_v27 = vmax.f32 %v1420_v52, 0.0 }
 0x1ed   :  { %v4488_v39 = vmax.f32 %v1625_v51, %v1650_v27 }
 0x1ee   :  { %3150 = vmatmul.msk.bf16.gmra.mxu1 %vm817_vm1, %v2819_v18  ;;  %v1121_v30 = vpop.f32.mrf.mxu0  ;;  %v3403_v18 = vld [vmem:[%s5032_s0 + $0x1f4] sm:$0xf] }
 0x1ef   :  { %v1122_v4 = vadd.f32 %v4403_v42, %v1121_v30  ;;  %v1277_v62 = vpop.f32.mrf.mxu3  ;;  %v1578_v51 = vpop.f32.mrf.mxu2 }
 0x1f0   :  { %v1278_v60 = vadd.f32 %v4403_v42, %v1277_v62 }
 0x1f1   :  { %v1423_v23 = vadd.f32 %v1422_v59, %v1122_v4  ;;  %1159 = vmatmul.bf16.gmra.mxu0 %v2807_v63  ;;  %v2824_v59 = vld [vmem:[%s5032_s0 + $0x1f8] sm:$0xf0] }
 0x1f2   :  { %v4504_v33 = vadd.f32 %v1578_v51, %v1278_v60  ;;  %v2827_v63 = vor.u32 %v3403_v18, %v2824_v59 }
 0x1f3   :  { %v1429_v53 = vpop.f32.mrf.mxu1  ;;  %v1651_v9 = vmax.f32 %v1423_v23, 0.0  ;;  %v1627_v23 = vmax.f32 %v3953_v19, 0.0 }
 0x1f4   :  { %5053 = vst [vmem:[#allocation14_spill] sm:$0xff] %v4504_v33  ;;  %v1628_v33 = vmax.f32 %v3977_v38, 0.0 }
 0x1f5   :  { %v4496_v52 = vmax.f32 %v1626_v25, %v1651_v9  ;;  %v2814_v25 = vld [vmem:[%s5032_s0 + $0x1e0] sm:$0xf]  ;;  %v3402_v9 = vld [vmem:[%s5032_s0 + $0x1e4] sm:$0xf0] }
 0x1f6   :  { %v1123_v27 = vpop.f32.mrf.mxu0 }
 0x1f7   :  { %v1124_v48 = vadd.f32 %v4403_v42, %v1123_v27  ;;  %v4513_v4 = vpop.f32.mrf.mxu3  ;;  %v4519_v51 = vpop.f32.mrf.mxu2 }
 0x1f8   :  { %5054 = vst [vmem:[#allocation15_spill] sm:$0xff] %v4513_v4 }
 0x1f9   :  { %v1425_v11 = vadd.f32 %v1424_v28, %v1124_v48  ;;  %v2815_v28 = vor.u32 %v3402_v9, %v2814_v25  ;;  %5055 = vst [vmem:[#allocation16_spill] sm:$0xff] %v4519_v51 }
 0x1fb   :  { %v1432_v30 = vpop.f32.mrf.mxu1  ;;  %v1652_v62 = vmax.f32 %v1425_v11, 0.0 }
 0x1fd   :  { %v4516_v60 = vmax.f32 %v1627_v23, %v1652_v62 }
 0x1fe   :  { %3151 = vmatmul.msk.bf16.gmra.mxu1 %vm817_vm1, %v2827_v63  ;;  %v1126_v27 = vpop.f32.mrf.mxu0  ;;  %v3405_v63 = vld [vmem:[%s5032_s0 + $0x204] sm:$0xf] }
 0x1ff   :  { %v1127_v18 = vadd.f32 %v4403_v42, %v1126_v27  ;;  %v1282_v37 = vpop.f32.mrf.mxu3  ;;  %v1583_v23 = vpop.f32.mrf.mxu2 }
 0x200   :  { %v1283_v19 = vadd.f32 %v4403_v42, %v1282_v37  ;;  %v2822_v37 = vld [vmem:[%s5032_s0 + $0x1f0] sm:$0xf] }
 0x201   :  { %v1428_v59 = vadd.f32 %v1427_v34, %v1127_v18  ;;  %1162 = vmatmul.bf16.gmra.mxu0 %v2815_v28  ;;  %v2832_v34 = vld [vmem:[%s5032_s0 + $0x208] sm:$0xf0]  ;;  %v1629_v18 = vmax.f32 %v3990_v49, 0.0 }
 0x202   :  { %v1584_v25 = vadd.f32 %v1583_v23, %v1283_v19  ;;  %v2835_v38 = vor.u32 %v3405_v63, %v2832_v34 }
 0x203   :  { %v1434_v48 = vpop.f32.mrf.mxu1  ;;  %v1653_v4 = vmax.f32 %v1428_v59, 0.0 }
 0x205   :  { %v4524_v11 = vmax.f32 %v1628_v33, %v1653_v4  ;;  %v3404_v33 = vld [vmem:[%s5032_s0 + $0x1f4] sm:$0xf0] }
 0x206   :  { %v1128_v62 = vpop.f32.mrf.mxu0 }
 0x207   :  { %5056 = vst [vmem:[#allocation17_spill] sm:$0xff] %v4524_v11  ;;  %v1129_v9 = vadd.f32 %v4403_v42, %v1128_v62  ;;  %v4539_v4 = vpop.f32.mrf.mxu3  ;;  %v4545_v19 = vpop.f32.mrf.mxu2  ;;  %v1630_v11 = vmax.f32 %v4015_v7, 0.0 }
 0x208   :  { %5057 = vst [vmem:[#allocation18_spill] sm:$0xff] %v4539_v4 }
 0x209   :  { %v1430_v28 = vadd.f32 %v1429_v53, %v1129_v9  ;;  %v2823_v53 = vor.u32 %v3404_v33, %v2822_v37  ;;  %5059 = vst [vmem:[#allocation20_spill] sm:$0xff] %v4545_v19 }
 0x20b   :  { %v1437_v27 = vpop.f32.mrf.mxu1  ;;  %v1654_v59 = vmax.f32 %v1430_v28, 0.0 }
 0x20d   :  { %v4542_v51 = vmax.f32 %v1629_v18, %v1654_v59 }
 0x20e   :  { %3152 = vmatmul.msk.bf16.gmra.mxu1 %vm817_vm1, %v2835_v38  ;;  %v1131_v23 = vpop.f32.mrf.mxu0  ;;  %v3407_v38 = vld [vmem:[%s5032_s0 + $0x214] sm:$0xf] }
 0x20f   :  { %5058 = vst [vmem:[#allocation19_spill] sm:$0xff] %v4542_v51  ;;  %v1132_v62 = vadd.f32 %v4403_v42, %v1131_v23  ;;  %v1287_v9 = vpop.f32.mrf.mxu3  ;;  %v1588_v28 = vpop.f32.mrf.mxu2  ;;  %v1632_v51 = vmax.f32 %v4059_v54, 0.0 }
 0x210   :  { %v1288_v49 = vadd.f32 %v4403_v42, %v1287_v9 }
 0x211   :  { %v1433_v63 = vadd.f32 %v1432_v30, %v1132_v62  ;;  %1165 = vmatmul.bf16.gmra.mxu0 %v2823_v53  ;;  %v2840_v30 = vld [vmem:[%s5032_s0 + $0x218] sm:$0xf0] }
 0x212   :  { %v4558_v37 = vadd.f32 %v1588_v28, %v1288_v49  ;;  %v2843_v53 = vor.u32 %v3407_v38, %v2840_v30 }
 0x213   :  { %v1439_v34 = vpop.f32.mrf.mxu1  ;;  %v1655_v4 = vmax.f32 %v1433_v63, 0.0  ;;  %v1631_v63 = vmax.f32 %v4034_v26, 0.0 }
 0x215   :  { %v4550_v18 = vmax.f32 %v1630_v11, %v1655_v4  ;;  %v2830_v11 = vld [vmem:[%s5032_s0 + $0x200] sm:$0xf]  ;;  %v3406_v4 = vld [vmem:[%s5032_s0 + $0x204] sm:$0xf0] }
 0x216   :  { %v1133_v59 = vpop.f32.mrf.mxu0  ;;  %v2831_v49 = vor.u32 %v3406_v4, %v2830_v11  ;;  %v1707_v11 = vmax.f32 %v1584_v25, 0.0 }
 0x217   :  { %v1134_v33 = vadd.f32 %v4403_v42, %v1133_v59  ;;  %v4567_v62 = vpop.f32.mrf.mxu3  ;;  %v4571_v28 = vpop.f32.mrf.mxu2 }
 0x218   :  { %5060 = vst [vmem:[#allocation21_spill] sm:$0xff] %v4567_v62 }
 0x219   :  { %v1435_v7 = vadd.f32 %v1434_v48, %v1134_v33  ;;  %5061 = vst [vmem:[#allocation22_spill] sm:$0xff] %v4571_v28 }
 0x21b   :  { %v1442_v23 = vpop.f32.mrf.mxu1  ;;  %v1656_v9 = vmax.f32 %v1435_v7, 0.0  ;;  %v1682_v7 = vmax.f32 %v3987_v47, 0.0 }
 0x21d   :  { %v4573_v48 = vmax.f32 %v1631_v63, %v1656_v9  ;;  %v3409_v63 = vld [vmem:[%s5032_s0 + $0x224] sm:$0xf] }
 0x21e   :  { %3153 = vmatmul.msk.bf16.gmra.mxu1 %vm817_vm1, %v2843_v53  ;;  %v1136_v59 = vpop.f32.mrf.mxu0 }
 0x21f   :  { %v1137_v38 = vadd.f32 %v4403_v42, %v1136_v59  ;;  %v1292_v19 = vpop.f32.mrf.mxu3  ;;  %v1593_v4 = vpop.f32.mrf.mxu2  ;;  %v3408_v59 = vld [vmem:[%s5032_s0 + $0x214] sm:$0xf0] }
 0x220   :  { %v1293_v26 = vadd.f32 %v4403_v42, %v1292_v19 }
 0x221   :  { %v1438_v30 = vadd.f32 %v1437_v27, %v1137_v38  ;;  %1168 = vmatmul.bf16.gmra.mxu0 %v2831_v49  ;;  %v2848_v27 = vld [vmem:[%s5032_s0 + $0x228] sm:$0xf0] }
 0x222   :  { %v4585_v9 = vadd.f32 %v1593_v4, %v1293_v26 }
 0x223   :  { %v1444_v33 = vpop.f32.mrf.mxu1  ;;  %v1657_v62 = vmax.f32 %v1438_v30, 0.0  ;;  %v1633_v30 = vmax.f32 %v4072_v1, 0.0  ;;  %v1634_v1 = vmax.f32 %v4097_v32, 0.0 }
 0x225   :  { %v1732_v53 = vmax.f32 %v1632_v51, %v1657_v62  ;;  %v2851_v51 = vor.u32 %v3409_v63, %v2848_v27  ;;  %v2838_v62 = vld [vmem:[%s5032_s0 + $0x210] sm:$0xf] }
 0x226   :  { %v1138_v28 = vpop.f32.mrf.mxu0 }
 0x227   :  { %v1757_v54 = vmax.f32 %v1732_v53, %v1682_v7  ;;  %v1139_v49 = vadd.f32 %v4403_v42, %v1138_v28  ;;  %v4596_v38 = vpop.f32.mrf.mxu3  ;;  %v1683_v28 = vmax.f32 %v4006_v2, 0.0  ;;  %v4601_v53 = vpop.f32.mrf.mxu2 }
 0x229   :  { %v4588_v19 = vmax.f32 %v1757_v54, %v1707_v11  ;;  %v1440_v47 = vadd.f32 %v1439_v34, %v1139_v49  ;;  %v2839_v34 = vor.u32 %v3408_v59, %v2838_v62  ;;  %v1709_v62 = vmax.f32 %v4558_v37, 0.0 }
 0x22b   :  { %v1447_v25 = vpop.f32.mrf.mxu1  ;;  %v1658_v26 = vmax.f32 %v1440_v47, 0.0 }
 0x22d   :  { %v1733_v7 = vmax.f32 %v1633_v30, %v1658_v26  ;;  %v1684_v30 = vmax.f32 %v4031_v22, 0.0 }
 0x22e   :  { %3154 = vmatmul.msk.bf16.gmra.mxu1 %vm817_vm1, %v2851_v51  ;;  %v1141_v11 = vpop.f32.mrf.mxu0 }
 0x22f   :  { %v4603_v4 = vmax.f32 %v1733_v7, %v1683_v28  ;;  %v1142_v63 = vadd.f32 %v4403_v42, %v1141_v11  ;;  %v1297_v49 = vpop.f32.mrf.mxu3  ;;  %v1598_v59 = vpop.f32.mrf.mxu2  ;;  %v3411_v28 = vld [vmem:[%s5032_s0 + $0x234] sm:$0xf] }
 0x230   :  { %v1298_v2 = vadd.f32 %v4403_v42, %v1297_v49  ;;  %v3410_v49 = vld [vmem:[%s5032_s0 + $0x224] sm:$0xf0] }
 0x231   :  { %v1443_v27 = vadd.f32 %v1442_v23, %v1142_v63  ;;  %1173 = vmatmul.bf16.gmra.mxu0 %v2839_v34  ;;  %v2856_v23 = vld [vmem:[%s5032_s0 + $0x238] sm:$0xf0] }
 0x232   :  { %v4616_v7 = vadd.f32 %v1598_v59, %v1298_v2  ;;  %v2859_v63 = vor.u32 %v3411_v28, %v2856_v23 }
 0x233   :  { %v1449_v54 = vpop.f32.mrf.mxu1  ;;  %v1659_v47 = vmax.f32 %v1443_v27, 0.0  ;;  %v2846_v27 = vld [vmem:[%s5032_s0 + $0x220] sm:$0xf] }
 0x235   :  { %v1734_v51 = vmax.f32 %v1634_v1, %v1659_v47  ;;  %v1635_v47 = vmax.f32 %v4110_v46, 0.0  ;;  %v1636_v46 = vmax.f32 %v4135_v16, 0.0 }
 0x236   :  { %v1143_v26 = vpop.f32.mrf.mxu0 }
 0x237   :  { %v1759_v32 = vmax.f32 %v1734_v51, %v1684_v30  ;;  %v1144_v34 = vadd.f32 %v4403_v42, %v1143_v26  ;;  %v4627_v1 = vpop.f32.mrf.mxu3  ;;  %v1685_v30 = vmax.f32 %v4050_v44, 0.0 }
 0x239   :  { %v4619_v11 = vmax.f32 %v1759_v32, %v1709_v62  ;;  %v1445_v22 = vadd.f32 %v1444_v33, %v1144_v34  ;;  %v2847_v33 = vor.u32 %v3410_v49, %v2846_v27  ;;  %v4632_v62 = vpop.f32.mrf.mxu2  ;;  %v1711_v27 = vmax.f32 %v4585_v9, 0.0 }
 0x23b   :  { %v1452_v37 = vpop.f32.mrf.mxu1  ;;  %v1660_v2 = vmax.f32 %v1445_v22, 0.0 }
 0x23d   :  { %v1735_v51 = vmax.f32 %v1635_v47, %v1660_v2  ;;  %v1686_v47 = vmax.f32 %v4069_v0, 0.0 }
 0x23e   :  { %3155 = vmatmul.msk.bf16.gmra.mxu1 %vm817_vm1, %v2859_v63  ;;  %v1146_v59 = vpop.f32.mrf.mxu0 }
 0x23f   :  { %v4634_v26 = vmax.f32 %v1735_v51, %v1685_v30  ;;  %v1147_v28 = vadd.f32 %v4403_v42, %v1146_v59  ;;  %v1302_v34 = vpop.f32.mrf.mxu3  ;;  %v3413_v30 = vld [vmem:[%s5032_s0 + $0x244] sm:$0xf] }
 0x240   :  { %v1303_v44 = vadd.f32 %v4403_v42, %v1302_v34  ;;  %v3412_v34 = vld [vmem:[%s5032_s0 + $0x234] sm:$0xf0] }
 0x241   :  { %v1448_v23 = vadd.f32 %v1447_v25, %v1147_v28  ;;  %1178 = vmatmul.bf16.gmra.mxu0 %v2847_v33  ;;  %v2864_v25 = vld [vmem:[%s5032_s0 + $0x248] sm:$0xf0] }
 0x242   :  { %v2867_v28 = vor.u32 %v3413_v30, %v2864_v25 }
 0x243   :  { %v1454_v32 = vpop.f32.mrf.mxu1  ;;  %v1661_v22 = vmax.f32 %v1448_v23, 0.0  ;;  %v1603_v49 = vpop.f32.mrf.mxu2  ;;  %v2854_v23 = vld [vmem:[%s5032_s0 + $0x230] sm:$0xf] }
 0x244   :  { %v4647_v51 = vadd.f32 %v1603_v49, %v1303_v44 }
 0x245   :  { %v1736_v63 = vmax.f32 %v1636_v46, %v1661_v22  ;;  %v1637_v22 = vmax.f32 %v4148_v36, 0.0  ;;  %v1688_v36 = vmax.f32 %v4107_v45, 0.0  ;;  %v3464_v45 = vld [vmem:[%s5032_s0 + $0x3d4] sm:$0xf0] }
 0x246   :  { %v1148_v2 = vpop.f32.mrf.mxu0 }
 0x247   :  { %v1761_v16 = vmax.f32 %v1736_v63, %v1686_v47  ;;  %v1149_v33 = vadd.f32 %v4403_v42, %v1148_v2  ;;  %v1304_v46 = vpop.f32.mrf.mxu3  ;;  %v1687_v47 = vmax.f32 %v4088_v21, 0.0  ;;  %v1713_v21 = vmax.f32 %v4616_v7, 0.0  ;;  %v3463_v7 = vld [vmem:[%s5032_s0 + $0x3d4] sm:$0xf] }
 0x249   :  { %v4650_v59 = vmax.f32 %v1761_v16, %v1711_v27  ;;  %v1450_v0 = vadd.f32 %v1449_v54, %v1149_v33  ;;  %v2855_v54 = vor.u32 %v3412_v34, %v2854_v23  ;;  %v1638_v33 = vmax.f32 %v4170_v3, 0.0  ;;  %v2872_v23 = vld [vmem:[%s5032_s0 + $0x258] sm:$0xf0]  ;;  %v3062_v3 = vld [vmem:[%s5032_s0 + $0x3d0] sm:$0xf] }
 0x24b   :  { %v1457_v9 = vpop.f32.mrf.mxu1  ;;  %v1662_v44 = vmax.f32 %v1450_v0, 0.0  ;;  %v1605_v27 = vpop.f32.mrf.mxu2 }
 0x24c   :  { %v3064_v27 = vld [vmem:[%s5032_s0 + $0x3d8] sm:$0xf0] }
 0x24d   :  { %v1737_v63 = vmax.f32 %v1637_v22, %v1662_v44 }
 0x24e   :  { %3156 = vmatmul.msk.bf16.gmra.mxu1 %vm817_vm1, %v2867_v28  ;;  %v1151_v49 = vpop.f32.mrf.mxu0  ;;  %v3415_v28 = vld [vmem:[%s5032_s0 + $0x254] sm:$0xf] }
 0x24f   :  { %v4661_v2 = vmax.f32 %v1737_v63, %v1687_v47  ;;  %v1152_v30 = vadd.f32 %v4403_v42, %v1151_v49  ;;  %v2875_v63 = vor.u32 %v3415_v28, %v2872_v23 }
 0x251   :  { %v1453_v25 = vadd.f32 %v1452_v37, %v1152_v30  ;;  %1183 = vmatmul.bf16.gmra.mxu0 %v2855_v54  ;;  %v3063_v54 = vor.u32 %v3464_v45, %v3062_v3  ;;  %v2862_v30 = vld [vmem:[%s5032_s0 + $0x240] sm:$0xf]  ;;  %v1690_v3 = vmax.f32 %v4145_v35, 0.0  ;;  %v3466_v35 = vld [vmem:[%s5032_s0 + $0x3e4] sm:$0xf0] }
 0x253   :  { %v1459_v16 = vpop.f32.mrf.mxu1  ;;  %v1663_v46 = vmax.f32 %v1453_v25, 0.0  ;;  %v3414_v25 = vld [vmem:[%s5032_s0 + $0x244] sm:$0xf0]  ;;  %1305 = vmatmul.bf16.gmra.mxu3 %v3063_v54 }
 0x254   :  { %v3067_v16 = vor.u32 %v3463_v7, %v3064_v27 }
 0x255   :  { %v1738_v0 = vmax.f32 %v1638_v33, %v1663_v46  ;;  %v1639_v33 = vmax.f32 %v4180_v24, 0.0  ;;  %v1640_v24 = vmax.f32 %v4202_v61, 0.0  ;;  %v3070_v61 = vld [vmem:[%s5032_s0 + $0x3e0] sm:$0xf] }
 0x256   :  { %v1153_v22 = vpop.f32.mrf.mxu0  ;;  %3181 = vmatmul.msk.bf16.gmra.mxu2 %vm817_vm1, %v3067_v16  ;;  %v2870_v16 = vld [vmem:[%s5032_s0 + $0x250] sm:$0xf] }
 0x257   :  { %v1763_v37 = vmax.f32 %v1738_v0, %v1688_v36  ;;  %v1154_v34 = vadd.f32 %v4403_v42, %v1153_v22  ;;  %v2863_v0 = vor.u32 %v3414_v25, %v2862_v30  ;;  %v3072_v30 = vld [vmem:[%s5032_s0 + $0x3e8] sm:$0xf0] }
 0x259   :  { %v4683_v44 = vmax.f32 %v1763_v37, %v1713_v21  ;;  %v1455_v47 = vadd.f32 %v1454_v32, %v1154_v34  ;;  %v1689_v32 = vmax.f32 %v4126_v6, 0.0  ;;  %v1715_v6 = vmax.f32 %v4647_v51, 0.0  ;;  %v3465_v51 = vld [vmem:[%s5032_s0 + $0x3e4] sm:$0xf] }
 0x25b   :  { %v1461_v49 = vpop.f32.mrf.mxu1  ;;  %v1664_v46 = vmax.f32 %v1455_v47, 0.0  ;;  %v3417_v47 = vld [vmem:[%s5032_s0 + $0x264] sm:$0xf] }
 0x25c   :  { %v3071_v49 = vor.u32 %v3466_v35, %v3070_v61 }
 0x25d   :  { %v1739_v36 = vmax.f32 %v1639_v33, %v1664_v46  ;;  %v3416_v33 = vld [vmem:[%s5032_s0 + $0x254] sm:$0xf0]  ;;  %v3075_v46 = vor.u32 %v3465_v51, %v3072_v30 }
 0x25e   :  { %3157 = vmatmul.msk.bf16.gmra.mxu1 %vm817_vm1, %v2875_v63  ;;  %v1156_v21 = vpop.f32.mrf.mxu0  ;;  %v2880_v63 = vld [vmem:[%s5032_s0 + $0x268] sm:$0xf0] }
 0x25f   :  { %v4698_v22 = vmax.f32 %v1739_v36, %v1689_v32  ;;  %v1157_v28 = vadd.f32 %v4403_v42, %v1156_v21  ;;  %v2883_v27 = vor.u32 %v3417_v47, %v2880_v63  ;;  %v2871_v32 = vor.u32 %v3416_v33, %v2870_v16  ;;  %v2878_v47 = vld [vmem:[%s5032_s0 + $0x260] sm:$0xf]  ;;  %v3418_v63 = vld [vmem:[%s5032_s0 + $0x264] sm:$0xf0]  ;;  %v3480_v33 = vld [vmem:[%s5034_s3 + $0x10] sm:$0xff] }
 0x260   :  { %v2879_v61 = vor.u32 %v3418_v63, %v2878_v47  ;;  %1905 = vmatpush.bf16.msra.mxu2 %v3480_v33 }
 0x261   :  { %v1458_v23 = vadd.f32 %v1457_v9, %v1157_v28  ;;  %1188 = vmatmul.bf16.gmra.mxu0 %v2863_v0  ;;  %v3419_v28 = vld [vmem:[%s5032_s0 + $0x274] sm:$0xf] }
 0x263   :  { %v1462_v37 = vpop.f32.mrf.mxu1  ;;  %v1665_v34 = vmax.f32 %v1458_v23, 0.0  ;;  %1308 = vmatmul.bf16.gmra.mxu3 %v3071_v49  ;;  %v2888_v23 = vld [vmem:[%s5032_s0 + $0x278] sm:$0xf0] }
 0x264   :  { %v3078_v37 = vld [vmem:[%s5032_s0 + $0x3f0] sm:$0xf] }
 0x265   :  { %v1740_v45 = vmax.f32 %v1640_v24, %v1665_v34  ;;  %v3468_v24 = vld [vmem:[%s5032_s0 + $0x3f4] sm:$0xf0]  ;;  %v3467_v34 = vld [vmem:[%s5032_s0 + $0x3f4] sm:$0xf] }
 0x266   :  { %v1158_v7 = vpop.f32.mrf.mxu0  ;;  %3182 = vmatmul.msk.bf16.gmra.mxu2 %vm817_vm1, %v3075_v46 }
 0x267   :  { %v1765_v9 = vmax.f32 %v1740_v45, %v1690_v3  ;;  %v2891_v3 = vor.u32 %v3419_v28, %v2888_v23  ;;  %v3079_v45 = vor.u32 %v3468_v24, %v3078_v37  ;;  %v1691_v37 = vmax.f32 %v4264_v43, 0.0  ;;  %v3483_v43 = vld [vmem:[%s5034_s3 + $0x28] sm:$0xff] }
 0x269   :  { %v4719_v54 = vmax.f32 %v1765_v9, %v1715_v6  ;;  %v3080_v6 = vld [vmem:[%s5032_s0 + $0x3f8] sm:$0xf0] }
 0x26a   :  { %v3083_v9 = vor.u32 %v3467_v34, %v3080_v6 }
 0x26b   :  { %v1464_v25 = vpop.f32.mrf.mxu1 }
 0x26e   :  { %3158 = vmatmul.msk.bf16.gmra.mxu1 %vm817_vm1, %v2883_v27  ;;  %v1160_v36 = vpop.f32.mrf.mxu0 }
 0x26f   :  { %v3481_v36 = vld [vmem:[%s5034_s3 + $0x18] sm:$0xff] }
 0x270   :  { %1929 = vmatpush.bf16.msra.mxu3 %v3481_v36 }
 0x271   :  { %1193 = vmatmul.bf16.gmra.mxu0 %v2871_v32 }
 0x273   :  { %v1465_v0 = vpop.f32.mrf.mxu1  ;;  %1311 = vmatmul.bf16.gmra.mxu3 %v3079_v45 }
 0x276   :  { %v1161_v21 = vpop.f32.mrf.mxu0  ;;  %3183 = vmatmul.msk.bf16.gmra.mxu2 %vm817_vm1, %v3083_v9  ;;  %v1692_v9 = vmax.f32 %v4283_v14, 0.0  ;;  %v1693_v14 = vmax.f32 %v4296_v40, 0.0 }
 0x27b   :  { %v1467_v7 = vpop.f32.mrf.mxu1 }
 0x27e   :  { %3159 = vmatmul.msk.bf16.gmra.mxu1 %vm817_vm1, %v2891_v3  ;;  %v1163_v35 = vpop.f32.mrf.mxu0 }
 0x281   :  { %1198 = vmatmul.bf16.gmra.mxu0 %v2879_v61 }
 0x283   :  { %v1468_v51 = vpop.f32.mrf.mxu1 }
 0x286   :  { %v1164_v27 = vpop.f32.mrf.mxu0 }
 0x287   :  { %v3482_v27 = vld [vmem:[%s5034_s3 + $0x20] sm:$0xff] }
 0x28b   :  { %v1470_v49 = vpop.f32.mrf.mxu1 }
 0x28e   :  { %v1166_v30 = vpop.f32.mrf.mxu0 }
 0x293   :  { %v1472_v25 = vpop.f32.mrf.mxu1 }
 0x296   :  { %v1167_v16 = vpop.f32.mrf.mxu0 }
 0x29b   :  { %v1475_v46 = vpop.f32.mrf.mxu1 }
 0x29e   :  { %v1169_v32 = vpop.f32.mrf.mxu0 }
 0x29f   :  { %v1170_v0 = vadd.f32 %v4403_v42, %v1169_v32 }
 0x2a1   :  { %v1471_v21 = vadd.f32 %v1470_v49, %v1170_v0 }
 0x2a3   :  { %v1477_v28 = vpop.f32.mrf.mxu1  ;;  %v1666_v23 = vmax.f32 %v1471_v21, 0.0 }
 0x2a5   :  { %v1741_v24 = vmax.f32 %v4324_v31, %v1666_v23 }
 0x2a6   :  { %v1171_v34 = vpop.f32.mrf.mxu0 }
 0x2a7   :  { %v1766_v3 = vmax.f32 %v1741_v24, %v1691_v37  ;;  %v1172_v45 = vadd.f32 %v4403_v42, %v1171_v34 }
 0x2a9   :  { %v1841_v6 = vpack.c.bf16 %v1766_v3, %v1766_v3  ;;  %v1473_v7 = vadd.f32 %v1472_v25, %v1172_v45 }
 0x2ab   :  { %v1480_v47 = vpop.f32.mrf.mxu1  ;;  %v1667_v63 = vmax.f32 %v1473_v7, 0.0  ;;  %3193 = vmatmul.msk.bf16.vlgmr.msrb.gmra.mxu3 %vm1849_vm2, %v1841_v6 }
 0x2ac   :  { %1977 = vmatpush.bf16.msrb.mxu3 %v3483_v43 }
 0x2ad   :  { %v1742_v61 = vmax.f32 %v4351_v50, %v1667_v63  ;;  %v1250_v50 = vadd.f32 %v4403_v42, %v4304_v56  ;;  %v3484_v56 = vld [vmem:[%s5034_s3 + $0x30] sm:$0xff] }
 0x2ae   :  { %v1174_v35 = vpop.f32.mrf.mxu0 }
 0x2af   :  { %v1767_v31 = vmax.f32 %v1742_v61, %v1692_v9  ;;  %v1175_v51 = vadd.f32 %v4403_v42, %v1174_v35  ;;  %v1551_v21 = vadd.f32 %v4313_v55, %v1250_v50  ;;  %v1255_v9 = vadd.f32 %v4403_v42, %v4342_v10  ;;  %v3486_v10 = vld [vmem:[%s5034_s3 + $0x40] sm:$0xff] }
 0x2b1   :  { %v1842_v49 = vpack.c.bf16 %v1767_v31, %v1767_v31  ;;  %v1476_v30 = vadd.f32 %v1475_v46, %v1175_v51  ;;  %v1694_v24 = vmax.f32 %v1551_v21, 0.0 }
 0x2b3   :  { %v1482_v25 = vpop.f32.mrf.mxu1  ;;  %v1668_v16 = vmax.f32 %v1476_v30, 0.0  ;;  %3188 = vmatmul.msk.bf16.vlgmr.msrb.gmra.mxu2 %vm1849_vm2, %v1842_v49 }
 0x2b4   :  { %1953 = vmatpush.bf16.msrb.mxu2 %v3482_v27 }
 0x2b5   :  { %v1743_v33 = vmax.f32 %v4365_v12, %v1668_v16  ;;  %v3485_v12 = vld [vmem:[%s5034_s3 + $0x38] sm:$0xff] }
 0x2b6   :  { %v1176_v32 = vpop.f32.mrf.mxu0 }
 0x2b7   :  { %v1768_v36 = vmax.f32 %v1743_v33, %v1693_v14  ;;  %v1177_v0 = vadd.f32 %v4403_v42, %v1176_v32 }
 0x2b9   :  { %v1478_v23 = vadd.f32 %v1477_v28, %v1177_v0  ;;  %v1888_v6 = vpack.c.bf16 %v1768_v36, %v1768_v36  ;;  %v5062_v0 = vld [vmem:[#allocation4_spill] sm:$0xff] }
 0x2ba   :  { %v1260_v21 = vadd.f32 %v4403_v42, %v5062_v0 }
 0x2bb   :  { %v1485_v46 = vpop.f32.mrf.mxu1  ;;  %v1669_v37 = vmax.f32 %v1478_v23, 0.0 }
 0x2bd   :  { %v1744_v34 = vmax.f32 %v4392_v5, %v1669_v37  ;;  %v1695_v5 = vmax.f32 %v4334_v58, 0.0 }
 0x2be   :  { %v1179_v3 = vpop.f32.mrf.mxu0 }
 0x2bf   :  { %v1769_v45 = vmax.f32 %v1744_v34, %v1694_v24  ;;  %v1180_v40 = vadd.f32 %v4403_v42, %v1179_v3 }
 0x2c1   :  { %v1912_v55 = vpack.c.bf16 %v1769_v45, %v1769_v45  ;;  %v1481_v28 = vadd.f32 %v1480_v47, %v1180_v40  ;;  %v1556_v47 = vadd.f32 %v4354_v29, %v1255_v9  ;;  %v3489_v9 = vld [vmem:[%s5034_s3 + $0x58] sm:$0xff] }
 0x2c3   :  { %v1487_v7 = vpop.f32.mrf.mxu1  ;;  %v1670_v63 = vmax.f32 %v1481_v28, 0.0  ;;  %3198 = vmatmul.msk.bf16.vlgmr.msra.gmra.mxu2 %vm1849_vm2, %v1888_v6  ;;  %3203 = vmatmul.msk.bf16.vlgmr.msra.gmra.mxu3 %vm1849_vm2, %v1912_v55  ;;  %v1696_v30 = vmax.f32 %v1556_v47, 0.0 }
 0x2c4   :  { %2001 = vmatpush.bf16.msra.mxu2 %v3484_v56  ;;  %2025 = vmatpush.bf16.msra.mxu3 %v3485_v12 }
 0x2c5   :  { %v1745_v61 = vmax.f32 %v4411_v20, %v1670_v63  ;;  %v3487_v20 = vld [vmem:[%s5034_s3 + $0x48] sm:$0xff] }
 0x2c6   :  { %v1181_v35 = vpop.f32.mrf.mxu0 }
 0x2c7   :  { %v1770_v43 = vmax.f32 %v1745_v61, %v1695_v5  ;;  %v1182_v31 = vadd.f32 %v4403_v42, %v1181_v35 }
 0x2c9   :  { %v1483_v51 = vadd.f32 %v1482_v25, %v1182_v31  ;;  %v1936_v33 = vpack.c.bf16 %v1770_v43, %v1770_v43 }
 0x2cb   :  { %v1490_v27 = vpop.f32.mrf.mxu1  ;;  %v1671_v49 = vmax.f32 %v1483_v51, 0.0  ;;  %v5065_v51 = vld [vmem:[#allocation7_spill] sm:$0xff] }
 0x2cd   :  { %v1746_v16 = vmax.f32 %v4432_v8, %v1671_v49  ;;  %v1697_v8 = vmax.f32 %v4375_v17, 0.0  ;;  %v1265_v49 = vadd.f32 %v4403_v42, %v5065_v51 }
 0x2ce   :  { %v1184_v14 = vpop.f32.mrf.mxu0 }
 0x2cf   :  { %v1771_v50 = vmax.f32 %v1746_v16, %v1696_v30  ;;  %v1185_v58 = vadd.f32 %v4403_v42, %v1184_v14 }
 0x2d1   :  { %v1960_v29 = vpack.c.bf16 %v1771_v50, %v1771_v50  ;;  %v1486_v25 = vadd.f32 %v1485_v46, %v1185_v58  ;;  %v5063_v46 = vld [vmem:[#allocation5_spill] sm:$0xff] }
 0x2d2   :  { %v1561_v3 = vadd.f32 %v5063_v46, %v1260_v21 }
 0x2d3   :  { %v1492_v32 = vpop.f32.mrf.mxu1  ;;  %v1672_v36 = vmax.f32 %v1486_v25, 0.0  ;;  %3208 = vmatmul.msk.bf16.vlgmr.msrb.gmra.mxu2 %vm1849_vm2, %v1936_v33  ;;  %3213 = vmatmul.msk.bf16.vlgmr.msrb.gmra.mxu3 %vm1849_vm2, %v1960_v29 }
 0x2d4   :  { %2049 = vmatpush.bf16.msrb.mxu2 %v3486_v10  ;;  %2073 = vmatpush.bf16.msrb.mxu3 %v3487_v20  ;;  %v1698_v12 = vmax.f32 %v1561_v3, 0.0  ;;  %v5066_v10 = vld [vmem:[#allocation8_spill] sm:$0xff] }
 0x2d5   :  { %v1747_v23 = vmax.f32 %v4439_v57, %v1672_v36  ;;  %v3488_v57 = vld [vmem:[%s5034_s3 + $0x50] sm:$0xff]  ;;  %v1566_v20 = vadd.f32 %v5066_v10, %v1265_v49 }
 0x2d6   :  { %v1186_v37 = vpop.f32.mrf.mxu0  ;;  %v1306_v28 = vpop.f32.mrf.mxu3 }
 0x2d7   :  { %v1772_v24 = vmax.f32 %v1747_v23, %v1697_v8  ;;  %v1187_v34 = vadd.f32 %v4403_v42, %v1186_v37  ;;  %v1700_v36 = vmax.f32 %v1566_v20, 0.0 }
 0x2d9   :  { %v1488_v45 = vadd.f32 %v1487_v7, %v1187_v34  ;;  %v1607_v5 = vpop.f32.mrf.mxu2  ;;  %v1984_v7 = vpack.c.bf16 %v1772_v24, %v1772_v24  ;;  %v3490_v24 = vld [vmem:[%s5034_s3 + $0x60] sm:$0xff]  ;;  %v3491_v34 = vld [vmem:[%s5034_s3 + $0x68] sm:$0xff] }
 0x2db   :  { %v1495_v40 = vpop.f32.mrf.mxu1  ;;  %v1673_v56 = vmax.f32 %v1488_v45, 0.0 }
 0x2dd   :  { %v1748_v6 = vmax.f32 %v4460_v41, %v1673_v56  ;;  %v5064_v41 = vld [vmem:[#allocation6_spill] sm:$0xff] }
 0x2de   :  { %v1189_v55 = vpop.f32.mrf.mxu0  ;;  %v1699_v47 = vmax.f32 %v5064_v41, 0.0  ;;  %v1307_v14 = vpop.f32.mrf.mxu3 }
 0x2df   :  { %v1773_v17 = vmax.f32 %v1748_v6, %v1698_v12  ;;  %v1190_v63 = vadd.f32 %v4403_v42, %v1189_v55  ;;  %v4847_v12 = vld [vmem:[%s5033_s2] ss:$0 sm:$0xff] }
 0x2e0   :  { %v5068_v6 = vld [vmem:[#allocation10_spill] sm:$0xff] }
 0x2e1   :  { %v2008_v61 = vpack.c.bf16 %v1773_v17, %v1773_v17  ;;  %v1491_v35 = vadd.f32 %v1490_v27, %v1190_v63  ;;  %v1608_v58 = vpop.f32.mrf.mxu2  ;;  %v1270_v55 = vadd.f32 %v4847_v12, %v5068_v6  ;;  %v5070_v14 = vld [vmem:[#allocation14_spill] sm:$0xff] }
 0x2e3   :  { %v1497_v43 = vpop.f32.mrf.mxu1  ;;  %v1674_v31 = vmax.f32 %v1491_v35, 0.0  ;;  %3218 = vmatmul.msk.bf16.vlgmr.msra.gmra.mxu2 %vm1849_vm2, %v1984_v7  ;;  %3223 = vmatmul.msk.bf16.vlgmr.msra.gmra.mxu3 %vm1849_vm2, %v2008_v61  ;;  %v1571_v61 = vadd.f32 %v4463_v15, %v1270_v55 }
 0x2e4   :  { %2097 = vmatpush.bf16.msra.mxu2 %v3488_v57  ;;  %2121 = vmatpush.bf16.msra.mxu3 %v3489_v9  ;;  %v5069_v9 = vld [vmem:[#allocation2_spill] sm:$0xff] }
 0x2e5   :  { %v1749_v30 = vmax.f32 %v4467_v13, %v1674_v31  ;;  %v1205_v7 = vadd.f32 %v4847_v12, %v5069_v9  ;;  %v1702_v51 = vmax.f32 %v1571_v61, 0.0  ;;  %v3494_v61 = vld [vmem:[%s5034_s3 + $0x80] sm:$0xff] }
 0x2e6   :  { %v1191_v16 = vpop.f32.mrf.mxu0  ;;  %v1309_v21 = vpop.f32.mrf.mxu3 }
 0x2e7   :  { %v1774_v50 = vmax.f32 %v1749_v30, %v1699_v47  ;;  %v1192_v27 = vadd.f32 %v4403_v42, %v1191_v16 }
 0x2e9   :  { %v1493_v33 = vadd.f32 %v1492_v32, %v1192_v27  ;;  %v1610_v13 = vpop.f32.mrf.mxu2  ;;  %v2032_v32 = vpack.c.bf16 %v1774_v50, %v1774_v50  ;;  %v1705_v50 = vmax.f32 %v5070_v14, 0.0  ;;  %v5079_v14 = vld [vmem:[#allocation18_spill] sm:$0xff] }
 0x2eb   :  { %v1500_v29 = vpop.f32.mrf.mxu1  ;;  %v1675_v25 = vmax.f32 %v1493_v33, 0.0  ;;  %v5071_v33 = vld [vmem:[#allocation3_spill] sm:$0xff] }
 0x2ec   :  { %v1207_v15 = vadd.f32 %v4847_v12, %v5071_v33 }
 0x2ed   :  { %v1750_v8 = vmax.f32 %v4488_v39, %v1675_v25 }
 0x2ee   :  { %v1194_v0 = vpop.f32.mrf.mxu0  ;;  %v1310_v17 = vpop.f32.mrf.mxu3 }
 0x2ef   :  { %v1775_v23 = vmax.f32 %v1750_v8, %v1700_v36  ;;  %v1195_v37 = vadd.f32 %v4403_v42, %v1194_v0  ;;  %v5067_v42 = vld [vmem:[#allocation9_spill] sm:$0xff] }
 0x2f0   :  { %v1701_v39 = vmax.f32 %v5067_v42, 0.0 }
 0x2f1   :  { %v2056_v46 = vpack.c.bf16 %v1775_v23, %v1775_v23  ;;  %v1496_v3 = vadd.f32 %v1495_v40, %v1195_v37  ;;  %v1611_v57 = vpop.f32.mrf.mxu2  ;;  %v5072_v37 = vld [vmem:[#allocation11_spill] sm:$0xff] }
 0x2f2   :  { %v1703_v13 = vmax.f32 %v5072_v37, 0.0  ;;  %v5076_v57 = vld [vmem:[#allocation19_spill] sm:$0xff] }
 0x2f3   :  { %v1502_v45 = vpop.f32.mrf.mxu1  ;;  %v1676_v56 = vmax.f32 %v1496_v3, 0.0  ;;  %3228 = vmatmul.msk.bf16.vlgmr.msrb.gmra.mxu2 %vm1849_vm2, %v2032_v32  ;;  %3233 = vmatmul.msk.bf16.vlgmr.msrb.gmra.mxu3 %vm1849_vm2, %v2056_v46  ;;  %v5074_v32 = vld [vmem:[#allocation17_spill] sm:$0xff] }
 0x2f4   :  { %2145 = vmatpush.bf16.msrb.mxu2 %v3490_v24  ;;  %2169 = vmatpush.bf16.msrb.mxu3 %v3491_v34  ;;  %v5073_v24 = vld [vmem:[#allocation12_spill] sm:$0xff] }
 0x2f5   :  { %v1751_v40 = vmax.f32 %v4496_v52, %v1676_v56  ;;  %v1275_v34 = vadd.f32 %v4847_v12, %v5073_v24 }
 0x2f6   :  { %v1196_v28 = vpop.f32.mrf.mxu0  ;;  %v1312_v16 = vpop.f32.mrf.mxu3 }
 0x2f7   :  { %v1776_v63 = vmax.f32 %v1751_v40, %v1701_v39  ;;  %v1197_v5 = vadd.f32 %v4847_v12, %v1196_v28  ;;  %v5075_v40 = vld [vmem:[#allocation13_spill] sm:$0xff] }
 0x2f8   :  { %v1576_v28 = vadd.f32 %v5075_v40, %v1275_v34  ;;  %v3497_v16 = vld [vmem:[%s5034_s3 + $0x98] sm:$0xff] }
 0x2f9   :  { %v1498_v35 = vadd.f32 %v1497_v43, %v1197_v5  ;;  %v1613_v20 = vpop.f32.mrf.mxu2  ;;  %v3492_v43 = vld [vmem:[%s5034_s3 + $0x70] sm:$0xff]  ;;  %v2080_v25 = vpack.c.bf16 %v1776_v63, %v1776_v63 }
 0x2fa   :  { %v1704_v5 = vmax.f32 %v1576_v28, 0.0 }
 0x2fb   :  { %v1505_v31 = vpop.f32.mrf.mxu1  ;;  %v1677_v41 = vmax.f32 %v1498_v35, 0.0  ;;  %v3495_v35 = vld [vmem:[%s5034_s3 + $0x88] sm:$0xff] }
 0x2fc   :  { %v1506_v47 = vadd.f32 %v1505_v31, %v1205_v7 }
 0x2fd   :  { %v1752_v49 = vmax.f32 %v4516_v60, %v1677_v41  ;;  %v3493_v60 = vld [vmem:[%s5034_s3 + $0x78] sm:$0xff]  ;;  %v5077_v41 = vld [vmem:[#allocation15_spill] sm:$0xff] }
 0x2fe   :  { %v1680_v30 = vmax.f32 %v1506_v47, 0.0  ;;  %v1199_v52 = vpop.f32.mrf.mxu0  ;;  %v1313_v42 = vpop.f32.mrf.mxu3  ;;  %v1280_v47 = vadd.f32 %v4847_v12, %v5077_v41  ;;  %v2368_v41 = vpack.c.bf16 %v4683_v44, %v4683_v44 }
 0x2ff   :  { %v1777_v27 = vmax.f32 %v1752_v49, %v1702_v51  ;;  %v1200_v10 = vadd.f32 %v4847_v12, %v1199_v52  ;;  %v3496_v52 = vld [vmem:[%s5034_s3 + $0x90] sm:$0xff]  ;;  %v1295_v42 = vadd.f32 %v4847_v12, %v4596_v38  ;;  %v3502_v38 = vld [vmem:[%s5034_s3 + $0xc0] sm:$0xff] }
 0x300   :  { %v1755_v58 = vmax.f32 %v4550_v18, %v1680_v30 }
 0x301   :  { %v2104_v36 = vpack.c.bf16 %v1777_v27, %v1777_v27  ;;  %v1501_v0 = vadd.f32 %v1500_v29, %v1200_v10  ;;  %v1614_v55 = vpop.f32.mrf.mxu2  ;;  %v5080_v10 = vld [vmem:[#allocation20_spill] sm:$0xff] }
 0x302   :  { %v1780_v8 = vmax.f32 %v1755_v58, %v1705_v50  ;;  %v1285_v50 = vadd.f32 %v4847_v12, %v5079_v14 }
 0x303   :  { %v1507_v21 = vpop.f32.mrf.mxu1  ;;  %v1678_v18 = vmax.f32 %v1501_v0, 0.0  ;;  %3238 = vmatmul.msk.bf16.vlgmr.msra.gmra.mxu2 %vm1849_vm2, %v2080_v25  ;;  %3243 = vmatmul.msk.bf16.vlgmr.msra.gmra.mxu3 %vm1849_vm2, %v2104_v36  ;;  %v3499_v25 = vld [vmem:[%s5034_s3 + $0xa8] sm:$0xff]  ;;  %v2224_v36 = vpack.c.bf16 %v4588_v19, %v4588_v19  ;;  %v5081_v0 = vld [vmem:[#allocation21_spill] sm:$0xff]  ;;  %v3500_v19 = vld [vmem:[%s5034_s3 + $0xb0] sm:$0xff] }
 0x304   :  { %v1508_v23 = vadd.f32 %v1507_v21, %v1207_v15  ;;  %2193 = vmatpush.bf16.msra.mxu2 %v3492_v43  ;;  %2217 = vmatpush.bf16.msra.mxu3 %v3493_v60  ;;  %v2176_v27 = vpack.c.bf16 %v1780_v8, %v1780_v8  ;;  %v1586_v20 = vadd.f32 %v5080_v10, %v1285_v50  ;;  %v3498_v60 = vld [vmem:[%s5034_s3 + $0xa0] sm:$0xff] }
 0x305   :  { %v1753_v46 = vmax.f32 %v5074_v32, %v1678_v18  ;;  %v1290_v21 = vadd.f32 %v4847_v12, %v5081_v0 }
 0x306   :  { %v1681_v3 = vmax.f32 %v1508_v23, 0.0  ;;  %v1201_v56 = vpop.f32.mrf.mxu0  ;;  %v1708_v33 = vmax.f32 %v1586_v20, 0.0 }
 0x307   :  { %v1778_v29 = vmax.f32 %v1753_v46, %v1703_v13  ;;  %v1202_v6 = vadd.f32 %v4847_v12, %v1201_v56  ;;  %v3501_v46 = vld [vmem:[%s5034_s3 + $0xb8] sm:$0xff] }
 0x308   :  { %v1756_v39 = vmax.f32 %v4573_v48, %v1681_v3  ;;  %v1783_v15 = vmax.f32 %v4603_v4, %v1708_v33  ;;  %v5082_v4 = vld [vmem:[#allocation22_spill] sm:$0xff]  ;;  %v2272_v3 = vpack.c.bf16 %v4619_v11, %v4619_v11 }
 0x309   :  { %v1503_v17 = vadd.f32 %v1502_v45, %v1202_v6  ;;  %v2128_v48 = vpack.c.bf16 %v1778_v29, %v1778_v29  ;;  %v5078_v45 = vld [vmem:[#allocation16_spill] sm:$0xff]  ;;  %v1591_v18 = vadd.f32 %v5082_v4, %v1290_v21 }
 0x30a   :  { %v1581_v51 = vadd.f32 %v5078_v45, %v1280_v47  ;;  %v2248_v8 = vpack.c.bf16 %v1783_v15, %v1783_v15 }
 0x30b   :  { %v1679_v63 = vmax.f32 %v1503_v17, 0.0  ;;  %v1710_v24 = vmax.f32 %v1591_v18, 0.0 }
 0x30c   :  { %v1706_v49 = vmax.f32 %v1581_v51, 0.0 }
 0x30d   :  { %v1754_v9 = vmax.f32 %v5076_v57, %v1679_v63  ;;  %v1785_v34 = vmax.f32 %v4634_v26, %v1710_v24  ;;  %v1596_v26 = vadd.f32 %v4601_v53, %v1295_v42  ;;  %v2320_v63 = vpack.c.bf16 %v4650_v59, %v4650_v59  ;;  %v3506_v42 = vld [vmem:[%s5037_s5 + $0x18] sm:$0xff] }
 0x30e   :  { %v1781_v30 = vmax.f32 %v1756_v39, %v1706_v49  ;;  %v1300_v53 = vadd.f32 %v4847_v12, %v4627_v1 }
 0x30f   :  { %v1779_v7 = vmax.f32 %v1754_v9, %v1704_v5  ;;  %v2296_v56 = vpack.c.bf16 %v1785_v34, %v1785_v34  ;;  %v1712_v55 = vmax.f32 %v1596_v26, 0.0 }
 0x310   :  { %v2200_v58 = vpack.c.bf16 %v1781_v30, %v1781_v30  ;;  %v2416_v30 = vpack.c.bf16 %v4719_v54, %v4719_v54 }
 0x311   :  { %v2152_v31 = vpack.c.bf16 %v1779_v7, %v1779_v7  ;;  %v1787_v28 = vmax.f32 %v4661_v2, %v1712_v55  ;;  %v1601_v2 = vadd.f32 %v4632_v62, %v1300_v53  ;;  %v2541_v53 = vld [vmem:[%s5038_s7 + $0x70] sm:$0xff] }
 0x313   :  { %3248 = vmatmul.msk.bf16.vlgmr.msrb.gmra.mxu2 %vm1849_vm2, %v2128_v48  ;;  %3253 = vmatmul.msk.bf16.vlgmr.msrb.gmra.mxu3 %vm1849_vm2, %v2152_v31  ;;  %v2344_v5 = vpack.c.bf16 %v1787_v28, %v1787_v28  ;;  %v3503_v28 = vld [vmem:[%s5037_s5] sm:$0xff] }
 0x314   :  { %2241 = vmatpush.bf16.msrb.mxu2 %v3494_v61  ;;  %2265 = vmatpush.bf16.msrb.mxu3 %v3495_v35  ;;  %v1714_v61 = vmax.f32 %v1601_v2, 0.0 }
 0x316   :  { %v1789_v48 = vmax.f32 %v4698_v22, %v1714_v61  ;;  %v2538_v61 = vld [vmem:[%s5038_s7 + $0x58] sm:$0xff] }
 0x318   :  { %v2392_v1 = vpack.c.bf16 %v1789_v48, %v1789_v48 }
 0x323   :  { %3258 = vmatmul.msk.bf16.vlgmr.msra.gmra.mxu2 %vm1849_vm2, %v2176_v27  ;;  %3263 = vmatmul.msk.bf16.vlgmr.msra.gmra.mxu3 %vm1849_vm2, %v2200_v58 }
 0x324   :  { %2289 = vmatpush.bf16.msra.mxu2 %v3496_v52  ;;  %2313 = vmatpush.bf16.msra.mxu3 %v3497_v16 }
 0x32e   :  { %v1884_v43 = vpop.f32.mrf.mxu3 }
 0x333   :  { %3268 = vmatmul.msk.bf16.vlgmr.msrb.gmra.mxu2 %vm1849_vm2, %v2224_v36  ;;  %3273 = vmatmul.msk.bf16.vlgmr.msrb.gmra.mxu3 %vm1849_vm2, %v2248_v8 }
 0x334   :  { %2337 = vmatpush.bf16.msrb.mxu2 %v3498_v60  ;;  %2361 = vmatpush.bf16.msrb.mxu3 %v3499_v25 }
 0x336   :  { %v1862_v23 = vpop.f32.mrf.mxu2  ;;  %v1886_v37 = vpop.f32.mrf.mxu3 }
 0x337   :  { %v1885_v13 = vadd.f32 %v1884_v43, %v1862_v23 }
 0x33e   :  { %v1864_v32 = vpop.f32.mrf.mxu2 }
 0x33f   :  { %v3509_v32 = vld [vmem:[%s5037_s5 + $0x30] sm:$0xff] }
 0x343   :  { %3278 = vmatmul.msk.bf16.vlgmr.msra.gmra.mxu2 %vm1849_vm2, %v2272_v3  ;;  %3283 = vmatmul.msk.bf16.vlgmr.msra.gmra.mxu3 %vm1849_vm2, %v2296_v56  ;;  %v3507_v56 = vld [vmem:[%s5037_s5 + $0x20] sm:$0xff] }
 0x344   :  { %2385 = vmatpush.bf16.msra.mxu2 %v3500_v19  ;;  %2409 = vmatpush.bf16.msra.mxu3 %v3501_v46  ;;  %v3508_v19 = vld [vmem:[%s5037_s5 + $0x28] sm:$0xff] }
 0x346   :  { %v1907_v29 = vpop.f32.mrf.mxu2  ;;  %v1931_v39 = vpop.f32.mrf.mxu3 }
 0x347   :  { %v1911_v6 = vadd.f32 %v1907_v29, %v1885_v13  ;;  %v3510_v13 = vld [vmem:[%s5037_s5 + $0x38] sm:$0xff] }
 0x349   :  { %v1935_v40 = vadd.f32 %v1931_v39, %v1911_v6  ;;  %v3505_v39 = vld [vmem:[%s5037_s5 + $0x10] sm:$0xff]  ;;  %v3504_v6 = vld [vmem:[%s5037_s5 + $0x8] sm:$0xff] }
 0x34e   :  { %v1909_v11 = vpop.f32.mrf.mxu2  ;;  %v1933_v17 = vpop.f32.mrf.mxu3 }
 0x353   :  { %3288 = vmatmul.msk.bf16.vlgmr.msrb.gmra.mxu2 %vm1849_vm2, %v2320_v63  ;;  %3293 = vmatmul.msk.bf16.vlgmr.msrb.gmra.mxu3 %vm1849_vm2, %v2344_v5  ;;  %v2542_v5 = vld [vmem:[%s5038_s7 + $0x78] sm:$0xff] }
 0x354   :  { %2433 = vmatpush.bf16.msrb.mxu2 %v3502_v38  ;;  %2514 = vmatpush.bf16.msrb.mxu3 %v3510_v13 }
 0x356   :  { %v1955_v57 = vpop.f32.mrf.mxu2  ;;  %v1979_v9 = vpop.f32.mrf.mxu3 }
 0x357   :  { %v1959_v7 = vadd.f32 %v1955_v57, %v1935_v40  ;;  %v2540_v57 = vld [vmem:[%s5038_s7 + $0x68] sm:$0xff] }
 0x358   :  { %2515 = vmatpush.bf16.msrb.mxu3 %v3509_v32 }
 0x359   :  { %v1983_v35 = vadd.f32 %v1979_v9, %v1959_v7  ;;  %v2539_v9 = vld [vmem:[%s5038_s7 + $0x60] sm:$0xff] }
 0x35c   :  { %2516 = vmatpush.bf16.msrb.mxu3 %v3508_v19 }
 0x35e   :  { %v1957_v31 = vpop.f32.mrf.mxu2  ;;  %v1981_v59 = vpop.f32.mrf.mxu3 }
 0x35f   :  { %v2537_v59 = vld [vmem:[%s5038_s7 + $0x50] sm:$0xff] }
 0x360   :  { %2517 = vmatpush.bf16.msrb.mxu3 %v3507_v56 }
 0x363   :  { %3298 = vmatmul.msk.bf16.vlgmr.msra.gmra.mxu2 %vm1849_vm2, %v2368_v41  ;;  %3303 = vmatmul.msk.bf16.vlgmr.msra.gmra.mxu3 %vm1849_vm2, %v2392_v1  ;;  %v2536_v41 = vld [vmem:[%s5038_s7 + $0x48] sm:$0xff] }
 0x364   :  { %2518 = vmatpush.bf16.msrb.mxu3 %v3506_v42  ;;  %2547 = vmatpush.msra.mxu2 %v2542_v5 }
 0x366   :  { %v2003_v12 = vpop.f32.mrf.mxu2  ;;  %v2027_v47 = vpop.f32.mrf.mxu3  ;;  %2548 = vmatpush.msra.mxu2 %v2541_v53 }
 0x367   :  { %v2007_v62 = vadd.f32 %v2003_v12, %v1983_v35  ;;  %v2535_v12 = vld [vmem:[%s5038_s7 + $0x40] sm:$0xff] }
 0x368   :  { %2519 = vmatpush.bf16.msrb.mxu3 %v3505_v39  ;;  %2549 = vmatpush.msra.mxu2 %v2540_v57 }
 0x369   :  { %v2031_v45 = vadd.f32 %v2027_v47, %v2007_v62  ;;  %v2534_v62 = vld [vmem:[%s5038_s7 + $0x38] sm:$0xff] }
 0x36a   :  { %2550 = vmatpush.msra.mxu2 %v2539_v9 }
 0x36c   :  { %2520 = vmatpush.bf16.msrb.mxu3 %v3504_v6  ;;  %2551 = vmatpush.msra.mxu2 %v2538_v61 }
 0x36e   :  { %v2005_v51 = vpop.f32.mrf.mxu2  ;;  %v2029_v49 = vpop.f32.mrf.mxu3  ;;  %2552 = vmatpush.msra.mxu2 %v2537_v59 }
 0x36f   :  { %v2533_v49 = vld [vmem:[%s5038_s7 + $0x30] sm:$0xff] }
 0x370   :  { %2521 = vmatpush.bf16.msrb.mxu3 %v3503_v28  ;;  %2553 = vmatpush.msra.mxu2 %v2536_v41 }
 0x372   :  { %2554 = vmatpush.msra.mxu2 %v2535_v12 }
 0x373   :  { %3308 = vmatmul.msk.bf16.vlgmr.msrb.gmra.mxu2 %vm1849_vm2, %v2416_v30 }
 0x374   :  { %2555 = vmatpush.msra.mxu2 %v2534_v62 }
 0x376   :  { %v2051_v22 = vpop.f32.mrf.mxu2  ;;  %v2075_v52 = vpop.f32.mrf.mxu3  ;;  %2556 = vmatpush.msra.mxu2 %v2533_v49 }
 0x377   :  { %v2055_v16 = vadd.f32 %v2051_v22, %v2031_v45  ;;  %v2532_v22 = vld [vmem:[%s5038_s7 + $0x28] sm:$0xff] }
 0x378   :  { %2557 = vmatpush.msra.mxu2 %v2532_v22 }
 0x379   :  { %v2079_v44 = vadd.f32 %v2075_v52, %v2055_v16  ;;  %v2531_v16 = vld [vmem:[%s5038_s7 + $0x20] sm:$0xff] }
 0x37a   :  { %2558 = vmatpush.msra.mxu2 %v2531_v16 }
 0x37e   :  { %v2053_v14 = vpop.f32.mrf.mxu2  ;;  %v2077_v50 = vpop.f32.mrf.mxu3 }
 0x37f   :  { %v3522_v50 = vld [vmem:[%s5035_s4] ss:$0 sm:$0xff] }
 0x386   :  { %v2099_v27 = vpop.f32.mrf.mxu2  ;;  %v2123_v58 = vpop.f32.mrf.mxu3 }
 0x387   :  { %v2103_v10 = vadd.f32 %v2099_v27, %v2079_v44  ;;  %v2530_v44 = vld [vmem:[%s5038_s7 + $0x18] sm:$0xff] }
 0x388   :  { %2559 = vmatpush.msra.mxu2 %v2530_v44 }
 0x389   :  { %v2127_v20 = vadd.f32 %v2123_v58, %v2103_v10  ;;  %v2529_v58 = vld [vmem:[%s5038_s7 + $0x10] sm:$0xff] }
 0x38a   :  { %2560 = vmatpush.msra.mxu2 %v2529_v58 }
 0x38e   :  { %v2101_v33 = vpop.f32.mrf.mxu2  ;;  %v2125_v15 = vpop.f32.mrf.mxu3 }
 0x396   :  { %v2147_v43 = vpop.f32.mrf.mxu2  ;;  %v2171_v60 = vpop.f32.mrf.mxu3 }
 0x397   :  { %v2151_v25 = vadd.f32 %v2147_v43, %v2127_v20  ;;  %v2528_v43 = vld [vmem:[%s5038_s7 + $0x8] sm:$0xff] }
 0x398   :  { %2561 = vmatpush.msra.mxu2 %v2528_v43 }
 0x399   :  { %v2175_v36 = vadd.f32 %v2171_v60, %v2151_v25  ;;  %v2527_v60 = vld [vmem:[%s5038_s7] sm:$0xff] }
 0x39a   :  { %2562 = vmatpush.msra.mxu2 %v2527_v60  ;;  %v3523_v25 = vld [vmem:[%s5036_s6] ss:$0 sm:$0xff] }
 0x39e   :  { %v2149_v8 = vpop.f32.mrf.mxu2  ;;  %v2173_v54 = vpop.f32.mrf.mxu3 }
 0x3a6   :  { %v2195_v0 = vpop.f32.mrf.mxu2  ;;  %v2219_v21 = vpop.f32.mrf.mxu3 }
 0x3a7   :  { %v2199_v11 = vadd.f32 %v2195_v0, %v2175_v36  ;;  %v3524_v0 = vld [vmem:[%s5039_s8] ss:$0 sm:$0xff] }
 0x3a9   :  { %v2223_v17 = vadd.f32 %v2219_v21, %v2199_v11 }
 0x3ae   :  { %v2197_v4 = vpop.f32.mrf.mxu2  ;;  %v2221_v18 = vpop.f32.mrf.mxu3 }
 0x3b6   :  { %v2243_v23 = vpop.f32.mrf.mxu2  ;;  %v2267_v37 = vpop.f32.mrf.mxu3 }
 0x3b7   :  { %v2247_v2 = vadd.f32 %v2243_v23, %v2223_v17 }
 0x3b9   :  { %v2271_v7 = vadd.f32 %v2267_v37, %v2247_v2 }
 0x3be   :  { %v2245_v24 = vpop.f32.mrf.mxu2  ;;  %v2269_v34 = vpop.f32.mrf.mxu3 }
 0x3c6   :  { %v2291_v46 = vpop.f32.mrf.mxu2  ;;  %v2315_v3 = vpop.f32.mrf.mxu3 }
 0x3c7   :  { %v2295_v35 = vadd.f32 %v2291_v46, %v2271_v7 }
 0x3c9   :  { %v2319_v1 = vadd.f32 %v2315_v3, %v2295_v35 }
 0x3ce   :  { %v2293_v26 = vpop.f32.mrf.mxu2  ;;  %v2317_v29 = vpop.f32.mrf.mxu3 }
 0x3d6   :  { %v2339_v55 = vpop.f32.mrf.mxu2  ;;  %v2363_v40 = vpop.f32.mrf.mxu3 }
 0x3d7   :  { %v2343_v47 = vadd.f32 %v2339_v55, %v2319_v1 }
 0x3d9   :  { %v2367_v30 = vadd.f32 %v2363_v40, %v2343_v47 }
 0x3de   :  { %v2341_v38 = vpop.f32.mrf.mxu2  ;;  %v2365_v63 = vpop.f32.mrf.mxu3 }
 0x3e6   :  { %v2387_v48 = vpop.f32.mrf.mxu2  ;;  %v2411_v31 = vpop.f32.mrf.mxu3 }
 0x3e7   :  { %v2391_v52 = vadd.f32 %v2387_v48, %v2367_v30 }
 0x3e9   :  { %v2415_v14 = vadd.f32 %v2411_v31, %v2391_v52 }
 0x3ee   :  { %v2389_v45 = vpop.f32.mrf.mxu2  ;;  %v2413_v51 = vpop.f32.mrf.mxu3 }
 0x3f6   :  { %v2435_v27 = vpop.f32.mrf.mxu2 }
 0x3f7   :  { %v2439_v10 = vadd.f32 %v2435_v27, %v2415_v14 }
 0x3f9   :  { %v2444_v20 = vadd.f32 %v3522_v50, %v2439_v10 }
 0x3fb   :  { %v2445_v33 = vpack.c.bf16 %v2444_v20, %v2444_v20 }
 0x3fd   :  { %2522 = vmatmul.bf16.vlgmr.msrb.gmra.mxu3 %v2445_v33 }
 0x3fe   :  { %v2437_v15 = vpop.f32.mrf.mxu2 }
 0x480   :  { %v2523_v36 = vpop.f32.mrf.mxu3 }
 0x481   :  { %v2524_v8 = vadd.f32 %v3523_v25, %v2523_v36 }
 0x483   :  { %2563 = vmatmul.f32.vlgmr.msra.gmra.mxu2 %v2524_v8 }
 0x488   :  { %v2525_v54 = vpop.f32.mrf.mxu3 }
 0x506   :  { %v2564_v21 = vpop.f32.mrf.mxu2 }
 0x507   :  { %v2565_v4 = vadd.f32 %v3524_v0, %v2564_v21 }
 0x509   :  { %2567 = vst [vmem:[%s5040_s9] sm:$0xff] %v2565_v4 }

</bundles_post_ra>
